<compile_context>
chip_gen: v5e
topology: v5e:2x2
jax: 0.10.0
libtpu: 0.0.40
codegen_flags: <defaults>
</compile_context>

<pallas_src>
import functools
import math

import jax
import jax.numpy as jnp
from jax import lax
from jax.experimental import pallas as pl
from jax.experimental.pallas import tpu as pltpu


# --------------------- packed per-layer vector slab layout --------------------

# Encoder: bq bk bv bo | g1 bn1 | b2 | g2 bn2
ENC_BQ, ENC_BK, ENC_BV, ENC_BO, ENC_G1, ENC_BN1, ENC_B2, ENC_G2, ENC_BN2 = range(9)
ENC_NV = 9

# Decoder: sbq sbk sbv sbo | cbq cbk cbv cbo | g1 bn1 g2 bn2 g3 bn3 | b2
(DEC_SBQ, DEC_SBK, DEC_SBV, DEC_SBO,
 DEC_CBQ, DEC_CBK, DEC_CBV, DEC_CBO,
 DEC_G1, DEC_BN1, DEC_G2, DEC_BN2, DEC_G3, DEC_BN3, DEC_B2) = range(15)
DEC_NV = 15


# ----------------------------- in-kernel helpers -----------------------------

def _dot(x, w):
    """MXU matmul: bf16 operands, f32 accumulation."""
    return jnp.dot(x.astype(w.dtype), w, preferred_element_type=jnp.float32)


def _dot_t(x, w_t):
    """x @ w_t.T without materializing a transpose (contract the last dims)."""
    return lax.dot_general(x.astype(w_t.dtype), w_t, (((1,), (1,)), ((), ())),
                           preferred_element_type=jnp.float32)


def _layernorm(x, gamma, beta, eps=1e-5):
    mu = jnp.mean(x, axis=-1, keepdims=True)
    xc = x - mu
    var = jnp.mean(xc * xc, axis=-1, keepdims=True)
    return xc * lax.rsqrt(var + eps) * gamma + beta


def _head_masks(d_model, nhead):
    hd = d_model // nhead
    col = lax.broadcasted_iota(jnp.int32, (1, d_model), 1)
    return tuple(((col >= h * hd) & (col < (h + 1) * hd)).astype(jnp.float32)
                 for h in range(nhead))


def _attend(q, k, v, masks, scale):
    """Multi-head attention core with disjoint per-head column masks.

    Masked columns contribute zero to both the score and the value
    contractions, so each iteration computes exactly one head; summing over
    heads yields the concatenated multi-head output.  All MXU operands are
    bf16 (native single-pass path), accumulation and softmax stay f32.
    """
    out = jnp.zeros(q.shape, jnp.float32)
    # TODO(synk): a batched (nhead, N, hd) dot_general would fuse the 8 softmax
    # chains, but the hd=8 lane-splitting reshape is risky to lower; attention
    # is not the bottleneck for this weight-DMA-bound workload.
    for m in masks:
        qm = (q * m).astype(jnp.bfloat16)
        km = (k * m).astype(jnp.bfloat16)
        s = lax.dot_general(qm, km, (((1,), (1,)), ((), ())),
                            preferred_element_type=jnp.float32) * scale
        s = s - jnp.max(s, axis=-1, keepdims=True)
        p = jnp.exp(s)
        p = p * pl.reciprocal(jnp.sum(p, axis=-1, keepdims=True), approx=True)
        out = out + jnp.dot(p.astype(jnp.bfloat16), (v * m).astype(jnp.bfloat16),
                            preferred_element_type=jnp.float32)
    return out


def _encoder_layer(x, masks, scale, d, wqkv, wo, w1, w2t, b1, vec):
    # --- self attention (fused QKV projection) ---
    qkv = _dot(x, wqkv)                                   # (N, 3D) f32
    q = qkv[:, :d] + vec[ENC_BQ:ENC_BQ + 1]
    k = qkv[:, d:2 * d] + vec[ENC_BK:ENC_BK + 1]
    v = qkv[:, 2 * d:] + vec[ENC_BV:ENC_BV + 1]
    a = _dot(_attend(q, k, v, masks, scale), wo) + vec[ENC_BO:ENC_BO + 1]
    x = _layernorm(x + a, vec[ENC_G1:ENC_G1 + 1], vec[ENC_BN1:ENC_BN1 + 1])
    # --- feed-forward (ReLU) ---
    h = jnp.maximum(_dot(x, w1) + b1, 0.0)
    f = _dot_t(h, w2t) + vec[ENC_B2:ENC_B2 + 1]
    return _layernorm(x + f, vec[ENC_G2:ENC_G2 + 1], vec[ENC_BN2:ENC_BN2 + 1])


def _decoder_layer(x, mem, masks, scale, d,
                   swqkv, swo, cwq, cwkv, cwo, w1, w2t, b1, vec):
    # --- self attention ---
    qkv = _dot(x, swqkv)
    q = qkv[:, :d] + vec[DEC_SBQ:DEC_SBQ + 1]
    k = qkv[:, d:2 * d] + vec[DEC_SBK:DEC_SBK + 1]
    v = qkv[:, 2 * d:] + vec[DEC_SBV:DEC_SBV + 1]
    a = _dot(_attend(q, k, v, masks, scale), swo) + vec[DEC_SBO:DEC_SBO + 1]
    x = _layernorm(x + a, vec[DEC_G1:DEC_G1 + 1], vec[DEC_BN1:DEC_BN1 + 1])
    # --- cross attention (fused K/V projection of the encoder memory) ---
    q = _dot(x, cwq) + vec[DEC_CBQ:DEC_CBQ + 1]
    kv = _dot(mem, cwkv)
    k = kv[:, :d] + vec[DEC_CBK:DEC_CBK + 1]
    v = kv[:, d:] + vec[DEC_CBV:DEC_CBV + 1]
    a = _dot(_attend(q, k, v, masks, scale), cwo) + vec[DEC_CBO:DEC_CBO + 1]
    x = _layernorm(x + a, vec[DEC_G2:DEC_G2 + 1], vec[DEC_BN2:DEC_BN2 + 1])
    # --- feed-forward ---
    h = jnp.maximum(_dot(x, w1) + b1, 0.0)
    f = _dot_t(h, w2t) + vec[DEC_B2:DEC_B2 + 1]
    return _layernorm(x + f, vec[DEC_G3:DEC_G3 + 1], vec[DEC_BN3:DEC_BN3 + 1])


# --------------------------------- kernels -----------------------------------

def encoder_stack_kernel(nhead, num_layers,
                         x_ref, wqkv_ref, wo_ref, w1_ref, w2t_ref, b1_ref, vec_ref,
                         o_ref):
    d_model = x_ref.shape[-1]
    masks = _head_masks(d_model, nhead)            # hoisted: built once per call
    scale = 1.0 / math.sqrt(d_model // nhead)

    def layer(l, x):
        return _encoder_layer(x, masks, scale, d_model,
                              wqkv_ref[l], wo_ref[l], w1_ref[l], w2t_ref[l],
                              b1_ref[l], vec_ref[l])

    o_ref[...] = lax.fori_loop(0, num_layers, layer, x_ref[...])


def decoder_stack_kernel(nhead, num_layers,
                         x_ref, mem_ref,
                         swqkv_ref, swo_ref, cwq_ref, cwkv_ref, cwo_ref,
                         w1_ref, w2t_ref, b1_ref, vec_ref,
                         o_ref):
    d_model = x_ref.shape[-1]
    masks = _head_masks(d_model, nhead)
    scale = 1.0 / math.sqrt(d_model // nhead)
    mem = mem_ref[...]                             # loop-invariant: load once

    def layer(l, x):
        return _decoder_layer(x, mem, masks, scale, d_model,
                              swqkv_ref[l], swo_ref[l],
                              cwq_ref[l], cwkv_ref[l], cwo_ref[l],
                              w1_ref[l], w2t_ref[l], b1_ref[l], vec_ref[l])

    o_ref[...] = lax.fori_loop(0, num_layers, layer, x_ref[...])


# --------------------------------- wrappers -----------------------------------

_ENC_KEYS = ("wqkv", "wo", "w1", "w2t", "b1", "vec")
_DEC_KEYS = ("swqkv", "swo", "cwq", "cwkv", "cwo", "w1", "w2t", "b1", "vec")


def _act_spec(n, d):
    # (stream, N, D): one stream's activation block per grid step.
    return pl.BlockSpec((None, n, d), lambda s: (s, 0, 0))


def _resident_spec(arr):
    # Whole stacked (L, ...) weight as a single VMEM block with a constant
    # block index: fetched from HBM once per pallas_call (per TC on v7x).
    zeros = (0,) * arr.ndim
    return pl.BlockSpec(arr.shape, lambda s: zeros)


def _cost_estimate(n, d, dff, nhead, num_layers, n_cross):
    streams = 2
    self_attn = 2 * n * d * (3 * d) + 2 * n * d * d + nhead * 4 * n * n * d
    cross_attn = (2 * n * d * d + 2 * n * d * (2 * d) + 2 * n * d * d
                  + nhead * 4 * n * n * d)
    ffn = 4 * n * d * dff
    flops = streams * num_layers * (self_attn + n_cross * cross_attn + ffn)
    transcendentals = streams * num_layers * (1 + n_cross) * nhead * n * n
    w_bytes = num_layers * (
        (4 * d * d + n_cross * 4 * d * d + 2 * d * dff) * 2      # bf16 matrices
        + (dff + (9 + 6 * n_cross) * d) * 4)                     # f32 slabs
    bytes_accessed = w_bytes + streams * (2 + n_cross) * n * d * 4
    return pl.CostEstimate(flops=flops, transcendentals=transcendentals,
                           bytes_accessed=bytes_accessed)


def _compiler_params():
    return pltpu.CompilerParams(
        dimension_semantics=("parallel",),       # streams -> both TCs on v7x
        vmem_limit_bytes=32 * 1024 * 1024)       # ~8 MiB working set + headroom


def encoder_stack(x, params, nhead):
    streams, n, d = x.shape
    num_layers = params["wqkv"].shape[0]
    dff = params["w1"].shape[-1]
    args = [x] + [params[k] for k in _ENC_KEYS]
    in_specs = [_act_spec(n, d)] + [_resident_spec(params[k]) for k in _ENC_KEYS]
    return pl.pallas_call(
        functools.partial(encoder_stack_kernel, nhead, num_layers),
        grid=(streams,),
        in_specs=in_specs,
        out_specs=_act_spec(n, d),
        out_shape=jax.ShapeDtypeStruct((streams, n, d), jnp.float32),
        compiler_params=_compiler_params(),
        cost_estimate=_cost_estimate(n, d, dff, nhead, num_layers, 0),
    )(*args)


def decoder_stack(x, memory, params, nhead):
    streams, n, d = x.shape
    num_layers = params["swqkv"].shape[0]
    dff = params["w1"].shape[-1]
    args = [x, memory] + [params[k] for k in _DEC_KEYS]
    in_specs = ([_act_spec(n, d), _act_spec(n, d)] +
                [_resident_spec(params[k]) for k in _DEC_KEYS])
    return pl.pallas_call(
        functools.partial(decoder_stack_kernel, nhead, num_layers),
        grid=(streams,),
        in_specs=in_specs,
        out_specs=_act_spec(n, d),
        out_shape=jax.ShapeDtypeStruct((streams, n, d), jnp.float32),
        compiler_params=_compiler_params(),
        cost_estimate=_cost_estimate(n, d, dff, nhead, num_layers, 1),
    )(*args)


def swarmalator_forward(positions, orientations, enc_params, dec_params, nhead):
    src = jnp.stack([positions, orientations], axis=0)    # (2, N, D)
    memory = encoder_stack(src, enc_params, nhead)        # per-stream encode
    out = decoder_stack(src, memory, dec_params, nhead)   # per-stream decode
    return out[0], out[1]


# -------------------------- deterministic parameters --------------------------

def _dense(key, shape, scale=0.05):
    # Weight matrices in bf16 (MXU operand dtype, half the HBM->VMEM bytes).
    return (jax.random.normal(key, shape, jnp.float32) * scale).astype(jnp.bfloat16)


def _stack(arr, num_layers):
    # nn.TransformerEncoder/Decoder deep-copy one layer, so every layer starts
    # with identical weights -> replicate along a leading L axis.
    return jnp.broadcast_to(arr, (num_layers,) + arr.shape)


def init_encoder_params(key, d_model, dff, num_layers):
    ks = jax.random.split(key, 4)
    vec = jnp.zeros((ENC_NV, d_model), jnp.float32)
    vec = vec.at[ENC_G1].set(1.0).at[ENC_G2].set(1.0)     # layernorm gains
    p = {
        "wqkv": _dense(ks[0], (d_model, 3 * d_model)),    # fused Q/K/V
        "wo":   _dense(ks[1], (d_model, d_model)),
        "w1":   _dense(ks[2], (d_model, dff)),
        "w2t":  _dense(ks[3], (d_model, dff)),            # W2 stored transposed
        "b1":   jnp.zeros((1, dff), jnp.float32),
        "vec":  vec,                                      # packed bias/norm slab
    }
    return {k: _stack(v, num_layers) for k, v in p.items()}


def init_decoder_params(key, d_model, dff, num_layers):
    ks = jax.random.split(key, 7)
    vec = jnp.zeros((DEC_NV, d_model), jnp.float32)
    vec = vec.at[DEC_G1].set(1.0).at[DEC_G2].set(1.0).at[DEC_G3].set(1.0)
    p = {
        "swqkv": _dense(ks[0], (d_model, 3 * d_model)),   # self-attn fused Q/K/V
        "swo":   _dense(ks[1], (d_model, d_model)),
        "cwq":   _dense(ks[2], (d_model, d_model)),       # cross-attn Q
        "cwkv":  _dense(ks[3], (d_model, 2 * d_model)),   # cross-attn fused K/V
        "cwo":   _dense(ks[4], (d_model, d_model)),
        "w1":    _dense(ks[5], (d_model, dff)),
        "w2t":   _dense(ks[6], (d_model, dff)),
        "b1":    jnp.zeros((1, dff), jnp.float32),
        "vec":   vec,
    }
    return {k: _stack(v, num_layers) for k, v in p.items()}


# ------------------------------------ main ------------------------------------

if __name__ == "__main__":
    N, D, NHEAD, DFF = 16, 64, 8, 2048          # D % nhead == 0; DFF = PyTorch default
    NUM_ENCODER_LAYERS, NUM_DECODER_LAYERS = 6, 6

    key = jax.random.PRNGKey(0)
    k_pos, k_ori, k_enc, k_dec = jax.random.split(key, 4)

    positions = jax.random.normal(k_pos, (N, D), jnp.float32)      # nn.Parameter(randn(N, D))
    orientations = jax.random.normal(k_ori, (N, D), jnp.float32)   # nn.Parameter(randn(N, D))

    enc_params = init_encoder_params(k_enc, D, DFF, NUM_ENCODER_LAYERS)
    dec_params = init_decoder_params(k_dec, D, DFF, NUM_DECODER_LAYERS)

    fwd = jax.jit(functools.partial(swarmalator_forward, nhead=NHEAD))
    updated_positions, updated_orientations = fwd(
        positions, orientations, enc_params, dec_params)
    jax.block_until_ready((updated_positions, updated_orientations))

    assert updated_positions.shape == (N, D)
    assert updated_orientations.shape == (N, D)
    assert bool(jnp.isfinite(updated_positions).all())
    assert bool(jnp.isfinite(updated_orientations).all())
    print("KERNEL_OK")
</pallas_src>

<mosaic_0001>
module attributes {stable_mosaic.version = 11 : i64} {
  func.func @encoder_stack_kernel(%arg0: i32, %arg1: memref<1x16x64xf32, #tpu.memory_space<vmem>>, %arg2: memref<6x64x192xbf16, #tpu.memory_space<vmem>>, %arg3: memref<6x64x64xbf16, #tpu.memory_space<vmem>>, %arg4: memref<6x64x2048xbf16, #tpu.memory_space<vmem>>, %arg5: memref<6x64x2048xbf16, #tpu.memory_space<vmem>>, %arg6: memref<6x1x2048xf32, #tpu.memory_space<vmem>>, %arg7: memref<6x9x64xf32, #tpu.memory_space<vmem>>, %arg8: memref<1x16x64xf32, #tpu.memory_space<vmem>>) attributes {dimension_semantics = [#tpu.dimension_semantics<parallel>], iteration_bounds = array<i64: 2>, scalar_prefetch = 0 : i64, scratch_operands = 0 : i64, tpu.core_type = #tpu.core_type<tc>, window_params = [{transform_indices = @transform_0, window_bounds = array<i64: 1, 16, 64>}, {pipeline_mode = #tpu.pipeline_mode<synchronous>, transform_indices = @transform_1, window_bounds = array<i64: 6, 64, 192>}, {pipeline_mode = #tpu.pipeline_mode<synchronous>, transform_indices = @transform_2, window_bounds = array<i64: 6, 64, 64>}, {pipeline_mode = #tpu.pipeline_mode<synchronous>, transform_indices = @transform_3, window_bounds = array<i64: 6, 64, 2048>}, {pipeline_mode = #tpu.pipeline_mode<synchronous>, transform_indices = @transform_4, window_bounds = array<i64: 6, 64, 2048>}, {pipeline_mode = #tpu.pipeline_mode<synchronous>, transform_indices = @transform_5, window_bounds = array<i64: 6, 1, 2048>}, {pipeline_mode = #tpu.pipeline_mode<synchronous>, transform_indices = @transform_6, window_bounds = array<i64: 6, 9, 64>}, {transform_indices = @transform_7, window_bounds = array<i64: 1, 16, 64>}]} {
    %0 = tpu.iota {dimensions = array<i32: 1>} : vector<1x64xi32>
    %c0_i32 = arith.constant 0 : i32
    %1 = vector.broadcast %c0_i32 : i32 to vector<1x64xi32>
    %2 = arith.cmpi sge, %0, %1 : vector<1x64xi32>
    %c8_i32 = arith.constant 8 : i32
    %3 = vector.broadcast %c8_i32 : i32 to vector<1x64xi32>
    %4 = arith.cmpi slt, %0, %3 : vector<1x64xi32>
    %5 = arith.andi %2, %4 : vector<1x64xi1>
    %6 = arith.extui %5 : vector<1x64xi1> to vector<1x64xi32>
    %7 = arith.sitofp %6 : vector<1x64xi32> to vector<1x64xf32>
    %c8_i32_0 = arith.constant 8 : i32
    %8 = vector.broadcast %c8_i32_0 : i32 to vector<1x64xi32>
    %9 = arith.cmpi sge, %0, %8 : vector<1x64xi32>
    %c16_i32 = arith.constant 16 : i32
    %10 = vector.broadcast %c16_i32 : i32 to vector<1x64xi32>
    %11 = arith.cmpi slt, %0, %10 : vector<1x64xi32>
    %12 = arith.andi %9, %11 : vector<1x64xi1>
    %13 = arith.extui %12 : vector<1x64xi1> to vector<1x64xi32>
    %14 = arith.sitofp %13 : vector<1x64xi32> to vector<1x64xf32>
    %c16_i32_1 = arith.constant 16 : i32
    %15 = vector.broadcast %c16_i32_1 : i32 to vector<1x64xi32>
    %16 = arith.cmpi sge, %0, %15 : vector<1x64xi32>
    %c24_i32 = arith.constant 24 : i32
    %17 = vector.broadcast %c24_i32 : i32 to vector<1x64xi32>
    %18 = arith.cmpi slt, %0, %17 : vector<1x64xi32>
    %19 = arith.andi %16, %18 : vector<1x64xi1>
    %20 = arith.extui %19 : vector<1x64xi1> to vector<1x64xi32>
    %21 = arith.sitofp %20 : vector<1x64xi32> to vector<1x64xf32>
    %c24_i32_2 = arith.constant 24 : i32
    %22 = vector.broadcast %c24_i32_2 : i32 to vector<1x64xi32>
    %23 = arith.cmpi sge, %0, %22 : vector<1x64xi32>
    %c32_i32 = arith.constant 32 : i32
    %24 = vector.broadcast %c32_i32 : i32 to vector<1x64xi32>
    %25 = arith.cmpi slt, %0, %24 : vector<1x64xi32>
    %26 = arith.andi %23, %25 : vector<1x64xi1>
    %27 = arith.extui %26 : vector<1x64xi1> to vector<1x64xi32>
    %28 = arith.sitofp %27 : vector<1x64xi32> to vector<1x64xf32>
    %c32_i32_3 = arith.constant 32 : i32
    %29 = vector.broadcast %c32_i32_3 : i32 to vector<1x64xi32>
    %30 = arith.cmpi sge, %0, %29 : vector<1x64xi32>
    %c40_i32 = arith.constant 40 : i32
    %31 = vector.broadcast %c40_i32 : i32 to vector<1x64xi32>
    %32 = arith.cmpi slt, %0, %31 : vector<1x64xi32>
    %33 = arith.andi %30, %32 : vector<1x64xi1>
    %34 = arith.extui %33 : vector<1x64xi1> to vector<1x64xi32>
    %35 = arith.sitofp %34 : vector<1x64xi32> to vector<1x64xf32>
    %c40_i32_4 = arith.constant 40 : i32
    %36 = vector.broadcast %c40_i32_4 : i32 to vector<1x64xi32>
    %37 = arith.cmpi sge, %0, %36 : vector<1x64xi32>
    %c48_i32 = arith.constant 48 : i32
    %38 = vector.broadcast %c48_i32 : i32 to vector<1x64xi32>
    %39 = arith.cmpi slt, %0, %38 : vector<1x64xi32>
    %40 = arith.andi %37, %39 : vector<1x64xi1>
    %41 = arith.extui %40 : vector<1x64xi1> to vector<1x64xi32>
    %42 = arith.sitofp %41 : vector<1x64xi32> to vector<1x64xf32>
    %c48_i32_5 = arith.constant 48 : i32
    %43 = vector.broadcast %c48_i32_5 : i32 to vector<1x64xi32>
    %44 = arith.cmpi sge, %0, %43 : vector<1x64xi32>
    %c56_i32 = arith.constant 56 : i32
    %45 = vector.broadcast %c56_i32 : i32 to vector<1x64xi32>
    %46 = arith.cmpi slt, %0, %45 : vector<1x64xi32>
    %47 = arith.andi %44, %46 : vector<1x64xi1>
    %48 = arith.extui %47 : vector<1x64xi1> to vector<1x64xi32>
    %49 = arith.sitofp %48 : vector<1x64xi32> to vector<1x64xf32>
    %c56_i32_6 = arith.constant 56 : i32
    %50 = vector.broadcast %c56_i32_6 : i32 to vector<1x64xi32>
    %51 = arith.cmpi sge, %0, %50 : vector<1x64xi32>
    %c64_i32 = arith.constant 64 : i32
    %52 = vector.broadcast %c64_i32 : i32 to vector<1x64xi32>
    %53 = arith.cmpi slt, %0, %52 : vector<1x64xi32>
    %54 = arith.andi %51, %53 : vector<1x64xi1>
    %55 = arith.extui %54 : vector<1x64xi1> to vector<1x64xi32>
    %56 = arith.sitofp %55 : vector<1x64xi32> to vector<1x64xf32>
    %c0 = arith.constant 0 : index
    %c0_7 = arith.constant 0 : index
    %c0_8 = arith.constant 0 : index
    %57 = vector.load %arg1[%c0, %c0_7, %c0_8] : memref<1x16x64xf32, #tpu.memory_space<vmem>>, vector<1x16x64xf32>
    %58 = vector.shape_cast %57 : vector<1x16x64xf32> to vector<16x64xf32>
    %c0_i32_9 = arith.constant 0 : i32
    %c6_i32 = arith.constant 6 : i32
    %59 = arith.addi %c0_i32_9, %c6_i32 : i32
    %c1_i32 = arith.constant 1 : i32
    %60 = scf.for %arg9 = %c0_i32_9 to %59 step %c1_i32 iter_args(%arg10 = %58) -> (vector<16x64xf32>)  : i32 {
      %64 = arith.index_cast %arg9 : i32 to index
      %c0_14 = arith.constant 0 : index
      %c0_15 = arith.constant 0 : index
      %65 = vector.load %arg2[%64, %c0_14, %c0_15] : memref<6x64x192xbf16, #tpu.memory_space<vmem>>, vector<1x64x192xbf16>
      %66 = vector.shape_cast %65 : vector<1x64x192xbf16> to vector<64x192xbf16>
      %67 = arith.index_cast %arg9 : i32 to index
      %c0_16 = arith.constant 0 : index
      %c0_17 = arith.constant 0 : index
      %68 = vector.load %arg3[%67, %c0_16, %c0_17] : memref<6x64x64xbf16, #tpu.memory_space<vmem>>, vector<1x64x64xbf16>
      %69 = vector.shape_cast %68 : vector<1x64x64xbf16> to vector<64x64xbf16>
      %70 = arith.index_cast %arg9 : i32 to index
      %c0_18 = arith.constant 0 : index
      %c0_19 = arith.constant 0 : index
      %71 = vector.load %arg4[%70, %c0_18, %c0_19] : memref<6x64x2048xbf16, #tpu.memory_space<vmem>>, vector<1x64x2048xbf16>
      %72 = vector.shape_cast %71 : vector<1x64x2048xbf16> to vector<64x2048xbf16>
      %73 = arith.index_cast %arg9 : i32 to index
      %c0_20 = arith.constant 0 : index
      %c0_21 = arith.constant 0 : index
      %74 = vector.load %arg5[%73, %c0_20, %c0_21] : memref<6x64x2048xbf16, #tpu.memory_space<vmem>>, vector<1x64x2048xbf16>
      %75 = vector.shape_cast %74 : vector<1x64x2048xbf16> to vector<64x2048xbf16>
      %76 = arith.index_cast %arg9 : i32 to index
      %c0_22 = arith.constant 0 : index
      %c0_23 = arith.constant 0 : index
      %77 = vector.load %arg6[%76, %c0_22, %c0_23] : memref<6x1x2048xf32, #tpu.memory_space<vmem>>, vector<1x1x2048xf32>
      %78 = vector.shape_cast %77 : vector<1x1x2048xf32> to vector<1x2048xf32>
      %79 = arith.index_cast %arg9 : i32 to index
      %c0_24 = arith.constant 0 : index
      %c0_25 = arith.constant 0 : index
      %80 = vector.load %arg7[%79, %c0_24, %c0_25] : memref<6x9x64xf32, #tpu.memory_space<vmem>>, vector<1x9x64xf32>
      %81 = vector.shape_cast %80 : vector<1x9x64xf32> to vector<9x64xf32>
      %82 = arith.truncf %arg10 : vector<16x64xf32> to vector<16x64xbf16>
      %cst = arith.constant dense<0.000000e+00> : vector<16x192xf32>
      %83 = tpu.matmul %82, %66, %cst {dimension_numbers = #tpu.dot_dimension_numbers<[1], [0], [0], [1], [0, 0, 1, 1], [], []>} : vector<16x64xbf16>, vector<64x192xbf16>, vector<16x192xf32> -> vector<16x192xf32>
      %84 = vector.extract_strided_slice %83 {offsets = [0, 0], sizes = [16, 64], strides = [1, 1]} : vector<16x192xf32> to vector<16x64xf32>
      %85 = vector.extract_strided_slice %81 {offsets = [0, 0], sizes = [1, 64], strides = [1, 1]} : vector<9x64xf32> to vector<1x64xf32>
      %86 = vector.broadcast %85 : vector<1x64xf32> to vector<16x64xf32>
      %87 = arith.addf %84, %86 : vector<16x64xf32>
      %88 = vector.extract_strided_slice %83 {offsets = [0, 64], sizes = [16, 64], strides = [1, 1]} : vector<16x192xf32> to vector<16x64xf32>
      %89 = vector.extract_strided_slice %81 {offsets = [1, 0], sizes = [1, 64], strides = [1, 1]} : vector<9x64xf32> to vector<1x64xf32>
      %90 = vector.broadcast %89 : vector<1x64xf32> to vector<16x64xf32>
      %91 = arith.addf %88, %90 : vector<16x64xf32>
      %92 = vector.extract_strided_slice %83 {offsets = [0, 128], sizes = [16, 64], strides = [1, 1]} : vector<16x192xf32> to vector<16x64xf32>
      %93 = vector.extract_strided_slice %81 {offsets = [2, 0], sizes = [1, 64], strides = [1, 1]} : vector<9x64xf32> to vector<1x64xf32>
      %94 = vector.broadcast %93 : vector<1x64xf32> to vector<16x64xf32>
      %95 = arith.addf %92, %94 : vector<16x64xf32>
      %cst_26 = arith.constant 0.000000e+00 : f32
      %96 = vector.broadcast %cst_26 : f32 to vector<16x64xf32>
      %97 = vector.broadcast %7 : vector<1x64xf32> to vector<16x64xf32>
      %98 = arith.mulf %87, %97 : vector<16x64xf32>
      %99 = arith.truncf %98 : vector<16x64xf32> to vector<16x64xbf16>
      %100 = vector.broadcast %7 : vector<1x64xf32> to vector<16x64xf32>
      %101 = arith.mulf %91, %100 : vector<16x64xf32>
      %102 = arith.truncf %101 : vector<16x64xf32> to vector<16x64xbf16>
      %cst_27 = arith.constant dense<0.000000e+00> : vector<16x16xf32>
      %103 = tpu.matmul %99, %102, %cst_27 {dimension_numbers = #tpu.dot_dimension_numbers<[1], [1], [0], [0], [0, 0, 1, 0], [], []>} : vector<16x64xbf16>, vector<16x64xbf16>, vector<16x16xf32> -> vector<16x16xf32>
      %cst_28 = arith.constant 0.353553385 : f32
      %104 = vector.broadcast %cst_28 : f32 to vector<16x16xf32>
      %105 = arith.mulf %103, %104 : vector<16x16xf32>
      %cst_29 = arith.constant dense<0xFF800000> : vector<16xf32>
      %106 = vector.multi_reduction <maximumf>, %105, %cst_29 [1] : vector<16x16xf32> to vector<16xf32>
      %107 = vector.shape_cast %106 : vector<16xf32> to vector<16x1xf32>
      %108 = vector.broadcast %107 : vector<16x1xf32> to vector<16x16xf32>
      %109 = arith.subf %105, %108 : vector<16x16xf32>
      %110 = math.exp %109 : vector<16x16xf32>
      %cst_30 = arith.constant dense<0.000000e+00> : vector<16xf32>
      %111 = vector.multi_reduction <add>, %110, %cst_30 [1] : vector<16x16xf32> to vector<16xf32>
      %112 = vector.shape_cast %111 : vector<16xf32> to vector<16x1xf32>
      %113 = tpu.reciprocal %112 {approx = true} : vector<16x1xf32> -> vector<16x1xf32>
      %114 = vector.broadcast %113 : vector<16x1xf32> to vector<16x16xf32>
      %115 = arith.mulf %110, %114 : vector<16x16xf32>
      %116 = arith.truncf %115 : vector<16x16xf32> to vector<16x16xbf16>
      %117 = vector.broadcast %7 : vector<1x64xf32> to vector<16x64xf32>
      %118 = arith.mulf %95, %117 : vector<16x64xf32>
      %119 = arith.truncf %118 : vector<16x64xf32> to vector<16x64xbf16>
      %cst_31 = arith.constant dense<0.000000e+00> : vector<16x64xf32>
      %120 = tpu.matmul %116, %119, %cst_31 {dimension_numbers = #tpu.dot_dimension_numbers<[1], [0], [0], [1], [0, 0, 1, 1], [], []>} : vector<16x16xbf16>, vector<16x64xbf16>, vector<16x64xf32> -> vector<16x64xf32>
      %121 = arith.addf %96, %120 : vector<16x64xf32>
      %122 = vector.broadcast %14 : vector<1x64xf32> to vector<16x64xf32>
      %123 = arith.mulf %87, %122 : vector<16x64xf32>
      %124 = arith.truncf %123 : vector<16x64xf32> to vector<16x64xbf16>
      %125 = vector.broadcast %14 : vector<1x64xf32> to vector<16x64xf32>
      %126 = arith.mulf %91, %125 : vector<16x64xf32>
      %127 = arith.truncf %126 : vector<16x64xf32> to vector<16x64xbf16>
      %cst_32 = arith.constant dense<0.000000e+00> : vector<16x16xf32>
      %128 = tpu.matmul %124, %127, %cst_32 {dimension_numbers = #tpu.dot_dimension_numbers<[1], [1], [0], [0], [0, 0, 1, 0], [], []>} : vector<16x64xbf16>, vector<16x64xbf16>, vector<16x16xf32> -> vector<16x16xf32>
      %cst_33 = arith.constant 0.353553385 : f32
      %129 = vector.broadcast %cst_33 : f32 to vector<16x16xf32>
      %130 = arith.mulf %128, %129 : vector<16x16xf32>
      %cst_34 = arith.constant dense<0xFF800000> : vector<16xf32>
      %131 = vector.multi_reduction <maximumf>, %130, %cst_34 [1] : vector<16x16xf32> to vector<16xf32>
      %132 = vector.shape_cast %131 : vector<16xf32> to vector<16x1xf32>
      %133 = vector.broadcast %132 : vector<16x1xf32> to vector<16x16xf32>
      %134 = arith.subf %130, %133 : vector<16x16xf32>
      %135 = math.exp %134 : vector<16x16xf32>
      %cst_35 = arith.constant dense<0.000000e+00> : vector<16xf32>
      %136 = vector.multi_reduction <add>, %135, %cst_35 [1] : vector<16x16xf32> to vector<16xf32>
      %137 = vector.shape_cast %136 : vector<16xf32> to vector<16x1xf32>
      %138 = tpu.reciprocal %137 {approx = true} : vector<16x1xf32> -> vector<16x1xf32>
      %139 = vector.broadcast %138 : vector<16x1xf32> to vector<16x16xf32>
      %140 = arith.mulf %135, %139 : vector<16x16xf32>
      %141 = arith.truncf %140 : vector<16x16xf32> to vector<16x16xbf16>
      %142 = vector.broadcast %14 : vector<1x64xf32> to vector<16x64xf32>
      %143 = arith.mulf %95, %142 : vector<16x64xf32>
      %144 = arith.truncf %143 : vector<16x64xf32> to vector<16x64xbf16>
      %cst_36 = arith.constant dense<0.000000e+00> : vector<16x64xf32>
      %145 = tpu.matmul %141, %144, %cst_36 {dimension_numbers = #tpu.dot_dimension_numbers<[1], [0], [0], [1], [0, 0, 1, 1], [], []>} : vector<16x16xbf16>, vector<16x64xbf16>, vector<16x64xf32> -> vector<16x64xf32>
      %146 = arith.addf %121, %145 : vector<16x64xf32>
      %147 = vector.broadcast %21 : vector<1x64xf32> to vector<16x64xf32>
      %148 = arith.mulf %87, %147 : vector<16x64xf32>
      %149 = arith.truncf %148 : vector<16x64xf32> to vector<16x64xbf16>
      %150 = vector.broadcast %21 : vector<1x64xf32> to vector<16x64xf32>
      %151 = arith.mulf %91, %150 : vector<16x64xf32>
      %152 = arith.truncf %151 : vector<16x64xf32> to vector<16x64xbf16>
      %cst_37 = arith.constant dense<0.000000e+00> : vector<16x16xf32>
      %153 = tpu.matmul %149, %152, %cst_37 {dimension_numbers = #tpu.dot_dimension_numbers<[1], [1], [0], [0], [0, 0, 1, 0], [], []>} : vector<16x64xbf16>, vector<16x64xbf16>, vector<16x16xf32> -> vector<16x16xf32>
      %cst_38 = arith.constant 0.353553385 : f32
      %154 = vector.broadcast %cst_38 : f32 to vector<16x16xf32>
      %155 = arith.mulf %153, %154 : vector<16x16xf32>
      %cst_39 = arith.constant dense<0xFF800000> : vector<16xf32>
      %156 = vector.multi_reduction <maximumf>, %155, %cst_39 [1] : vector<16x16xf32> to vector<16xf32>
      %157 = vector.shape_cast %156 : vector<16xf32> to vector<16x1xf32>
      %158 = vector.broadcast %157 : vector<16x1xf32> to vector<16x16xf32>
      %159 = arith.subf %155, %158 : vector<16x16xf32>
      %160 = math.exp %159 : vector<16x16xf32>
      %cst_40 = arith.constant dense<0.000000e+00> : vector<16xf32>
      %161 = vector.multi_reduction <add>, %160, %cst_40 [1] : vector<16x16xf32> to vector<16xf32>
      %162 = vector.shape_cast %161 : vector<16xf32> to vector<16x1xf32>
      %163 = tpu.reciprocal %162 {approx = true} : vector<16x1xf32> -> vector<16x1xf32>
      %164 = vector.broadcast %163 : vector<16x1xf32> to vector<16x16xf32>
      %165 = arith.mulf %160, %164 : vector<16x16xf32>
      %166 = arith.truncf %165 : vector<16x16xf32> to vector<16x16xbf16>
      %167 = vector.broadcast %21 : vector<1x64xf32> to vector<16x64xf32>
      %168 = arith.mulf %95, %167 : vector<16x64xf32>
      %169 = arith.truncf %168 : vector<16x64xf32> to vector<16x64xbf16>
      %cst_41 = arith.constant dense<0.000000e+00> : vector<16x64xf32>
      %170 = tpu.matmul %166, %169, %cst_41 {dimension_numbers = #tpu.dot_dimension_numbers<[1], [0], [0], [1], [0, 0, 1, 1], [], []>} : vector<16x16xbf16>, vector<16x64xbf16>, vector<16x64xf32> -> vector<16x64xf32>
      %171 = arith.addf %146, %170 : vector<16x64xf32>
      %172 = vector.broadcast %28 : vector<1x64xf32> to vector<16x64xf32>
      %173 = arith.mulf %87, %172 : vector<16x64xf32>
      %174 = arith.truncf %173 : vector<16x64xf32> to vector<16x64xbf16>
      %175 = vector.broadcast %28 : vector<1x64xf32> to vector<16x64xf32>
      %176 = arith.mulf %91, %175 : vector<16x64xf32>
      %177 = arith.truncf %176 : vector<16x64xf32> to vector<16x64xbf16>
      %cst_42 = arith.constant dense<0.000000e+00> : vector<16x16xf32>
      %178 = tpu.matmul %174, %177, %cst_42 {dimension_numbers = #tpu.dot_dimension_numbers<[1], [1], [0], [0], [0, 0, 1, 0], [], []>} : vector<16x64xbf16>, vector<16x64xbf16>, vector<16x16xf32> -> vector<16x16xf32>
      %cst_43 = arith.constant 0.353553385 : f32
      %179 = vector.broadcast %cst_43 : f32 to vector<16x16xf32>
      %180 = arith.mulf %178, %179 : vector<16x16xf32>
      %cst_44 = arith.constant dense<0xFF800000> : vector<16xf32>
      %181 = vector.multi_reduction <maximumf>, %180, %cst_44 [1] : vector<16x16xf32> to vector<16xf32>
      %182 = vector.shape_cast %181 : vector<16xf32> to vector<16x1xf32>
      %183 = vector.broadcast %182 : vector<16x1xf32> to vector<16x16xf32>
      %184 = arith.subf %180, %183 : vector<16x16xf32>
      %185 = math.exp %184 : vector<16x16xf32>
      %cst_45 = arith.constant dense<0.000000e+00> : vector<16xf32>
      %186 = vector.multi_reduction <add>, %185, %cst_45 [1] : vector<16x16xf32> to vector<16xf32>
      %187 = vector.shape_cast %186 : vector<16xf32> to vector<16x1xf32>
      %188 = tpu.reciprocal %187 {approx = true} : vector<16x1xf32> -> vector<16x1xf32>
      %189 = vector.broadcast %188 : vector<16x1xf32> to vector<16x16xf32>
      %190 = arith.mulf %185, %189 : vector<16x16xf32>
      %191 = arith.truncf %190 : vector<16x16xf32> to vector<16x16xbf16>
      %192 = vector.broadcast %28 : vector<1x64xf32> to vector<16x64xf32>
      %193 = arith.mulf %95, %192 : vector<16x64xf32>
      %194 = arith.truncf %193 : vector<16x64xf32> to vector<16x64xbf16>
      %cst_46 = arith.constant dense<0.000000e+00> : vector<16x64xf32>
      %195 = tpu.matmul %191, %194, %cst_46 {dimension_numbers = #tpu.dot_dimension_numbers<[1], [0], [0], [1], [0, 0, 1, 1], [], []>} : vector<16x16xbf16>, vector<16x64xbf16>, vector<16x64xf32> -> vector<16x64xf32>
      %196 = arith.addf %171, %195 : vector<16x64xf32>
      %197 = vector.broadcast %35 : vector<1x64xf32> to vector<16x64xf32>
      %198 = arith.mulf %87, %197 : vector<16x64xf32>
      %199 = arith.truncf %198 : vector<16x64xf32> to vector<16x64xbf16>
      %200 = vector.broadcast %35 : vector<1x64xf32> to vector<16x64xf32>
      %201 = arith.mulf %91, %200 : vector<16x64xf32>
      %202 = arith.truncf %201 : vector<16x64xf32> to vector<16x64xbf16>
      %cst_47 = arith.constant dense<0.000000e+00> : vector<16x16xf32>
      %203 = tpu.matmul %199, %202, %cst_47 {dimension_numbers = #tpu.dot_dimension_numbers<[1], [1], [0], [0], [0, 0, 1, 0], [], []>} : vector<16x64xbf16>, vector<16x64xbf16>, vector<16x16xf32> -> vector<16x16xf32>
      %cst_48 = arith.constant 0.353553385 : f32
      %204 = vector.broadcast %cst_48 : f32 to vector<16x16xf32>
      %205 = arith.mulf %203, %204 : vector<16x16xf32>
      %cst_49 = arith.constant dense<0xFF800000> : vector<16xf32>
      %206 = vector.multi_reduction <maximumf>, %205, %cst_49 [1] : vector<16x16xf32> to vector<16xf32>
      %207 = vector.shape_cast %206 : vector<16xf32> to vector<16x1xf32>
      %208 = vector.broadcast %207 : vector<16x1xf32> to vector<16x16xf32>
      %209 = arith.subf %205, %208 : vector<16x16xf32>
      %210 = math.exp %209 : vector<16x16xf32>
      %cst_50 = arith.constant dense<0.000000e+00> : vector<16xf32>
      %211 = vector.multi_reduction <add>, %210, %cst_50 [1] : vector<16x16xf32> to vector<16xf32>
      %212 = vector.shape_cast %211 : vector<16xf32> to vector<16x1xf32>
      %213 = tpu.reciprocal %212 {approx = true} : vector<16x1xf32> -> vector<16x1xf32>
      %214 = vector.broadcast %213 : vector<16x1xf32> to vector<16x16xf32>
      %215 = arith.mulf %210, %214 : vector<16x16xf32>
      %216 = arith.truncf %215 : vector<16x16xf32> to vector<16x16xbf16>
      %217 = vector.broadcast %35 : vector<1x64xf32> to vector<16x64xf32>
      %218 = arith.mulf %95, %217 : vector<16x64xf32>
      %219 = arith.truncf %218 : vector<16x64xf32> to vector<16x64xbf16>
      %cst_51 = arith.constant dense<0.000000e+00> : vector<16x64xf32>
      %220 = tpu.matmul %216, %219, %cst_51 {dimension_numbers = #tpu.dot_dimension_numbers<[1], [0], [0], [1], [0, 0, 1, 1], [], []>} : vector<16x16xbf16>, vector<16x64xbf16>, vector<16x64xf32> -> vector<16x64xf32>
      %221 = arith.addf %196, %220 : vector<16x64xf32>
      %222 = vector.broadcast %42 : vector<1x64xf32> to vector<16x64xf32>
      %223 = arith.mulf %87, %222 : vector<16x64xf32>
      %224 = arith.truncf %223 : vector<16x64xf32> to vector<16x64xbf16>
      %225 = vector.broadcast %42 : vector<1x64xf32> to vector<16x64xf32>
      %226 = arith.mulf %91, %225 : vector<16x64xf32>
      %227 = arith.truncf %226 : vector<16x64xf32> to vector<16x64xbf16>
      %cst_52 = arith.constant dense<0.000000e+00> : vector<16x16xf32>
      %228 = tpu.matmul %224, %227, %cst_52 {dimension_numbers = #tpu.dot_dimension_numbers<[1], [1], [0], [0], [0, 0, 1, 0], [], []>} : vector<16x64xbf16>, vector<16x64xbf16>, vector<16x16xf32> -> vector<16x16xf32>
      %cst_53 = arith.constant 0.353553385 : f32
      %229 = vector.broadcast %cst_53 : f32 to vector<16x16xf32>
      %230 = arith.mulf %228, %229 : vector<16x16xf32>
      %cst_54 = arith.constant dense<0xFF800000> : vector<16xf32>
      %231 = vector.multi_reduction <maximumf>, %230, %cst_54 [1] : vector<16x16xf32> to vector<16xf32>
      %232 = vector.shape_cast %231 : vector<16xf32> to vector<16x1xf32>
      %233 = vector.broadcast %232 : vector<16x1xf32> to vector<16x16xf32>
      %234 = arith.subf %230, %233 : vector<16x16xf32>
      %235 = math.exp %234 : vector<16x16xf32>
      %cst_55 = arith.constant dense<0.000000e+00> : vector<16xf32>
      %236 = vector.multi_reduction <add>, %235, %cst_55 [1] : vector<16x16xf32> to vector<16xf32>
      %237 = vector.shape_cast %236 : vector<16xf32> to vector<16x1xf32>
      %238 = tpu.reciprocal %237 {approx = true} : vector<16x1xf32> -> vector<16x1xf32>
      %239 = vector.broadcast %238 : vector<16x1xf32> to vector<16x16xf32>
      %240 = arith.mulf %235, %239 : vector<16x16xf32>
      %241 = arith.truncf %240 : vector<16x16xf32> to vector<16x16xbf16>
      %242 = vector.broadcast %42 : vector<1x64xf32> to vector<16x64xf32>
      %243 = arith.mulf %95, %242 : vector<16x64xf32>
      %244 = arith.truncf %243 : vector<16x64xf32> to vector<16x64xbf16>
      %cst_56 = arith.constant dense<0.000000e+00> : vector<16x64xf32>
      %245 = tpu.matmul %241, %244, %cst_56 {dimension_numbers = #tpu.dot_dimension_numbers<[1], [0], [0], [1], [0, 0, 1, 1], [], []>} : vector<16x16xbf16>, vector<16x64xbf16>, vector<16x64xf32> -> vector<16x64xf32>
      %246 = arith.addf %221, %245 : vector<16x64xf32>
      %247 = vector.broadcast %49 : vector<1x64xf32> to vector<16x64xf32>
      %248 = arith.mulf %87, %247 : vector<16x64xf32>
      %249 = arith.truncf %248 : vector<16x64xf32> to vector<16x64xbf16>
      %250 = vector.broadcast %49 : vector<1x64xf32> to vector<16x64xf32>
      %251 = arith.mulf %91, %250 : vector<16x64xf32>
      %252 = arith.truncf %251 : vector<16x64xf32> to vector<16x64xbf16>
      %cst_57 = arith.constant dense<0.000000e+00> : vector<16x16xf32>
      %253 = tpu.matmul %249, %252, %cst_57 {dimension_numbers = #tpu.dot_dimension_numbers<[1], [1], [0], [0], [0, 0, 1, 0], [], []>} : vector<16x64xbf16>, vector<16x64xbf16>, vector<16x16xf32> -> vector<16x16xf32>
      %cst_58 = arith.constant 0.353553385 : f32
      %254 = vector.broadcast %cst_58 : f32 to vector<16x16xf32>
      %255 = arith.mulf %253, %254 : vector<16x16xf32>
      %cst_59 = arith.constant dense<0xFF800000> : vector<16xf32>
      %256 = vector.multi_reduction <maximumf>, %255, %cst_59 [1] : vector<16x16xf32> to vector<16xf32>
      %257 = vector.shape_cast %256 : vector<16xf32> to vector<16x1xf32>
      %258 = vector.broadcast %257 : vector<16x1xf32> to vector<16x16xf32>
      %259 = arith.subf %255, %258 : vector<16x16xf32>
      %260 = math.exp %259 : vector<16x16xf32>
      %cst_60 = arith.constant dense<0.000000e+00> : vector<16xf32>
      %261 = vector.multi_reduction <add>, %260, %cst_60 [1] : vector<16x16xf32> to vector<16xf32>
      %262 = vector.shape_cast %261 : vector<16xf32> to vector<16x1xf32>
      %263 = tpu.reciprocal %262 {approx = true} : vector<16x1xf32> -> vector<16x1xf32>
      %264 = vector.broadcast %263 : vector<16x1xf32> to vector<16x16xf32>
      %265 = arith.mulf %260, %264 : vector<16x16xf32>
      %266 = arith.truncf %265 : vector<16x16xf32> to vector<16x16xbf16>
      %267 = vector.broadcast %49 : vector<1x64xf32> to vector<16x64xf32>
      %268 = arith.mulf %95, %267 : vector<16x64xf32>
      %269 = arith.truncf %268 : vector<16x64xf32> to vector<16x64xbf16>
      %cst_61 = arith.constant dense<0.000000e+00> : vector<16x64xf32>
      %270 = tpu.matmul %266, %269, %cst_61 {dimension_numbers = #tpu.dot_dimension_numbers<[1], [0], [0], [1], [0, 0, 1, 1], [], []>} : vector<16x16xbf16>, vector<16x64xbf16>, vector<16x64xf32> -> vector<16x64xf32>
      %271 = arith.addf %246, %270 : vector<16x64xf32>
      %272 = vector.broadcast %56 : vector<1x64xf32> to vector<16x64xf32>
      %273 = arith.mulf %87, %272 : vector<16x64xf32>
      %274 = arith.truncf %273 : vector<16x64xf32> to vector<16x64xbf16>
      %275 = vector.broadcast %56 : vector<1x64xf32> to vector<16x64xf32>
      %276 = arith.mulf %91, %275 : vector<16x64xf32>
      %277 = arith.truncf %276 : vector<16x64xf32> to vector<16x64xbf16>
      %cst_62 = arith.constant dense<0.000000e+00> : vector<16x16xf32>
      %278 = tpu.matmul %274, %277, %cst_62 {dimension_numbers = #tpu.dot_dimension_numbers<[1], [1], [0], [0], [0, 0, 1, 0], [], []>} : vector<16x64xbf16>, vector<16x64xbf16>, vector<16x16xf32> -> vector<16x16xf32>
      %cst_63 = arith.constant 0.353553385 : f32
      %279 = vector.broadcast %cst_63 : f32 to vector<16x16xf32>
      %280 = arith.mulf %278, %279 : vector<16x16xf32>
      %cst_64 = arith.constant dense<0xFF800000> : vector<16xf32>
      %281 = vector.multi_reduction <maximumf>, %280, %cst_64 [1] : vector<16x16xf32> to vector<16xf32>
      %282 = vector.shape_cast %281 : vector<16xf32> to vector<16x1xf32>
      %283 = vector.broadcast %282 : vector<16x1xf32> to vector<16x16xf32>
      %284 = arith.subf %280, %283 : vector<16x16xf32>
      %285 = math.exp %284 : vector<16x16xf32>
      %cst_65 = arith.constant dense<0.000000e+00> : vector<16xf32>
      %286 = vector.multi_reduction <add>, %285, %cst_65 [1] : vector<16x16xf32> to vector<16xf32>
      %287 = vector.shape_cast %286 : vector<16xf32> to vector<16x1xf32>
      %288 = tpu.reciprocal %287 {approx = true} : vector<16x1xf32> -> vector<16x1xf32>
      %289 = vector.broadcast %288 : vector<16x1xf32> to vector<16x16xf32>
      %290 = arith.mulf %285, %289 : vector<16x16xf32>
      %291 = arith.truncf %290 : vector<16x16xf32> to vector<16x16xbf16>
      %292 = vector.broadcast %56 : vector<1x64xf32> to vector<16x64xf32>
      %293 = arith.mulf %95, %292 : vector<16x64xf32>
      %294 = arith.truncf %293 : vector<16x64xf32> to vector<16x64xbf16>
      %cst_66 = arith.constant dense<0.000000e+00> : vector<16x64xf32>
      %295 = tpu.matmul %291, %294, %cst_66 {dimension_numbers = #tpu.dot_dimension_numbers<[1], [0], [0], [1], [0, 0, 1, 1], [], []>} : vector<16x16xbf16>, vector<16x64xbf16>, vector<16x64xf32> -> vector<16x64xf32>
      %296 = arith.addf %271, %295 : vector<16x64xf32>
      %297 = arith.truncf %296 : vector<16x64xf32> to vector<16x64xbf16>
      %cst_67 = arith.constant dense<0.000000e+00> : vector<16x64xf32>
      %298 = tpu.matmul %297, %69, %cst_67 {dimension_numbers = #tpu.dot_dimension_numbers<[1], [0], [0], [1], [0, 0, 1, 1], [], []>} : vector<16x64xbf16>, vector<64x64xbf16>, vector<16x64xf32> -> vector<16x64xf32>
      %299 = vector.extract_strided_slice %81 {offsets = [3, 0], sizes = [1, 64], strides = [1, 1]} : vector<9x64xf32> to vector<1x64xf32>
      %300 = vector.broadcast %299 : vector<1x64xf32> to vector<16x64xf32>
      %301 = arith.addf %298, %300 : vector<16x64xf32>
      %302 = arith.addf %arg10, %301 : vector<16x64xf32>
      %303 = vector.extract_strided_slice %81 {offsets = [4, 0], sizes = [1, 64], strides = [1, 1]} : vector<9x64xf32> to vector<1x64xf32>
      %304 = vector.extract_strided_slice %81 {offsets = [5, 0], sizes = [1, 64], strides = [1, 1]} : vector<9x64xf32> to vector<1x64xf32>
      %cst_68 = arith.constant dense<0.000000e+00> : vector<16xf32>
      %305 = vector.multi_reduction <add>, %302, %cst_68 [1] : vector<16x64xf32> to vector<16xf32>
      %306 = vector.shape_cast %305 : vector<16xf32> to vector<16x1xf32>
      %cst_69 = arith.constant 6.400000e+01 : f32
      %307 = vector.broadcast %cst_69 : f32 to vector<16x1xf32>
      %308 = arith.divf %306, %307 : vector<16x1xf32>
      %309 = vector.broadcast %308 : vector<16x1xf32> to vector<16x64xf32>
      %310 = arith.subf %302, %309 : vector<16x64xf32>
      %311 = arith.mulf %310, %310 : vector<16x64xf32>
      %cst_70 = arith.constant dense<0.000000e+00> : vector<16xf32>
      %312 = vector.multi_reduction <add>, %311, %cst_70 [1] : vector<16x64xf32> to vector<16xf32>
      %313 = vector.shape_cast %312 : vector<16xf32> to vector<16x1xf32>
      %cst_71 = arith.constant 6.400000e+01 : f32
      %314 = vector.broadcast %cst_71 : f32 to vector<16x1xf32>
      %315 = arith.divf %313, %314 : vector<16x1xf32>
      %cst_72 = arith.constant 9.99999974E-6 : f32
      %316 = vector.broadcast %cst_72 : f32 to vector<16x1xf32>
      %317 = arith.addf %315, %316 : vector<16x1xf32>
      %318 = math.rsqrt %317 : vector<16x1xf32>
      %319 = vector.broadcast %318 : vector<16x1xf32> to vector<16x64xf32>
      %320 = arith.mulf %310, %319 : vector<16x64xf32>
      %321 = vector.broadcast %303 : vector<1x64xf32> to vector<16x64xf32>
      %322 = arith.mulf %320, %321 : vector<16x64xf32>
      %323 = vector.broadcast %304 : vector<1x64xf32> to vector<16x64xf32>
      %324 = arith.addf %322, %323 : vector<16x64xf32>
      %325 = arith.truncf %324 : vector<16x64xf32> to vector<16x64xbf16>
      %cst_73 = arith.constant dense<0.000000e+00> : vector<16x2048xf32>
      %326 = tpu.matmul %325, %72, %cst_73 {dimension_numbers = #tpu.dot_dimension_numbers<[1], [0], [0], [1], [0, 0, 1, 1], [], []>} : vector<16x64xbf16>, vector<64x2048xbf16>, vector<16x2048xf32> -> vector<16x2048xf32>
      %327 = vector.broadcast %78 : vector<1x2048xf32> to vector<16x2048xf32>
      %328 = arith.addf %326, %327 : vector<16x2048xf32>
      %cst_74 = arith.constant 0.000000e+00 : f32
      %329 = vector.broadcast %cst_74 : f32 to vector<16x2048xf32>
      %330 = arith.maximumf %328, %329 : vector<16x2048xf32>
      %331 = arith.truncf %330 : vector<16x2048xf32> to vector<16x2048xbf16>
      %cst_75 = arith.constant dense<0.000000e+00> : vector<16x64xf32>
      %332 = tpu.matmul %331, %75, %cst_75 {dimension_numbers = #tpu.dot_dimension_numbers<[1], [1], [0], [0], [0, 0, 1, 0], [], []>} : vector<16x2048xbf16>, vector<64x2048xbf16>, vector<16x64xf32> -> vector<16x64xf32>
      %333 = vector.extract_strided_slice %81 {offsets = [6, 0], sizes = [1, 64], strides = [1, 1]} : vector<9x64xf32> to vector<1x64xf32>
      %334 = vector.broadcast %333 : vector<1x64xf32> to vector<16x64xf32>
      %335 = arith.addf %332, %334 : vector<16x64xf32>
      %336 = arith.addf %324, %335 : vector<16x64xf32>
      %337 = vector.extract_strided_slice %81 {offsets = [7, 0], sizes = [1, 64], strides = [1, 1]} : vector<9x64xf32> to vector<1x64xf32>
      %338 = vector.extract_strided_slice %81 {offsets = [8, 0], sizes = [1, 64], strides = [1, 1]} : vector<9x64xf32> to vector<1x64xf32>
      %cst_76 = arith.constant dense<0.000000e+00> : vector<16xf32>
      %339 = vector.multi_reduction <add>, %336, %cst_76 [1] : vector<16x64xf32> to vector<16xf32>
      %340 = vector.shape_cast %339 : vector<16xf32> to vector<16x1xf32>
      %cst_77 = arith.constant 6.400000e+01 : f32
      %341 = vector.broadcast %cst_77 : f32 to vector<16x1xf32>
      %342 = arith.divf %340, %341 : vector<16x1xf32>
      %343 = vector.broadcast %342 : vector<16x1xf32> to vector<16x64xf32>
      %344 = arith.subf %336, %343 : vector<16x64xf32>
      %345 = arith.mulf %344, %344 : vector<16x64xf32>
      %cst_78 = arith.constant dense<0.000000e+00> : vector<16xf32>
      %346 = vector.multi_reduction <add>, %345, %cst_78 [1] : vector<16x64xf32> to vector<16xf32>
      %347 = vector.shape_cast %346 : vector<16xf32> to vector<16x1xf32>
      %cst_79 = arith.constant 6.400000e+01 : f32
      %348 = vector.broadcast %cst_79 : f32 to vector<16x1xf32>
      %349 = arith.divf %347, %348 : vector<16x1xf32>
      %cst_80 = arith.constant 9.99999974E-6 : f32
      %350 = vector.broadcast %cst_80 : f32 to vector<16x1xf32>
      %351 = arith.addf %349, %350 : vector<16x1xf32>
      %352 = math.rsqrt %351 : vector<16x1xf32>
      %353 = vector.broadcast %352 : vector<16x1xf32> to vector<16x64xf32>
      %354 = arith.mulf %344, %353 : vector<16x64xf32>
      %355 = vector.broadcast %337 : vector<1x64xf32> to vector<16x64xf32>
      %356 = arith.mulf %354, %355 : vector<16x64xf32>
      %357 = vector.broadcast %338 : vector<1x64xf32> to vector<16x64xf32>
      %358 = arith.addf %356, %357 : vector<16x64xf32>
      scf.yield %358 : vector<16x64xf32>
    }
    %c6_i32_10 = arith.constant 6 : i32
    %c0_11 = arith.constant 0 : index
    %c0_12 = arith.constant 0 : index
    %c0_13 = arith.constant 0 : index
    %61 = vector.load %arg8[%c0_11, %c0_12, %c0_13] : memref<1x16x64xf32, #tpu.memory_space<vmem>>, vector<1x16x64xf32>
    %62 = vector.shape_cast %61 : vector<1x16x64xf32> to vector<16x64xf32>
    %63 = vector.shape_cast %60 : vector<16x64xf32> to vector<1x16x64xf32>
    tpu.vector_store %arg8[%c0_11, %c0_12, %c0_13], %63 {strides = array<i32>} : memref<1x16x64xf32, #tpu.memory_space<vmem>>, vector<1x16x64xf32>,
    return
  }
  func.func @transform_0(%arg0: i32) -> (i32, i32, i32) {
    %c0_i32 = arith.constant 0 : i32
    %c0_i32_0 = arith.constant 0 : i32
    %c0_i32_1 = arith.constant 0 : i32
    return %arg0, %c0_i32, %c0_i32_0 : i32, i32, i32
  }
  func.func @transform_1(%arg0: i32) -> (i32, i32, i32) {
    %c0_i32 = arith.constant 0 : i32
    %c0_i32_0 = arith.constant 0 : i32
    %c0_i32_1 = arith.constant 0 : i32
    %c0_i32_2 = arith.constant 0 : i32
    return %c0_i32, %c0_i32_0, %c0_i32_1 : i32, i32, i32
  }
  func.func @transform_2(%arg0: i32) -> (i32, i32, i32) {
    %c0_i32 = arith.constant 0 : i32
    %c0_i32_0 = arith.constant 0 : i32
    %c0_i32_1 = arith.constant 0 : i32
    %c0_i32_2 = arith.constant 0 : i32
    return %c0_i32, %c0_i32_0, %c0_i32_1 : i32, i32, i32
  }
  func.func @transform_3(%arg0: i32) -> (i32, i32, i32) {
    %c0_i32 = arith.constant 0 : i32
    %c0_i32_0 = arith.constant 0 : i32
    %c0_i32_1 = arith.constant 0 : i32
    %c0_i32_2 = arith.constant 0 : i32
    return %c0_i32, %c0_i32_0, %c0_i32_1 : i32, i32, i32
  }
  func.func @transform_4(%arg0: i32) -> (i32, i32, i32) {
    %c0_i32 = arith.constant 0 : i32
    %c0_i32_0 = arith.constant 0 : i32
    %c0_i32_1 = arith.constant 0 : i32
    %c0_i32_2 = arith.constant 0 : i32
    return %c0_i32, %c0_i32_0, %c0_i32_1 : i32, i32, i32
  }
  func.func @transform_5(%arg0: i32) -> (i32, i32, i32) {
    %c0_i32 = arith.constant 0 : i32
    %c0_i32_0 = arith.constant 0 : i32
    %c0_i32_1 = arith.constant 0 : i32
    %c0_i32_2 = arith.constant 0 : i32
    return %c0_i32, %c0_i32_0, %c0_i32_1 : i32, i32, i32
  }
  func.func @transform_6(%arg0: i32) -> (i32, i32, i32) {
    %c0_i32 = arith.constant 0 : i32
    %c0_i32_0 = arith.constant 0 : i32
    %c0_i32_1 = arith.constant 0 : i32
    %c0_i32_2 = arith.constant 0 : i32
    return %c0_i32, %c0_i32_0, %c0_i32_1 : i32, i32, i32
  }
  func.func @transform_7(%arg0: i32) -> (i32, i32, i32) {
    %c0_i32 = arith.constant 0 : i32
    %c0_i32_0 = arith.constant 0 : i32
    %c0_i32_1 = arith.constant 0 : i32
    return %arg0, %c0_i32, %c0_i32_0 : i32, i32, i32
  }
}

module attributes {stable_mosaic.version = 11 : i64} {
  func.func @decoder_stack_kernel(%arg0: i32, %arg1: memref<1x16x64xf32, #tpu.memory_space<vmem>>, %arg2: memref<1x16x64xf32, #tpu.memory_space<vmem>>, %arg3: memref<6x64x192xbf16, #tpu.memory_space<vmem>>, %arg4: memref<6x64x64xbf16, #tpu.memory_space<vmem>>, %arg5: memref<6x64x64xbf16, #tpu.memory_space<vmem>>, %arg6: memref<6x64x128xbf16, #tpu.memory_space<vmem>>, %arg7: memref<6x64x64xbf16, #tpu.memory_space<vmem>>, %arg8: memref<6x64x2048xbf16, #tpu.memory_space<vmem>>, %arg9: memref<6x64x2048xbf16, #tpu.memory_space<vmem>>, %arg10: memref<6x1x2048xf32, #tpu.memory_space<vmem>>, %arg11: memref<6x15x64xf32, #tpu.memory_space<vmem>>, %arg12: memref<1x16x64xf32, #tpu.memory_space<vmem>>) attributes {dimension_semantics = [#tpu.dimension_semantics<parallel>], iteration_bounds = array<i64: 2>, scalar_prefetch = 0 : i64, scratch_operands = 0 : i64, tpu.core_type = #tpu.core_type<tc>, window_params = [{transform_indices = @transform_0, window_bounds = array<i64: 1, 16, 64>}, {transform_indices = @transform_1, window_bounds = array<i64: 1, 16, 64>}, {pipeline_mode = #tpu.pipeline_mode<synchronous>, transform_indices = @transform_2, window_bounds = array<i64: 6, 64, 192>}, {pipeline_mode = #tpu.pipeline_mode<synchronous>, transform_indices = @transform_3, window_bounds = array<i64: 6, 64, 64>}, {pipeline_mode = #tpu.pipeline_mode<synchronous>, transform_indices = @transform_4, window_bounds = array<i64: 6, 64, 64>}, {pipeline_mode = #tpu.pipeline_mode<synchronous>, transform_indices = @transform_5, window_bounds = array<i64: 6, 64, 128>}, {pipeline_mode = #tpu.pipeline_mode<synchronous>, transform_indices = @transform_6, window_bounds = array<i64: 6, 64, 64>}, {pipeline_mode = #tpu.pipeline_mode<synchronous>, transform_indices = @transform_7, window_bounds = array<i64: 6, 64, 2048>}, {pipeline_mode = #tpu.pipeline_mode<synchronous>, transform_indices = @transform_8, window_bounds = array<i64: 6, 64, 2048>}, {pipeline_mode = #tpu.pipeline_mode<synchronous>, transform_indices = @transform_9, window_bounds = array<i64: 6, 1, 2048>}, {pipeline_mode = #tpu.pipeline_mode<synchronous>, transform_indices = @transform_10, window_bounds = array<i64: 6, 15, 64>}, {transform_indices = @transform_11, window_bounds = array<i64: 1, 16, 64>}]} {
    %0 = tpu.iota {dimensions = array<i32: 1>} : vector<1x64xi32>
    %c0_i32 = arith.constant 0 : i32
    %1 = vector.broadcast %c0_i32 : i32 to vector<1x64xi32>
    %2 = arith.cmpi sge, %0, %1 : vector<1x64xi32>
    %c8_i32 = arith.constant 8 : i32
    %3 = vector.broadcast %c8_i32 : i32 to vector<1x64xi32>
    %4 = arith.cmpi slt, %0, %3 : vector<1x64xi32>
    %5 = arith.andi %2, %4 : vector<1x64xi1>
    %6 = arith.extui %5 : vector<1x64xi1> to vector<1x64xi32>
    %7 = arith.sitofp %6 : vector<1x64xi32> to vector<1x64xf32>
    %c8_i32_0 = arith.constant 8 : i32
    %8 = vector.broadcast %c8_i32_0 : i32 to vector<1x64xi32>
    %9 = arith.cmpi sge, %0, %8 : vector<1x64xi32>
    %c16_i32 = arith.constant 16 : i32
    %10 = vector.broadcast %c16_i32 : i32 to vector<1x64xi32>
    %11 = arith.cmpi slt, %0, %10 : vector<1x64xi32>
    %12 = arith.andi %9, %11 : vector<1x64xi1>
    %13 = arith.extui %12 : vector<1x64xi1> to vector<1x64xi32>
    %14 = arith.sitofp %13 : vector<1x64xi32> to vector<1x64xf32>
    %c16_i32_1 = arith.constant 16 : i32
    %15 = vector.broadcast %c16_i32_1 : i32 to vector<1x64xi32>
    %16 = arith.cmpi sge, %0, %15 : vector<1x64xi32>
    %c24_i32 = arith.constant 24 : i32
    %17 = vector.broadcast %c24_i32 : i32 to vector<1x64xi32>
    %18 = arith.cmpi slt, %0, %17 : vector<1x64xi32>
    %19 = arith.andi %16, %18 : vector<1x64xi1>
    %20 = arith.extui %19 : vector<1x64xi1> to vector<1x64xi32>
    %21 = arith.sitofp %20 : vector<1x64xi32> to vector<1x64xf32>
    %c24_i32_2 = arith.constant 24 : i32
    %22 = vector.broadcast %c24_i32_2 : i32 to vector<1x64xi32>
    %23 = arith.cmpi sge, %0, %22 : vector<1x64xi32>
    %c32_i32 = arith.constant 32 : i32
    %24 = vector.broadcast %c32_i32 : i32 to vector<1x64xi32>
    %25 = arith.cmpi slt, %0, %24 : vector<1x64xi32>
    %26 = arith.andi %23, %25 : vector<1x64xi1>
    %27 = arith.extui %26 : vector<1x64xi1> to vector<1x64xi32>
    %28 = arith.sitofp %27 : vector<1x64xi32> to vector<1x64xf32>
    %c32_i32_3 = arith.constant 32 : i32
    %29 = vector.broadcast %c32_i32_3 : i32 to vector<1x64xi32>
    %30 = arith.cmpi sge, %0, %29 : vector<1x64xi32>
    %c40_i32 = arith.constant 40 : i32
    %31 = vector.broadcast %c40_i32 : i32 to vector<1x64xi32>
    %32 = arith.cmpi slt, %0, %31 : vector<1x64xi32>
    %33 = arith.andi %30, %32 : vector<1x64xi1>
    %34 = arith.extui %33 : vector<1x64xi1> to vector<1x64xi32>
    %35 = arith.sitofp %34 : vector<1x64xi32> to vector<1x64xf32>
    %c40_i32_4 = arith.constant 40 : i32
    %36 = vector.broadcast %c40_i32_4 : i32 to vector<1x64xi32>
    %37 = arith.cmpi sge, %0, %36 : vector<1x64xi32>
    %c48_i32 = arith.constant 48 : i32
    %38 = vector.broadcast %c48_i32 : i32 to vector<1x64xi32>
    %39 = arith.cmpi slt, %0, %38 : vector<1x64xi32>
    %40 = arith.andi %37, %39 : vector<1x64xi1>
    %41 = arith.extui %40 : vector<1x64xi1> to vector<1x64xi32>
    %42 = arith.sitofp %41 : vector<1x64xi32> to vector<1x64xf32>
    %c48_i32_5 = arith.constant 48 : i32
    %43 = vector.broadcast %c48_i32_5 : i32 to vector<1x64xi32>
    %44 = arith.cmpi sge, %0, %43 : vector<1x64xi32>
    %c56_i32 = arith.constant 56 : i32
    %45 = vector.broadcast %c56_i32 : i32 to vector<1x64xi32>
    %46 = arith.cmpi slt, %0, %45 : vector<1x64xi32>
    %47 = arith.andi %44, %46 : vector<1x64xi1>
    %48 = arith.extui %47 : vector<1x64xi1> to vector<1x64xi32>
    %49 = arith.sitofp %48 : vector<1x64xi32> to vector<1x64xf32>
    %c56_i32_6 = arith.constant 56 : i32
    %50 = vector.broadcast %c56_i32_6 : i32 to vector<1x64xi32>
    %51 = arith.cmpi sge, %0, %50 : vector<1x64xi32>
    %c64_i32 = arith.constant 64 : i32
    %52 = vector.broadcast %c64_i32 : i32 to vector<1x64xi32>
    %53 = arith.cmpi slt, %0, %52 : vector<1x64xi32>
    %54 = arith.andi %51, %53 : vector<1x64xi1>
    %55 = arith.extui %54 : vector<1x64xi1> to vector<1x64xi32>
    %56 = arith.sitofp %55 : vector<1x64xi32> to vector<1x64xf32>
    %c0 = arith.constant 0 : index
    %c0_7 = arith.constant 0 : index
    %c0_8 = arith.constant 0 : index
    %57 = vector.load %arg2[%c0, %c0_7, %c0_8] : memref<1x16x64xf32, #tpu.memory_space<vmem>>, vector<1x16x64xf32>
    %58 = vector.shape_cast %57 : vector<1x16x64xf32> to vector<16x64xf32>
    %c0_9 = arith.constant 0 : index
    %c0_10 = arith.constant 0 : index
    %c0_11 = arith.constant 0 : index
    %59 = vector.load %arg1[%c0_9, %c0_10, %c0_11] : memref<1x16x64xf32, #tpu.memory_space<vmem>>, vector<1x16x64xf32>
    %60 = vector.shape_cast %59 : vector<1x16x64xf32> to vector<16x64xf32>
    %c0_i32_12 = arith.constant 0 : i32
    %c6_i32 = arith.constant 6 : i32
    %61 = arith.addi %c0_i32_12, %c6_i32 : i32
    %c1_i32 = arith.constant 1 : i32
    %62 = scf.for %arg13 = %c0_i32_12 to %61 step %c1_i32 iter_args(%arg14 = %60) -> (vector<16x64xf32>)  : i32 {
      %66 = arith.index_cast %arg13 : i32 to index
      %c0_17 = arith.constant 0 : index
      %c0_18 = arith.constant 0 : index
      %67 = vector.load %arg3[%66, %c0_17, %c0_18] : memref<6x64x192xbf16, #tpu.memory_space<vmem>>, vector<1x64x192xbf16>
      %68 = vector.shape_cast %67 : vector<1x64x192xbf16> to vector<64x192xbf16>
      %69 = arith.index_cast %arg13 : i32 to index
      %c0_19 = arith.constant 0 : index
      %c0_20 = arith.constant 0 : index
      %70 = vector.load %arg4[%69, %c0_19, %c0_20] : memref<6x64x64xbf16, #tpu.memory_space<vmem>>, vector<1x64x64xbf16>
      %71 = vector.shape_cast %70 : vector<1x64x64xbf16> to vector<64x64xbf16>
      %72 = arith.index_cast %arg13 : i32 to index
      %c0_21 = arith.constant 0 : index
      %c0_22 = arith.constant 0 : index
      %73 = vector.load %arg5[%72, %c0_21, %c0_22] : memref<6x64x64xbf16, #tpu.memory_space<vmem>>, vector<1x64x64xbf16>
      %74 = vector.shape_cast %73 : vector<1x64x64xbf16> to vector<64x64xbf16>
      %75 = arith.index_cast %arg13 : i32 to index
      %c0_23 = arith.constant 0 : index
      %c0_24 = arith.constant 0 : index
      %76 = vector.load %arg6[%75, %c0_23, %c0_24] : memref<6x64x128xbf16, #tpu.memory_space<vmem>>, vector<1x64x128xbf16>
      %77 = vector.shape_cast %76 : vector<1x64x128xbf16> to vector<64x128xbf16>
      %78 = arith.index_cast %arg13 : i32 to index
      %c0_25 = arith.constant 0 : index
      %c0_26 = arith.constant 0 : index
      %79 = vector.load %arg7[%78, %c0_25, %c0_26] : memref<6x64x64xbf16, #tpu.memory_space<vmem>>, vector<1x64x64xbf16>
      %80 = vector.shape_cast %79 : vector<1x64x64xbf16> to vector<64x64xbf16>
      %81 = arith.index_cast %arg13 : i32 to index
      %c0_27 = arith.constant 0 : index
      %c0_28 = arith.constant 0 : index
      %82 = vector.load %arg8[%81, %c0_27, %c0_28] : memref<6x64x2048xbf16, #tpu.memory_space<vmem>>, vector<1x64x2048xbf16>
      %83 = vector.shape_cast %82 : vector<1x64x2048xbf16> to vector<64x2048xbf16>
      %84 = arith.index_cast %arg13 : i32 to index
      %c0_29 = arith.constant 0 : index
      %c0_30 = arith.constant 0 : index
      %85 = vector.load %arg9[%84, %c0_29, %c0_30] : memref<6x64x2048xbf16, #tpu.memory_space<vmem>>, vector<1x64x2048xbf16>
      %86 = vector.shape_cast %85 : vector<1x64x2048xbf16> to vector<64x2048xbf16>
      %87 = arith.index_cast %arg13 : i32 to index
      %c0_31 = arith.constant 0 : index
      %c0_32 = arith.constant 0 : index
      %88 = vector.load %arg10[%87, %c0_31, %c0_32] : memref<6x1x2048xf32, #tpu.memory_space<vmem>>, vector<1x1x2048xf32>
      %89 = vector.shape_cast %88 : vector<1x1x2048xf32> to vector<1x2048xf32>
      %90 = arith.index_cast %arg13 : i32 to index
      %c0_33 = arith.constant 0 : index
      %c0_34 = arith.constant 0 : index
      %91 = vector.load %arg11[%90, %c0_33, %c0_34] : memref<6x15x64xf32, #tpu.memory_space<vmem>>, vector<1x15x64xf32>
      %92 = vector.shape_cast %91 : vector<1x15x64xf32> to vector<15x64xf32>
      %93 = arith.truncf %arg14 : vector<16x64xf32> to vector<16x64xbf16>
      %cst = arith.constant dense<0.000000e+00> : vector<16x192xf32>
      %94 = tpu.matmul %93, %68, %cst {dimension_numbers = #tpu.dot_dimension_numbers<[1], [0], [0], [1], [0, 0, 1, 1], [], []>} : vector<16x64xbf16>, vector<64x192xbf16>, vector<16x192xf32> -> vector<16x192xf32>
      %95 = vector.extract_strided_slice %94 {offsets = [0, 0], sizes = [16, 64], strides = [1, 1]} : vector<16x192xf32> to vector<16x64xf32>
      %96 = vector.extract_strided_slice %92 {offsets = [0, 0], sizes = [1, 64], strides = [1, 1]} : vector<15x64xf32> to vector<1x64xf32>
      %97 = vector.broadcast %96 : vector<1x64xf32> to vector<16x64xf32>
      %98 = arith.addf %95, %97 : vector<16x64xf32>
      %99 = vector.extract_strided_slice %94 {offsets = [0, 64], sizes = [16, 64], strides = [1, 1]} : vector<16x192xf32> to vector<16x64xf32>
      %100 = vector.extract_strided_slice %92 {offsets = [1, 0], sizes = [1, 64], strides = [1, 1]} : vector<15x64xf32> to vector<1x64xf32>
      %101 = vector.broadcast %100 : vector<1x64xf32> to vector<16x64xf32>
      %102 = arith.addf %99, %101 : vector<16x64xf32>
      %103 = vector.extract_strided_slice %94 {offsets = [0, 128], sizes = [16, 64], strides = [1, 1]} : vector<16x192xf32> to vector<16x64xf32>
      %104 = vector.extract_strided_slice %92 {offsets = [2, 0], sizes = [1, 64], strides = [1, 1]} : vector<15x64xf32> to vector<1x64xf32>
      %105 = vector.broadcast %104 : vector<1x64xf32> to vector<16x64xf32>
      %106 = arith.addf %103, %105 : vector<16x64xf32>
      %cst_35 = arith.constant 0.000000e+00 : f32
      %107 = vector.broadcast %cst_35 : f32 to vector<16x64xf32>
      %108 = vector.broadcast %7 : vector<1x64xf32> to vector<16x64xf32>
      %109 = arith.mulf %98, %108 : vector<16x64xf32>
      %110 = arith.truncf %109 : vector<16x64xf32> to vector<16x64xbf16>
      %111 = vector.broadcast %7 : vector<1x64xf32> to vector<16x64xf32>
      %112 = arith.mulf %102, %111 : vector<16x64xf32>
      %113 = arith.truncf %112 : vector<16x64xf32> to vector<16x64xbf16>
      %cst_36 = arith.constant dense<0.000000e+00> : vector<16x16xf32>
      %114 = tpu.matmul %110, %113, %cst_36 {dimension_numbers = #tpu.dot_dimension_numbers<[1], [1], [0], [0], [0, 0, 1, 0], [], []>} : vector<16x64xbf16>, vector<16x64xbf16>, vector<16x16xf32> -> vector<16x16xf32>
      %cst_37 = arith.constant 0.353553385 : f32
      %115 = vector.broadcast %cst_37 : f32 to vector<16x16xf32>
      %116 = arith.mulf %114, %115 : vector<16x16xf32>
      %cst_38 = arith.constant dense<0xFF800000> : vector<16xf32>
      %117 = vector.multi_reduction <maximumf>, %116, %cst_38 [1] : vector<16x16xf32> to vector<16xf32>
      %118 = vector.shape_cast %117 : vector<16xf32> to vector<16x1xf32>
      %119 = vector.broadcast %118 : vector<16x1xf32> to vector<16x16xf32>
      %120 = arith.subf %116, %119 : vector<16x16xf32>
      %121 = math.exp %120 : vector<16x16xf32>
      %cst_39 = arith.constant dense<0.000000e+00> : vector<16xf32>
      %122 = vector.multi_reduction <add>, %121, %cst_39 [1] : vector<16x16xf32> to vector<16xf32>
      %123 = vector.shape_cast %122 : vector<16xf32> to vector<16x1xf32>
      %124 = tpu.reciprocal %123 {approx = true} : vector<16x1xf32> -> vector<16x1xf32>
      %125 = vector.broadcast %124 : vector<16x1xf32> to vector<16x16xf32>
      %126 = arith.mulf %121, %125 : vector<16x16xf32>
      %127 = arith.truncf %126 : vector<16x16xf32> to vector<16x16xbf16>
      %128 = vector.broadcast %7 : vector<1x64xf32> to vector<16x64xf32>
      %129 = arith.mulf %106, %128 : vector<16x64xf32>
      %130 = arith.truncf %129 : vector<16x64xf32> to vector<16x64xbf16>
      %cst_40 = arith.constant dense<0.000000e+00> : vector<16x64xf32>
      %131 = tpu.matmul %127, %130, %cst_40 {dimension_numbers = #tpu.dot_dimension_numbers<[1], [0], [0], [1], [0, 0, 1, 1], [], []>} : vector<16x16xbf16>, vector<16x64xbf16>, vector<16x64xf32> -> vector<16x64xf32>
      %132 = arith.addf %107, %131 : vector<16x64xf32>
      %133 = vector.broadcast %14 : vector<1x64xf32> to vector<16x64xf32>
      %134 = arith.mulf %98, %133 : vector<16x64xf32>
      %135 = arith.truncf %134 : vector<16x64xf32> to vector<16x64xbf16>
      %136 = vector.broadcast %14 : vector<1x64xf32> to vector<16x64xf32>
      %137 = arith.mulf %102, %136 : vector<16x64xf32>
      %138 = arith.truncf %137 : vector<16x64xf32> to vector<16x64xbf16>
      %cst_41 = arith.constant dense<0.000000e+00> : vector<16x16xf32>
      %139 = tpu.matmul %135, %138, %cst_41 {dimension_numbers = #tpu.dot_dimension_numbers<[1], [1], [0], [0], [0, 0, 1, 0], [], []>} : vector<16x64xbf16>, vector<16x64xbf16>, vector<16x16xf32> -> vector<16x16xf32>
      %cst_42 = arith.constant 0.353553385 : f32
      %140 = vector.broadcast %cst_42 : f32 to vector<16x16xf32>
      %141 = arith.mulf %139, %140 : vector<16x16xf32>
      %cst_43 = arith.constant dense<0xFF800000> : vector<16xf32>
      %142 = vector.multi_reduction <maximumf>, %141, %cst_43 [1] : vector<16x16xf32> to vector<16xf32>
      %143 = vector.shape_cast %142 : vector<16xf32> to vector<16x1xf32>
      %144 = vector.broadcast %143 : vector<16x1xf32> to vector<16x16xf32>
      %145 = arith.subf %141, %144 : vector<16x16xf32>
      %146 = math.exp %145 : vector<16x16xf32>
      %cst_44 = arith.constant dense<0.000000e+00> : vector<16xf32>
      %147 = vector.multi_reduction <add>, %146, %cst_44 [1] : vector<16x16xf32> to vector<16xf32>
      %148 = vector.shape_cast %147 : vector<16xf32> to vector<16x1xf32>
      %149 = tpu.reciprocal %148 {approx = true} : vector<16x1xf32> -> vector<16x1xf32>
      %150 = vector.broadcast %149 : vector<16x1xf32> to vector<16x16xf32>
      %151 = arith.mulf %146, %150 : vector<16x16xf32>
      %152 = arith.truncf %151 : vector<16x16xf32> to vector<16x16xbf16>
      %153 = vector.broadcast %14 : vector<1x64xf32> to vector<16x64xf32>
      %154 = arith.mulf %106, %153 : vector<16x64xf32>
      %155 = arith.truncf %154 : vector<16x64xf32> to vector<16x64xbf16>
      %cst_45 = arith.constant dense<0.000000e+00> : vector<16x64xf32>
      %156 = tpu.matmul %152, %155, %cst_45 {dimension_numbers = #tpu.dot_dimension_numbers<[1], [0], [0], [1], [0, 0, 1, 1], [], []>} : vector<16x16xbf16>, vector<16x64xbf16>, vector<16x64xf32> -> vector<16x64xf32>
      %157 = arith.addf %132, %156 : vector<16x64xf32>
      %158 = vector.broadcast %21 : vector<1x64xf32> to vector<16x64xf32>
      %159 = arith.mulf %98, %158 : vector<16x64xf32>
      %160 = arith.truncf %159 : vector<16x64xf32> to vector<16x64xbf16>
      %161 = vector.broadcast %21 : vector<1x64xf32> to vector<16x64xf32>
      %162 = arith.mulf %102, %161 : vector<16x64xf32>
      %163 = arith.truncf %162 : vector<16x64xf32> to vector<16x64xbf16>
      %cst_46 = arith.constant dense<0.000000e+00> : vector<16x16xf32>
      %164 = tpu.matmul %160, %163, %cst_46 {dimension_numbers = #tpu.dot_dimension_numbers<[1], [1], [0], [0], [0, 0, 1, 0], [], []>} : vector<16x64xbf16>, vector<16x64xbf16>, vector<16x16xf32> -> vector<16x16xf32>
      %cst_47 = arith.constant 0.353553385 : f32
      %165 = vector.broadcast %cst_47 : f32 to vector<16x16xf32>
      %166 = arith.mulf %164, %165 : vector<16x16xf32>
      %cst_48 = arith.constant dense<0xFF800000> : vector<16xf32>
      %167 = vector.multi_reduction <maximumf>, %166, %cst_48 [1] : vector<16x16xf32> to vector<16xf32>
      %168 = vector.shape_cast %167 : vector<16xf32> to vector<16x1xf32>
      %169 = vector.broadcast %168 : vector<16x1xf32> to vector<16x16xf32>
      %170 = arith.subf %166, %169 : vector<16x16xf32>
      %171 = math.exp %170 : vector<16x16xf32>
      %cst_49 = arith.constant dense<0.000000e+00> : vector<16xf32>
      %172 = vector.multi_reduction <add>, %171, %cst_49 [1] : vector<16x16xf32> to vector<16xf32>
      %173 = vector.shape_cast %172 : vector<16xf32> to vector<16x1xf32>
      %174 = tpu.reciprocal %173 {approx = true} : vector<16x1xf32> -> vector<16x1xf32>
      %175 = vector.broadcast %174 : vector<16x1xf32> to vector<16x16xf32>
      %176 = arith.mulf %171, %175 : vector<16x16xf32>
      %177 = arith.truncf %176 : vector<16x16xf32> to vector<16x16xbf16>
      %178 = vector.broadcast %21 : vector<1x64xf32> to vector<16x64xf32>
      %179 = arith.mulf %106, %178 : vector<16x64xf32>
      %180 = arith.truncf %179 : vector<16x64xf32> to vector<16x64xbf16>
      %cst_50 = arith.constant dense<0.000000e+00> : vector<16x64xf32>
      %181 = tpu.matmul %177, %180, %cst_50 {dimension_numbers = #tpu.dot_dimension_numbers<[1], [0], [0], [1], [0, 0, 1, 1], [], []>} : vector<16x16xbf16>, vector<16x64xbf16>, vector<16x64xf32> -> vector<16x64xf32>
      %182 = arith.addf %157, %181 : vector<16x64xf32>
      %183 = vector.broadcast %28 : vector<1x64xf32> to vector<16x64xf32>
      %184 = arith.mulf %98, %183 : vector<16x64xf32>
      %185 = arith.truncf %184 : vector<16x64xf32> to vector<16x64xbf16>
      %186 = vector.broadcast %28 : vector<1x64xf32> to vector<16x64xf32>
      %187 = arith.mulf %102, %186 : vector<16x64xf32>
      %188 = arith.truncf %187 : vector<16x64xf32> to vector<16x64xbf16>
      %cst_51 = arith.constant dense<0.000000e+00> : vector<16x16xf32>
      %189 = tpu.matmul %185, %188, %cst_51 {dimension_numbers = #tpu.dot_dimension_numbers<[1], [1], [0], [0], [0, 0, 1, 0], [], []>} : vector<16x64xbf16>, vector<16x64xbf16>, vector<16x16xf32> -> vector<16x16xf32>
      %cst_52 = arith.constant 0.353553385 : f32
      %190 = vector.broadcast %cst_52 : f32 to vector<16x16xf32>
      %191 = arith.mulf %189, %190 : vector<16x16xf32>
      %cst_53 = arith.constant dense<0xFF800000> : vector<16xf32>
      %192 = vector.multi_reduction <maximumf>, %191, %cst_53 [1] : vector<16x16xf32> to vector<16xf32>
      %193 = vector.shape_cast %192 : vector<16xf32> to vector<16x1xf32>
      %194 = vector.broadcast %193 : vector<16x1xf32> to vector<16x16xf32>
      %195 = arith.subf %191, %194 : vector<16x16xf32>
      %196 = math.exp %195 : vector<16x16xf32>
      %cst_54 = arith.constant dense<0.000000e+00> : vector<16xf32>
      %197 = vector.multi_reduction <add>, %196, %cst_54 [1] : vector<16x16xf32> to vector<16xf32>
      %198 = vector.shape_cast %197 : vector<16xf32> to vector<16x1xf32>
      %199 = tpu.reciprocal %198 {approx = true} : vector<16x1xf32> -> vector<16x1xf32>
      %200 = vector.broadcast %199 : vector<16x1xf32> to vector<16x16xf32>
      %201 = arith.mulf %196, %200 : vector<16x16xf32>
      %202 = arith.truncf %201 : vector<16x16xf32> to vector<16x16xbf16>
      %203 = vector.broadcast %28 : vector<1x64xf32> to vector<16x64xf32>
      %204 = arith.mulf %106, %203 : vector<16x64xf32>
      %205 = arith.truncf %204 : vector<16x64xf32> to vector<16x64xbf16>
      %cst_55 = arith.constant dense<0.000000e+00> : vector<16x64xf32>
      %206 = tpu.matmul %202, %205, %cst_55 {dimension_numbers = #tpu.dot_dimension_numbers<[1], [0], [0], [1], [0, 0, 1, 1], [], []>} : vector<16x16xbf16>, vector<16x64xbf16>, vector<16x64xf32> -> vector<16x64xf32>
      %207 = arith.addf %182, %206 : vector<16x64xf32>
      %208 = vector.broadcast %35 : vector<1x64xf32> to vector<16x64xf32>
      %209 = arith.mulf %98, %208 : vector<16x64xf32>
      %210 = arith.truncf %209 : vector<16x64xf32> to vector<16x64xbf16>
      %211 = vector.broadcast %35 : vector<1x64xf32> to vector<16x64xf32>
      %212 = arith.mulf %102, %211 : vector<16x64xf32>
      %213 = arith.truncf %212 : vector<16x64xf32> to vector<16x64xbf16>
      %cst_56 = arith.constant dense<0.000000e+00> : vector<16x16xf32>
      %214 = tpu.matmul %210, %213, %cst_56 {dimension_numbers = #tpu.dot_dimension_numbers<[1], [1], [0], [0], [0, 0, 1, 0], [], []>} : vector<16x64xbf16>, vector<16x64xbf16>, vector<16x16xf32> -> vector<16x16xf32>
      %cst_57 = arith.constant 0.353553385 : f32
      %215 = vector.broadcast %cst_57 : f32 to vector<16x16xf32>
      %216 = arith.mulf %214, %215 : vector<16x16xf32>
      %cst_58 = arith.constant dense<0xFF800000> : vector<16xf32>
      %217 = vector.multi_reduction <maximumf>, %216, %cst_58 [1] : vector<16x16xf32> to vector<16xf32>
      %218 = vector.shape_cast %217 : vector<16xf32> to vector<16x1xf32>
      %219 = vector.broadcast %218 : vector<16x1xf32> to vector<16x16xf32>
      %220 = arith.subf %216, %219 : vector<16x16xf32>
      %221 = math.exp %220 : vector<16x16xf32>
      %cst_59 = arith.constant dense<0.000000e+00> : vector<16xf32>
      %222 = vector.multi_reduction <add>, %221, %cst_59 [1] : vector<16x16xf32> to vector<16xf32>
      %223 = vector.shape_cast %222 : vector<16xf32> to vector<16x1xf32>
      %224 = tpu.reciprocal %223 {approx = true} : vector<16x1xf32> -> vector<16x1xf32>
      %225 = vector.broadcast %224 : vector<16x1xf32> to vector<16x16xf32>
      %226 = arith.mulf %221, %225 : vector<16x16xf32>
      %227 = arith.truncf %226 : vector<16x16xf32> to vector<16x16xbf16>
      %228 = vector.broadcast %35 : vector<1x64xf32> to vector<16x64xf32>
      %229 = arith.mulf %106, %228 : vector<16x64xf32>
      %230 = arith.truncf %229 : vector<16x64xf32> to vector<16x64xbf16>
      %cst_60 = arith.constant dense<0.000000e+00> : vector<16x64xf32>
      %231 = tpu.matmul %227, %230, %cst_60 {dimension_numbers = #tpu.dot_dimension_numbers<[1], [0], [0], [1], [0, 0, 1, 1], [], []>} : vector<16x16xbf16>, vector<16x64xbf16>, vector<16x64xf32> -> vector<16x64xf32>
      %232 = arith.addf %207, %231 : vector<16x64xf32>
      %233 = vector.broadcast %42 : vector<1x64xf32> to vector<16x64xf32>
      %234 = arith.mulf %98, %233 : vector<16x64xf32>
      %235 = arith.truncf %234 : vector<16x64xf32> to vector<16x64xbf16>
      %236 = vector.broadcast %42 : vector<1x64xf32> to vector<16x64xf32>
      %237 = arith.mulf %102, %236 : vector<16x64xf32>
      %238 = arith.truncf %237 : vector<16x64xf32> to vector<16x64xbf16>
      %cst_61 = arith.constant dense<0.000000e+00> : vector<16x16xf32>
      %239 = tpu.matmul %235, %238, %cst_61 {dimension_numbers = #tpu.dot_dimension_numbers<[1], [1], [0], [0], [0, 0, 1, 0], [], []>} : vector<16x64xbf16>, vector<16x64xbf16>, vector<16x16xf32> -> vector<16x16xf32>
      %cst_62 = arith.constant 0.353553385 : f32
      %240 = vector.broadcast %cst_62 : f32 to vector<16x16xf32>
      %241 = arith.mulf %239, %240 : vector<16x16xf32>
      %cst_63 = arith.constant dense<0xFF800000> : vector<16xf32>
      %242 = vector.multi_reduction <maximumf>, %241, %cst_63 [1] : vector<16x16xf32> to vector<16xf32>
      %243 = vector.shape_cast %242 : vector<16xf32> to vector<16x1xf32>
      %244 = vector.broadcast %243 : vector<16x1xf32> to vector<16x16xf32>
      %245 = arith.subf %241, %244 : vector<16x16xf32>
      %246 = math.exp %245 : vector<16x16xf32>
      %cst_64 = arith.constant dense<0.000000e+00> : vector<16xf32>
      %247 = vector.multi_reduction <add>, %246, %cst_64 [1] : vector<16x16xf32> to vector<16xf32>
      %248 = vector.shape_cast %247 : vector<16xf32> to vector<16x1xf32>
      %249 = tpu.reciprocal %248 {approx = true} : vector<16x1xf32> -> vector<16x1xf32>
      %250 = vector.broadcast %249 : vector<16x1xf32> to vector<16x16xf32>
      %251 = arith.mulf %246, %250 : vector<16x16xf32>
      %252 = arith.truncf %251 : vector<16x16xf32> to vector<16x16xbf16>
      %253 = vector.broadcast %42 : vector<1x64xf32> to vector<16x64xf32>
      %254 = arith.mulf %106, %253 : vector<16x64xf32>
      %255 = arith.truncf %254 : vector<16x64xf32> to vector<16x64xbf16>
      %cst_65 = arith.constant dense<0.000000e+00> : vector<16x64xf32>
      %256 = tpu.matmul %252, %255, %cst_65 {dimension_numbers = #tpu.dot_dimension_numbers<[1], [0], [0], [1], [0, 0, 1, 1], [], []>} : vector<16x16xbf16>, vector<16x64xbf16>, vector<16x64xf32> -> vector<16x64xf32>
      %257 = arith.addf %232, %256 : vector<16x64xf32>
      %258 = vector.broadcast %49 : vector<1x64xf32> to vector<16x64xf32>
      %259 = arith.mulf %98, %258 : vector<16x64xf32>
      %260 = arith.truncf %259 : vector<16x64xf32> to vector<16x64xbf16>
      %261 = vector.broadcast %49 : vector<1x64xf32> to vector<16x64xf32>
      %262 = arith.mulf %102, %261 : vector<16x64xf32>
      %263 = arith.truncf %262 : vector<16x64xf32> to vector<16x64xbf16>
      %cst_66 = arith.constant dense<0.000000e+00> : vector<16x16xf32>
      %264 = tpu.matmul %260, %263, %cst_66 {dimension_numbers = #tpu.dot_dimension_numbers<[1], [1], [0], [0], [0, 0, 1, 0], [], []>} : vector<16x64xbf16>, vector<16x64xbf16>, vector<16x16xf32> -> vector<16x16xf32>
      %cst_67 = arith.constant 0.353553385 : f32
      %265 = vector.broadcast %cst_67 : f32 to vector<16x16xf32>
      %266 = arith.mulf %264, %265 : vector<16x16xf32>
      %cst_68 = arith.constant dense<0xFF800000> : vector<16xf32>
      %267 = vector.multi_reduction <maximumf>, %266, %cst_68 [1] : vector<16x16xf32> to vector<16xf32>
      %268 = vector.shape_cast %267 : vector<16xf32> to vector<16x1xf32>
      %269 = vector.broadcast %268 : vector<16x1xf32> to vector<16x16xf32>
      %270 = arith.subf %266, %269 : vector<16x16xf32>
      %271 = math.exp %270 : vector<16x16xf32>
      %cst_69 = arith.constant dense<0.000000e+00> : vector<16xf32>
      %272 = vector.multi_reduction <add>, %271, %cst_69 [1] : vector<16x16xf32> to vector<16xf32>
      %273 = vector.shape_cast %272 : vector<16xf32> to vector<16x1xf32>
      %274 = tpu.reciprocal %273 {approx = true} : vector<16x1xf32> -> vector<16x1xf32>
      %275 = vector.broadcast %274 : vector<16x1xf32> to vector<16x16xf32>
      %276 = arith.mulf %271, %275 : vector<16x16xf32>
      %277 = arith.truncf %276 : vector<16x16xf32> to vector<16x16xbf16>
      %278 = vector.broadcast %49 : vector<1x64xf32> to vector<16x64xf32>
      %279 = arith.mulf %106, %278 : vector<16x64xf32>
      %280 = arith.truncf %279 : vector<16x64xf32> to vector<16x64xbf16>
      %cst_70 = arith.constant dense<0.000000e+00> : vector<16x64xf32>
      %281 = tpu.matmul %277, %280, %cst_70 {dimension_numbers = #tpu.dot_dimension_numbers<[1], [0], [0], [1], [0, 0, 1, 1], [], []>} : vector<16x16xbf16>, vector<16x64xbf16>, vector<16x64xf32> -> vector<16x64xf32>
      %282 = arith.addf %257, %281 : vector<16x64xf32>
      %283 = vector.broadcast %56 : vector<1x64xf32> to vector<16x64xf32>
      %284 = arith.mulf %98, %283 : vector<16x64xf32>
      %285 = arith.truncf %284 : vector<16x64xf32> to vector<16x64xbf16>
      %286 = vector.broadcast %56 : vector<1x64xf32> to vector<16x64xf32>
      %287 = arith.mulf %102, %286 : vector<16x64xf32>
      %288 = arith.truncf %287 : vector<16x64xf32> to vector<16x64xbf16>
      %cst_71 = arith.constant dense<0.000000e+00> : vector<16x16xf32>
      %289 = tpu.matmul %285, %288, %cst_71 {dimension_numbers = #tpu.dot_dimension_numbers<[1], [1], [0], [0], [0, 0, 1, 0], [], []>} : vector<16x64xbf16>, vector<16x64xbf16>, vector<16x16xf32> -> vector<16x16xf32>
      %cst_72 = arith.constant 0.353553385 : f32
      %290 = vector.broadcast %cst_72 : f32 to vector<16x16xf32>
      %291 = arith.mulf %289, %290 : vector<16x16xf32>
      %cst_73 = arith.constant dense<0xFF800000> : vector<16xf32>
      %292 = vector.multi_reduction <maximumf>, %291, %cst_73 [1] : vector<16x16xf32> to vector<16xf32>
      %293 = vector.shape_cast %292 : vector<16xf32> to vector<16x1xf32>
      %294 = vector.broadcast %293 : vector<16x1xf32> to vector<16x16xf32>
      %295 = arith.subf %291, %294 : vector<16x16xf32>
      %296 = math.exp %295 : vector<16x16xf32>
      %cst_74 = arith.constant dense<0.000000e+00> : vector<16xf32>
      %297 = vector.multi_reduction <add>, %296, %cst_74 [1] : vector<16x16xf32> to vector<16xf32>
      %298 = vector.shape_cast %297 : vector<16xf32> to vector<16x1xf32>
      %299 = tpu.reciprocal %298 {approx = true} : vector<16x1xf32> -> vector<16x1xf32>
      %300 = vector.broadcast %299 : vector<16x1xf32> to vector<16x16xf32>
      %301 = arith.mulf %296, %300 : vector<16x16xf32>
      %302 = arith.truncf %301 : vector<16x16xf32> to vector<16x16xbf16>
      %303 = vector.broadcast %56 : vector<1x64xf32> to vector<16x64xf32>
      %304 = arith.mulf %106, %303 : vector<16x64xf32>
      %305 = arith.truncf %304 : vector<16x64xf32> to vector<16x64xbf16>
      %cst_75 = arith.constant dense<0.000000e+00> : vector<16x64xf32>
      %306 = tpu.matmul %302, %305, %cst_75 {dimension_numbers = #tpu.dot_dimension_numbers<[1], [0], [0], [1], [0, 0, 1, 1], [], []>} : vector<16x16xbf16>, vector<16x64xbf16>, vector<16x64xf32> -> vector<16x64xf32>
      %307 = arith.addf %282, %306 : vector<16x64xf32>
      %308 = arith.truncf %307 : vector<16x64xf32> to vector<16x64xbf16>
      %cst_76 = arith.constant dense<0.000000e+00> : vector<16x64xf32>
      %309 = tpu.matmul %308, %71, %cst_76 {dimension_numbers = #tpu.dot_dimension_numbers<[1], [0], [0], [1], [0, 0, 1, 1], [], []>} : vector<16x64xbf16>, vector<64x64xbf16>, vector<16x64xf32> -> vector<16x64xf32>
      %310 = vector.extract_strided_slice %92 {offsets = [3, 0], sizes = [1, 64], strides = [1, 1]} : vector<15x64xf32> to vector<1x64xf32>
      %311 = vector.broadcast %310 : vector<1x64xf32> to vector<16x64xf32>
      %312 = arith.addf %309, %311 : vector<16x64xf32>
      %313 = arith.addf %arg14, %312 : vector<16x64xf32>
      %314 = vector.extract_strided_slice %92 {offsets = [8, 0], sizes = [1, 64], strides = [1, 1]} : vector<15x64xf32> to vector<1x64xf32>
      %315 = vector.extract_strided_slice %92 {offsets = [9, 0], sizes = [1, 64], strides = [1, 1]} : vector<15x64xf32> to vector<1x64xf32>
      %cst_77 = arith.constant dense<0.000000e+00> : vector<16xf32>
      %316 = vector.multi_reduction <add>, %313, %cst_77 [1] : vector<16x64xf32> to vector<16xf32>
      %317 = vector.shape_cast %316 : vector<16xf32> to vector<16x1xf32>
      %cst_78 = arith.constant 6.400000e+01 : f32
      %318 = vector.broadcast %cst_78 : f32 to vector<16x1xf32>
      %319 = arith.divf %317, %318 : vector<16x1xf32>
      %320 = vector.broadcast %319 : vector<16x1xf32> to vector<16x64xf32>
      %321 = arith.subf %313, %320 : vector<16x64xf32>
      %322 = arith.mulf %321, %321 : vector<16x64xf32>
      %cst_79 = arith.constant dense<0.000000e+00> : vector<16xf32>
      %323 = vector.multi_reduction <add>, %322, %cst_79 [1] : vector<16x64xf32> to vector<16xf32>
      %324 = vector.shape_cast %323 : vector<16xf32> to vector<16x1xf32>
      %cst_80 = arith.constant 6.400000e+01 : f32
      %325 = vector.broadcast %cst_80 : f32 to vector<16x1xf32>
      %326 = arith.divf %324, %325 : vector<16x1xf32>
      %cst_81 = arith.constant 9.99999974E-6 : f32
      %327 = vector.broadcast %cst_81 : f32 to vector<16x1xf32>
      %328 = arith.addf %326, %327 : vector<16x1xf32>
      %329 = math.rsqrt %328 : vector<16x1xf32>
      %330 = vector.broadcast %329 : vector<16x1xf32> to vector<16x64xf32>
      %331 = arith.mulf %321, %330 : vector<16x64xf32>
      %332 = vector.broadcast %314 : vector<1x64xf32> to vector<16x64xf32>
      %333 = arith.mulf %331, %332 : vector<16x64xf32>
      %334 = vector.broadcast %315 : vector<1x64xf32> to vector<16x64xf32>
      %335 = arith.addf %333, %334 : vector<16x64xf32>
      %336 = arith.truncf %335 : vector<16x64xf32> to vector<16x64xbf16>
      %cst_82 = arith.constant dense<0.000000e+00> : vector<16x64xf32>
      %337 = tpu.matmul %336, %74, %cst_82 {dimension_numbers = #tpu.dot_dimension_numbers<[1], [0], [0], [1], [0, 0, 1, 1], [], []>} : vector<16x64xbf16>, vector<64x64xbf16>, vector<16x64xf32> -> vector<16x64xf32>
      %338 = vector.extract_strided_slice %92 {offsets = [4, 0], sizes = [1, 64], strides = [1, 1]} : vector<15x64xf32> to vector<1x64xf32>
      %339 = vector.broadcast %338 : vector<1x64xf32> to vector<16x64xf32>
      %340 = arith.addf %337, %339 : vector<16x64xf32>
      %341 = arith.truncf %58 : vector<16x64xf32> to vector<16x64xbf16>
      %cst_83 = arith.constant dense<0.000000e+00> : vector<16x128xf32>
      %342 = tpu.matmul %341, %77, %cst_83 {dimension_numbers = #tpu.dot_dimension_numbers<[1], [0], [0], [1], [0, 0, 1, 1], [], []>} : vector<16x64xbf16>, vector<64x128xbf16>, vector<16x128xf32> -> vector<16x128xf32>
      %343 = vector.extract_strided_slice %342 {offsets = [0, 0], sizes = [16, 64], strides = [1, 1]} : vector<16x128xf32> to vector<16x64xf32>
      %344 = vector.extract_strided_slice %92 {offsets = [5, 0], sizes = [1, 64], strides = [1, 1]} : vector<15x64xf32> to vector<1x64xf32>
      %345 = vector.broadcast %344 : vector<1x64xf32> to vector<16x64xf32>
      %346 = arith.addf %343, %345 : vector<16x64xf32>
      %347 = vector.extract_strided_slice %342 {offsets = [0, 64], sizes = [16, 64], strides = [1, 1]} : vector<16x128xf32> to vector<16x64xf32>
      %348 = vector.extract_strided_slice %92 {offsets = [6, 0], sizes = [1, 64], strides = [1, 1]} : vector<15x64xf32> to vector<1x64xf32>
      %349 = vector.broadcast %348 : vector<1x64xf32> to vector<16x64xf32>
      %350 = arith.addf %347, %349 : vector<16x64xf32>
      %cst_84 = arith.constant 0.000000e+00 : f32
      %351 = vector.broadcast %cst_84 : f32 to vector<16x64xf32>
      %352 = vector.broadcast %7 : vector<1x64xf32> to vector<16x64xf32>
      %353 = arith.mulf %340, %352 : vector<16x64xf32>
      %354 = arith.truncf %353 : vector<16x64xf32> to vector<16x64xbf16>
      %355 = vector.broadcast %7 : vector<1x64xf32> to vector<16x64xf32>
      %356 = arith.mulf %346, %355 : vector<16x64xf32>
      %357 = arith.truncf %356 : vector<16x64xf32> to vector<16x64xbf16>
      %cst_85 = arith.constant dense<0.000000e+00> : vector<16x16xf32>
      %358 = tpu.matmul %354, %357, %cst_85 {dimension_numbers = #tpu.dot_dimension_numbers<[1], [1], [0], [0], [0, 0, 1, 0], [], []>} : vector<16x64xbf16>, vector<16x64xbf16>, vector<16x16xf32> -> vector<16x16xf32>
      %cst_86 = arith.constant 0.353553385 : f32
      %359 = vector.broadcast %cst_86 : f32 to vector<16x16xf32>
      %360 = arith.mulf %358, %359 : vector<16x16xf32>
      %cst_87 = arith.constant dense<0xFF800000> : vector<16xf32>
      %361 = vector.multi_reduction <maximumf>, %360, %cst_87 [1] : vector<16x16xf32> to vector<16xf32>
      %362 = vector.shape_cast %361 : vector<16xf32> to vector<16x1xf32>
      %363 = vector.broadcast %362 : vector<16x1xf32> to vector<16x16xf32>
      %364 = arith.subf %360, %363 : vector<16x16xf32>
      %365 = math.exp %364 : vector<16x16xf32>
      %cst_88 = arith.constant dense<0.000000e+00> : vector<16xf32>
      %366 = vector.multi_reduction <add>, %365, %cst_88 [1] : vector<16x16xf32> to vector<16xf32>
      %367 = vector.shape_cast %366 : vector<16xf32> to vector<16x1xf32>
      %368 = tpu.reciprocal %367 {approx = true} : vector<16x1xf32> -> vector<16x1xf32>
      %369 = vector.broadcast %368 : vector<16x1xf32> to vector<16x16xf32>
      %370 = arith.mulf %365, %369 : vector<16x16xf32>
      %371 = arith.truncf %370 : vector<16x16xf32> to vector<16x16xbf16>
      %372 = vector.broadcast %7 : vector<1x64xf32> to vector<16x64xf32>
      %373 = arith.mulf %350, %372 : vector<16x64xf32>
      %374 = arith.truncf %373 : vector<16x64xf32> to vector<16x64xbf16>
      %cst_89 = arith.constant dense<0.000000e+00> : vector<16x64xf32>
      %375 = tpu.matmul %371, %374, %cst_89 {dimension_numbers = #tpu.dot_dimension_numbers<[1], [0], [0], [1], [0, 0, 1, 1], [], []>} : vector<16x16xbf16>, vector<16x64xbf16>, vector<16x64xf32> -> vector<16x64xf32>
      %376 = arith.addf %351, %375 : vector<16x64xf32>
      %377 = vector.broadcast %14 : vector<1x64xf32> to vector<16x64xf32>
      %378 = arith.mulf %340, %377 : vector<16x64xf32>
      %379 = arith.truncf %378 : vector<16x64xf32> to vector<16x64xbf16>
      %380 = vector.broadcast %14 : vector<1x64xf32> to vector<16x64xf32>
      %381 = arith.mulf %346, %380 : vector<16x64xf32>
      %382 = arith.truncf %381 : vector<16x64xf32> to vector<16x64xbf16>
      %cst_90 = arith.constant dense<0.000000e+00> : vector<16x16xf32>
      %383 = tpu.matmul %379, %382, %cst_90 {dimension_numbers = #tpu.dot_dimension_numbers<[1], [1], [0], [0], [0, 0, 1, 0], [], []>} : vector<16x64xbf16>, vector<16x64xbf16>, vector<16x16xf32> -> vector<16x16xf32>
      %cst_91 = arith.constant 0.353553385 : f32
      %384 = vector.broadcast %cst_91 : f32 to vector<16x16xf32>
      %385 = arith.mulf %383, %384 : vector<16x16xf32>
      %cst_92 = arith.constant dense<0xFF800000> : vector<16xf32>
      %386 = vector.multi_reduction <maximumf>, %385, %cst_92 [1] : vector<16x16xf32> to vector<16xf32>
      %387 = vector.shape_cast %386 : vector<16xf32> to vector<16x1xf32>
      %388 = vector.broadcast %387 : vector<16x1xf32> to vector<16x16xf32>
      %389 = arith.subf %385, %388 : vector<16x16xf32>
      %390 = math.exp %389 : vector<16x16xf32>
      %cst_93 = arith.constant dense<0.000000e+00> : vector<16xf32>
      %391 = vector.multi_reduction <add>, %390, %cst_93 [1] : vector<16x16xf32> to vector<16xf32>
      %392 = vector.shape_cast %391 : vector<16xf32> to vector<16x1xf32>
      %393 = tpu.reciprocal %392 {approx = true} : vector<16x1xf32> -> vector<16x1xf32>
      %394 = vector.broadcast %393 : vector<16x1xf32> to vector<16x16xf32>
      %395 = arith.mulf %390, %394 : vector<16x16xf32>
      %396 = arith.truncf %395 : vector<16x16xf32> to vector<16x16xbf16>
      %397 = vector.broadcast %14 : vector<1x64xf32> to vector<16x64xf32>
      %398 = arith.mulf %350, %397 : vector<16x64xf32>
      %399 = arith.truncf %398 : vector<16x64xf32> to vector<16x64xbf16>
      %cst_94 = arith.constant dense<0.000000e+00> : vector<16x64xf32>
      %400 = tpu.matmul %396, %399, %cst_94 {dimension_numbers = #tpu.dot_dimension_numbers<[1], [0], [0], [1], [0, 0, 1, 1], [], []>} : vector<16x16xbf16>, vector<16x64xbf16>, vector<16x64xf32> -> vector<16x64xf32>
      %401 = arith.addf %376, %400 : vector<16x64xf32>
      %402 = vector.broadcast %21 : vector<1x64xf32> to vector<16x64xf32>
      %403 = arith.mulf %340, %402 : vector<16x64xf32>
      %404 = arith.truncf %403 : vector<16x64xf32> to vector<16x64xbf16>
      %405 = vector.broadcast %21 : vector<1x64xf32> to vector<16x64xf32>
      %406 = arith.mulf %346, %405 : vector<16x64xf32>
      %407 = arith.truncf %406 : vector<16x64xf32> to vector<16x64xbf16>
      %cst_95 = arith.constant dense<0.000000e+00> : vector<16x16xf32>
      %408 = tpu.matmul %404, %407, %cst_95 {dimension_numbers = #tpu.dot_dimension_numbers<[1], [1], [0], [0], [0, 0, 1, 0], [], []>} : vector<16x64xbf16>, vector<16x64xbf16>, vector<16x16xf32> -> vector<16x16xf32>
      %cst_96 = arith.constant 0.353553385 : f32
      %409 = vector.broadcast %cst_96 : f32 to vector<16x16xf32>
      %410 = arith.mulf %408, %409 : vector<16x16xf32>
      %cst_97 = arith.constant dense<0xFF800000> : vector<16xf32>
      %411 = vector.multi_reduction <maximumf>, %410, %cst_97 [1] : vector<16x16xf32> to vector<16xf32>
      %412 = vector.shape_cast %411 : vector<16xf32> to vector<16x1xf32>
      %413 = vector.broadcast %412 : vector<16x1xf32> to vector<16x16xf32>
      %414 = arith.subf %410, %413 : vector<16x16xf32>
      %415 = math.exp %414 : vector<16x16xf32>
      %cst_98 = arith.constant dense<0.000000e+00> : vector<16xf32>
      %416 = vector.multi_reduction <add>, %415, %cst_98 [1] : vector<16x16xf32> to vector<16xf32>
      %417 = vector.shape_cast %416 : vector<16xf32> to vector<16x1xf32>
      %418 = tpu.reciprocal %417 {approx = true} : vector<16x1xf32> -> vector<16x1xf32>
      %419 = vector.broadcast %418 : vector<16x1xf32> to vector<16x16xf32>
      %420 = arith.mulf %415, %419 : vector<16x16xf32>
      %421 = arith.truncf %420 : vector<16x16xf32> to vector<16x16xbf16>
      %422 = vector.broadcast %21 : vector<1x64xf32> to vector<16x64xf32>
      %423 = arith.mulf %350, %422 : vector<16x64xf32>
      %424 = arith.truncf %423 : vector<16x64xf32> to vector<16x64xbf16>
      %cst_99 = arith.constant dense<0.000000e+00> : vector<16x64xf32>
      %425 = tpu.matmul %421, %424, %cst_99 {dimension_numbers = #tpu.dot_dimension_numbers<[1], [0], [0], [1], [0, 0, 1, 1], [], []>} : vector<16x16xbf16>, vector<16x64xbf16>, vector<16x64xf32> -> vector<16x64xf32>
      %426 = arith.addf %401, %425 : vector<16x64xf32>
      %427 = vector.broadcast %28 : vector<1x64xf32> to vector<16x64xf32>
      %428 = arith.mulf %340, %427 : vector<16x64xf32>
      %429 = arith.truncf %428 : vector<16x64xf32> to vector<16x64xbf16>
      %430 = vector.broadcast %28 : vector<1x64xf32> to vector<16x64xf32>
      %431 = arith.mulf %346, %430 : vector<16x64xf32>
      %432 = arith.truncf %431 : vector<16x64xf32> to vector<16x64xbf16>
      %cst_100 = arith.constant dense<0.000000e+00> : vector<16x16xf32>
      %433 = tpu.matmul %429, %432, %cst_100 {dimension_numbers = #tpu.dot_dimension_numbers<[1], [1], [0], [0], [0, 0, 1, 0], [], []>} : vector<16x64xbf16>, vector<16x64xbf16>, vector<16x16xf32> -> vector<16x16xf32>
      %cst_101 = arith.constant 0.353553385 : f32
      %434 = vector.broadcast %cst_101 : f32 to vector<16x16xf32>
      %435 = arith.mulf %433, %434 : vector<16x16xf32>
      %cst_102 = arith.constant dense<0xFF800000> : vector<16xf32>
      %436 = vector.multi_reduction <maximumf>, %435, %cst_102 [1] : vector<16x16xf32> to vector<16xf32>
      %437 = vector.shape_cast %436 : vector<16xf32> to vector<16x1xf32>
      %438 = vector.broadcast %437 : vector<16x1xf32> to vector<16x16xf32>
      %439 = arith.subf %435, %438 : vector<16x16xf32>
      %440 = math.exp %439 : vector<16x16xf32>
      %cst_103 = arith.constant dense<0.000000e+00> : vector<16xf32>
      %441 = vector.multi_reduction <add>, %440, %cst_103 [1] : vector<16x16xf32> to vector<16xf32>
      %442 = vector.shape_cast %441 : vector<16xf32> to vector<16x1xf32>
      %443 = tpu.reciprocal %442 {approx = true} : vector<16x1xf32> -> vector<16x1xf32>
      %444 = vector.broadcast %443 : vector<16x1xf32> to vector<16x16xf32>
      %445 = arith.mulf %440, %444 : vector<16x16xf32>
      %446 = arith.truncf %445 : vector<16x16xf32> to vector<16x16xbf16>
      %447 = vector.broadcast %28 : vector<1x64xf32> to vector<16x64xf32>
      %448 = arith.mulf %350, %447 : vector<16x64xf32>
      %449 = arith.truncf %448 : vector<16x64xf32> to vector<16x64xbf16>
      %cst_104 = arith.constant dense<0.000000e+00> : vector<16x64xf32>
      %450 = tpu.matmul %446, %449, %cst_104 {dimension_numbers = #tpu.dot_dimension_numbers<[1], [0], [0], [1], [0, 0, 1, 1], [], []>} : vector<16x16xbf16>, vector<16x64xbf16>, vector<16x64xf32> -> vector<16x64xf32>
      %451 = arith.addf %426, %450 : vector<16x64xf32>
      %452 = vector.broadcast %35 : vector<1x64xf32> to vector<16x64xf32>
      %453 = arith.mulf %340, %452 : vector<16x64xf32>
      %454 = arith.truncf %453 : vector<16x64xf32> to vector<16x64xbf16>
      %455 = vector.broadcast %35 : vector<1x64xf32> to vector<16x64xf32>
      %456 = arith.mulf %346, %455 : vector<16x64xf32>
      %457 = arith.truncf %456 : vector<16x64xf32> to vector<16x64xbf16>
      %cst_105 = arith.constant dense<0.000000e+00> : vector<16x16xf32>
      %458 = tpu.matmul %454, %457, %cst_105 {dimension_numbers = #tpu.dot_dimension_numbers<[1], [1], [0], [0], [0, 0, 1, 0], [], []>} : vector<16x64xbf16>, vector<16x64xbf16>, vector<16x16xf32> -> vector<16x16xf32>
      %cst_106 = arith.constant 0.353553385 : f32
      %459 = vector.broadcast %cst_106 : f32 to vector<16x16xf32>
      %460 = arith.mulf %458, %459 : vector<16x16xf32>
      %cst_107 = arith.constant dense<0xFF800000> : vector<16xf32>
      %461 = vector.multi_reduction <maximumf>, %460, %cst_107 [1] : vector<16x16xf32> to vector<16xf32>
      %462 = vector.shape_cast %461 : vector<16xf32> to vector<16x1xf32>
      %463 = vector.broadcast %462 : vector<16x1xf32> to vector<16x16xf32>
      %464 = arith.subf %460, %463 : vector<16x16xf32>
      %465 = math.exp %464 : vector<16x16xf32>
      %cst_108 = arith.constant dense<0.000000e+00> : vector<16xf32>
      %466 = vector.multi_reduction <add>, %465, %cst_108 [1] : vector<16x16xf32> to vector<16xf32>
      %467 = vector.shape_cast %466 : vector<16xf32> to vector<16x1xf32>
      %468 = tpu.reciprocal %467 {approx = true} : vector<16x1xf32> -> vector<16x1xf32>
      %469 = vector.broadcast %468 : vector<16x1xf32> to vector<16x16xf32>
      %470 = arith.mulf %465, %469 : vector<16x16xf32>
      %471 = arith.truncf %470 : vector<16x16xf32> to vector<16x16xbf16>
      %472 = vector.broadcast %35 : vector<1x64xf32> to vector<16x64xf32>
      %473 = arith.mulf %350, %472 : vector<16x64xf32>
      %474 = arith.truncf %473 : vector<16x64xf32> to vector<16x64xbf16>
      %cst_109 = arith.constant dense<0.000000e+00> : vector<16x64xf32>
      %475 = tpu.matmul %471, %474, %cst_109 {dimension_numbers = #tpu.dot_dimension_numbers<[1], [0], [0], [1], [0, 0, 1, 1], [], []>} : vector<16x16xbf16>, vector<16x64xbf16>, vector<16x64xf32> -> vector<16x64xf32>
      %476 = arith.addf %451, %475 : vector<16x64xf32>
      %477 = vector.broadcast %42 : vector<1x64xf32> to vector<16x64xf32>
      %478 = arith.mulf %340, %477 : vector<16x64xf32>
      %479 = arith.truncf %478 : vector<16x64xf32> to vector<16x64xbf16>
      %480 = vector.broadcast %42 : vector<1x64xf32> to vector<16x64xf32>
      %481 = arith.mulf %346, %480 : vector<16x64xf32>
      %482 = arith.truncf %481 : vector<16x64xf32> to vector<16x64xbf16>
      %cst_110 = arith.constant dense<0.000000e+00> : vector<16x16xf32>
      %483 = tpu.matmul %479, %482, %cst_110 {dimension_numbers = #tpu.dot_dimension_numbers<[1], [1], [0], [0], [0, 0, 1, 0], [], []>} : vector<16x64xbf16>, vector<16x64xbf16>, vector<16x16xf32> -> vector<16x16xf32>
      %cst_111 = arith.constant 0.353553385 : f32
      %484 = vector.broadcast %cst_111 : f32 to vector<16x16xf32>
      %485 = arith.mulf %483, %484 : vector<16x16xf32>
      %cst_112 = arith.constant dense<0xFF800000> : vector<16xf32>
      %486 = vector.multi_reduction <maximumf>, %485, %cst_112 [1] : vector<16x16xf32> to vector<16xf32>
      %487 = vector.shape_cast %486 : vector<16xf32> to vector<16x1xf32>
      %488 = vector.broadcast %487 : vector<16x1xf32> to vector<16x16xf32>
      %489 = arith.subf %485, %488 : vector<16x16xf32>
      %490 = math.exp %489 : vector<16x16xf32>
      %cst_113 = arith.constant dense<0.000000e+00> : vector<16xf32>
      %491 = vector.multi_reduction <add>, %490, %cst_113 [1] : vector<16x16xf32> to vector<16xf32>
      %492 = vector.shape_cast %491 : vector<16xf32> to vector<16x1xf32>
      %493 = tpu.reciprocal %492 {approx = true} : vector<16x1xf32> -> vector<16x1xf32>
      %494 = vector.broadcast %493 : vector<16x1xf32> to vector<16x16xf32>
      %495 = arith.mulf %490, %494 : vector<16x16xf32>
      %496 = arith.truncf %495 : vector<16x16xf32> to vector<16x16xbf16>
      %497 = vector.broadcast %42 : vector<1x64xf32> to vector<16x64xf32>
      %498 = arith.mulf %350, %497 : vector<16x64xf32>
      %499 = arith.truncf %498 : vector<16x64xf32> to vector<16x64xbf16>
      %cst_114 = arith.constant dense<0.000000e+00> : vector<16x64xf32>
      %500 = tpu.matmul %496, %499, %cst_114 {dimension_numbers = #tpu.dot_dimension_numbers<[1], [0], [0], [1], [0, 0, 1, 1], [], []>} : vector<16x16xbf16>, vector<16x64xbf16>, vector<16x64xf32> -> vector<16x64xf32>
      %501 = arith.addf %476, %500 : vector<16x64xf32>
      %502 = vector.broadcast %49 : vector<1x64xf32> to vector<16x64xf32>
      %503 = arith.mulf %340, %502 : vector<16x64xf32>
      %504 = arith.truncf %503 : vector<16x64xf32> to vector<16x64xbf16>
      %505 = vector.broadcast %49 : vector<1x64xf32> to vector<16x64xf32>
      %506 = arith.mulf %346, %505 : vector<16x64xf32>
      %507 = arith.truncf %506 : vector<16x64xf32> to vector<16x64xbf16>
      %cst_115 = arith.constant dense<0.000000e+00> : vector<16x16xf32>
      %508 = tpu.matmul %504, %507, %cst_115 {dimension_numbers = #tpu.dot_dimension_numbers<[1], [1], [0], [0], [0, 0, 1, 0], [], []>} : vector<16x64xbf16>, vector<16x64xbf16>, vector<16x16xf32> -> vector<16x16xf32>
      %cst_116 = arith.constant 0.353553385 : f32
      %509 = vector.broadcast %cst_116 : f32 to vector<16x16xf32>
      %510 = arith.mulf %508, %509 : vector<16x16xf32>
      %cst_117 = arith.constant dense<0xFF800000> : vector<16xf32>
      %511 = vector.multi_reduction <maximumf>, %510, %cst_117 [1] : vector<16x16xf32> to vector<16xf32>
      %512 = vector.shape_cast %511 : vector<16xf32> to vector<16x1xf32>
      %513 = vector.broadcast %512 : vector<16x1xf32> to vector<16x16xf32>
      %514 = arith.subf %510, %513 : vector<16x16xf32>
      %515 = math.exp %514 : vector<16x16xf32>
      %cst_118 = arith.constant dense<0.000000e+00> : vector<16xf32>
      %516 = vector.multi_reduction <add>, %515, %cst_118 [1] : vector<16x16xf32> to vector<16xf32>
      %517 = vector.shape_cast %516 : vector<16xf32> to vector<16x1xf32>
      %518 = tpu.reciprocal %517 {approx = true} : vector<16x1xf32> -> vector<16x1xf32>
      %519 = vector.broadcast %518 : vector<16x1xf32> to vector<16x16xf32>
      %520 = arith.mulf %515, %519 : vector<16x16xf32>
      %521 = arith.truncf %520 : vector<16x16xf32> to vector<16x16xbf16>
      %522 = vector.broadcast %49 : vector<1x64xf32> to vector<16x64xf32>
      %523 = arith.mulf %350, %522 : vector<16x64xf32>
      %524 = arith.truncf %523 : vector<16x64xf32> to vector<16x64xbf16>
      %cst_119 = arith.constant dense<0.000000e+00> : vector<16x64xf32>
      %525 = tpu.matmul %521, %524, %cst_119 {dimension_numbers = #tpu.dot_dimension_numbers<[1], [0], [0], [1], [0, 0, 1, 1], [], []>} : vector<16x16xbf16>, vector<16x64xbf16>, vector<16x64xf32> -> vector<16x64xf32>
      %526 = arith.addf %501, %525 : vector<16x64xf32>
      %527 = vector.broadcast %56 : vector<1x64xf32> to vector<16x64xf32>
      %528 = arith.mulf %340, %527 : vector<16x64xf32>
      %529 = arith.truncf %528 : vector<16x64xf32> to vector<16x64xbf16>
      %530 = vector.broadcast %56 : vector<1x64xf32> to vector<16x64xf32>
      %531 = arith.mulf %346, %530 : vector<16x64xf32>
      %532 = arith.truncf %531 : vector<16x64xf32> to vector<16x64xbf16>
      %cst_120 = arith.constant dense<0.000000e+00> : vector<16x16xf32>
      %533 = tpu.matmul %529, %532, %cst_120 {dimension_numbers = #tpu.dot_dimension_numbers<[1], [1], [0], [0], [0, 0, 1, 0], [], []>} : vector<16x64xbf16>, vector<16x64xbf16>, vector<16x16xf32> -> vector<16x16xf32>
      %cst_121 = arith.constant 0.353553385 : f32
      %534 = vector.broadcast %cst_121 : f32 to vector<16x16xf32>
      %535 = arith.mulf %533, %534 : vector<16x16xf32>
      %cst_122 = arith.constant dense<0xFF800000> : vector<16xf32>
      %536 = vector.multi_reduction <maximumf>, %535, %cst_122 [1] : vector<16x16xf32> to vector<16xf32>
      %537 = vector.shape_cast %536 : vector<16xf32> to vector<16x1xf32>
      %538 = vector.broadcast %537 : vector<16x1xf32> to vector<16x16xf32>
      %539 = arith.subf %535, %538 : vector<16x16xf32>
      %540 = math.exp %539 : vector<16x16xf32>
      %cst_123 = arith.constant dense<0.000000e+00> : vector<16xf32>
      %541 = vector.multi_reduction <add>, %540, %cst_123 [1] : vector<16x16xf32> to vector<16xf32>
      %542 = vector.shape_cast %541 : vector<16xf32> to vector<16x1xf32>
      %543 = tpu.reciprocal %542 {approx = true} : vector<16x1xf32> -> vector<16x1xf32>
      %544 = vector.broadcast %543 : vector<16x1xf32> to vector<16x16xf32>
      %545 = arith.mulf %540, %544 : vector<16x16xf32>
      %546 = arith.truncf %545 : vector<16x16xf32> to vector<16x16xbf16>
      %547 = vector.broadcast %56 : vector<1x64xf32> to vector<16x64xf32>
      %548 = arith.mulf %350, %547 : vector<16x64xf32>
      %549 = arith.truncf %548 : vector<16x64xf32> to vector<16x64xbf16>
      %cst_124 = arith.constant dense<0.000000e+00> : vector<16x64xf32>
      %550 = tpu.matmul %546, %549, %cst_124 {dimension_numbers = #tpu.dot_dimension_numbers<[1], [0], [0], [1], [0, 0, 1, 1], [], []>} : vector<16x16xbf16>, vector<16x64xbf16>, vector<16x64xf32> -> vector<16x64xf32>
      %551 = arith.addf %526, %550 : vector<16x64xf32>
      %552 = arith.truncf %551 : vector<16x64xf32> to vector<16x64xbf16>
      %cst_125 = arith.constant dense<0.000000e+00> : vector<16x64xf32>
      %553 = tpu.matmul %552, %80, %cst_125 {dimension_numbers = #tpu.dot_dimension_numbers<[1], [0], [0], [1], [0, 0, 1, 1], [], []>} : vector<16x64xbf16>, vector<64x64xbf16>, vector<16x64xf32> -> vector<16x64xf32>
      %554 = vector.extract_strided_slice %92 {offsets = [7, 0], sizes = [1, 64], strides = [1, 1]} : vector<15x64xf32> to vector<1x64xf32>
      %555 = vector.broadcast %554 : vector<1x64xf32> to vector<16x64xf32>
      %556 = arith.addf %553, %555 : vector<16x64xf32>
      %557 = arith.addf %335, %556 : vector<16x64xf32>
      %558 = vector.extract_strided_slice %92 {offsets = [10, 0], sizes = [1, 64], strides = [1, 1]} : vector<15x64xf32> to vector<1x64xf32>
      %559 = vector.extract_strided_slice %92 {offsets = [11, 0], sizes = [1, 64], strides = [1, 1]} : vector<15x64xf32> to vector<1x64xf32>
      %cst_126 = arith.constant dense<0.000000e+00> : vector<16xf32>
      %560 = vector.multi_reduction <add>, %557, %cst_126 [1] : vector<16x64xf32> to vector<16xf32>
      %561 = vector.shape_cast %560 : vector<16xf32> to vector<16x1xf32>
      %cst_127 = arith.constant 6.400000e+01 : f32
      %562 = vector.broadcast %cst_127 : f32 to vector<16x1xf32>
      %563 = arith.divf %561, %562 : vector<16x1xf32>
      %564 = vector.broadcast %563 : vector<16x1xf32> to vector<16x64xf32>
      %565 = arith.subf %557, %564 : vector<16x64xf32>
      %566 = arith.mulf %565, %565 : vector<16x64xf32>
      %cst_128 = arith.constant dense<0.000000e+00> : vector<16xf32>
      %567 = vector.multi_reduction <add>, %566, %cst_128 [1] : vector<16x64xf32> to vector<16xf32>
      %568 = vector.shape_cast %567 : vector<16xf32> to vector<16x1xf32>
      %cst_129 = arith.constant 6.400000e+01 : f32
      %569 = vector.broadcast %cst_129 : f32 to vector<16x1xf32>
      %570 = arith.divf %568, %569 : vector<16x1xf32>
      %cst_130 = arith.constant 9.99999974E-6 : f32
      %571 = vector.broadcast %cst_130 : f32 to vector<16x1xf32>
      %572 = arith.addf %570, %571 : vector<16x1xf32>
      %573 = math.rsqrt %572 : vector<16x1xf32>
      %574 = vector.broadcast %573 : vector<16x1xf32> to vector<16x64xf32>
      %575 = arith.mulf %565, %574 : vector<16x64xf32>
      %576 = vector.broadcast %558 : vector<1x64xf32> to vector<16x64xf32>
      %577 = arith.mulf %575, %576 : vector<16x64xf32>
      %578 = vector.broadcast %559 : vector<1x64xf32> to vector<16x64xf32>
      %579 = arith.addf %577, %578 : vector<16x64xf32>
      %580 = arith.truncf %579 : vector<16x64xf32> to vector<16x64xbf16>
      %cst_131 = arith.constant dense<0.000000e+00> : vector<16x2048xf32>
      %581 = tpu.matmul %580, %83, %cst_131 {dimension_numbers = #tpu.dot_dimension_numbers<[1], [0], [0], [1], [0, 0, 1, 1], [], []>} : vector<16x64xbf16>, vector<64x2048xbf16>, vector<16x2048xf32> -> vector<16x2048xf32>
      %582 = vector.broadcast %89 : vector<1x2048xf32> to vector<16x2048xf32>
      %583 = arith.addf %581, %582 : vector<16x2048xf32>
      %cst_132 = arith.constant 0.000000e+00 : f32
      %584 = vector.broadcast %cst_132 : f32 to vector<16x2048xf32>
      %585 = arith.maximumf %583, %584 : vector<16x2048xf32>
      %586 = arith.truncf %585 : vector<16x2048xf32> to vector<16x2048xbf16>
      %cst_133 = arith.constant dense<0.000000e+00> : vector<16x64xf32>
      %587 = tpu.matmul %586, %86, %cst_133 {dimension_numbers = #tpu.dot_dimension_numbers<[1], [1], [0], [0], [0, 0, 1, 0], [], []>} : vector<16x2048xbf16>, vector<64x2048xbf16>, vector<16x64xf32> -> vector<16x64xf32>
      %588 = vector.extract_strided_slice %92 {offsets = [14, 0], sizes = [1, 64], strides = [1, 1]} : vector<15x64xf32> to vector<1x64xf32>
      %589 = vector.broadcast %588 : vector<1x64xf32> to vector<16x64xf32>
      %590 = arith.addf %587, %589 : vector<16x64xf32>
      %591 = arith.addf %579, %590 : vector<16x64xf32>
      %592 = vector.extract_strided_slice %92 {offsets = [12, 0], sizes = [1, 64], strides = [1, 1]} : vector<15x64xf32> to vector<1x64xf32>
      %593 = vector.extract_strided_slice %92 {offsets = [13, 0], sizes = [1, 64], strides = [1, 1]} : vector<15x64xf32> to vector<1x64xf32>
      %cst_134 = arith.constant dense<0.000000e+00> : vector<16xf32>
      %594 = vector.multi_reduction <add>, %591, %cst_134 [1] : vector<16x64xf32> to vector<16xf32>
      %595 = vector.shape_cast %594 : vector<16xf32> to vector<16x1xf32>
      %cst_135 = arith.constant 6.400000e+01 : f32
      %596 = vector.broadcast %cst_135 : f32 to vector<16x1xf32>
      %597 = arith.divf %595, %596 : vector<16x1xf32>
      %598 = vector.broadcast %597 : vector<16x1xf32> to vector<16x64xf32>
      %599 = arith.subf %591, %598 : vector<16x64xf32>
      %600 = arith.mulf %599, %599 : vector<16x64xf32>
      %cst_136 = arith.constant dense<0.000000e+00> : vector<16xf32>
      %601 = vector.multi_reduction <add>, %600, %cst_136 [1] : vector<16x64xf32> to vector<16xf32>
      %602 = vector.shape_cast %601 : vector<16xf32> to vector<16x1xf32>
      %cst_137 = arith.constant 6.400000e+01 : f32
      %603 = vector.broadcast %cst_137 : f32 to vector<16x1xf32>
      %604 = arith.divf %602, %603 : vector<16x1xf32>
      %cst_138 = arith.constant 9.99999974E-6 : f32
      %605 = vector.broadcast %cst_138 : f32 to vector<16x1xf32>
      %606 = arith.addf %604, %605 : vector<16x1xf32>
      %607 = math.rsqrt %606 : vector<16x1xf32>
      %608 = vector.broadcast %607 : vector<16x1xf32> to vector<16x64xf32>
      %609 = arith.mulf %599, %608 : vector<16x64xf32>
      %610 = vector.broadcast %592 : vector<1x64xf32> to vector<16x64xf32>
      %611 = arith.mulf %609, %610 : vector<16x64xf32>
      %612 = vector.broadcast %593 : vector<1x64xf32> to vector<16x64xf32>
      %613 = arith.addf %611, %612 : vector<16x64xf32>
      scf.yield %613 : vector<16x64xf32>
    }
    %c6_i32_13 = arith.constant 6 : i32
    %c0_14 = arith.constant 0 : index
    %c0_15 = arith.constant 0 : index
    %c0_16 = arith.constant 0 : index
    %63 = vector.load %arg12[%c0_14, %c0_15, %c0_16] : memref<1x16x64xf32, #tpu.memory_space<vmem>>, vector<1x16x64xf32>
    %64 = vector.shape_cast %63 : vector<1x16x64xf32> to vector<16x64xf32>
    %65 = vector.shape_cast %62 : vector<16x64xf32> to vector<1x16x64xf32>
    tpu.vector_store %arg12[%c0_14, %c0_15, %c0_16], %65 {strides = array<i32>} : memref<1x16x64xf32, #tpu.memory_space<vmem>>, vector<1x16x64xf32>,
    return
  }
  func.func @transform_0(%arg0: i32) -> (i32, i32, i32) {
    %c0_i32 = arith.constant 0 : i32
    %c0_i32_0 = arith.constant 0 : i32
    %c0_i32_1 = arith.constant 0 : i32
    return %arg0, %c0_i32, %c0_i32_0 : i32, i32, i32
  }
  func.func @transform_1(%arg0: i32) -> (i32, i32, i32) {
    %c0_i32 = arith.constant 0 : i32
    %c0_i32_0 = arith.constant 0 : i32
    %c0_i32_1 = arith.constant 0 : i32
    return %arg0, %c0_i32, %c0_i32_0 : i32, i32, i32
  }
  func.func @transform_2(%arg0: i32) -> (i32, i32, i32) {
    %c0_i32 = arith.constant 0 : i32
    %c0_i32_0 = arith.constant 0 : i32
    %c0_i32_1 = arith.constant 0 : i32
    %c0_i32_2 = arith.constant 0 : i32
    return %c0_i32, %c0_i32_0, %c0_i32_1 : i32, i32, i32
  }
  func.func @transform_3(%arg0: i32) -> (i32, i32, i32) {
    %c0_i32 = arith.constant 0 : i32
    %c0_i32_0 = arith.constant 0 : i32
    %c0_i32_1 = arith.constant 0 : i32
    %c0_i32_2 = arith.constant 0 : i32
    return %c0_i32, %c0_i32_0, %c0_i32_1 : i32, i32, i32
  }
  func.func @transform_4(%arg0: i32) -> (i32, i32, i32) {
    %c0_i32 = arith.constant 0 : i32
    %c0_i32_0 = arith.constant 0 : i32
    %c0_i32_1 = arith.constant 0 : i32
    %c0_i32_2 = arith.constant 0 : i32
    return %c0_i32, %c0_i32_0, %c0_i32_1 : i32, i32, i32
  }
  func.func @transform_5(%arg0: i32) -> (i32, i32, i32) {
    %c0_i32 = arith.constant 0 : i32
    %c0_i32_0 = arith.constant 0 : i32
    %c0_i32_1 = arith.constant 0 : i32
    %c0_i32_2 = arith.constant 0 : i32
    return %c0_i32, %c0_i32_0, %c0_i32_1 : i32, i32, i32
  }
  func.func @transform_6(%arg0: i32) -> (i32, i32, i32) {
    %c0_i32 = arith.constant 0 : i32
    %c0_i32_0 = arith.constant 0 : i32
    %c0_i32_1 = arith.constant 0 : i32
    %c0_i32_2 = arith.constant 0 : i32
    return %c0_i32, %c0_i32_0, %c0_i32_1 : i32, i32, i32
  }
  func.func @transform_7(%arg0: i32) -> (i32, i32, i32) {
    %c0_i32 = arith.constant 0 : i32
    %c0_i32_0 = arith.constant 0 : i32
    %c0_i32_1 = arith.constant 0 : i32
    %c0_i32_2 = arith.constant 0 : i32
    return %c0_i32, %c0_i32_0, %c0_i32_1 : i32, i32, i32
  }
  func.func @transform_8(%arg0: i32) -> (i32, i32, i32) {
    %c0_i32 = arith.constant 0 : i32
    %c0_i32_0 = arith.constant 0 : i32
    %c0_i32_1 = arith.constant 0 : i32
    %c0_i32_2 = arith.constant 0 : i32
    return %c0_i32, %c0_i32_0, %c0_i32_1 : i32, i32, i32
  }
  func.func @transform_9(%arg0: i32) -> (i32, i32, i32) {
    %c0_i32 = arith.constant 0 : i32
    %c0_i32_0 = arith.constant 0 : i32
    %c0_i32_1 = arith.constant 0 : i32
    %c0_i32_2 = arith.constant 0 : i32
    return %c0_i32, %c0_i32_0, %c0_i32_1 : i32, i32, i32
  }
  func.func @transform_10(%arg0: i32) -> (i32, i32, i32) {
    %c0_i32 = arith.constant 0 : i32
    %c0_i32_0 = arith.constant 0 : i32
    %c0_i32_1 = arith.constant 0 : i32
    %c0_i32_2 = arith.constant 0 : i32
    return %c0_i32, %c0_i32_0, %c0_i32_1 : i32, i32, i32
  }
  func.func @transform_11(%arg0: i32) -> (i32, i32, i32) {
    %c0_i32 = arith.constant 0 : i32
    %c0_i32_0 = arith.constant 0 : i32
    %c0_i32_1 = arith.constant 0 : i32
    return %arg0, %c0_i32, %c0_i32_0 : i32, i32, i32
  }
}

</mosaic_0001>

<bundles_post_ra>
// kernel: swarmalator_forward.2
= control target key start
LH: loop header
LB: loop body
LE: loop exit
PB: predicated region body
PF: predicated region fallthrough
CT: control target
= control target key end

     0   :  { %12 = vsyncpa [#allocation3], 0  ;;  %s4836_s0 = inlined_call_operand.vmem [shape: f32[2,16,64], index: 0, kind: input, shape index: {}]   ;;  %s4837_s1 = inlined_call_operand.hbm [shape: bf16[6,64,192], index: 1, kind: input, shape index: {}]   ;;  %s4838_s2 = inlined_call_operand.hbm [shape: bf16[6,64,64], index: 2, kind: input, shape index: {}]   ;;  %s4839_s3 = inlined_call_operand.hbm [shape: bf16[6,64,2048], index: 3, kind: input, shape index: {}]   ;;  %s4840_s4 = inlined_call_operand.hbm [shape: bf16[6,64,2048], index: 4, kind: input, shape index: {}]   ;;  %s4841_s5 = inlined_call_operand.hbm [shape: f32[6,1,2048], index: 5, kind: input, shape index: {}]   ;;  %s4842_s6 = inlined_call_operand.vmem [shape: f32[6,9,64], index: 6, kind: input, shape index: {}]   ;;  %s4843_s7 = inlined_call_operand.vmem [shape: f32[2,16,64], index: 7, kind: output, shape index: {}]  }
   0x1   :  { %13 = vsyncpa [#allocation5], 0 }
   0x2   :  { %14 = vsyncpa [#allocation8], 0  ;;  %s3960_s24 = smov 0  }
   0x3 LB: > { %s228_s27 = sshll.u32 %s4838_s2, 4  ;;  %s3969_s28 = sadd.s32 4294967295, %s3891_s24   ;;  %s3891_s24 = sphi %s3960_s24, %s20_s24   ;;  %s229_s27 = int_to_ptr.hbm [resolvable:$true] %s228_s27 }
   0x4   : > { %p2761_p0 = scmp.ge.s32.totalorder %s3891_s24, 1  ;;  %p203_p1 = scmp.lt.s32.totalorder %s3891_s24, 3 }
   0x5   : > { %p3572_p2 = scmp.eq.s32.totalorder %s3969_s28, 0  ;;  %s3905_s30 = smov [#allocation4]  }
   0x6   : > { %p3974_p3 = pnand %p2761_p0, %p203_p1  ;;  %s230_s8 = sshll.u32 %s3905_s30, 4  ;;  %s231_s8 = int_to_ptr.vmem [resolvable:$true] %s230_s8 }
   0x7   : > { %s256_s11 = sshll.u32 %s4840_s4, 4  ;;  %s214_s15 = sshll.u32 %s4837_s1, 4  ;;  %s257_s11 = int_to_ptr.hbm [resolvable:$true] %s256_s11  ;;  %s215_s15 = int_to_ptr.hbm [resolvable:$true] %s214_s15 }
   0x8   : > { %p3556_p4 = pneg %p3974_p3  ;;  %s3906_s16 = smov [#allocation7]  }
   0x9   : > { %s258_s17 = sshll.u32 %s3906_s16, 4  ;;  %s3907_s18 = smov 64   ;;  %s259_s17 = int_to_ptr.vmem [resolvable:$true] %s258_s17 }
   0xa   : > { %p3985_p5 = pnand %p3572_p2, %p3556_p4  ;;  %s3908_s19 = smov 4  }
   0xb   : > { %s3909_s20 = smov 1024   ;;  %s3910_s21 = smov [#allocation2]  }
   0xc   : > { %3562 = dma.hbm_to_vmem [thread:$0]  (!%p3985_p5), %s229_s27, 3072, %s231_s8, [#allocation5], %s3907_s18, %s3907_s18, %s3908_s19  }
   0xd   : > { %3568 = dma.hbm_to_vmem [thread:$0]  (!%p3985_p5), %s257_s11, 49152, %s259_s17, [#allocation8], %s3909_s20, %s3909_s20, %s3907_s18  }
   0xe   : > { %s216_s22 = sshll.u32 %s3910_s21, 4  ;;  %s242_s26 = sshll.u32 %s4839_s3, 4  ;;  %s217_s22 = int_to_ptr.vmem [resolvable:$true] %s216_s22  ;;  %s243_s26 = int_to_ptr.hbm [resolvable:$true] %s242_s26 }
   0xf   : > { %s3911_s30 = smov 128   ;;  %s3912_s9 = smov 8  }
  0x10   : > { %3559 = dma.hbm_to_vmem [thread:$0]  (!%p3985_p5), %s215_s15, 6144, %s217_s22, [#allocation3], %s3911_s30, %s3911_s30, %s3912_s9  }
  0x11   : > { %s3913_s27 = smov [#allocation6]   ;;  %s270_s14 = sshll.u32 %s4841_s5, 4  ;;  %s271_s14 = int_to_ptr.hbm [resolvable:$true] %s270_s14 }
  0x12   : > { %s244_s8 = sshll.u32 %s3913_s27, 4  ;;  %s3914_s11 = smov [#allocation9]   ;;  %s245_s8 = int_to_ptr.vmem [resolvable:$true] %s244_s8 }
  0x13   : > { %3565 = dma.hbm_to_vmem [thread:$0]  (!%p3985_p5), %s243_s26, 49152, %s245_s8, [#allocation5], %s3909_s20, %s3909_s20, %s3907_s18  }
  0x14   : > { %s272_s16 = sshll.u32 %s3914_s11, 4  ;;  %s3915_s17 = smov 256   ;;  %s273_s16 = int_to_ptr.vmem [resolvable:$true] %s272_s16 }
  0x15   : > { %s3916_s19 = smov 16   ;;  %299 = sbr.rel (%p3974_p3) target bundleno = 2354 (0x932), region = 48 }
  0x16   : > { %3571 = dma.hbm_to_vmem [thread:$0]  (!%p3985_p5), %s271_s14, 1536, %s273_s16, [#allocation8], %s3915_s17, %s3915_s17, %s3916_s19  }
  0x1a   : > { %3878 = dma.done.wait (%p3572_p2), [#allocation3], 6144  }
  0x1b   : > { %3880 = vsyncadd (%p3572_p2), [#allocation3], 4294961152 }
  0x1c   : > { %3882 = dma.done.wait (%p3572_p2), [#allocation5], 52224  }
  0x1d   : > { %3884 = vsyncadd (%p3572_p2), [#allocation5], 4294915072 }
  0x1e   : > { %3886 = dma.done.wait (%p3572_p2), [#allocation8], 50688  }
  0x1f   : > { %3888 = vsyncadd (%p3572_p2), [#allocation8], 4294916608  ;;  %p352_p6 = scmp.lt.s32.totalorder %s3969_s28, 1  ;;  %v363_v0 = vlaneseq  ;;  %v3917_v2 = vmov 0.0  }
  0x21   : > { %s4849_s28 = smov (!%p352_p6, %s3969_s28), 1  ;;  %v364_v1 = vand.u32 127, %v363_v0 }
  0x22   : > { %s3390_s29 = sshll.u32 %s4849_s28, 4  ;;  %s4052_s28 = smov 0  }
  0x23   : > { %vm366_vm0 = vcmp.lt.s32.totalorder %v364_v1, 8  ;;  %vm370_vm1 = vcmp.ge.s32.totalorder %v364_v1, 8  ;;  %vm371_vm2 = vcmp.lt.s32.totalorder %v364_v1, 16  ;;  %vm375_vm3 = vcmp.ge.s32.totalorder %v364_v1, 16  ;;  %s356_s18 = scalar_lea.vmem %s4836_s0, %s3390_s29  ;;  %s4030_s22 = scalar_lea.vmem %s4843_s7, %s3390_s29 }
  0x24   : > { %v4032_v3 = vsel %vm366_vm0, 1.0, %v3917_v2  ;;  %vm372_vm4 = vmand %vm370_vm1, %vm371_vm2  ;;  %vm376_vm5 = vcmp.lt.s32.totalorder %v364_v1, 24  ;;  %vm380_vm6 = vcmp.ge.s32.totalorder %v364_v1, 24  ;;  %vm381_vm7 = vcmp.lt.s32.totalorder %v364_v1, 32  ;;  %v405_v5 = vld [vmem:[%s356_s18] sm:$0xff]   ;;  %v406_v6 = vld [vmem:[%s356_s18 + $0x8] sm:$0xff]  }
  0x25   : > { %v4034_v4 = vsel %vm372_vm4, 1.0, %v3917_v2  ;;  %vm377_vm8 = vmand %vm375_vm3, %vm376_vm5  ;;  %vm385_vm9 = vcmp.ge.s32.totalorder %v364_v1, 32  ;;  %vm386_vm10 = vcmp.lt.s32.totalorder %v364_v1, 40  ;;  %vm390_vm11 = vcmp.ge.s32.totalorder %v364_v1, 40 }
  0x26   : > { %v4036_v7 = vsel %vm377_vm8, 1.0, %v3917_v2  ;;  %vm382_vm12 = vmand %vm380_vm6, %vm381_vm7  ;;  %vm391_vm13 = vcmp.lt.s32.totalorder %v364_v1, 48  ;;  %vm395_vm14 = vcmp.ge.s32.totalorder %v364_v1, 48  ;;  %vm396_vm15 = vcmp.lt.s32.totalorder %v364_v1, 56 }
  0x27   : > { %v4038_v8 = vsel %vm382_vm12, 1.0, %v3917_v2  ;;  %vm387_vm0 = vmand %vm385_vm9, %vm386_vm10  ;;  %vm400_vm1 = vcmp.ge.s32.totalorder %v364_v1, 56  ;;  %vm401_vm2 = vcmp.lt.s32.totalorder %v364_v1, 64 }
  0x28   : > { %v4040_v9 = vsel %vm387_vm0, 1.0, %v3917_v2  ;;  %vm392_vm4 = vmand %vm390_vm11, %vm391_vm13 }
  0x29   : > { %v4042_v10 = vsel %vm392_vm4, 1.0, %v3917_v2  ;;  %vm397_vm3 = vmand %vm395_vm14, %vm396_vm15 }
  0x2a   : > { %v4044_v11 = vsel %vm397_vm3, 1.0, %v3917_v2  ;;  %vm402_vm5 = vmand %vm400_vm1, %vm401_vm2 }
  0x2b   : > { %v4046_v12 = vsel %vm402_vm5, 1.0, %v3917_v2 }
  0x2c LB: >> { %s3392_s23 = sshll.u32 %s3903_s28, 6  ;;  %s2786_s26 = sshll.u32 %s3903_s28, 4  ;;  %v4091_v27 = vpack.c.bf16 %v3895_v6, %v3899_v5  ;;  %vm617_vm6 = vcmask 523264   ;;  %v3629_v28 = vpack.i.bf16 %v4036_v7, %v4038_v8  ;;  %vm697_vm7 = vcmask 130048   ;;  %s3903_s28 = sphi %s4052_s28, %s412_s28   ;;  %v3899_v5 = vphi %v405_v5, %v4847_v5   ;;  %v3895_v6 = vphi %v406_v6, %v4846_v6  }
  0x2d   : >> { %s4064_s25 = scalar_lea.vmem [#allocation2], %s3392_s23  ;;  %s4076_s27 = scalar_lea.vmem %s4842_s6, %s2786_s26 }
  0x2e   : >> { %v2819_v13 = vld [vmem:[%s4064_s25 + $0x30] sm:$0xf]  ;;  %v3400_v14 = vld [vmem:[%s4064_s25 + $0x34] sm:$0xf0]  ;;  %v2811_v16 = vld [vmem:[%s4064_s25 + $0x20] sm:$0xf] }
  0x2f   : >> { %v2820_v15 = vor.u32 %v3400_v14, %v2819_v13  ;;  %v3398_v17 = vld [vmem:[%s4064_s25 + $0x24] sm:$0xf0]  ;;  %v4079_v18 = vld [vmem:[%s4076_s27] sm:$0xff]  ;;  %v2803_v21 = vld [vmem:[%s4064_s25 + $0x10] sm:$0xf]  ;;  %s3918_s8 = smov 64  }
  0x30   : >> { %v2812_v19 = vor.u32 %v3398_v17, %v2811_v16  ;;  %v652_v20 = vperm.slane %v4079_v18, 1  ;;  %v3396_v22 = vld [vmem:[%s4064_s25 + $0x14] sm:$0xf0]  ;;  %v2795_v24 = vld [vmem:[%s4064_s25] sm:$0xf]  ;;  %v649_v31 = vperm.slane %v4079_v18, 0 }
  0x31   : >> { %625 = vmatpush.bf16.msra.mxu0 %v2820_v15  ;;  %v2804_v23 = vor.u32 %v3396_v22, %v2803_v21  ;;  %v3394_v25 = vld [vmem:[%s4064_s25 + $0x4] sm:$0xf0]  ;;  %v3399_v17 = vld [vmem:[%s4064_s25 + $0x34] sm:$0xf]  ;;  %v3397_v21 = vld [vmem:[%s4064_s25 + $0x24] sm:$0xf] }
  0x32   : >> { %654 = vrot.lane.b32.xlu0 %v652_v20, %s3918_s8  ;;  %v2796_v26 = vor.u32 %v3394_v25, %v2795_v24  ;;  %v2813_v22 = vld [vmem:[%s4064_s25 + $0x28] sm:$0xf0]  ;;  %v3395_v24 = vld [vmem:[%s4064_s25 + $0x14] sm:$0xf]  ;;  %v2805_v25 = vld [vmem:[%s4064_s25 + $0x18] sm:$0xf0] }
  0x33   : >> { %s3401_s10 = sshll.u32 %s3903_s28, 5  ;;  %s3406_s14 = sshll.u32 %s3903_s28, 9 }
  0x34   : >> { %s428_s13 = scalar_lea.vmem [#allocation4], %s3401_s10  ;;  %s4456_s11 = scalar_lea.vmem [#allocation6], %s3406_s14 }
  0x35   : >> { %626 = vmatpush.bf16.msra.mxu0 %v2812_v19  ;;  %v2821_v19 = vld [vmem:[%s4064_s25 + $0x38] sm:$0xf0]  ;;  %s4634_s16 = scalar_lea.vmem [#allocation7], %s3406_s14  ;;  %s4718_s17 = scalar_lea.vmem [#allocation9], %s2786_s26 }
  0x36   : >> { %v2824_v20 = vor.u32 %v3399_v17, %v2821_v19  ;;  %s412_s28 = sadd.s32 1, %s3903_s28  }
  0x37   : >> { %p409_p7 = scmp.ge.s32.totalorder %s412_s28, 6  }
  0x38   : >> { %639 = vmatpush.bf16.msra.mxu1 %v2824_v20 }
  0x39   : >> { %627 = vmatpush.bf16.msra.mxu0 %v2804_v23  ;;  %v2816_v23 = vor.u32 %v3397_v21, %v2813_v22 }
  0x3a   : >> { %728 = vrot.lane.b32.xlu0 %v4034_v4, %s3918_s8 }
  0x3c   : >> { %640 = vmatpush.bf16.msra.mxu1 %v2816_v23 }
  0x3d   : >> { %628 = vmatpush.bf16.msra.mxu0 %v2796_v26  ;;  %v2808_v26 = vor.u32 %v3395_v24, %v2805_v25 }
  0x40   : >> { %2825 = vmatmul.msk.bf16.vlgmr.msra.gmra.mxu0 %vm617_vm6, %v4091_v27  ;;  %641 = vmatpush.bf16.msra.mxu1 %v2808_v26 }
  0x42   : >> { %3630 = vrot.lane.b32.xlu0 %v3629_v28, %s3918_s8  ;;  %v3393_v28 = vld [vmem:[%s4064_s25 + $0x4] sm:$0xf] }
  0xa4   : >> { %v655_v29 = vpop.permute.xlu0 %654 }
  0xac   : >> { %v729_v35 = vpop.permute.xlu0 %728 }
  0xbd   : >> { %v630_v30 = vpop.f32.mrf.mxu0 }
  0xbe   : >> { %v650_v32 = vadd.f32 %v649_v31, %v630_v30  ;;  %v4099_v33 = vadd.f32 %v655_v29, %v630_v30 }
  0xc0   : >> { %v731_v38 = vmul.f32 %v729_v35, %v4099_v33  ;;  %v662_v39 = vmul.f32 %v4032_v3, %v650_v32  ;;  %v4108_v42 = vmul.f32 %v4036_v7, %v650_v32  ;;  %v4111_v43 = vmul.f32 %v4038_v8, %v650_v32 }
  0xc1   : >> { %v4120_v46 = vmul.f32 %v4040_v9, %v650_v32  ;;  %v4126_v50 = vmul.f32 %v4042_v10, %v650_v32  ;;  %v4135_v54 = vmul.f32 %v4044_v11, %v650_v32  ;;  %v4145_v57 = vmul.f32 %v4046_v12, %v650_v32 }
  0xc2   : >> { %v724_v1 = vmul.f32 %v4034_v4, %v650_v32 }
  0xc5   : >> { %v632_v34 = vpop.f32.mrf.mxu0 }
  0xc6   : >> { %v651_v36 = vadd.f32 %v649_v31, %v632_v34  ;;  %v4101_v37 = vadd.f32 %v655_v29, %v632_v34  ;;  %v2797_v29 = vld [vmem:[%s4064_s25 + $0x8] sm:$0xf0] }
  0xc7   : >> { %v2800_v32 = vor.u32 %v3393_v28, %v2797_v29 }
  0xc8   : >> { %v732_v40 = vmul.f32 %v729_v35, %v4101_v37  ;;  %v663_v41 = vmul.f32 %v4032_v3, %v651_v36  ;;  %v4114_v44 = vmul.f32 %v4036_v7, %v651_v36  ;;  %v4117_v45 = vmul.f32 %v4038_v8, %v651_v36 }
  0xc9   : >> { %v4123_v47 = vmul.f32 %v4040_v9, %v651_v36  ;;  %v4139_v55 = vmul.f32 %v4042_v10, %v651_v36  ;;  %v4142_v56 = vmul.f32 %v4044_v11, %v651_v36  ;;  %v4148_v58 = vmul.f32 %v4046_v12, %v651_v36  ;;  %642 = vmatpush.bf16.msra.mxu1 %v2800_v32 }
  0xca   : >> { %v733_v48 = vpack.c.bf16 %v732_v40, %v731_v38  ;;  %v664_v49 = vpack.c.bf16 %v663_v41, %v662_v39  ;;  %v821_v51 = vpack.c.bf16 %v4114_v44, %v4108_v42  ;;  %v901_v52 = vpack.c.bf16 %v4117_v45, %v4111_v43 }
  0xcb   : >> { %v981_v53 = vpack.c.bf16 %v4123_v47, %v4120_v46  ;;  %v1061_v59 = vpack.c.bf16 %v4139_v55, %v4126_v50  ;;  %v1141_v60 = vpack.c.bf16 %v4142_v56, %v4135_v54  ;;  %v1221_v61 = vpack.c.bf16 %v4148_v58, %v4145_v57 }
  0xcc   : >> { %735 = vrot.lane.b32.xlu1 %v733_v48, %s3918_s8  ;;  %v725_v0 = vmul.f32 %v4034_v4, %v651_v36  ;;  %2826 = vmatmul.msk.bf16.vlgmr.msra.gmra.mxu1 %vm617_vm6, %v4091_v27  ;;  %v3631_v27 = vpop.permute.xlu0 %3630 }
  0xcd   : >> { %v3632_v41 = vunpack.i.l.bf16 %v3631_v27 }
  0xce   : >> { %v726_v2 = vpack.c.bf16 %v725_v0, %v724_v1 }
  0xcf   : >> { %v907_v48 = vmul.f32 %v3632_v41, %v4101_v37 }
  0xd4   : >> { %666 = vrot.lane.b32.xlu1 %v4032_v3, %s3918_s8 }
 0x13e   : >> { %v736_v62 = vpop.permute.xlu1 %735 }
 0x13f   : >> { %v741_v63 = vsel %vm617_vm6, %v736_v62, 0 }
 0x140   : >> { %750 = vmatpush.bf16.xpose.msra.mxu3 %v741_v63 }
 0x146   : >> { %v667_v13 = vpop.permute.xlu1 %666 }
 0x147   : >> { %v669_v14 = vmul.f32 %v667_v13, %v4099_v33  ;;  %v670_v15 = vmul.f32 %v667_v13, %v4101_v37  ;;  %2828 = vmatmul.msk.bf16.vlgmr.msra.gmra.mxu3 %vm617_vm6, %v726_v2  ;;  %v659_v13 = vperm.slane %v4079_v18, 2 }
 0x149   : >> { %v671_v16 = vpack.c.bf16 %v670_v15, %v669_v14  ;;  %v644_v2 = vpop.f32.mrf.mxu1 }
 0x14b   : >> { %673 = vrot.lane.b32.xlu1 %v671_v16, %s3918_s8  ;;  %v4191_v16 = vadd.f32 %v659_v13, %v644_v2 }
 0x14d   : >> { %v782_v23 = vmul.f32 %v4034_v4, %v4191_v16 }
 0x151   : >> { %v646_v20 = vpop.f32.mrf.mxu1 }
 0x152   : >> { %v4197_v22 = vadd.f32 %v659_v13, %v646_v20 }
 0x154   : >> { %v783_v24 = vmul.f32 %v4034_v4, %v4197_v22 }
 0x156   : >> { %v784_v26 = vpack.c.bf16 %v783_v24, %v782_v23  ;;  %v721_v24 = vmul.f32 %v4032_v3, %v4191_v16 }
 0x1bd   : >> { %v674_v30 = vpop.permute.xlu1 %673 }
 0x1be   : >> { %v679_v31 = vsel %vm617_vm6, %v674_v30, 0 }
 0x1bf   : >> { %688 = vmatpush.bf16.xpose.msra.mxu2 %v679_v31  ;;  %v3633_v31 = vunpack.i.h.bf16 %v3631_v27 }
 0x1c6   : >> { %2827 = vmatmul.msk.bf16.vlgmr.msra.gmra.mxu2 %vm617_vm6, %v664_v49  ;;  %v906_v49 = vmul.f32 %v3632_v41, %v4099_v33 }
 0x1c7   : >> { %795 = vmatpush.bf16.msrb.mxu2 %v784_v26  ;;  %v877_v26 = vmul.f32 %v4036_v7, %v4191_v16 }
 0x1c8   : >> { %v908_v62 = vpack.c.bf16 %v907_v48, %v906_v49 }
 0x1ca   : >> { %v752_v34 = vpop.f32.mrf.mxu3 }
 0x1cb   : >> { %v757_v35 = vmul.f32 0.35355338, %v752_v34 }
 0x1cd   : >> { %v759_v36 = vsel %vm697_vm7, %v757_v35, -inf }
 0x1ce   : >> { %760 = vmax.xlane.f32.xlu2 %v759_v36  ;;  %v827_v36 = vmul.f32 %v3633_v31, %v4101_v37 }
 0x1d2   : >> { %v754_v38 = vpop.f32.mrf.mxu3 }
 0x1d3   : >> { %v758_v39 = vmul.f32 0.35355338, %v754_v38  ;;  %v826_v38 = vmul.f32 %v3633_v31, %v4099_v33  ;;  %v958_v31 = vmul.f32 %v4038_v8, %v4197_v22 }
 0x1d5   : >> { %v762_v40 = vsel %vm697_vm7, %v758_v39, -inf }
 0x1d6   : >> { %763 = vmax.xlane.f32.xlu2 %v762_v40 }
 0x1ee   : >> { %1063 = vrot.lane.b32.xlu2 %v4042_v10, %s3918_s8 }
 0x1f6   : >> { %983 = vrot.lane.b32.xlu2 %v4040_v9, %s3918_s8 }
 0x1fe   : >> { %1223 = vrot.lane.b32.xlu2 %v4046_v12, %s3918_s8 }
 0x206   : >> { %1143 = vrot.lane.b32.xlu2 %v4044_v11, %s3918_s8 }
 0x20e   : >> { %910 = vrot.lane.b32.xlu2 %v908_v62, %s3918_s8 }
 0x241   : >> { %v761_v63 = vpop.xlane.xlu2 %760 }
 0x242   : >> { %v765_v0 = vsub.f32 %v757_v35, %v761_v63 }
 0x244   : >> { %v767_v1 = vmul.f32 1.442695, %v765_v0 }
 0x246   : >> { %3635 = vpow2.f32 %v767_v1 }
 0x249   : >> { %v764_v14 = vpop.xlane.xlu2 %763 }
 0x24a   : >> { %v766_v15 = vsub.f32 %v758_v39, %v764_v14  ;;  %v828_v39 = vpack.c.bf16 %v827_v36, %v826_v38 }
 0x24c   : >> { %v4193_v17 = vpop.eup %3635  ;;  %v769_v19 = vmul.f32 1.442695, %v766_v15 }
 0x24d   : >> { %v771_v21 = vsel %vm697_vm7, %v4193_v17, 0.0 }
 0x24e   : >> { %3637 = vpow2.f32 %v769_v19  ;;  %772 = vadd.xlane.f32.xlu0 %v771_v21  ;;  %v690_v19 = vpop.f32.mrf.mxu2 }
 0x24f   : >> { %v4220_v20 = vmul.f32 0.35355338, %v690_v19 }
 0x251   : >> { %v1064_v25 = vpop.permute.xlu2 %1063  ;;  %v698_v21 = vsel %vm697_vm7, %v4220_v20, -inf }
 0x252   : >> { %v1066_v49 = vmul.f32 %v1064_v25, %v4099_v33  ;;  %v1067_v62 = vmul.f32 %v1064_v25, %v4101_v37  ;;  %v722_v25 = vmul.f32 %v4032_v3, %v4197_v22 }
 0x254   : >> { %v3638_v28 = vpop.eup %3637  ;;  %v1068_v13 = vpack.c.bf16 %v1067_v62, %v1066_v49 }
 0x255   : >> { %v774_v29 = vsel %vm697_vm7, %v3638_v28, 0.0 }
 0x256   : >> { %775 = vadd.xlane.f32.xlu1 %v774_v29  ;;  %v878_v29 = vmul.f32 %v4036_v7, %v4197_v22 }
 0x258   : >> { %v879_v36 = vpack.c.bf16 %v878_v29, %v877_v26 }
 0x259   : >> { %v984_v30 = vpop.permute.xlu2 %983 }
 0x25a   : >> { %v986_v32 = vmul.f32 %v984_v30, %v4099_v33  ;;  %v987_v34 = vmul.f32 %v984_v30, %v4101_v37  ;;  %v957_v30 = vmul.f32 %v4038_v8, %v4191_v16  ;;  %890 = vmatpush.bf16.msrb.mxu1 %v879_v36 }
 0x25c   : >> { %v988_v35 = vpack.c.bf16 %v987_v34, %v986_v32  ;;  %v1037_v32 = vmul.f32 %v4040_v9, %v4191_v16  ;;  %v1038_v34 = vmul.f32 %v4040_v9, %v4197_v22  ;;  %v959_v38 = vpack.c.bf16 %v958_v31, %v957_v30 }
 0x25e   : >> { %990 = vrot.lane.b32.xlu2 %v988_v35, %s3918_s8  ;;  %v723_v35 = vpack.c.bf16 %v722_v25, %v721_v24 }
 0x260   : >> { %812 = vmatpush.bf16.msrb.mxu3 %v723_v35 }
 0x261   : >> { %v1224_v40 = vpop.permute.xlu2 %1223 }
 0x262   : >> { %v1226_v41 = vmul.f32 %v1224_v40, %v4099_v33  ;;  %v1227_v48 = vmul.f32 %v1224_v40, %v4101_v37  ;;  %830 = vrot.lane.b32.xlu0 %v828_v39, %s3918_s8  ;;  %v1039_v39 = vpack.c.bf16 %v1038_v34, %v1037_v32 }
 0x264   : >> { %v1228_v27 = vpack.c.bf16 %v1227_v48, %v1226_v41  ;;  %970 = vmatpush.bf16.msra.mxu3 %v959_v38  ;;  %1050 = vmatpush.bf16.msra.mxu1 %v1039_v39 }
 0x266   : >> { %1230 = vrot.lane.b32.xlu2 %v1228_v27, %s3918_s8 }
 0x269   : >> { %v1144_v63 = vpop.permute.xlu2 %1143 }
 0x26a   : >> { %v1146_v0 = vmul.f32 %v1144_v63, %v4099_v33  ;;  %v1147_v1 = vmul.f32 %v1144_v63, %v4101_v37  ;;  %v692_v33 = vpop.f32.mrf.mxu2 }
 0x26b   : >> { %v4224_v23 = vmul.f32 0.35355338, %v692_v33 }
 0x26c   : >> { %v1148_v2 = vpack.c.bf16 %v1147_v1, %v1146_v0 }
 0x26d   : >> { %v701_v37 = vsel %vm697_vm7, %v4224_v23, -inf }
 0x26e   : >> { %1150 = vrot.lane.b32.xlu0 %v1148_v2, %s3918_s8 }
 0x26f   : >> { %1070 = vrot.lane.b32.xlu1 %v1068_v13, %s3918_s8 }
 0x271   : >> { %v911_v14 = vpop.permute.xlu2 %910 }
 0x272   : >> { %v916_v15 = vsel %vm617_vm6, %v911_v14, 0 }
 0x273   : >> { %925 = vmatpush.bf16.xpose.msra.mxu2 %v916_v15 }
 0x28f   : >> { %699 = vmax.xlane.f32.xlu2 %v698_v21 }
 0x299   : >> { %702 = vmax.xlane.f32.xlu1 %v701_v37 }
 0x2b8   : >> { %v991_v63 = vpop.permute.xlu2 %990 }
 0x2b9   : >> { %v996_v13 = vsel %vm617_vm6, %v991_v63, 0 }
 0x2c0   : >> { %v1231_v15 = vpop.permute.xlu2 %1230 }
 0x2c1   : >> { %v773_v40 = vpop.xlane.xlu0 %772  ;;  %v1236_v21 = vsel %vm617_vm6, %v1231_v15, 0 }
 0x2c2   : >> { %3639 = vrcp.f32 %v773_v40 }
 0x2c8   : >> { %v3640_v48 = vpop.eup %3639 }
 0x2c9   : >> { %v776_v41 = vpop.xlane.xlu1 %775  ;;  %v779_v49 = vmul.f32 %v3640_v48, %v4193_v17 }
 0x2ca   : >> { %3641 = vrcp.f32 %v776_v41 }
 0x2d0   : >> { %v3642_v27 = vpop.eup %3641 }
 0x2d1   : >> { %v780_v62 = vmul.f32 %v3642_v27, %v3638_v28 }
 0x2d3   : >> { %v781_v0 = vpack.c.bf16 %v780_v62, %v779_v49 }
 0x2d4   : >> { %v831_v1 = vpop.permute.xlu0 %830 }
 0x2d5   : >> { %2829 = vmatmul.msk.bf16.vlgmr.msrb.gmra.mxu2 %vm697_vm7, %v781_v0  ;;  %v836_v2 = vsel %vm617_vm6, %v831_v1, 0 }
 0x2d6   : >> { %845 = vmatpush.bf16.xpose.msrb.mxu0 %v836_v2 }
 0x2dd   : >> { %2831 = vmatmul.msk.bf16.vlgmr.msrb.gmra.mxu0 %vm617_vm6, %v821_v51 }
 0x2de   : >> { %1005 = vmatpush.bf16.xpose.msra.mxu0 %v996_v13 }
 0x2e0   : >> { %v1151_v14 = vpop.permute.xlu0 %1150 }
 0x2e1   : >> { %v1156_v17 = vsel %vm617_vm6, %v1151_v14, 0  ;;  %v1071_v28 = vpop.permute.xlu1 %1070 }
 0x2e2   : >> { %v1076_v19 = vsel %vm617_vm6, %v1071_v28, 0 }
 0x2e3   : >> { %1085 = vmatpush.bf16.xpose.msrb.mxu2 %v1076_v19 }
 0x2e5   : >> { %2833 = vmatmul.msk.bf16.vlgmr.msra.gmra.mxu2 %vm617_vm6, %v901_v52 }
 0x2e6   : >> { %1165 = vmatpush.bf16.xpose.msrb.mxu0 %v1156_v17 }
 0x2eb   : >> { %1245 = vmatpush.bf16.xpose.msra.mxu2 %v1236_v21 }
 0x2ed   : >> { %2835 = vmatmul.msk.bf16.vlgmr.msra.gmra.mxu0 %vm617_vm6, %v981_v53 }
 0x2f5   : >> { %2837 = vmatmul.msk.bf16.vlgmr.msrb.gmra.mxu2 %vm617_vm6, %v1061_v59 }
 0x2fd   : >> { %2839 = vmatmul.msk.bf16.vlgmr.msrb.gmra.mxu0 %vm617_vm6, %v1141_v60 }
 0x302   : >> { %v700_v59 = vpop.xlane.xlu2 %699 }
 0x303   : >> { %v704_v24 = vsub.f32 %v4220_v20, %v700_v59 }
 0x305   : >> { %2841 = vmatmul.msk.bf16.vlgmr.msra.gmra.mxu2 %vm617_vm6, %v1221_v61  ;;  %v706_v29 = vmul.f32 1.442695, %v704_v24 }
 0x307   : >> { %3643 = vpow2.f32 %v706_v29 }
 0x30c   : >> { %v703_v31 = vpop.xlane.xlu1 %702 }
 0x30d   : >> { %v705_v36 = vsub.f32 %v4224_v23, %v703_v31  ;;  %v4313_v40 = vpop.eup %3643 }
 0x30e   : >> { %v710_v27 = vsel %vm697_vm7, %v4313_v40, 0.0 }
 0x30f   : >> { %v708_v39 = vmul.f32 1.442695, %v705_v36 }
 0x311   : >> { %3645 = vpow2.f32 %v708_v39 }
 0x317   : >> { %v4323_v0 = vpop.eup %3645 }
 0x318   : >> { %v713_v14 = vsel %vm697_vm7, %v4323_v0, 0.0 }
 0x358   : >> { %v4275_v42 = vpop.f32.mrf.mxu2 }
 0x35a   : >> { %v847_v43 = vpop.f32.mrf.mxu0 }
 0x35b   : >> { %v4277_v44 = vmul.f32 0.35355338, %v847_v43 }
 0x35d   : >> { %v854_v45 = vsel %vm697_vm7, %v4277_v44, -inf }
 0x35e   : >> { %855 = vmax.xlane.f32.xlu1 %v854_v45 }
 0x360   : >> { %v4281_v46 = vpop.f32.mrf.mxu2 }
 0x362   : >> { %v849_v47 = vpop.f32.mrf.mxu0 }
 0x363   : >> { %v4287_v54 = vmul.f32 0.35355338, %v849_v47 }
 0x365   : >> { %v857_v57 = vsel %vm697_vm7, %v4287_v54, -inf }
 0x368   : >> { %v927_v50 = vpop.f32.mrf.mxu2 }
 0x369   : >> { %v4283_v51 = vmul.f32 0.35355338, %v927_v50 }
 0x36a   : >> { %v1007_v53 = vpop.f32.mrf.mxu0 }
 0x36b   : >> { %v934_v52 = vsel %vm697_vm7, %v4283_v51, -inf  ;;  %v4295_v60 = vmul.f32 0.35355338, %v1007_v53 }
 0x36c   : >> { %935 = vmax.xlane.f32.xlu0 %v934_v52 }
 0x36d   : >> { %v1014_v25 = vsel %vm697_vm7, %v4295_v60, -inf }
 0x370   : >> { %v929_v55 = vpop.f32.mrf.mxu2 }
 0x371   : >> { %v4289_v56 = vmul.f32 0.35355338, %v929_v55 }
 0x372   : >> { %v1009_v61 = vpop.f32.mrf.mxu0 }
 0x373   : >> { %v937_v58 = vsel %vm697_vm7, %v4289_v56, -inf  ;;  %v4304_v30 = vmul.f32 0.35355338, %v1009_v61 }
 0x374   : >> { %858 = vmax.xlane.f32.xlu0 %v857_v57  ;;  %938 = vmax.xlane.f32.xlu2 %v937_v58 }
 0x375   : >> { %v1017_v20 = vsel %vm697_vm7, %v4304_v30, -inf }
 0x378   : >> { %v1087_v33 = vpop.f32.mrf.mxu2 }
 0x379   : >> { %v4297_v37 = vmul.f32 0.35355338, %v1087_v33 }
 0x37a   : >> { %v1167_v35 = vpop.f32.mrf.mxu0 }
 0x37b   : >> { %v1094_v26 = vsel %vm697_vm7, %v4297_v37, -inf  ;;  %v4333_v17 = vmul.f32 0.35355338, %v1167_v35 }
 0x37c   : >> { %1015 = vmax.xlane.f32.xlu0 %v1014_v25  ;;  %1095 = vmax.xlane.f32.xlu2 %v1094_v26 }
 0x37d   : >> { %v1174_v28 = vsel %vm697_vm7, %v4333_v17, -inf }
 0x380   : >> { %v1089_v32 = vpop.f32.mrf.mxu2 }
 0x381   : >> { %v4306_v34 = vmul.f32 0.35355338, %v1089_v32 }
 0x382   : >> { %v1169_v49 = vpop.f32.mrf.mxu0 }
 0x383   : >> { %v1097_v38 = vsel %vm697_vm7, %v4306_v34, -inf  ;;  %v4321_v62 = vmul.f32 0.35355338, %v1169_v49 }
 0x384   : >> { %1018 = vmax.xlane.f32.xlu2 %v1017_v20  ;;  %1098 = vmax.xlane.f32.xlu1 %v1097_v38 }
 0x385   : >> { %v1177_v13 = vsel %vm697_vm7, %v4321_v62, -inf }
 0x388   : >> { %v1247_v41 = vpop.f32.mrf.mxu2 }
 0x389   : >> { %v4315_v48 = vmul.f32 0.35355338, %v1247_v41 }
 0x38b   : >> { %v1254_v23 = vsel %vm697_vm7, %v4315_v48, -inf }
 0x38c   : >> { %711 = vadd.xlane.f32.xlu2 %v710_v27  ;;  %1255 = vmax.xlane.f32.xlu1 %v1254_v23 }
 0x390   : >> { %v1249_v63 = vpop.f32.mrf.mxu2 }
 0x391   : >> { %v4325_v1 = vmul.f32 0.35355338, %v1249_v63 }
 0x393   : >> { %v1257_v2 = vsel %vm697_vm7, %v4325_v1, -inf }
 0x394   : >> { %1258 = vmax.xlane.f32.xlu0 %v1257_v2  ;;  %1178 = vmax.xlane.f32.xlu2 %v1177_v13 }
 0x395   : >> { %714 = vadd.xlane.f32.xlu1 %v713_v14 }
 0x39c   : >> { %1175 = vmax.xlane.f32.xlu0 %v1174_v28 }
 0x3d1   : >> { %v856_v15 = vpop.xlane.xlu1 %855 }
 0x3d2   : >> { %v860_v19 = vsub.f32 %v4277_v44, %v856_v15 }
 0x3d4   : >> { %v862_v21 = vmul.f32 1.442695, %v860_v19 }
 0x3d6   : >> { %3647 = vpow2.f32 %v862_v21 }
 0x3dc   : >> { %v4338_v43 = vpop.eup %3647 }
 0x3dd   : >> { %v866_v45 = vsel %vm697_vm7, %v4338_v43, 0.0 }
 0x3de   : >> { %867 = vadd.xlane.f32.xlu2 %v866_v45 }
 0x3df   : >> { %v936_v47 = vpop.xlane.xlu0 %935 }
 0x3e0   : >> { %v940_v50 = vsub.f32 %v4283_v51, %v936_v47 }
 0x3e2   : >> { %v942_v52 = vmul.f32 1.442695, %v940_v50 }
 0x3e4   : >> { %3649 = vpow2.f32 %v942_v52 }
 0x3e7   : >> { %v859_v53 = vpop.xlane.xlu0 %858  ;;  %v939_v55 = vpop.xlane.xlu2 %938 }
 0x3e8   : >> { %v861_v57 = vsub.f32 %v4287_v54, %v859_v53  ;;  %v941_v58 = vsub.f32 %v4289_v56, %v939_v55 }
 0x3ea   : >> { %v4345_v44 = vpop.eup %3649  ;;  %v864_v59 = vmul.f32 1.442695, %v861_v57  ;;  %v944_v61 = vmul.f32 1.442695, %v941_v58 }
 0x3eb   : >> { %v946_v33 = vsel %vm697_vm7, %v4345_v44, 0.0 }
 0x3ec   : >> { %3651 = vpow2.f32 %v864_v59  ;;  %947 = vadd.xlane.f32.xlu1 %v946_v33 }
 0x3ed   : >> { %3653 = vpow2.f32 %v944_v61 }
 0x3ef   : >> { %v1016_v24 = vpop.xlane.xlu0 %1015  ;;  %v1096_v51 = vpop.xlane.xlu2 %1095 }
 0x3f0   : >> { %v1020_v25 = vsub.f32 %v4295_v60, %v1016_v24  ;;  %v1100_v26 = vsub.f32 %v4297_v37, %v1096_v51 }
 0x3f2   : >> { %v4351_v29 = vpop.eup %3651  ;;  %v1022_v54 = vmul.f32 1.442695, %v1020_v25  ;;  %v1102_v56 = vmul.f32 1.442695, %v1100_v26 }
 0x3f3   : >> { %v4353_v31 = vpop.eup %3653  ;;  %v869_v32 = vsel %vm697_vm7, %v4351_v29, 0.0 }
 0x3f4   : >> { %3655 = vpow2.f32 %v1022_v54  ;;  %v949_v35 = vsel %vm697_vm7, %v4353_v31, 0.0  ;;  %870 = vadd.xlane.f32.xlu1 %v869_v32 }
 0x3f5   : >> { %3657 = vpow2.f32 %v1102_v56  ;;  %950 = vadd.xlane.f32.xlu0 %v949_v35 }
 0x3f7   : >> { %v1019_v36 = vpop.xlane.xlu2 %1018  ;;  %v1099_v60 = vpop.xlane.xlu1 %1098 }
 0x3f8   : >> { %v1021_v37 = vsub.f32 %v4304_v30, %v1019_v36  ;;  %v1101_v20 = vsub.f32 %v4306_v34, %v1099_v60 }
 0x3fa   : >> { %v4361_v38 = vpop.eup %3655  ;;  %v1024_v39 = vmul.f32 1.442695, %v1021_v37  ;;  %v1104_v41 = vmul.f32 1.442695, %v1101_v20 }
 0x3fb   : >> { %v4363_v27 = vpop.eup %3657  ;;  %v1026_v23 = vsel %vm697_vm7, %v4361_v38, 0.0 }
 0x3fc   : >> { %3659 = vpow2.f32 %v1024_v39  ;;  %v1106_v49 = vsel %vm697_vm7, %v4363_v27, 0.0  ;;  %1027 = vadd.xlane.f32.xlu1 %v1026_v23  ;;  %v1197_v23 = vmul.f32 %v4044_v11, %v4191_v16 }
 0x3fd   : >> { %3661 = vpow2.f32 %v1104_v41  ;;  %1107 = vadd.xlane.f32.xlu0 %v1106_v49  ;;  %v1198_v49 = vmul.f32 %v4044_v11, %v4197_v22 }
 0x3ff   : >> { %v712_v63 = vpop.xlane.xlu2 %711  ;;  %v1256_v30 = vpop.xlane.xlu1 %1255 }
 0x400   : >> { %v1260_v34 = vsub.f32 %v4315_v48, %v1256_v30 }
 0x402   : >> { %v4370_v2 = vpop.eup %3659  ;;  %v1262_v13 = vmul.f32 1.442695, %v1260_v34 }
 0x403   : >> { %v4372_v14 = vpop.eup %3661  ;;  %v1029_v28 = vsel %vm697_vm7, %v4370_v2, 0.0 }
 0x404   : >> { %3663 = vpow2.f32 %v1262_v13  ;;  %v1109_v15 = vsel %vm697_vm7, %v4372_v14, 0.0  ;;  %v1277_v13 = vmul.f32 %v4046_v12, %v4191_v16 }
 0x405   : >> { %1030 = vadd.xlane.f32.xlu0 %v1029_v28  ;;  %1110 = vadd.xlane.f32.xlu2 %v1109_v15  ;;  %3665 = vrcp.f32 %v712_v63  ;;  %v1278_v28 = vmul.f32 %v4046_v12, %v4197_v22 }
 0x407   : >> { %v1259_v19 = vpop.xlane.xlu0 %1258  ;;  %v1179_v21 = vpop.xlane.xlu2 %1178 }
 0x408   : >> { %v1261_v45 = vsub.f32 %v4325_v1, %v1259_v19  ;;  %v1181_v48 = vsub.f32 %v4321_v62, %v1179_v21  ;;  %v715_v47 = vpop.xlane.xlu1 %714  ;;  %v1117_v1 = vmul.f32 %v4042_v10, %v4191_v16  ;;  %v1118_v62 = vmul.f32 %v4042_v10, %v4197_v22 }
 0x409   : >> { %3667 = vrcp.f32 %v715_v47  ;;  %v1199_v47 = vpack.c.bf16 %v1198_v49, %v1197_v23  ;;  %v3403_v23 = vld [vmem:[%s428_s13 + $0x8] sm:$0xff] }
 0x40a   : >> { %v4380_v50 = vpop.eup %3663  ;;  %v1264_v52 = vmul.f32 1.442695, %v1261_v45  ;;  %v1184_v53 = vmul.f32 1.442695, %v1181_v48  ;;  %v1119_v56 = vpack.c.bf16 %v1118_v62, %v1117_v1 }
 0x40b   : >> { %v1266_v55 = vsel %vm697_vm7, %v4380_v50, 0.0  ;;  %v3666_v57 = vpop.eup %3665 }
 0x40c   : >> { %3669 = vpow2.f32 %v1264_v52  ;;  %v718_v61 = vmul.f32 %v3666_v57, %v4313_v40  ;;  %v1279_v52 = vpack.c.bf16 %v1278_v28, %v1277_v13 }
 0x40d   : >> { %3671 = vpow2.f32 %v1184_v53  ;;  %1267 = vadd.xlane.f32.xlu2 %v1266_v55 }
 0x40f   : >> { %v3668_v58 = vpop.eup %3667  ;;  %v1176_v59 = vpop.xlane.xlu0 %1175 }
 0x410   : >> { %v719_v33 = vmul.f32 %v3668_v58, %v4323_v0  ;;  %v1180_v24 = vsub.f32 %v4333_v17, %v1176_v59 }
 0x412   : >> { %v4391_v51 = vpop.eup %3669  ;;  %v1182_v25 = vmul.f32 1.442695, %v1180_v24  ;;  %v720_v26 = vpack.c.bf16 %v719_v33, %v718_v61 }
 0x413   : >> { %v4393_v54 = vpop.eup %3671  ;;  %v1269_v32 = vsel %vm697_vm7, %v4391_v51, 0.0 }
 0x414   : >> { %3673 = vpow2.f32 %v1182_v25  ;;  %2830 = vmatmul.msk.bf16.vlgmr.msrb.gmra.mxu3 %vm697_vm7, %v720_v26  ;;  %1270 = vadd.xlane.f32.xlu1 %v1269_v32  ;;  %v1189_v40 = vsel %vm697_vm7, %v4393_v54, 0.0 }
 0x415   : >> { %1130 = vmatpush.bf16.msrb.mxu3 %v1119_v56  ;;  %1190 = vadd.xlane.f32.xlu2 %v1189_v40 }
 0x41a   : >> { %v4400_v0 = vpop.eup %3673 }
 0x41b   : >> { %v1186_v17 = vsel %vm697_vm7, %v4400_v0, 0.0 }
 0x41c   : >> { %1187 = vadd.xlane.f32.xlu0 %v1186_v17 }
 0x451   : >> { %v868_v36 = vpop.xlane.xlu2 %867 }
 0x452   : >> { %3675 = vrcp.f32 %v868_v36 }
 0x458   : >> { %v3676_v20 = vpop.eup %3675 }
 0x459   : >> { %v874_v30 = vmul.f32 %v3676_v20, %v4338_v43 }
 0x45f   : >> { %v948_v35 = vpop.xlane.xlu1 %947 }
 0x460   : >> { %3677 = vrcp.f32 %v948_v35 }
 0x466   : >> { %v3678_v39 = vpop.eup %3677 }
 0x467   : >> { %v871_v60 = vpop.xlane.xlu1 %870  ;;  %v954_v15 = vmul.f32 %v3678_v39, %v4345_v44  ;;  %v3404_v39 = vld [vmem:[%s428_s13 + $0x10] sm:$0xff] }
 0x468   : >> { %v951_v37 = vpop.xlane.xlu0 %950  ;;  %3679 = vrcp.f32 %v871_v60 }
 0x469   : >> { %3681 = vrcp.f32 %v951_v37 }
 0x46e   : >> { %v3680_v41 = vpop.eup %3679 }
 0x46f   : >> { %v3682_v63 = vpop.eup %3681  ;;  %v875_v34 = vmul.f32 %v3680_v41, %v4351_v29  ;;  %v1028_v43 = vpop.xlane.xlu1 %1027 }
 0x470   : >> { %v955_v19 = vmul.f32 %v3682_v63, %v4353_v31  ;;  %v1108_v21 = vpop.xlane.xlu0 %1107  ;;  %3683 = vrcp.f32 %v1028_v43 }
 0x471   : >> { %v876_v45 = vpack.c.bf16 %v875_v34, %v874_v30  ;;  %3685 = vrcp.f32 %v1108_v21 }
 0x472   : >> { %v956_v48 = vpack.c.bf16 %v955_v19, %v954_v15 }
 0x473   : >> { %2832 = vmatmul.msk.bf16.vlgmr.msrb.gmra.mxu1 %vm697_vm7, %v876_v45 }
 0x474   : >> { %2834 = vmatmul.msk.bf16.vlgmr.msra.gmra.mxu3 %vm697_vm7, %v956_v48  ;;  %1210 = vmatpush.bf16.msrb.mxu1 %v1199_v47 }
 0x475   : >> { %1290 = vmatpush.bf16.msra.mxu3 %v1279_v52 }
 0x476   : >> { %v3684_v44 = vpop.eup %3683 }
 0x477   : >> { %v3686_v29 = vpop.eup %3685  ;;  %v1034_v55 = vmul.f32 %v3684_v44, %v4361_v38 }
 0x478   : >> { %v1031_v16 = vpop.xlane.xlu0 %1030  ;;  %v1111_v22 = vpop.xlane.xlu2 %1110  ;;  %v1114_v58 = vmul.f32 %v3686_v29, %v4363_v27 }
 0x479   : >> { %3687 = vrcp.f32 %v1031_v16 }
 0x47a   : >> { %3689 = vrcp.f32 %v1111_v22 }
 0x47f   : >> { %v3688_v31 = vpop.eup %3687 }
 0x480   : >> { %v3690_v53 = vpop.eup %3689  ;;  %v1035_v57 = vmul.f32 %v3688_v31, %v4370_v2  ;;  %v1268_v1 = vpop.xlane.xlu2 %1267 }
 0x481   : >> { %v1115_v59 = vmul.f32 %v3690_v53, %v4372_v14  ;;  %3691 = vrcp.f32 %v1268_v1 }
 0x482   : >> { %v1036_v62 = vpack.c.bf16 %v1035_v57, %v1034_v55 }
 0x483   : >> { %v1116_v61 = vpack.c.bf16 %v1115_v59, %v1114_v58 }
 0x484   : >> { %2836 = vmatmul.msk.bf16.vlgmr.msra.gmra.mxu1 %vm697_vm7, %v1036_v62 }
 0x485   : >> { %2838 = vmatmul.msk.bf16.vlgmr.msrb.gmra.mxu3 %vm697_vm7, %v1116_v61 }
 0x487   : >> { %v1271_v33 = vpop.xlane.xlu1 %1270  ;;  %v3692_v25 = vpop.eup %3691 }
 0x488   : >> { %3693 = vrcp.f32 %v1271_v33  ;;  %v1191_v24 = vpop.xlane.xlu2 %1190  ;;  %v1274_v38 = vmul.f32 %v3692_v25, %v4380_v50  ;;  %v3919_v25 = vmov 64.0  }
 0x489   : >> { %3695 = vrcp.f32 %v1191_v24 }
 0x48e   : >> { %v3694_v26 = vpop.eup %3693 }
 0x48f   : >> { %v1275_v27 = vmul.f32 %v3694_v26, %v4391_v51  ;;  %v1188_v2 = vpop.xlane.xlu0 %1187  ;;  %v3696_v56 = vpop.eup %3695  ;;  %v3405_v51 = vld [vmem:[%s428_s13 + $0x18] sm:$0xff] }
 0x490   : >> { %3697 = vrcp.f32 %v1188_v2  ;;  %v1195_v40 = vmul.f32 %v3696_v56, %v4393_v54  ;;  %1332 = vmatpush.bf16.msra.mxu0 %v3405_v51  ;;  %v3402_v54 = vld [vmem:[%s428_s13] sm:$0xff] }
 0x491   : >> { %v1276_v14 = vpack.c.bf16 %v1275_v27, %v1274_v38  ;;  %3699 = vrcp.f32 %v3919_v25  ;;  %v3463_v51 = vld [vmem:[%s4456_s11 + $0x1bc] sm:$0xf0] }
 0x492   : >> { %v2862_v25 = vld [vmem:[%s4456_s11] sm:$0xf] }
 0x494   : >> { %1333 = vmatpush.bf16.msra.mxu0 %v3404_v39 }
 0x495   : >> { %2842 = vmatmul.msk.bf16.vlgmr.msra.gmra.mxu3 %vm697_vm7, %v1276_v14 }
 0x496   : >> { %v3698_v32 = vpop.eup %3697 }
 0x497   : >> { %v1194_v17 = vmul.f32 %v3698_v32, %v4400_v0  ;;  %v814_v36 = vpop.f32.mrf.mxu3  ;;  %v3700_v26 = vpop.eup %3699 }
 0x498   : >> { %1334 = vmatpush.bf16.msra.mxu0 %v3403_v23  ;;  %v815_v34 = vadd.f32 %v814_v36, %v4275_v42  ;;  %v1300_v42 = vperm.slane %v4079_v18, 3  ;;  %v1351_v38 = vmul.f32 64.0, %v3700_v26  ;;  %vm1355_vm8 = vweird.f32 %v3700_v26  ;;  %v3062_v23 = vld [vmem:[%s4456_s11 + $0x188] sm:$0xf] }
 0x499   : >> { %v1196_v35 = vpack.c.bf16 %v1195_v40, %v1194_v17 }
 0x49a   : >> { %v1352_v27 = vsub.f32 1.0, %v1351_v38  ;;  %v3407_v38 = vld [vmem:[%s4456_s11 + $0x4] sm:$0xf] }
 0x49b   : >> { %2840 = vmatmul.msk.bf16.vlgmr.msrb.gmra.mxu1 %vm697_vm7, %v1196_v35 }
 0x49c   : >> { %1335 = vmatpush.bf16.msra.mxu0 %v3402_v54  ;;  %v1353_v18 = vmul.f32 %v3700_v26, %v1352_v27  ;;  %v3464_v54 = vld [vmem:[%s4456_s11 + $0x1c4] sm:$0xf0] }
 0x49e   : >> { %v1354_v2 = vadd.f32 %v3700_v26, %v1353_v18  ;;  %v2864_v18 = vld [vmem:[%s4456_s11 + $0x40] sm:$0xf0] }
 0x49f   : >> { %v816_v60 = vpop.f32.mrf.mxu3 }
 0x4a0   : >> { %v817_v13 = vadd.f32 %v816_v60, %v4281_v46 }
 0x4f0   : >> { %v892_v37 = vpop.f32.mrf.mxu1 }
 0x4f1   : >> { %v897_v28 = vadd.f32 %v892_v37, %v815_v34 }
 0x4f7   : >> { %v972_v50 = vpop.f32.mrf.mxu3 }
 0x4f8   : >> { %v894_v20 = vpop.f32.mrf.mxu1  ;;  %v977_v21 = vadd.f32 %v972_v50, %v897_v28  ;;  %v3054_v50 = vld [vmem:[%s4456_s11 + $0x180] sm:$0xf] }
 0x4f9   : >> { %v898_v45 = vadd.f32 %v894_v20, %v817_v13  ;;  %v3455_v20 = vld [vmem:[%s4456_s11 + $0x184] sm:$0xf]  ;;  %v3055_v39 = vor.u32 %v3463_v51, %v3054_v50  ;;  %v2990_v13 = vld [vmem:[%s4456_s11 + $0x100] sm:$0xf]  ;;  %v3465_v50 = vld [vmem:[%s4456_s11 + $0x1cc] sm:$0xf0] }
 0x4fa   : >> { %v3447_v28 = vld [vmem:[%s4456_s11 + $0x13c] sm:$0xf0]  ;;  %v3457_v51 = vld [vmem:[%s4456_s11 + $0x194] sm:$0xf] }
 0x4fb   : >> { %1763 = vmatpush.bf16.msra.mxu1 %v3055_v39 }
 0x4ff   : >> { %v974_v41 = vpop.f32.mrf.mxu3 }
 0x500   : >> { %v978_v48 = vadd.f32 %v974_v41, %v898_v45  ;;  %v3056_v41 = vld [vmem:[%s4456_s11 + $0x1c0] sm:$0xf0]  ;;  %v2998_v45 = vld [vmem:[%s4456_s11 + $0x108] sm:$0xf] }
 0x501   : >> { %v1052_v49 = vpop.f32.mrf.mxu1 }
 0x502   : >> { %v1057_v47 = vadd.f32 %v1052_v49, %v977_v21  ;;  %v3059_v49 = vor.u32 %v3455_v20, %v3056_v41  ;;  %v2992_v21 = vld [vmem:[%s4456_s11 + $0x140] sm:$0xf0]  ;;  %v3072_v41 = vld [vmem:[%s4456_s11 + $0x1d0] sm:$0xf0] }
 0x504   : >> { %1777 = vmatpush.bf16.msrb.mxu2 %v3059_v49  ;;  %v3075_v49 = vor.u32 %v3457_v51, %v3072_v41 }
 0x508   : >> { %v1132_v0 = vpop.f32.mrf.mxu3 }
 0x509   : >> { %v1054_v63 = vpop.f32.mrf.mxu1  ;;  %v1137_v52 = vadd.f32 %v1132_v0, %v1057_v47  ;;  %v3063_v0 = vor.u32 %v3464_v54, %v3062_v23  ;;  %v3078_v23 = vld [vmem:[%s4456_s11 + $0x198] sm:$0xf] }
 0x50a   : >> { %v1058_v43 = vadd.f32 %v1054_v63, %v978_v48  ;;  %v3456_v63 = vld [vmem:[%s4456_s11 + $0x18c] sm:$0xf]  ;;  %v3448_v48 = vld [vmem:[%s4456_s11 + $0x144] sm:$0xf0]  ;;  %v3466_v54 = vld [vmem:[%s4456_s11 + $0x1d4] sm:$0xf0] }
 0x50b   : >> { %1791 = vmatpush.bf16.msrb.mxu3 %v3063_v0  ;;  %v3079_v0 = vor.u32 %v3466_v54, %v3078_v23 }
 0x510   : >> { %v1134_v30 = vpop.f32.mrf.mxu3 }
 0x511   : >> { %v1138_v16 = vadd.f32 %v1134_v30, %v1058_v43  ;;  %v3064_v30 = vld [vmem:[%s4456_s11 + $0x1c8] sm:$0xf0] }
 0x512   : >> { %v3067_v34 = vor.u32 %v3456_v63, %v3064_v30  ;;  %v3440_v43 = vld [vmem:[%s4456_s11 + $0x10c] sm:$0xf]  ;;  %v3458_v63 = vld [vmem:[%s4456_s11 + $0x19c] sm:$0xf] }
 0x513   : >> { %v3080_v30 = vld [vmem:[%s4456_s11 + $0x1d8] sm:$0xf0] }
 0x514   : >> { %1805 = vmatpush.bf16.msrb.mxu0 %v3067_v34  ;;  %v3006_v34 = vld [vmem:[%s4456_s11 + $0x110] sm:$0xf] }
 0x518   : >> { %v1292_v15 = vpop.f32.mrf.mxu3  ;;  %v1212_v19 = vpop.f32.mrf.mxu1 }
 0x519   : >> { %v1217_v22 = vadd.f32 %v1212_v19, %v1137_v52  ;;  %v2991_v19 = vor.u32 %v3447_v28, %v2990_v13  ;;  %v2999_v52 = vor.u32 %v3448_v48, %v2998_v45 }
 0x51b   : >> { %v1297_v53 = vadd.f32 %v1292_v15, %v1217_v22  ;;  %v3439_v15 = vld [vmem:[%s4456_s11 + $0x104] sm:$0xf]  ;;  %1764 = vmatpush.bf16.msra.mxu1 %v2991_v19  ;;  %1792 = vmatpush.bf16.msrb.mxu3 %v2999_v52  ;;  %v3449_v19 = vld [vmem:[%s4456_s11 + $0x14c] sm:$0xf0]  ;;  %v3014_v52 = vld [vmem:[%s4456_s11 + $0x118] sm:$0xf] }
 0x51c   : >> { %v2995_v47 = vor.u32 %v3439_v15, %v2992_v21  ;;  %v3083_v15 = vor.u32 %v3458_v63, %v3080_v30  ;;  %v3441_v21 = vld [vmem:[%s4456_s11 + $0x114] sm:$0xf]  ;;  %v3007_v48 = vor.u32 %v3449_v19, %v3006_v34  ;;  %v3709_v63 = vld [vmem:[%s4076_s27] sm:$0xff] }
 0x51d   : >> { %v1395_v30 = vperm.slane %v3709_v63, 4 }
 0x51e   : >> { %1778 = vmatpush.bf16.msrb.mxu2 %v2995_v47  ;;  %v3008_v47 = vld [vmem:[%s4456_s11 + $0x150] sm:$0xf0] }
 0x520   : >> { %v1214_v44 = vpop.f32.mrf.mxu1  ;;  %v1294_v31 = vpop.f32.mrf.mxu3 }
 0x521   : >> { %v1218_v29 = vadd.f32 %v1214_v44, %v1138_v16  ;;  %v3000_v16 = vld [vmem:[%s4456_s11 + $0x148] sm:$0xf0] }
 0x522   : >> { %v3003_v44 = vor.u32 %v3440_v43, %v3000_v16  ;;  %v3450_v43 = vld [vmem:[%s4456_s11 + $0x154] sm:$0xf0]  ;;  %v3011_v16 = vor.u32 %v3441_v21, %v3008_v47  ;;  %v3467_v47 = vld [vmem:[%s4456_s11 + $0x1dc] sm:$0xf0] }
 0x523   : >> { %v1298_v55 = vadd.f32 %v1294_v31, %v1218_v29  ;;  %v2926_v31 = vld [vmem:[%s4456_s11 + $0x80] sm:$0xf] }
 0x524   : >> { %1806 = vmatpush.bf16.msrb.mxu0 %v3003_v44  ;;  %v3442_v44 = vld [vmem:[%s4456_s11 + $0x11c] sm:$0xf] }
 0x525   : >> { %v1299_v57 = vpack.c.bf16 %v1298_v55, %v1297_v53  ;;  %v3431_v53 = vld [vmem:[%s4456_s11 + $0xbc] sm:$0xf0]  ;;  %v3423_v55 = vld [vmem:[%s4456_s11 + $0x84] sm:$0xf] }
 0x527   : >> { %2859 = vmatmul.msk.bf16.vlgmr.msra.gmra.mxu0 %vm617_vm6, %v1299_v57  ;;  %v2927_v57 = vor.u32 %v3431_v53, %v2926_v31 }
 0x529   : >> { %1765 = vmatpush.bf16.msra.mxu1 %v2927_v57  ;;  %v3433_v57 = vld [vmem:[%s4456_s11 + $0xcc] sm:$0xf0] }
 0x5a4   : >> { %v1337_v46 = vpop.f32.mrf.mxu0 }
 0x5a5   : >> { %v1338_v58 = vadd.f32 %v1337_v46, %v1300_v42  ;;  %v2934_v46 = vld [vmem:[%s4456_s11 + $0x88] sm:$0xf] }
 0x5a7   : >> { %v1342_v59 = vadd.f32 %v3899_v5, %v1338_v58  ;;  %v4439_v5 = vsel %vm1355_vm8, %v3700_v26, %v1354_v2  ;;  %v3432_v58 = vld [vmem:[%s4456_s11 + $0xc4] sm:$0xf0]  ;;  %v3415_v26 = vld [vmem:[%s4456_s11 + $0x3c] sm:$0xf0] }
 0x5a8   : >> { %v2863_v27 = vor.u32 %v3415_v26, %v2862_v25  ;;  %v2870_v2 = vld [vmem:[%s4456_s11 + $0x8] sm:$0xf]  ;;  %v3426_v25 = vld [vmem:[%s4456_s11 + $0x9c] sm:$0xf] }
 0x5a9   : >> { %v1344_v1 = vsel %vm617_vm6, %v1342_v59, 0.0  ;;  %v2952_v26 = vld [vmem:[%s4456_s11 + $0xd8] sm:$0xf0] }
 0x5aa   : >> { %1345 = vadd.xlane.f32.xlu1 %v1344_v1  ;;  %1766 = vmatpush.bf16.msra.mxu1 %v2863_v27  ;;  %v2878_v27 = vld [vmem:[%s4456_s11 + $0x10] sm:$0xf] }
 0x5ac   : >> { %v1339_v62 = vpop.f32.mrf.mxu0 }
 0x5ad   : >> { %v1340_v61 = vadd.f32 %v1339_v62, %v1300_v42  ;;  %v2928_v42 = vld [vmem:[%s4456_s11 + $0xc0] sm:$0xf0]  ;;  %v2935_v62 = vor.u32 %v3432_v58, %v2934_v46  ;;  %v2944_v58 = vld [vmem:[%s4456_s11 + $0xd0] sm:$0xf0] }
 0x5ae   : >> { %v2931_v1 = vor.u32 %v3423_v55, %v2928_v42  ;;  %v2942_v55 = vld [vmem:[%s4456_s11 + $0x90] sm:$0xf]  ;;  %v3425_v42 = vld [vmem:[%s4456_s11 + $0x94] sm:$0xf] }
 0x5af   : >> { %v1343_v33 = vadd.f32 %v3895_v6, %v1340_v61  ;;  %v3424_v61 = vld [vmem:[%s4456_s11 + $0x8c] sm:$0xf]  ;;  %1793 = vmatpush.bf16.msrb.mxu3 %v2935_v62  ;;  %v2943_v46 = vor.u32 %v3433_v57, %v2942_v55  ;;  %v3434_v62 = vld [vmem:[%s4456_s11 + $0xd4] sm:$0xf0]  ;;  %v3022_v55 = vld [vmem:[%s4456_s11 + $0x120] sm:$0xf] }
 0x5b0   : >> { %1779 = vmatpush.bf16.msrb.mxu2 %v2931_v1  ;;  %v2950_v1 = vld [vmem:[%s4456_s11 + $0x98] sm:$0xf]  ;;  %v3451_v57 = vld [vmem:[%s4456_s11 + $0x15c] sm:$0xf0] }
 0x5b1   : >> { %v1347_v24 = vsel %vm617_vm6, %v1343_v33, 0.0 }
 0x5b2   : >> { %1348 = vadd.xlane.f32.xlu0 %v1347_v24 }
 0x61d   : >> { %v1346_v14 = vpop.xlane.xlu1 %1345 }
 0x61e   : >> { %v1357_v56 = vmul.f32 %v4439_v5, %v1346_v14  ;;  %v3416_v14 = vld [vmem:[%s4456_s11 + $0x44] sm:$0xf0] }
 0x620   : >> { %v4442_v32 = vsub.f32 %v1342_v59, %v1357_v56  ;;  %v2867_v56 = vor.u32 %v3407_v38, %v2864_v18  ;;  %v2955_v38 = vor.u32 %v3426_v25, %v2952_v26  ;;  %v3417_v18 = vld [vmem:[%s4456_s11 + $0x4c] sm:$0xf0]  ;;  %v3023_v25 = vor.u32 %v3451_v57, %v3022_v55  ;;  %v3445_v55 = vld [vmem:[%s4456_s11 + $0x134] sm:$0xf] }
 0x621   : >> { %v3040_v57 = vld [vmem:[%s4456_s11 + $0x170] sm:$0xf0] }
 0x622   : >> { %v1361_v6 = vmul.f32 %v4442_v32, %v4442_v32  ;;  %1780 = vmatpush.bf16.msrb.mxu2 %v2867_v56  ;;  %v2880_v56 = vld [vmem:[%s4456_s11 + $0x50] sm:$0xf0] }
 0x624   : >> { %v1363_v40 = vsel %vm617_vm6, %v1361_v6, 0.0  ;;  %v2871_v6 = vor.u32 %v3416_v14, %v2870_v2  ;;  %v3409_v2 = vld [vmem:[%s4456_s11 + $0x14] sm:$0xf] }
 0x625   : >> { %v1349_v17 = vpop.xlane.xlu0 %1348  ;;  %1364 = vadd.xlane.f32.xlu2 %v1363_v40  ;;  %v3408_v40 = vld [vmem:[%s4456_s11 + $0xc] sm:$0xf] }
 0x626   : >> { %v1358_v35 = vmul.f32 %v4439_v5, %v1349_v17  ;;  %v2872_v17 = vld [vmem:[%s4456_s11 + $0x48] sm:$0xf0]  ;;  %1794 = vmatpush.bf16.msrb.mxu3 %v2871_v6  ;;  %1833 = vmatpush.bf16.msra.mxu2 %v3075_v49  ;;  %v2886_v6 = vld [vmem:[%s4456_s11 + $0x18] sm:$0xf] }
 0x628   : >> { %v4448_v36 = vsub.f32 %v1343_v33, %v1358_v35  ;;  %v2936_v33 = vld [vmem:[%s4456_s11 + $0xc8] sm:$0xf0] }
 0x629   : >> { %v2939_v24 = vor.u32 %v3424_v61, %v2936_v33  ;;  %v2947_v33 = vor.u32 %v3425_v42, %v2944_v58  ;;  %v3443_v58 = vld [vmem:[%s4456_s11 + $0x124] sm:$0xf] }
 0x62a   : >> { %v1362_v60 = vmul.f32 %v4448_v36, %v4448_v36  ;;  %1847 = vmatpush.bf16.msra.mxu3 %v3079_v0  ;;  %1834 = vmatpush.bf16.msra.mxu2 %v3011_v16 }
 0x62b   : >> { %1807 = vmatpush.bf16.msrb.mxu0 %v2939_v24  ;;  %v2951_v24 = vor.u32 %v3434_v62, %v2950_v1  ;;  %v3024_v1 = vld [vmem:[%s4456_s11 + $0x160] sm:$0xf0]  ;;  %v3030_v62 = vld [vmem:[%s4456_s11 + $0x128] sm:$0xf] }
 0x62c   : >> { %v1366_v37 = vsel %vm617_vm6, %v1362_v60, 0.0  ;;  %v2875_v60 = vor.u32 %v3408_v40, %v2872_v17  ;;  %v2879_v17 = vor.u32 %v3417_v18, %v2878_v27  ;;  %v3027_v26 = vor.u32 %v3443_v58, %v3024_v1  ;;  %v3435_v27 = vld [vmem:[%s4456_s11 + $0xdc] sm:$0xf0]  ;;  %v3446_v58 = vld [vmem:[%s4456_s11 + $0x13c] sm:$0xf] }
 0x62d   : >> { %1367 = vadd.xlane.f32.xlu1 %v1366_v37  ;;  %v3070_v37 = vld [vmem:[%s4456_s11 + $0x190] sm:$0xf]  ;;  %v3048_v1 = vld [vmem:[%s4456_s11 + $0x178] sm:$0xf0] }
 0x62e   : >> { %v3071_v39 = vor.u32 %v3465_v50, %v3070_v37  ;;  %v3410_v37 = vld [vmem:[%s4456_s11 + $0x1c] sm:$0xf]  ;;  %1835 = vmatpush.bf16.msra.mxu2 %v2947_v33  ;;  %v3444_v33 = vld [vmem:[%s4456_s11 + $0x12c] sm:$0xf] }
 0x62f   : >> { %1808 = vmatpush.bf16.msrb.mxu0 %v2875_v60  ;;  %v3418_v60 = vld [vmem:[%s4456_s11 + $0x54] sm:$0xf0]  ;;  %v2888_v50 = vld [vmem:[%s4456_s11 + $0x58] sm:$0xf0] }
 0x630   : >> { %1819 = vmatpush.bf16.msrb.mxu1 %v3071_v39  ;;  %v2887_v39 = vor.u32 %v3418_v60, %v2886_v6  ;;  %v2891_v41 = vor.u32 %v3410_v37, %v2888_v50  ;;  %v2966_v6 = vld [vmem:[%s4456_s11 + $0xa8] sm:$0xf]  ;;  %v2894_v50 = vld [vmem:[%s4456_s11 + $0x20] sm:$0xf] }
 0x633   : >> { %1861 = vmatpush.bf16.msra.mxu0 %v3083_v15  ;;  %v1398_v15 = vperm.slane %v3709_v63, 5  ;;  %v2904_v63 = vld [vmem:[%s4456_s11 + $0x68] sm:$0xf0] }
 0x634   : >> { %1820 = vmatpush.bf16.msrb.mxu1 %v3007_v48  ;;  %v3086_v48 = vld [vmem:[%s4456_s11 + $0x1a0] sm:$0xf] }
 0x638   : >> { %1821 = vmatpush.bf16.msrb.mxu1 %v2943_v46 }
 0x63c   : >> { %1822 = vmatpush.bf16.msrb.mxu1 %v2879_v17  ;;  %v3428_v17 = vld [vmem:[%s4456_s11 + $0xac] sm:$0xf] }
 0x698   : >> { %v1365_v22 = vpop.xlane.xlu2 %1364 }
 0x699   : >> { %v1369_v29 = vmul.f32 %v1365_v22, %v4439_v5  ;;  %v3015_v22 = vor.u32 %v3450_v43, %v3014_v52  ;;  %v3459_v52 = vld [vmem:[%s4456_s11 + $0x1a4] sm:$0xf]  ;;  %v3094_v43 = vld [vmem:[%s4456_s11 + $0x1a8] sm:$0xf] }
 0x69b   : >> { %v4481_v59 = vadd.f32 1e-05, %v1369_v29  ;;  %v3016_v29 = vld [vmem:[%s4456_s11 + $0x158] sm:$0xf0]  ;;  %1848 = vmatpush.bf16.msra.mxu3 %v3015_v22  ;;  %v3468_v22 = vld [vmem:[%s4456_s11 + $0x1e4] sm:$0xf0] }
 0x69c   : >> { %v3019_v53 = vor.u32 %v3442_v44, %v3016_v29  ;;  %v3460_v44 = vld [vmem:[%s4456_s11 + $0x1ac] sm:$0xf]  ;;  %v3095_v42 = vor.u32 %v3468_v22, %v3094_v43 }
 0x69d   : >> { %3701 = vrsqrt.f32 %v4481_v59  ;;  %vm1379_vm10 = vweird.f32 %v4481_v59 }
 0x69e   : >> { %1862 = vmatpush.bf16.msra.mxu0 %v3019_v53 }
 0x69f   : >> { %1849 = vmatpush.bf16.msra.mxu3 %v2951_v24  ;;  %v3032_v24 = vld [vmem:[%s4456_s11 + $0x168] sm:$0xf0] }
 0x6a0   : >> { %v1368_v35 = vpop.xlane.xlu1 %1367 }
 0x6a1   : >> { %v1370_v20 = vmul.f32 %v1368_v35, %v4439_v5  ;;  %v2883_v35 = vor.u32 %v3409_v2, %v2880_v56  ;;  %v3035_v2 = vor.u32 %v3444_v33, %v3032_v24  ;;  %v2960_v56 = vld [vmem:[%s4456_s11 + $0xe0] sm:$0xf0]  ;;  %v2974_v33 = vld [vmem:[%s4456_s11 + $0xb0] sm:$0xf] }
 0x6a2   : >> { %1863 = vmatpush.bf16.msra.mxu0 %v2955_v38  ;;  %v2958_v38 = vld [vmem:[%s4456_s11 + $0xa0] sm:$0xf]  ;;  %v3437_v24 = vld [vmem:[%s4456_s11 + $0xec] sm:$0xf0] }
 0x6a3   : >> { %v4504_v13 = vpop.eup %3701  ;;  %v4506_v28 = vadd.f32 1e-05, %v1370_v20  ;;  %1836 = vmatpush.bf16.msra.mxu2 %v2883_v35  ;;  %1850 = vmatpush.bf16.msra.mxu3 %v2887_v39  ;;  %v2968_v35 = vld [vmem:[%s4456_s11 + $0xe8] sm:$0xf0]  ;;  %v2959_v60 = vor.u32 %v3435_v27, %v2958_v38  ;;  %v3429_v38 = vld [vmem:[%s4456_s11 + $0xb4] sm:$0xf] }
 0x6a4   : >> { %v1374_v45 = vmul.f32 %v4504_v13, %v4481_v59  ;;  %vm1380_vm9 = vweird.f32 %v4504_v13  ;;  %v2971_v39 = vor.u32 %v3428_v17, %v2968_v35  ;;  %v2976_v27 = vld [vmem:[%s4456_s11 + $0xf0] sm:$0xf0]  ;;  %v2910_v17 = vld [vmem:[%s4456_s11 + $0x30] sm:$0xf] }
 0x6a5   : >> { %3703 = vrsqrt.f32 %v4506_v28  ;;  %vm1381_vm11 = vmor %vm1379_vm10, %vm1380_vm9  ;;  %vm1389_vm13 = vweird.f32 %v4506_v28  ;;  %v3421_v35 = vld [vmem:[%s4456_s11 + $0x6c] sm:$0xf0] }
 0x6a6   : >> { %v1375_v31 = vmul.f32 %v4504_v13, %v1374_v45  ;;  %1864 = vmatpush.bf16.msra.mxu0 %v2891_v41  ;;  %v3411_v41 = vld [vmem:[%s4456_s11 + $0x24] sm:$0xf] }
 0x6a8   : >> { %v1376_v61 = vmul.f32 0.5, %v1375_v31  ;;  %v3087_v31 = vor.u32 %v3467_v47, %v3086_v48  ;;  %v3110_v48 = vld [vmem:[%s4456_s11 + $0x1b8] sm:$0xf] }
 0x6a9   : >> { %v3470_v47 = vld [vmem:[%s4456_s11 + $0x1f4] sm:$0xf0] }
 0x6aa   : >> { %v1377_v14 = vsub.f32 1.5, %v1376_v61  ;;  %v3452_v61 = vld [vmem:[%s4456_s11 + $0x164] sm:$0xf0] }
 0x6ab   : >> { %v3704_v40 = vpop.eup %3703  ;;  %v3031_v18 = vor.u32 %v3452_v61, %v3030_v62  ;;  %v3043_v61 = vor.u32 %v3445_v55, %v3040_v57  ;;  %v3270_v55 = vld [vmem:[%s4634_s16 + $0x108] sm:$0xf] }
 0x6ac   : >> { %v1378_v51 = vmul.f32 %v4504_v13, %v1377_v14  ;;  %v1384_v20 = vmul.f32 %v3704_v40, %v4506_v28  ;;  %vm1390_vm12 = vweird.f32 %v3704_v40  ;;  %v3427_v14 = vld [vmem:[%s4456_s11 + $0xa4] sm:$0xf]  ;;  %v3513_v57 = vld [vmem:[%s4634_s16 + $0x144] sm:$0xf0] }
 0x6ad   : >> { %vm1391_vm14 = vmor %vm1389_vm13, %vm1390_vm12  ;;  %v2963_v37 = vor.u32 %v3427_v14, %v2960_v56  ;;  %v3430_v14 = vld [vmem:[%s4456_s11 + $0xbc] sm:$0xf] }
 0x6ae   : >> { %v1385_v23 = vmul.f32 %v3704_v40, %v1384_v20  ;;  %v1382_v54 = vsel %vm1381_vm11, %v4504_v13, %v1378_v51  ;;  %v3419_v51 = vld [vmem:[%s4456_s11 + $0x5c] sm:$0xf0]  ;;  %v2984_v56 = vld [vmem:[%s4456_s11 + $0xf8] sm:$0xf0] }
 0x6af   : >> { %v1393_v59 = vmul.f32 %v1382_v54, %v4442_v32  ;;  %v3088_v32 = vld [vmem:[%s4456_s11 + $0x1e0] sm:$0xf0]  ;;  %v2902_v54 = vld [vmem:[%s4456_s11 + $0x28] sm:$0xf] }
 0x6b0   : >> { %v1386_v49 = vmul.f32 0.5, %v1385_v23  ;;  %v3091_v53 = vor.u32 %v3459_v52, %v3088_v32  ;;  %v2896_v23 = vld [vmem:[%s4456_s11 + $0x60] sm:$0xf0]  ;;  %v3462_v52 = vld [vmem:[%s4456_s11 + $0x1bc] sm:$0xf] }
 0x6b1   : >> { %v1396_v19 = vmul.f32 %v1395_v30, %v1393_v59  ;;  %v2899_v59 = vor.u32 %v3411_v41, %v2896_v23  ;;  %v3112_v32 = vld [vmem:[%s4456_s11 + $0x1f8] sm:$0xf0] }
 0x6b2   : >> { %v1387_v0 = vsub.f32 1.5, %v1386_v49  ;;  %v3420_v49 = vld [vmem:[%s4456_s11 + $0x64] sm:$0xf0]  ;;  %v3414_v41 = vld [vmem:[%s4456_s11 + $0x3c] sm:$0xf] }
 0x6b3   : >> { %v4549_v16 = vadd.f32 %v1398_v15, %v1396_v19  ;;  %v2920_v23 = vld [vmem:[%s4456_s11 + $0x78] sm:$0xf0] }
 0x6b4   : >> { %v1388_v34 = vmul.f32 %v3704_v40, %v1387_v0  ;;  %v3412_v0 = vld [vmem:[%s4456_s11 + $0x2c] sm:$0xf] }
 0x6b5   : >> { %v2907_v19 = vor.u32 %v3412_v0, %v2904_v63  ;;  %v3326_v0 = vld [vmem:[%s4634_s16 + $0x180] sm:$0xf] }
 0x6b6   : >> { %v1392_v13 = vsel %vm1391_vm14, %v3704_v40, %v1388_v34  ;;  %v3436_v40 = vld [vmem:[%s4456_s11 + $0xe4] sm:$0xf0]  ;;  %v3102_v34 = vld [vmem:[%s4456_s11 + $0x1b0] sm:$0xf]  ;;  %v3528_v63 = vld [vmem:[%s4634_s16 + $0x1bc] sm:$0xf0] }
 0x6b7   : >> { %v1394_v21 = vmul.f32 %v1392_v13, %v4448_v36  ;;  %v3096_v36 = vld [vmem:[%s4456_s11 + $0x1e8] sm:$0xf0]  ;;  %v2967_v20 = vor.u32 %v3436_v40, %v2966_v6  ;;  %v3469_v13 = vld [vmem:[%s4456_s11 + $0x1ec] sm:$0xf0]  ;;  %v2975_v6 = vor.u32 %v3437_v24, %v2974_v33  ;;  %v2979_v40 = vor.u32 %v3429_v38, %v2976_v27  ;;  %v3206_v38 = vld [vmem:[%s4634_s16 + $0x88] sm:$0xf] }
 0x6b8   : >> { %v3099_v46 = vor.u32 %v3460_v44, %v3096_v36  ;;  %v3103_v43 = vor.u32 %v3469_v13, %v3102_v34  ;;  %v3038_v44 = vld [vmem:[%s4456_s11 + $0x130] sm:$0xf]  ;;  %v3521_v34 = vld [vmem:[%s4634_s16 + $0x18c] sm:$0xf]  ;;  %v3497_v27 = vld [vmem:[%s4634_s16 + $0xc4] sm:$0xf0] }
 0x6b9   : >> { %v1397_v45 = vmul.f32 %v1395_v30, %v1394_v21  ;;  %v2895_v30 = vor.u32 %v3419_v51, %v2894_v50  ;;  %v3461_v21 = vld [vmem:[%s4456_s11 + $0x1b4] sm:$0xf]  ;;  %v3453_v36 = vld [vmem:[%s4456_s11 + $0x16c] sm:$0xf0]  ;;  %v3336_v13 = vld [vmem:[%s4634_s16 + $0x1c8] sm:$0xf0] }
 0x6ba   : >> { %v3039_v62 = vor.u32 %v3453_v36, %v3038_v44  ;;  %v3413_v50 = vld [vmem:[%s4456_s11 + $0x34] sm:$0xf]  ;;  %v3505_v44 = vld [vmem:[%s4634_s16 + $0x10c] sm:$0xf] }
 0x6bb   : >> { %v4551_v28 = vadd.f32 %v1398_v15, %v1397_v45  ;;  %v2903_v15 = vor.u32 %v3420_v49, %v2902_v54  ;;  %v3104_v45 = vld [vmem:[%s4456_s11 + $0x1f0] sm:$0xf0]  ;;  %v2911_v54 = vor.u32 %v3421_v35, %v2910_v17  ;;  %v3272_v36 = vld [vmem:[%s4634_s16 + $0x148] sm:$0xf0] }
 0x6bc   : >> { %v3107_v22 = vor.u32 %v3461_v21, %v3104_v45  ;;  %v2912_v51 = vld [vmem:[%s4456_s11 + $0x70] sm:$0xf0]  ;;  %v3334_v21 = vld [vmem:[%s4634_s16 + $0x188] sm:$0xf]  ;;  %v3489_v33 = vld [vmem:[%s4634_s16 + $0x8c] sm:$0xf] }
 0x6bd   : >> { %v4558_v29 = vpack.c.bf16 %v4551_v28, %v4549_v16  ;;  %v2915_v49 = vor.u32 %v3413_v50, %v2912_v51  ;;  %v3529_v45 = vld [vmem:[%s4634_s16 + $0x1c4] sm:$0xf0]  ;;  %v3208_v24 = vld [vmem:[%s4634_s16 + $0xc8] sm:$0xf0]  ;;  %v3523_v50 = vld [vmem:[%s4634_s16 + $0x19c] sm:$0xf] }
 0x6be   : >> { %v3473_v17 = vld [vmem:[%s4634_s16 + $0xc] sm:$0xf]  ;;  %v3352_v51 = vld [vmem:[%s4634_s16 + $0x1d8] sm:$0xf0] }
 0x6bf   : >> { %3116 = vmatmul.msk.bf16.vlgmr.msra.gmra.mxu1 %vm617_vm6, %v4558_v29  ;;  %3117 = vmatmul.msk.bf16.vlgmr.msrb.gmra.mxu2 %vm617_vm6, %v4558_v29  ;;  %v3144_v35 = vld [vmem:[%s4634_s16 + $0x48] sm:$0xf0] }
 0x6c0   : >> { %3118 = vmatmul.msk.bf16.vlgmr.msrb.gmra.mxu3 %vm617_vm6, %v4558_v29  ;;  %3119 = vmatmul.msk.bf16.vlgmr.msrb.gmra.mxu0 %vm617_vm6, %v4558_v29 }
 0x6c1   : >> { %1875 = vmatpush.bf16.msra.mxu1 %v3087_v31  ;;  %1889 = vmatpush.bf16.msrb.mxu2 %v3091_v53  ;;  %v3111_v31 = vor.u32 %v3470_v47, %v3110_v48  ;;  %v3115_v53 = vor.u32 %v3462_v52, %v3112_v32  ;;  %v3327_v48 = vor.u32 %v3528_v63, %v3326_v0  ;;  %v3344_v0 = vld [vmem:[%s4634_s16 + $0x1d0] sm:$0xf0]  ;;  %v3350_v63 = vld [vmem:[%s4634_s16 + $0x198] sm:$0xf] }
 0x6c2   : >> { %1903 = vmatpush.bf16.msrb.mxu3 %v3095_v42  ;;  %1917 = vmatpush.bf16.msrb.mxu0 %v3099_v46  ;;  %v3046_v42 = vld [vmem:[%s4456_s11 + $0x138] sm:$0xf]  ;;  %v3339_v47 = vor.u32 %v3521_v34, %v3336_v13  ;;  %v3335_v32 = vor.u32 %v3529_v45, %v3334_v21  ;;  %v3355_v34 = vor.u32 %v3523_v50, %v3352_v51  ;;  %v3278_v45 = vld [vmem:[%s4634_s16 + $0x110] sm:$0xf]  ;;  %v4721_v51 = vld [vmem:[%s4718_s17] sm:$0xff] }
 0x6c3   : >> { %v3454_v46 = vld [vmem:[%s4456_s11 + $0x174] sm:$0xf0] }
 0x6c5   : >> { %1876 = vmatpush.bf16.msra.mxu1 %v3023_v25  ;;  %1890 = vmatpush.bf16.msrb.mxu2 %v3027_v26  ;;  %v3047_v25 = vor.u32 %v3454_v46, %v3046_v42  ;;  %v3051_v26 = vor.u32 %v3446_v58, %v3048_v1  ;;  %v3275_v46 = vor.u32 %v3505_v44, %v3272_v36  ;;  %v3280_v44 = vld [vmem:[%s4634_s16 + $0x150] sm:$0xf0]  ;;  %v3286_v36 = vld [vmem:[%s4634_s16 + $0x118] sm:$0xf] }
 0x6c6   : >> { %1904 = vmatpush.bf16.msrb.mxu3 %v3031_v18  ;;  %1918 = vmatpush.bf16.msrb.mxu0 %v3035_v2  ;;  %v2982_v18 = vld [vmem:[%s4456_s11 + $0xb8] sm:$0xf]  ;;  %v3271_v1 = vor.u32 %v3513_v57, %v3270_v55  ;;  %v3214_v57 = vld [vmem:[%s4634_s16 + $0x90] sm:$0xf] }
 0x6c7   : >> { %v3438_v2 = vld [vmem:[%s4456_s11 + $0xf4] sm:$0xf0] }
 0x6c9   : >> { %1877 = vmatpush.bf16.msra.mxu1 %v2959_v60  ;;  %1891 = vmatpush.bf16.msrb.mxu2 %v2963_v37  ;;  %v2983_v60 = vor.u32 %v3438_v2, %v2982_v18  ;;  %v2987_v37 = vor.u32 %v3430_v14, %v2984_v56  ;;  %v3211_v2 = vor.u32 %v3489_v33, %v3208_v24  ;;  %v3216_v33 = vld [vmem:[%s4634_s16 + $0xd0] sm:$0xf0]  ;;  %v3222_v24 = vld [vmem:[%s4634_s16 + $0x98] sm:$0xf] }
 0x6ca   : >> { %1905 = vmatpush.bf16.msrb.mxu3 %v2967_v20  ;;  %1919 = vmatpush.bf16.msrb.mxu0 %v2971_v39  ;;  %v2918_v20 = vld [vmem:[%s4456_s11 + $0x38] sm:$0xf]  ;;  %v3207_v56 = vor.u32 %v3497_v27, %v3206_v38  ;;  %v3150_v27 = vld [vmem:[%s4634_s16 + $0x10] sm:$0xf] }
 0x6cb   : >> { %v3422_v39 = vld [vmem:[%s4456_s11 + $0x74] sm:$0xf0] }
 0x6cd   : >> { %1878 = vmatpush.bf16.msra.mxu1 %v2895_v30  ;;  %1892 = vmatpush.bf16.msrb.mxu2 %v2899_v59  ;;  %v2919_v30 = vor.u32 %v3422_v39, %v2918_v20  ;;  %v2923_v59 = vor.u32 %v3414_v41, %v2920_v23  ;;  %v3472_v20 = vld [vmem:[%s4634_s16 + $0x4] sm:$0xf]  ;;  %v3481_v41 = vld [vmem:[%s4634_s16 + $0x44] sm:$0xf0]  ;;  %v3522_v23 = vld [vmem:[%s4634_s16 + $0x194] sm:$0xf] }
 0x6ce   : >> { %1906 = vmatpush.bf16.msrb.mxu3 %v2903_v15  ;;  %1920 = vmatpush.bf16.msrb.mxu0 %v2907_v19  ;;  %v3520_v15 = vld [vmem:[%s4634_s16 + $0x184] sm:$0xf] }
 0x6cf   : >> { %3120 = vmatmul.msk.bf16.vlgmr.msrb.gmra.mxu1 %vm617_vm6, %v4558_v29  ;;  %3121 = vmatmul.msk.bf16.vlgmr.msra.gmra.mxu2 %vm617_vm6, %v4558_v29  ;;  %v3328_v19 = vld [vmem:[%s4634_s16 + $0x1c0] sm:$0xf0] }
 0x6d0   : >> { %3122 = vmatmul.msk.bf16.vlgmr.msra.gmra.mxu3 %vm617_vm6, %v4558_v29  ;;  %3123 = vmatmul.msk.bf16.vlgmr.msra.gmra.mxu0 %vm617_vm6, %v4558_v29  ;;  %v3331_v52 = vor.u32 %v3520_v15, %v3328_v19  ;;  %v3136_v39 = vld [vmem:[%s4634_s16 + $0x40] sm:$0xf0]  ;;  %v3347_v19 = vor.u32 %v3522_v23, %v3344_v0 }
 0x6d1   : >> { %1931 = vmatpush.bf16.msrb.mxu1 %v3103_v43  ;;  %1945 = vmatpush.bf16.msra.mxu2 %v3107_v22  ;;  %v3262_v43 = vld [vmem:[%s4634_s16 + $0x100] sm:$0xf]  ;;  %v3139_v13 = vor.u32 %v3472_v20, %v3136_v39 }
 0x6d2   : >> { %1959 = vmatpush.bf16.msra.mxu3 %v3111_v31  ;;  %1973 = vmatpush.bf16.msra.mxu0 %v3115_v53  ;;  %v3512_v22 = vld [vmem:[%s4634_s16 + $0x13c] sm:$0xf0]  ;;  %v3504_v31 = vld [vmem:[%s4634_s16 + $0x104] sm:$0xf] }
 0x6d3   : >> { %v3264_v53 = vld [vmem:[%s4634_s16 + $0x140] sm:$0xf0]  ;;  %v3263_v42 = vor.u32 %v3512_v22, %v3262_v43  ;;  %v3506_v22 = vld [vmem:[%s4634_s16 + $0x114] sm:$0xf] }
 0x6d4   : >> { %v3267_v58 = vor.u32 %v3504_v31, %v3264_v53  ;;  %v3283_v31 = vor.u32 %v3506_v22, %v3280_v44  ;;  %v3515_v53 = vld [vmem:[%s4634_s16 + $0x154] sm:$0xf0] }
 0x6d5   : >> { %1932 = vmatpush.bf16.msrb.mxu1 %v3039_v62  ;;  %1946 = vmatpush.bf16.msra.mxu2 %v3043_v61  ;;  %v3198_v62 = vld [vmem:[%s4634_s16 + $0x80] sm:$0xf]  ;;  %v3287_v55 = vor.u32 %v3515_v53, %v3286_v36 }
 0x6d6   : >> { %1960 = vmatpush.bf16.msra.mxu3 %v3047_v25  ;;  %1974 = vmatpush.bf16.msra.mxu0 %v3051_v26  ;;  %v3496_v61 = vld [vmem:[%s4634_s16 + $0xbc] sm:$0xf0]  ;;  %v3488_v25 = vld [vmem:[%s4634_s16 + $0x84] sm:$0xf] }
 0x6d7   : >> { %v3200_v26 = vld [vmem:[%s4634_s16 + $0xc0] sm:$0xf0]  ;;  %v3199_v18 = vor.u32 %v3496_v61, %v3198_v62  ;;  %v3490_v61 = vld [vmem:[%s4634_s16 + $0x94] sm:$0xf] }
 0x6d8   : >> { %v3203_v14 = vor.u32 %v3488_v25, %v3200_v26  ;;  %v3219_v25 = vor.u32 %v3490_v61, %v3216_v33  ;;  %v3499_v26 = vld [vmem:[%s4634_s16 + $0xd4] sm:$0xf0]  ;;  %v3366_v33 = vld [vmem:[%s4634_s16 + $0x1a8] sm:$0xf] }
 0x6d9   : >> { %1933 = vmatpush.bf16.msrb.mxu1 %v2975_v6  ;;  %1947 = vmatpush.bf16.msra.mxu2 %v2979_v40  ;;  %v3134_v6 = vld [vmem:[%s4634_s16] sm:$0xf]  ;;  %v3223_v38 = vor.u32 %v3499_v26, %v3222_v24  ;;  %v3533_v24 = vld [vmem:[%s4634_s16 + $0x1e4] sm:$0xf0] }
 0x6da   : >> { %1961 = vmatpush.bf16.msra.mxu3 %v2983_v60  ;;  %1975 = vmatpush.bf16.msra.mxu0 %v2987_v37  ;;  %v3480_v40 = vld [vmem:[%s4634_s16 + $0x3c] sm:$0xf0]  ;;  %v3342_v60 = vld [vmem:[%s4634_s16 + $0x190] sm:$0xf] }
 0x6db   : >> { %v3530_v37 = vld [vmem:[%s4634_s16 + $0x1cc] sm:$0xf0] }
 0x6dd   : >> { %1934 = vmatpush.bf16.msrb.mxu1 %v2911_v54  ;;  %1948 = vmatpush.bf16.msra.mxu2 %v2915_v49  ;;  %v3135_v54 = vor.u32 %v3480_v40, %v3134_v6  ;;  %v3147_v49 = vor.u32 %v3473_v17, %v3144_v35  ;;  %v3474_v40 = vld [vmem:[%s4634_s16 + $0x14] sm:$0xf]  ;;  %v3158_v35 = vld [vmem:[%s4634_s16 + $0x18] sm:$0xf] }
 0x6de   : >> { %1962 = vmatpush.bf16.msra.mxu3 %v2919_v30  ;;  %1976 = vmatpush.bf16.msra.mxu0 %v2923_v59  ;;  %v3531_v30 = vld [vmem:[%s4634_s16 + $0x1d4] sm:$0xf0]  ;;  %v3343_v59 = vor.u32 %v3530_v37, %v3342_v60  ;;  %v3152_v17 = vld [vmem:[%s4634_s16 + $0x50] sm:$0xf0] }
 0x6df   : >> { %3124 = vmatmul.msk.bf16.vlgmr.msra.gmra.mxu1 %vm617_vm6, %v4558_v29  ;;  %3125 = vmatmul.msk.bf16.vlgmr.msrb.gmra.mxu2 %vm617_vm6, %v4558_v29  ;;  %v3351_v21 = vor.u32 %v3531_v30, %v3350_v63  ;;  %v3155_v60 = vor.u32 %v3474_v40, %v3152_v17  ;;  %v3483_v37 = vld [vmem:[%s4634_s16 + $0x54] sm:$0xf0]  ;;  %v1405_v30 = vperm.slane %v4721_v51, 1  ;;  %v3304_v40 = vld [vmem:[%s4634_s16 + $0x168] sm:$0xf0] }
 0x6e0   : >> { %3126 = vmatmul.msk.bf16.vlgmr.msrb.gmra.mxu3 %vm617_vm6, %v4558_v29  ;;  %3127 = vmatmul.msk.bf16.vlgmr.msrb.gmra.mxu0 %vm617_vm6, %v4558_v29  ;;  %v3159_v50 = vor.u32 %v3483_v37, %v3158_v35  ;;  %v1408_v35 = vperm.slane %v4721_v51, 4 }
 0x6e1   : >> { %2356 = vmatpush.bf16.xpose.msra.mxu1 %v3327_v48  ;;  %2370 = vmatpush.bf16.xpose.msrb.mxu2 %v3331_v52  ;;  %v3514_v48 = vld [vmem:[%s4634_s16 + $0x14c] sm:$0xf0]  ;;  %v3288_v52 = vld [vmem:[%s4634_s16 + $0x158] sm:$0xf0] }
 0x6e2   : >> { %2398 = vmatpush.bf16.xpose.msrb.mxu0 %v3339_v47  ;;  %2384 = vmatpush.bf16.xpose.msrb.mxu3 %v3335_v32  ;;  %v3507_v47 = vld [vmem:[%s4634_s16 + $0x11c] sm:$0xf]  ;;  %v3279_v32 = vor.u32 %v3514_v48, %v3278_v45  ;;  %v3525_v45 = vld [vmem:[%s4634_s16 + $0x1ac] sm:$0xf] }
 0x6e3   : >> { %v3291_v43 = vor.u32 %v3507_v47, %v3288_v52  ;;  %v3368_v48 = vld [vmem:[%s4634_s16 + $0x1e8] sm:$0xf0] }
 0x6e9   : >> { %2357 = vmatpush.bf16.xpose.msra.mxu1 %v3263_v42  ;;  %2371 = vmatpush.bf16.xpose.msrb.mxu2 %v3267_v58  ;;  %v3498_v42 = vld [vmem:[%s4634_s16 + $0xcc] sm:$0xf0] }
 0x6ea   : >> { %2399 = vmatpush.bf16.xpose.msrb.mxu0 %v3275_v46  ;;  %2385 = vmatpush.bf16.xpose.msrb.mxu3 %v3271_v1  ;;  %v3491_v46 = vld [vmem:[%s4634_s16 + $0x9c] sm:$0xf]  ;;  %v3215_v58 = vor.u32 %v3498_v42, %v3214_v57 }
 0x6eb   : >> { %v3224_v1 = vld [vmem:[%s4634_s16 + $0xd8] sm:$0xf0] }
 0x6ec   : >> { %v3227_v62 = vor.u32 %v3491_v46, %v3224_v1  ;;  %v3360_v1 = vld [vmem:[%s4634_s16 + $0x1e0] sm:$0xf0] }
 0x6ef   : >> { %3128 = vmatmul.msk.bf16.vlgmr.msrb.gmra.mxu1 %vm617_vm6, %v4558_v29  ;;  %3129 = vmatmul.msk.bf16.vlgmr.msra.gmra.mxu2 %vm617_vm6, %v4558_v29 }
 0x6f0   : >> { %3130 = vmatmul.msk.bf16.vlgmr.msra.gmra.mxu3 %vm617_vm6, %v4558_v29  ;;  %3131 = vmatmul.msk.bf16.vlgmr.msra.gmra.mxu0 %vm617_vm6, %v4558_v29  ;;  %v3142_v29 = vld [vmem:[%s4634_s16 + $0x8] sm:$0xf] }
 0x6f1   : >> { %2358 = vmatpush.bf16.xpose.msra.mxu1 %v3199_v18  ;;  %2372 = vmatpush.bf16.xpose.msrb.mxu2 %v3203_v14  ;;  %v3143_v15 = vor.u32 %v3481_v41, %v3142_v29  ;;  %v3482_v18 = vld [vmem:[%s4634_s16 + $0x4c] sm:$0xf0]  ;;  %v1404_v29 = vperm.slane %v4721_v51, 0  ;;  %v1407_v41 = vperm.slane %v4721_v51, 3 }
 0x6f2   : >> { %2400 = vmatpush.bf16.xpose.msrb.mxu0 %v3211_v2  ;;  %2386 = vmatpush.bf16.xpose.msrb.mxu3 %v3207_v56  ;;  %v3475_v2 = vld [vmem:[%s4634_s16 + $0x1c] sm:$0xf]  ;;  %v3151_v14 = vor.u32 %v3482_v18, %v3150_v27  ;;  %v3294_v27 = vld [vmem:[%s4634_s16 + $0x120] sm:$0xf] }
 0x6f3   : >> { %v3160_v56 = vld [vmem:[%s4634_s16 + $0x58] sm:$0xf0]  ;;  %v3516_v18 = vld [vmem:[%s4634_s16 + $0x15c] sm:$0xf0] }
 0x6f4   : >> { %v3163_v6 = vor.u32 %v3475_v2, %v3160_v56 }
 0x6f9   : >> { %2359 = vmatpush.bf16.xpose.msra.mxu1 %v3135_v54  ;;  %2373 = vmatpush.bf16.xpose.msrb.mxu2 %v3139_v13  ;;  %v3358_v13 = vld [vmem:[%s4634_s16 + $0x1a0] sm:$0xf] }
 0x6fa   : >> { %2401 = vmatpush.bf16.xpose.msrb.mxu0 %v3147_v49  ;;  %2387 = vmatpush.bf16.xpose.msrb.mxu3 %v3143_v15  ;;  %v3532_v15 = vld [vmem:[%s4634_s16 + $0x1dc] sm:$0xf0] }
 0x6fb   : >> { %v3359_v22 = vor.u32 %v3532_v15, %v3358_v13 }
 0x701   : >> { %2412 = vmatpush.bf16.xpose.msrb.mxu1 %v3343_v59  ;;  %2426 = vmatpush.bf16.xpose.msra.mxu2 %v3347_v19  ;;  %v1406_v19 = vperm.slane %v4721_v51, 2 }
 0x702   : >> { %2454 = vmatpush.bf16.xpose.msra.mxu0 %v3355_v34  ;;  %2440 = vmatpush.bf16.xpose.msra.mxu3 %v3351_v21 }
 0x709   : >> { %2413 = vmatpush.bf16.xpose.msrb.mxu1 %v3279_v32  ;;  %2427 = vmatpush.bf16.xpose.msra.mxu2 %v3283_v31  ;;  %v3371_v31 = vor.u32 %v3525_v45, %v3368_v48  ;;  %v1410_v45 = vperm.slane %v4721_v51, 6 }
 0x70a   : >> { %2455 = vmatpush.bf16.xpose.msra.mxu0 %v3291_v43  ;;  %2441 = vmatpush.bf16.xpose.msra.mxu3 %v3287_v55 }
 0x711   : >> { %2414 = vmatpush.bf16.xpose.msrb.mxu1 %v3215_v58  ;;  %2428 = vmatpush.bf16.xpose.msra.mxu2 %v3219_v25  ;;  %v3524_v58 = vld [vmem:[%s4634_s16 + $0x1a4] sm:$0xf] }
 0x712   : >> { %2456 = vmatpush.bf16.xpose.msra.mxu0 %v3227_v62  ;;  %2442 = vmatpush.bf16.xpose.msra.mxu3 %v3223_v38  ;;  %v3363_v56 = vor.u32 %v3524_v58, %v3360_v1  ;;  %v4752_v1 = vld [vmem:[%s4718_s17 + $0x8] sm:$0xff] }
 0x719   : >> { %2415 = vmatpush.bf16.xpose.msrb.mxu1 %v3151_v14  ;;  %2429 = vmatpush.bf16.xpose.msra.mxu2 %v3155_v60  ;;  %v3367_v60 = vor.u32 %v3533_v24, %v3366_v33  ;;  %v3492_v33 = vld [vmem:[%s4634_s16 + $0xa4] sm:$0xf] }
 0x71a   : >> { %2457 = vmatpush.bf16.xpose.msra.mxu0 %v3163_v6  ;;  %2443 = vmatpush.bf16.xpose.msra.mxu3 %v3159_v50  ;;  %v3509_v6 = vld [vmem:[%s4634_s16 + $0x12c] sm:$0xf]  ;;  %v1411_v50 = vperm.slane %v4721_v51, 7  ;;  %v3232_v24 = vld [vmem:[%s4634_s16 + $0xe0] sm:$0xf0] }
 0x73c   : >> { %v1768_v20 = vpop.f32.mrf.mxu1 }
 0x73d   : >> { %v1810_v39 = vpop.f32.mrf.mxu0  ;;  %v1769_v54 = vadd.f32 %v1768_v20, %v1404_v29  ;;  %v3295_v20 = vor.u32 %v3516_v18, %v3294_v27  ;;  %v3501_v27 = vld [vmem:[%s4634_s16 + $0xe4] sm:$0xf0]  ;;  %v3166_v18 = vld [vmem:[%s4634_s16 + $0x20] sm:$0xf] }
 0x73e   : >> { %v1811_v0 = vadd.f32 %v1810_v39, %v1407_v41  ;;  %v3307_v39 = vor.u32 %v3509_v6, %v3304_v40  ;;  %v3477_v40 = vld [vmem:[%s4634_s16 + $0x2c] sm:$0xf] }
 0x73f   : >> { %v1983_v47 = vmax.f32 %v1769_v54, 0.0  ;;  %v3508_v54 = vld [vmem:[%s4634_s16 + $0x124] sm:$0xf] }
 0x740   : >> { %v1986_v32 = vmax.f32 %v1811_v0, 0.0 }
 0x742   : >> { %v1782_v23 = vpop.f32.mrf.mxu2 }
 0x743   : >> { %v1796_v49 = vpop.f32.mrf.mxu3  ;;  %v1783_v44 = vadd.f32 %v1782_v23, %v1405_v30 }
 0x744   : >> { %v1770_v63 = vpop.f32.mrf.mxu1  ;;  %v1797_v53 = vadd.f32 %v1796_v49, %v1406_v19  ;;  %v3296_v49 = vld [vmem:[%s4634_s16 + $0x160] sm:$0xf0] }
 0x745   : >> { %v1771_v59 = vadd.f32 %v1770_v63, %v1404_v29  ;;  %v1812_v34 = vpop.f32.mrf.mxu0  ;;  %v1984_v25 = vmax.f32 %v1783_v44, 0.0 }
 0x746   : >> { %v1813_v21 = vadd.f32 %v1812_v34, %v1407_v41  ;;  %v1985_v2 = vmax.f32 %v1797_v53, 0.0  ;;  %v1409_v34 = vperm.slane %v4721_v51, 5 }
 0x747   : >> { %v1999_v52 = vmax.f32 %v1771_v59, 0.0  ;;  %v3517_v59 = vld [vmem:[%s4634_s16 + $0x164] sm:$0xf0] }
 0x748   : >> { %v2002_v43 = vmax.f32 %v1813_v21, 0.0  ;;  %v3500_v21 = vld [vmem:[%s4634_s16 + $0xdc] sm:$0xf0] }
 0x749   : >> { %v2015_v36 = vpack.c.bf16 %v1999_v52, %v1983_v47  ;;  %v3299_v47 = vor.u32 %v3508_v54, %v3296_v49  ;;  %v3493_v52 = vld [vmem:[%s4634_s16 + $0xac] sm:$0xf]  ;;  %v3384_v54 = vld [vmem:[%s4634_s16 + $0x1f8] sm:$0xf0] }
 0x74a   : >> { %v2018_v55 = vpack.c.bf16 %v2002_v43, %v1986_v32  ;;  %v1784_v57 = vpop.f32.mrf.mxu2  ;;  %v3240_v32 = vld [vmem:[%s4634_s16 + $0xe8] sm:$0xf0] }
 0x74b   : >> { %v1785_v42 = vadd.f32 %v1784_v57, %v1405_v30  ;;  %v1798_v46 = vpop.f32.mrf.mxu3  ;;  %2360 = vmatmul.bf16.vlgmr.msra.gmra.mxu1 %v2015_v36  ;;  %v3302_v30 = vld [vmem:[%s4634_s16 + $0x128] sm:$0xf] }
 0x74c   : >> { %v1799_v62 = vadd.f32 %v1798_v46, %v1406_v19  ;;  %2402 = vmatmul.bf16.vlgmr.msrb.gmra.mxu0 %v2018_v55  ;;  %2468 = vmatpush.bf16.xpose.msra.mxu1 %v3359_v22  ;;  %v1824_v61 = vpop.f32.mrf.mxu1  ;;  %v3230_v19 = vld [vmem:[%s4634_s16 + $0xa0] sm:$0xf]  ;;  %v3303_v44 = vor.u32 %v3517_v59, %v3302_v30 }
 0x74d   : >> { %v2000_v26 = vmax.f32 %v1785_v42, 0.0  ;;  %2510 = vmatpush.bf16.xpose.msrb.mxu0 %v3371_v31  ;;  %v1866_v38 = vpop.f32.mrf.mxu0  ;;  %v1825_v41 = vadd.f32 %v1824_v61, %v1408_v35  ;;  %v3231_v53 = vor.u32 %v3500_v21, %v3230_v19  ;;  %v3243_v42 = vor.u32 %v3493_v52, %v3240_v32  ;;  %v3476_v21 = vld [vmem:[%s4634_s16 + $0x24] sm:$0xf]  ;;  %v3485_v32 = vld [vmem:[%s4634_s16 + $0x64] sm:$0xf0] }
 0x74e   : >> { %v2001_v14 = vmax.f32 %v1799_v62, 0.0  ;;  %v1867_v0 = vadd.f32 %v1866_v38, %v1411_v50 }
 0x74f   : >> { %v2016_v17 = vpack.c.bf16 %v2000_v26, %v1984_v25  ;;  %v1987_v43 = vmax.f32 %v1825_v41, 0.0  ;;  %v3238_v25 = vld [vmem:[%s4634_s16 + $0xa8] sm:$0xf] }
 0x750   : >> { %v2017_v37 = vpack.c.bf16 %v2001_v14, %v1985_v2  ;;  %v1990_v36 = vmax.f32 %v1867_v0, 0.0  ;;  %v3484_v2 = vld [vmem:[%s4634_s16 + $0x5c] sm:$0xf0]  ;;  %v3239_v41 = vor.u32 %v3501_v27, %v3238_v25  ;;  %v1415_v0 = vperm.slane %v4752_v1, 3  ;;  %v3511_v25 = vld [vmem:[%s4634_s16 + $0x13c] sm:$0xf] }
 0x751   : >> { %2374 = vmatmul.bf16.vlgmr.msrb.gmra.mxu2 %v2016_v17  ;;  %v3176_v17 = vld [vmem:[%s4634_s16 + $0x68] sm:$0xf0] }
 0x752   : >> { %2388 = vmatmul.bf16.vlgmr.msrb.gmra.mxu3 %v2017_v37  ;;  %2482 = vmatpush.bf16.xpose.msrb.mxu2 %v3363_v56  ;;  %v1838_v29 = vpop.f32.mrf.mxu2  ;;  %v3235_v37 = vor.u32 %v3492_v33, %v3232_v24  ;;  %v3179_v30 = vor.u32 %v3477_v40, %v3176_v17 }
 0x753   : >> { %2496 = vmatpush.bf16.xpose.msrb.mxu3 %v3367_v60  ;;  %v1852_v23 = vpop.f32.mrf.mxu3  ;;  %v1839_v55 = vadd.f32 %v1838_v29, %v1409_v34  ;;  %v1412_v29 = vperm.slane %v4752_v1, 0 }
 0x754   : >> { %2469 = vmatpush.bf16.xpose.msra.mxu1 %v3295_v20  ;;  %v1826_v63 = vpop.f32.mrf.mxu1  ;;  %v1853_v46 = vadd.f32 %v1852_v23, %v1410_v45  ;;  %v3534_v20 = vld [vmem:[%s4634_s16 + $0x1ec] sm:$0xf0]  ;;  %v3527_v23 = vld [vmem:[%s4634_s16 + $0x1bc] sm:$0xf] }
 0x755   : >> { %2511 = vmatpush.bf16.xpose.msrb.mxu0 %v3307_v39  ;;  %v1827_v13 = vadd.f32 %v1826_v63, %v1408_v35  ;;  %v1868_v15 = vpop.f32.mrf.mxu0  ;;  %v1988_v14 = vmax.f32 %v1839_v55, 0.0  ;;  %v3167_v63 = vor.u32 %v3484_v2, %v3166_v18  ;;  %v3535_v55 = vld [vmem:[%s4634_s16 + $0x1f4] sm:$0xf0] }
 0x756   : >> { %v1869_v48 = vadd.f32 %v1868_v15, %v1411_v50  ;;  %v1989_v35 = vmax.f32 %v1853_v46, 0.0  ;;  %v3374_v50 = vld [vmem:[%s4634_s16 + $0x1b0] sm:$0xf] }
 0x757   : >> { %v2003_v22 = vmax.f32 %v1827_v13, 0.0  ;;  %v3375_v59 = vor.u32 %v3534_v20, %v3374_v50  ;;  %v3387_v13 = vor.u32 %v3527_v23, %v3384_v54  ;;  %v3510_v20 = vld [vmem:[%s4634_s16 + $0x134] sm:$0xf]  ;;  %v3318_v54 = vld [vmem:[%s4634_s16 + $0x138] sm:$0xf] }
 0x758   : >> { %v2006_v31 = vmax.f32 %v1869_v48, 0.0  ;;  %v3174_v48 = vld [vmem:[%s4634_s16 + $0x28] sm:$0xf] }
 0x759   : >> { %v2019_v57 = vpack.c.bf16 %v2003_v22, %v1987_v43  ;;  %v3526_v43 = vld [vmem:[%s4634_s16 + $0x1b4] sm:$0xf]  ;;  %v3175_v33 = vor.u32 %v3485_v32, %v3174_v48 }
 0x75a   : >> { %v2022_v51 = vpack.c.bf16 %v2006_v31, %v1990_v36  ;;  %2483 = vmatpush.bf16.xpose.msrb.mxu2 %v3299_v47  ;;  %v1840_v58 = vpop.f32.mrf.mxu2  ;;  %v3376_v22 = vld [vmem:[%s4634_s16 + $0x1f0] sm:$0xf0] }
 0x75b   : >> { %2497 = vmatpush.bf16.xpose.msrb.mxu3 %v3303_v44  ;;  %v1841_v62 = vadd.f32 %v1840_v58, %v1409_v34  ;;  %v1854_v61 = vpop.f32.mrf.mxu3  ;;  %2416 = vmatmul.bf16.vlgmr.msrb.gmra.mxu1 %v2019_v57  ;;  %v1413_v44 = vperm.slane %v4752_v1, 1  ;;  %v1414_v57 = vperm.slane %v4752_v1, 2  ;;  %v3518_v58 = vld [vmem:[%s4634_s16 + $0x16c] sm:$0xf0]  ;;  %v3379_v24 = vor.u32 %v3526_v43, %v3376_v22  ;;  %v3494_v22 = vld [vmem:[%s4634_s16 + $0xb4] sm:$0xf] }
 0x75c   : >> { %v1855_v26 = vadd.f32 %v1854_v61, %v1410_v45  ;;  %2458 = vmatmul.bf16.vlgmr.msra.gmra.mxu0 %v2022_v51  ;;  %2470 = vmatpush.bf16.xpose.msra.mxu1 %v3231_v53  ;;  %v1880_v38 = vpop.f32.mrf.mxu1  ;;  %v3168_v45 = vld [vmem:[%s4634_s16 + $0x60] sm:$0xf0]  ;;  %v3382_v53 = vld [vmem:[%s4634_s16 + $0x1b8] sm:$0xf]  ;;  %v3310_v51 = vld [vmem:[%s4634_s16 + $0x130] sm:$0xf] }
 0x75d   : >> { %v2004_v56 = vmax.f32 %v1841_v62, 0.0  ;;  %2512 = vmatpush.bf16.xpose.msrb.mxu0 %v3243_v42  ;;  %v1922_v6 = vpop.f32.mrf.mxu0  ;;  %v1881_v15 = vadd.f32 %v1880_v38, %v1412_v29  ;;  %v3171_v46 = vor.u32 %v3476_v21, %v3168_v45  ;;  %v3383_v18 = vor.u32 %v3535_v55, %v3382_v53  ;;  %v3256_v21 = vld [vmem:[%s4634_s16 + $0xf8] sm:$0xf0]  ;;  %v3182_v53 = vld [vmem:[%s4634_s16 + $0x30] sm:$0xf] }
 0x75e   : >> { %v2005_v60 = vmax.f32 %v1855_v26, 0.0  ;;  %v1923_v47 = vadd.f32 %v1922_v6, %v1415_v0  ;;  %v3320_v26 = vld [vmem:[%s4634_s16 + $0x178] sm:$0xf0]  ;;  %v3486_v55 = vld [vmem:[%s4634_s16 + $0x6c] sm:$0xf0] }
 0x75f   : >> { %v2020_v39 = vpack.c.bf16 %v2004_v56, %v1988_v14  ;;  %v1991_v62 = vmax.f32 %v1881_v15, 0.0  ;;  %v3311_v56 = vor.u32 %v3518_v58, %v3310_v51  ;;  %v3192_v51 = vld [vmem:[%s4634_s16 + $0x78] sm:$0xf0]  ;;  %v1416_v58 = vperm.slane %v4752_v1, 4 }
 0x760   : >> { %v2021_v49 = vpack.c.bf16 %v2005_v60, %v1989_v35  ;;  %v1994_v38 = vmax.f32 %v1923_v47, 0.0  ;;  %v3323_v35 = vor.u32 %v3511_v25, %v3320_v26 }
 0x761   : >> { %2430 = vmatmul.bf16.vlgmr.msra.gmra.mxu2 %v2020_v39  ;;  %v3312_v39 = vld [vmem:[%s4634_s16 + $0x170] sm:$0xf0] }
 0x762   : >> { %2444 = vmatmul.bf16.vlgmr.msra.gmra.mxu3 %v2021_v49  ;;  %2484 = vmatpush.bf16.xpose.msrb.mxu2 %v3235_v37  ;;  %v1894_v34 = vpop.f32.mrf.mxu2  ;;  %v3519_v49 = vld [vmem:[%s4634_s16 + $0x174] sm:$0xf0]  ;;  %v3315_v15 = vor.u32 %v3510_v20, %v3312_v39 }
 0x763   : >> { %2498 = vmatpush.bf16.xpose.msrb.mxu3 %v3239_v41  ;;  %v1908_v19 = vpop.f32.mrf.mxu3  ;;  %v1895_v2 = vadd.f32 %v1894_v34, %v1413_v44  ;;  %v3502_v34 = vld [vmem:[%s4634_s16 + $0xec] sm:$0xf0]  ;;  %v3319_v48 = vor.u32 %v3519_v49, %v3318_v54 }
 0x764   : >> { %2471 = vmatpush.bf16.xpose.msra.mxu1 %v3167_v63  ;;  %v1882_v52 = vpop.f32.mrf.mxu1  ;;  %v1909_v6 = vadd.f32 %v1908_v19, %v1414_v57  ;;  %v3495_v19 = vld [vmem:[%s4634_s16 + $0xbc] sm:$0xf] }
 0x765   : >> { %2513 = vmatpush.bf16.xpose.msrb.mxu0 %v3179_v30  ;;  %v1883_v36 = vadd.f32 %v1882_v52, %v1412_v29  ;;  %v1924_v31 = vpop.f32.mrf.mxu0  ;;  %v1992_v29 = vmax.f32 %v1895_v2, 0.0  ;;  %v3259_v52 = vor.u32 %v3495_v19, %v3256_v21  ;;  %v3184_v2 = vld [vmem:[%s4634_s16 + $0x70] sm:$0xf0] }
 0x766   : >> { %v1925_v42 = vadd.f32 %v1924_v31, %v1415_v0  ;;  %v1993_v0 = vmax.f32 %v1909_v6, 0.0  ;;  %v3503_v31 = vld [vmem:[%s4634_s16 + $0xf4] sm:$0xf0] }
 0x767   : >> { %v2007_v61 = vmax.f32 %v1883_v36, 0.0  ;;  %v3254_v36 = vld [vmem:[%s4634_s16 + $0xb8] sm:$0xf] }
 0x768   : >> { %v2010_v27 = vmax.f32 %v1925_v42, 0.0  ;;  %v3190_v6 = vld [vmem:[%s4634_s16 + $0x38] sm:$0xf] }
 0x769   : >> { %v2023_v14 = vpack.c.bf16 %v2007_v61, %v1991_v62  ;;  %v3255_v61 = vor.u32 %v3503_v31, %v3254_v36 }
 0x76a   : >> { %v2026_v40 = vpack.c.bf16 %v2010_v27, %v1994_v38  ;;  %2485 = vmatpush.bf16.xpose.msrb.mxu2 %v3171_v46  ;;  %v1896_v17 = vpop.f32.mrf.mxu2  ;;  %v3479_v46 = vld [vmem:[%s4634_s16 + $0x3c] sm:$0xf] }
 0x76b   : >> { %2499 = vmatpush.bf16.xpose.msrb.mxu3 %v3175_v33  ;;  %v1897_v60 = vadd.f32 %v1896_v17, %v1413_v44  ;;  %v1910_v37 = vpop.f32.mrf.mxu3  ;;  %2472 = vmatmul.bf16.vlgmr.msra.gmra.mxu1 %v2023_v14  ;;  %v3248_v44 = vld [vmem:[%s4634_s16 + $0xf0] sm:$0xf0]  ;;  %v1419_v33 = vperm.slane %v4752_v1, 7  ;;  %v3195_v26 = vor.u32 %v3479_v46, %v3192_v51  ;;  %v1417_v17 = vperm.slane %v4752_v1, 5 }
 0x76c   : >> { %2524 = vmatpush.bf16.xpose.msrb.mxu1 %v3375_v59  ;;  %v1911_v50 = vadd.f32 %v1910_v37, %v1414_v57  ;;  %2514 = vmatmul.bf16.vlgmr.msrb.gmra.mxu0 %v2026_v40  ;;  %v1936_v23 = vpop.f32.mrf.mxu1  ;;  %v3246_v59 = vld [vmem:[%s4634_s16 + $0xb0] sm:$0xf]  ;;  %v3251_v42 = vor.u32 %v3494_v22, %v3248_v44  ;;  %v3487_v40 = vld [vmem:[%s4634_s16 + $0x74] sm:$0xf0]  ;;  %v1418_v37 = vperm.slane %v4752_v1, 6  ;;  %v4807_v44 = vld [vmem:[%s4076_s27] sm:$0xff] }
 0x76d   : >> { %2566 = vmatpush.bf16.xpose.msra.mxu0 %v3387_v13  ;;  %v2008_v41 = vmax.f32 %v1897_v60, 0.0  ;;  %v1978_v30 = vpop.f32.mrf.mxu0  ;;  %v3247_v47 = vor.u32 %v3502_v34, %v3246_v59  ;;  %v1937_v27 = vadd.f32 %v1936_v23, %v1416_v58  ;;  %v2031_v36 = vperm.slane %v4807_v44, 6 }
 0x76e   : >> { %v2009_v63 = vmax.f32 %v1911_v50, 0.0  ;;  %v1979_v14 = vadd.f32 %v1978_v30, %v1419_v33 }
 0x76f   : >> { %v2024_v13 = vpack.c.bf16 %v2008_v41, %v1992_v29  ;;  %v1995_v39 = vmax.f32 %v1937_v27, 0.0  ;;  %v3191_v41 = vor.u32 %v3487_v40, %v3190_v6 }
 0x770   : >> { %v2025_v45 = vpack.c.bf16 %v2009_v63, %v1993_v0  ;;  %v1998_v23 = vmax.f32 %v1979_v14, 0.0 }
 0x771   : >> { %2486 = vmatmul.bf16.vlgmr.msrb.gmra.mxu2 %v2024_v13 }
 0x772   : >> { %2538 = vmatpush.bf16.xpose.msra.mxu2 %v3379_v24  ;;  %2500 = vmatmul.bf16.vlgmr.msrb.gmra.mxu3 %v2025_v45  ;;  %v1950_v32 = vpop.f32.mrf.mxu2  ;;  %v3183_v24 = vor.u32 %v3486_v55, %v3182_v53 }
 0x773   : >> { %2552 = vmatpush.bf16.xpose.msra.mxu3 %v3383_v18  ;;  %v1964_v43 = vpop.f32.mrf.mxu3  ;;  %v3478_v18 = vld [vmem:[%s4634_s16 + $0x34] sm:$0xf]  ;;  %v1951_v49 = vadd.f32 %v1950_v32, %v1417_v17 }
 0x774   : >> { %2525 = vmatpush.bf16.xpose.msrb.mxu1 %v3311_v56  ;;  %v1938_v57 = vpop.f32.mrf.mxu1  ;;  %v3187_v20 = vor.u32 %v3478_v18, %v3184_v2  ;;  %v1965_v63 = vadd.f32 %v1964_v43, %v1418_v37 }
 0x775   : >> { %2567 = vmatpush.bf16.xpose.msra.mxu0 %v3323_v35  ;;  %v1980_v62 = vpop.f32.mrf.mxu0  ;;  %v1939_v25 = vadd.f32 %v1938_v57, %v1416_v58  ;;  %v1996_v13 = vmax.f32 %v1951_v49, 0.0 }
 0x776   : >> { %v1981_v38 = vadd.f32 %v1980_v62, %v1419_v33  ;;  %v1997_v1 = vmax.f32 %v1965_v63, 0.0 }
 0x777   : >> { %v2011_v35 = vmax.f32 %v1939_v25, 0.0 }
 0x778   : >> { %v2014_v50 = vmax.f32 %v1981_v38, 0.0 }
 0x779   : >> { %v2027_v0 = vpack.c.bf16 %v2011_v35, %v1995_v39 }
 0x77a   : >> { %2539 = vmatpush.bf16.xpose.msra.mxu2 %v3315_v15  ;;  %v1952_v56 = vpop.f32.mrf.mxu2  ;;  %v2030_v30 = vpack.c.bf16 %v2014_v50, %v1998_v23 }
 0x77b   : >> { %2553 = vmatpush.bf16.xpose.msra.mxu3 %v3319_v48  ;;  %v1966_v60 = vpop.f32.mrf.mxu3  ;;  %v1953_v29 = vadd.f32 %v1952_v56, %v1417_v17 }
 0x77c   : >> { %2526 = vmatpush.bf16.xpose.msrb.mxu1 %v3247_v47  ;;  %v1967_v54 = vadd.f32 %v1966_v60, %v1418_v37 }
 0x77d   : >> { %2568 = vmatpush.bf16.xpose.msra.mxu0 %v3259_v52  ;;  %v2012_v59 = vmax.f32 %v1953_v29, 0.0 }
 0x77e   : >> { %v2013_v34 = vmax.f32 %v1967_v54, 0.0 }
 0x77f   : >> { %v2028_v15 = vpack.c.bf16 %v2012_v59, %v1996_v13 }
 0x780   : >> { %v2029_v19 = vpack.c.bf16 %v2013_v34, %v1997_v1 }
 0x782   : >> { %2540 = vmatpush.bf16.xpose.msra.mxu2 %v3251_v42 }
 0x783   : >> { %2554 = vmatpush.bf16.xpose.msra.mxu3 %v3255_v61 }
 0x784   : >> { %2527 = vmatpush.bf16.xpose.msrb.mxu1 %v3183_v24 }
 0x785   : >> { %2569 = vmatpush.bf16.xpose.msra.mxu0 %v3195_v26 }
 0x78a   : >> { %2541 = vmatpush.bf16.xpose.msra.mxu2 %v3187_v20 }
 0x78b   : >> { %2555 = vmatpush.bf16.xpose.msra.mxu3 %v3191_v41  ;;  %2528 = vmatmul.bf16.vlgmr.msrb.gmra.mxu1 %v2027_v0 }
 0x78c   : >> { %2570 = vmatmul.bf16.vlgmr.msra.gmra.mxu0 %v2030_v30 }
 0x791   : >> { %2542 = vmatmul.bf16.vlgmr.msra.gmra.mxu2 %v2028_v15 }
 0x792   : >> { %2556 = vmatmul.bf16.vlgmr.msra.gmra.mxu3 %v2029_v19 }
 0x7c8   : >> { %v2361_v21 = vpop.f32.mrf.mxu1 }
 0x7c9   : >> { %v2403_v48 = vpop.f32.mrf.mxu0  ;;  %v2362_v53 = vadd.f32 %v2361_v21, %v2031_v36 }
 0x7d0   : >> { %v2363_v52 = vpop.f32.mrf.mxu1 }
 0x7d1   : >> { %v2405_v22 = vpop.f32.mrf.mxu0  ;;  %v2364_v62 = vadd.f32 %v2363_v52, %v2031_v36 }
 0x7d4   : >> { %v2375_v45 = vpop.f32.mrf.mxu2 }
 0x7d5   : >> { %v2389_v47 = vpop.f32.mrf.mxu3  ;;  %v2376_v55 = vadd.f32 %v2375_v45, %v2362_v53 }
 0x7d7   : >> { %v2390_v51 = vadd.f32 %v2389_v47, %v2376_v55 }
 0x7d8   : >> { %v2417_v31 = vpop.f32.mrf.mxu1 }
 0x7d9   : >> { %v2459_v46 = vpop.f32.mrf.mxu0  ;;  %v2404_v61 = vadd.f32 %v2403_v48, %v2390_v51 }
 0x7db   : >> { %v2418_v25 = vadd.f32 %v2417_v31, %v2404_v61 }
 0x7dc   : >> { %v2377_v32 = vpop.f32.mrf.mxu2 }
 0x7dd   : >> { %v2391_v43 = vpop.f32.mrf.mxu3  ;;  %v2378_v33 = vadd.f32 %v2377_v32, %v2364_v62 }
 0x7df   : >> { %v2392_v26 = vadd.f32 %v2391_v43, %v2378_v33 }
 0x7e0   : >> { %v2419_v58 = vpop.f32.mrf.mxu1 }
 0x7e1   : >> { %v2461_v27 = vpop.f32.mrf.mxu0  ;;  %v2406_v14 = vadd.f32 %v2405_v22, %v2392_v26 }
 0x7e3   : >> { %v2420_v6 = vadd.f32 %v2419_v58, %v2406_v14 }
 0x7e4   : >> { %v2431_v57 = vpop.f32.mrf.mxu2 }
 0x7e5   : >> { %v2445_v42 = vpop.f32.mrf.mxu3  ;;  %v2432_v18 = vadd.f32 %v2431_v57, %v2418_v25 }
 0x7e7   : >> { %v2446_v56 = vadd.f32 %v2445_v42, %v2432_v18 }
 0x7e8   : >> { %v2473_v2 = vpop.f32.mrf.mxu1 }
 0x7e9   : >> { %v2460_v17 = vadd.f32 %v2459_v46, %v2446_v56  ;;  %v2515_v37 = vpop.f32.mrf.mxu0 }
 0x7eb   : >> { %v2474_v20 = vadd.f32 %v2473_v2, %v2460_v17 }
 0x7ec   : >> { %v2433_v24 = vpop.f32.mrf.mxu2 }
 0x7ed   : >> { %v2447_v38 = vpop.f32.mrf.mxu3  ;;  %v2434_v35 = vadd.f32 %v2433_v24, %v2420_v6 }
 0x7ef   : >> { %v2448_v39 = vadd.f32 %v2447_v38, %v2434_v35 }
 0x7f0   : >> { %v2475_v50 = vpop.f32.mrf.mxu1 }
 0x7f1   : >> { %v2462_v41 = vadd.f32 %v2461_v27, %v2448_v39  ;;  %v2517_v0 = vpop.f32.mrf.mxu0 }
 0x7f3   : >> { %v2476_v30 = vadd.f32 %v2475_v50, %v2462_v41  ;;  %v2622_v41 = vperm.slane %v4807_v44, 7 }
 0x7f4   : >> { %v2487_v40 = vpop.f32.mrf.mxu2 }
 0x7f5   : >> { %v2501_v60 = vpop.f32.mrf.mxu3  ;;  %v2488_v29 = vadd.f32 %v2487_v40, %v2474_v20 }
 0x7f7   : >> { %v2502_v54 = vadd.f32 %v2501_v60, %v2488_v29 }
 0x7f9   : >> { %v2516_v34 = vadd.f32 %v2515_v37, %v2502_v54 }
 0x7fc   : >> { %v2489_v23 = vpop.f32.mrf.mxu2 }
 0x7fd   : >> { %v2503_v49 = vpop.f32.mrf.mxu3  ;;  %v2490_v59 = vadd.f32 %v2489_v23, %v2476_v30 }
 0x7ff   : >> { %v2504_v15 = vadd.f32 %v2503_v49, %v2490_v59  ;;  %v3634_v49 = vld [vmem:[%s4076_s27 + $0x8] ss:$0 sm:$0xff] }
 0x801   : >> { %v2518_v52 = vadd.f32 %v2517_v0, %v2504_v15 }
 0x808   : >> { %v2529_v63 = vpop.f32.mrf.mxu1 }
 0x809   : >> { %v2530_v13 = vadd.f32 %v2529_v63, %v2516_v34  ;;  %v2571_v45 = vpop.f32.mrf.mxu0 }
 0x810   : >> { %v2531_v47 = vpop.f32.mrf.mxu1 }
 0x811   : >> { %v2532_v43 = vadd.f32 %v2531_v47, %v2518_v52  ;;  %v2573_v42 = vpop.f32.mrf.mxu0 }
 0x814   : >> { %v2543_v1 = vpop.f32.mrf.mxu2 }
 0x815   : >> { %v2544_v19 = vadd.f32 %v2543_v1, %v2530_v13  ;;  %v2557_v21 = vpop.f32.mrf.mxu3 }
 0x817   : >> { %v2558_v48 = vadd.f32 %v2557_v21, %v2544_v19 }
 0x819   : >> { %v2572_v32 = vadd.f32 %v2571_v45, %v2558_v48 }
 0x81b   : >> { %v2576_v22 = vadd.f32 %v2572_v32, %v4549_v16 }
 0x81c   : >> { %v2545_v36 = vpop.f32.mrf.mxu2 }
 0x81d   : >> { %v2546_v31 = vadd.f32 %v2545_v36, %v2532_v43  ;;  %v2578_v53 = vsel %vm617_vm6, %v2576_v22, 0.0  ;;  %v2559_v55 = vpop.f32.mrf.mxu3 }
 0x81e   : >> { %2579 = vadd.xlane.f32.xlu0 %v2578_v53 }
 0x81f   : >> { %v2560_v57 = vadd.f32 %v2559_v55, %v2546_v31 }
 0x821   : >> { %v2574_v46 = vadd.f32 %v2573_v42, %v2560_v57 }
 0x823   : >> { %v2577_v51 = vadd.f32 %v2574_v46, %v4551_v28 }
 0x825   : >> { %v2581_v58 = vsel %vm617_vm6, %v2577_v51, 0.0 }
 0x826   : >> { %2582 = vadd.xlane.f32.xlu2 %v2581_v58 }
 0x891   : >> { %v2580_v62 = vpop.xlane.xlu0 %2579 }
 0x892   : >> { %v2584_v61 = vmul.f32 %v2580_v62, %v4439_v5 }
 0x894   : >> { %v2586_v33 = vsub.f32 %v2576_v22, %v2584_v61 }
 0x896   : >> { %v2588_v24 = vmul.f32 %v2586_v33, %v2586_v33 }
 0x898   : >> { %v2590_v16 = vsel %vm617_vm6, %v2588_v24, 0.0 }
 0x899   : >> { %v2583_v25 = vpop.xlane.xlu2 %2582  ;;  %2591 = vadd.xlane.f32.xlu1 %v2590_v16 }
 0x89a   : >> { %v2585_v26 = vmul.f32 %v2583_v25, %v4439_v5 }
 0x89c   : >> { %v2587_v38 = vsub.f32 %v2577_v51, %v2585_v26 }
 0x89e   : >> { %v2589_v27 = vmul.f32 %v2587_v38, %v2587_v38 }
 0x8a0   : >> { %v2593_v18 = vsel %vm617_vm6, %v2589_v27, 0.0 }
 0x8a1   : >> { %2594 = vadd.xlane.f32.xlu0 %v2593_v18 }
 0x90c   : >> { %v2592_v28 = vpop.xlane.xlu1 %2591 }
 0x90d   : >> { %v2596_v2 = vmul.f32 %v2592_v28, %v4439_v5 }
 0x90f   : >> { %v2598_v14 = vadd.f32 1e-05, %v2596_v2 }
 0x911   : >> { %3705 = vrsqrt.f32 %v2598_v14  ;;  %vm2606_vm0 = vweird.f32 %v2598_v14 }
 0x914   : >> { %v2595_v56 = vpop.xlane.xlu0 %2594 }
 0x915   : >> { %v2597_v6 = vmul.f32 %v2595_v56, %v4439_v5 }
 0x917   : >> { %v3706_v40 = vpop.eup %3705  ;;  %v2599_v17 = vadd.f32 1e-05, %v2597_v6 }
 0x918   : >> { %v2601_v35 = vmul.f32 %v3706_v40, %v2598_v14  ;;  %vm2607_vm15 = vweird.f32 %v3706_v40 }
 0x919   : >> { %3707 = vrsqrt.f32 %v2599_v17  ;;  %vm2608_vm1 = vmor %vm2606_vm0, %vm2607_vm15  ;;  %vm2616_vm4 = vweird.f32 %v2599_v17 }
 0x91a   : >> { %v2602_v60 = vmul.f32 %v3706_v40, %v2601_v35 }
 0x91c   : >> { %v2603_v37 = vmul.f32 0.5, %v2602_v60 }
 0x91e   : >> { %v2604_v50 = vsub.f32 1.5, %v2603_v37 }
 0x91f   : >> { %v3708_v20 = vpop.eup %3707 }
 0x920   : >> { %v2605_v39 = vmul.f32 %v3706_v40, %v2604_v50  ;;  %v2611_v29 = vmul.f32 %v3708_v20, %v2599_v17  ;;  %vm2617_vm2 = vweird.f32 %v3708_v20 }
 0x921   : >> { %vm2618_vm3 = vmor %vm2616_vm4, %vm2617_vm2 }
 0x922   : >> { %v2609_v23 = vsel %vm2608_vm1, %v3706_v40, %v2605_v39  ;;  %v2612_v54 = vmul.f32 %v3708_v20, %v2611_v29 }
 0x923   : >> { %v2620_v5 = vmul.f32 %v2609_v23, %v2586_v33 }
 0x924   : >> { %v2613_v0 = vmul.f32 0.5, %v2612_v54 }
 0x925   : >> { %v2623_v63 = vmul.f32 %v2622_v41, %v2620_v5 }
 0x926   : >> { %v2614_v30 = vsub.f32 1.5, %v2613_v0 }
 0x927   : >> { %v2626_v59 = vadd.f32 %v3634_v49, %v2623_v63  }
 0x928   : >> { %v2615_v34 = vmul.f32 %v3708_v20, %v2614_v30 }
 0x929   : >> { %v4847_v5 = vmov %v2626_v59  ;;  %2629 = vst.msk [vmem:[%s4030_s22] sm:$0xff] (%p409_p7), %vm617_vm6, %v2626_v59 }
 0x92a   : >> { %v2619_v13 = vsel %vm2618_vm3, %v3708_v20, %v2615_v34 }
 0x92b   : >> { %v2621_v1 = vmul.f32 %v2619_v13, %v2587_v38 }
 0x92d   : >> { %v2624_v15 = vmul.f32 %v2622_v41, %v2621_v1  ;;  %411 = sbr.rel (!%p409_p7) target bundleno = 44 (0x2c), region = 112 }
 0x92f   : >> { %v2627_v19 = vadd.f32 %v3634_v49, %v2624_v15  }
 0x931   : >> { %v4846_v6 = vmov %v2627_v19  ;;  %2630 = vst.msk [vmem:[%s4030_s22 + $0x8] sm:$0xff] (%p409_p7), %vm617_vm6, %v2627_v19 }
 0x932 PF: > { %s20_s24 = sadd.s32 1, %s3891_s24  }
 0x933   : > { %p17_p8 = scmp.ge.s32.totalorder %s20_s24, 4  }
 0x935   :  { %19 = sbr.rel (!%p17_p8) target bundleno = 3 (0x3), region = 123 }
 0x93a   :  { %2652 = vsyncpa [#allocation3], 1 }
 0x93b   :  { %2654 = vsyncpa [#allocation3 + $0x1], 1 }
 0x93c   :  { %2655 = vsyncpa [#allocation5], 1 }
 0x93d   :  { %2656 = vsyncpa [#allocation8], 1 }

// kernel: swarmalator_forward.3
= control target key start
LH: loop header
LB: loop body
LE: loop exit
PB: predicated region body
PF: predicated region fallthrough
CT: control target
= control target key end

     0   :  { %s6304_s0 = inlined_call_operand.vmem [shape: f32[2,16,64], index: 0, kind: input, shape index: {}]   ;;  %s6305_s1 = inlined_call_operand.vmem [shape: f32[2,16,64], index: 1, kind: input, shape index: {}]   ;;  %s6306_s2 = inlined_call_operand.vmem [shape: bf16[6,64,192], index: 2, kind: input, shape index: {}]   ;;  %s6307_s3 = inlined_call_operand.vmem [shape: bf16[6,64,64], index: 3, kind: input, shape index: {}]   ;;  %s6308_s4 = inlined_call_operand.vmem [shape: bf16[6,64,64], index: 4, kind: input, shape index: {}]   ;;  %s6309_s5 = inlined_call_operand.hbm [shape: bf16[6,64,128], index: 5, kind: input, shape index: {}]   ;;  %s6310_s6 = inlined_call_operand.hbm [shape: bf16[6,64,64], index: 6, kind: input, shape index: {}]   ;;  %s6311_s7 = inlined_call_operand.vmem [shape: bf16[6,64,2048], index: 7, kind: input, shape index: {}]   ;;  %s6312_s8 = inlined_call_operand.vmem [shape: bf16[6,64,2048], index: 8, kind: input, shape index: {}]   ;;  %s6313_s9 = inlined_call_operand.hbm [shape: f32[6,1,2048], index: 9, kind: input, shape index: {}]   ;;  %s6314_s10 = inlined_call_operand.hbm [shape: f32[6,15,64], index: 10, kind: input, shape index: {}]   ;;  %s6315_s11 = inlined_call_operand.vmem [shape: f32[2,16,64], index: 11, kind: output, shape index: {}]  }
   0x1   :  { %6316 = sst [smem:[#allocation12_spill]] %s6309_s5 }
   0x2   :  { %16 = vsyncpa [#allocation3], 0 }
   0x3   :  { %17 = vsyncpa [#allocation5], 0 }
   0x4   :  { %18 = vsyncpa [#allocation8], 0  ;;  %s5046_s17 = smov 0  }
   0x5 LB: > { %s5052_s18 = sadd.s32 4294967295, %s4959_s17   ;;  %p3716_p0 = scmp.ge.s32.totalorder %s4959_s17, 1  ;;  %s4959_s17 = sphi %s5046_s17, %s24_s17  }
   0x6   : > { %p296_p1 = scmp.lt.s32.totalorder %s4959_s17, 3  ;;  %p4606_p2 = scmp.eq.s32.totalorder %s5052_s18, 0 }
   0x7   : > { %s330_s21 = sshll.u32 %s6310_s6, 4  ;;  %s6318_s5 = sld [smem:[#allocation12_spill]]  ;;  %s331_s21 = int_to_ptr.hbm [resolvable:$true] %s330_s21 }
   0x8   : > { %p5060_p3 = pnand %p3716_p0, %p296_p1  ;;  %s4973_s26 = smov [#allocation4]  }
   0x9   : > { %s332_s27 = sshll.u32 %s4973_s26, 4  ;;  %s4974_s29 = smov [#allocation2]   ;;  %s333_s27 = int_to_ptr.vmem [resolvable:$true] %s332_s27 }
   0xa   : > { %p4593_p4 = pneg %p5060_p3  ;;  %s318_s30 = sshll.u32 %s4974_s29, 4  ;;  %s319_s30 = int_to_ptr.vmem [resolvable:$true] %s318_s30 }
   0xb   : > { %s350_s14 = sshll.u32 %s6313_s9, 4  ;;  %s4975_s15 = smov 64   ;;  %s351_s14 = int_to_ptr.hbm [resolvable:$true] %s350_s14 }
   0xc   : > { %p5071_p5 = pnand %p4606_p2, %p4593_p4  ;;  %s4976_s16 = smov 4  }
   0xd   : > { %s316_s25 = sshll.u32 %s6318_s5, 4  ;;  %s4977_s19 = smov [#allocation6]   ;;  %s317_s25 = int_to_ptr.hbm [resolvable:$true] %s316_s25 }
   0xe   : > { %4599 = dma.hbm_to_vmem [thread:$0]  (!%p5071_p5), %s331_s21, 3072, %s333_s27, [#allocation5], %s4975_s15, %s4975_s15, %s4976_s16  }
   0xf   : > { %4596 = dma.hbm_to_vmem [thread:$0]  (!%p5071_p5), %s317_s25, 3072, %s319_s30, [#allocation3], %s4975_s15, %s4975_s15, %s4976_s16  }
  0x10   : > { %s352_s20 = sshll.u32 %s4977_s19, 4  ;;  %s4978_s23 = smov 256   ;;  %s353_s20 = int_to_ptr.vmem [resolvable:$true] %s352_s20 }
  0x11   : > { %s4979_s24 = smov 16   ;;  %s364_s12 = sshll.u32 %s6314_s10, 4  ;;  %s365_s12 = int_to_ptr.hbm [resolvable:$true] %s364_s12 }
  0x12   : > { %4602 = dma.hbm_to_vmem [thread:$0]  (!%p5071_p5), %s351_s14, 1536, %s353_s20, [#allocation5], %s4978_s23, %s4978_s23, %s4979_s24  }
  0x13   : > { %s4980_s13 = smov [#allocation7]   ;;  %s4981_s21 = smov 128  }
  0x14   : > { %s366_s5 = sshll.u32 %s4980_s13, 4  ;;  %s4982_s27 = smov 8   ;;  %s367_s5 = int_to_ptr.vmem [resolvable:$true] %s366_s5 }
  0x15   : > { %4605 = dma.hbm_to_vmem [thread:$0]  (!%p5071_p5), %s365_s12, 1536, %s367_s5, [#allocation8], %s4981_s21, %s4981_s21, %s4982_s27  }
  0x16   : > { %398 = sbr.rel (%p5060_p3) target bundleno = 3929 (0xf59), region = 64 }
  0x1b   : > { %4946 = dma.done.wait (%p4606_p2), [#allocation3], 3072  }
  0x1c   : > { %4948 = vsyncadd (%p4606_p2), [#allocation3], 4294964224 }
  0x1d   : > { %4950 = dma.done.wait (%p4606_p2), [#allocation5], 4608  }
  0x1e   : > { %4952 = vsyncadd (%p4606_p2), [#allocation5], 4294962688 }
  0x1f   : > { %4954 = dma.done.wait (%p4606_p2), [#allocation8], 1536  }
  0x20   : > { %4956 = vsyncadd (%p4606_p2), [#allocation8], 4294965760  ;;  %p459_p6 = scmp.lt.s32.totalorder %s5052_s18, 1  ;;  %v475_v0 = vlaneseq  ;;  %v4983_v2 = vmov 0.0   ;;  %s5140_s20 = smov 0  }
  0x22   : > { %s6329_s18 = smov (!%p459_p6, %s5052_s18), 1  ;;  %v476_v1 = vand.u32 127, %v475_v0 }
  0x23   : > { %s4415_s5 = sshll.u32 %s6329_s18, 4 }
  0x24   : > { %vm478_vm0 = vcmp.lt.s32.totalorder %v476_v1, 8  ;;  %vm482_vm1 = vcmp.ge.s32.totalorder %v476_v1, 8  ;;  %vm483_vm2 = vcmp.lt.s32.totalorder %v476_v1, 16  ;;  %vm487_vm3 = vcmp.ge.s32.totalorder %v476_v1, 16  ;;  %s463_s28 = scalar_lea.vmem %s6304_s0, %s4415_s5  ;;  %s468_s15 = scalar_lea.vmem %s6305_s1, %s4415_s5 }
  0x25   : > { %v5111_v3 = vsel %vm478_vm0, 1.0, %v4983_v2  ;;  %vm484_vm4 = vmand %vm482_vm1, %vm483_vm2  ;;  %vm488_vm5 = vcmp.lt.s32.totalorder %v476_v1, 24  ;;  %vm492_vm6 = vcmp.ge.s32.totalorder %v476_v1, 24  ;;  %vm493_vm7 = vcmp.lt.s32.totalorder %v476_v1, 32  ;;  %s5116_s19 = scalar_lea.vmem %s6315_s11, %s4415_s5  ;;  %v5120_v5 = vld [vmem:[%s468_s15] sm:$0xff]  ;;  %v5122_v6 = vld [vmem:[%s468_s15 + $0x8] sm:$0xff] }
  0x26   : > { %v5118_v4 = vsel %vm484_vm4, 1.0, %v4983_v2  ;;  %vm489_vm8 = vmand %vm487_vm3, %vm488_vm5  ;;  %vm497_vm9 = vcmp.ge.s32.totalorder %v476_v1, 32  ;;  %vm498_vm10 = vcmp.lt.s32.totalorder %v476_v1, 40  ;;  %v519_v7 = vld [vmem:[%s463_s28] sm:$0xff]   ;;  %vm502_vm11 = vcmp.ge.s32.totalorder %v476_v1, 40  ;;  %v520_v9 = vld [vmem:[%s463_s28 + $0x8] sm:$0xff]  }
  0x27   : > { %v5124_v8 = vsel %vm489_vm8, 1.0, %v4983_v2  ;;  %vm503_vm12 = vcmp.lt.s32.totalorder %v476_v1, 48  ;;  %vm494_vm13 = vmand %vm492_vm6, %vm493_vm7  ;;  %vm507_vm14 = vcmp.ge.s32.totalorder %v476_v1, 48  ;;  %vm508_vm15 = vcmp.lt.s32.totalorder %v476_v1, 56 }
  0x28   : > { %v5126_v10 = vsel %vm494_vm13, 1.0, %v4983_v2  ;;  %vm499_vm0 = vmand %vm497_vm9, %vm498_vm10  ;;  %vm512_vm1 = vcmp.ge.s32.totalorder %v476_v1, 56  ;;  %vm513_vm2 = vcmp.lt.s32.totalorder %v476_v1, 64 }
  0x29   : > { %v5128_v11 = vsel %vm499_vm0, 1.0, %v4983_v2  ;;  %vm504_vm3 = vmand %vm502_vm11, %vm503_vm12 }
  0x2a   : > { %v5130_v12 = vsel %vm504_vm3, 1.0, %v4983_v2  ;;  %vm509_vm4 = vmand %vm507_vm14, %vm508_vm15 }
  0x2b   : > { %v5132_v13 = vsel %vm509_vm4, 1.0, %v4983_v2  ;;  %vm514_vm5 = vmand %vm512_vm1, %vm513_vm2 }
  0x2c   : > { %v5134_v14 = vsel %vm514_vm5, 1.0, %v4983_v2 }
  0x2d LB: >> { %s4418_s23 = sshll.u32 %s4971_s20, 6  ;;  %s3741_s12 = sshll.u32 %s4971_s20, 4  ;;  %v5177_v29 = vpack.c.bf16 %v4963_v9, %v4967_v7  ;;  %vm761_vm6 = vcmask 523264   ;;  %v4659_v30 = vpack.i.bf16 %v5124_v8, %v5126_v10  ;;  %vm841_vm7 = vcmask 130048   ;;  %s4971_s20 = sphi %s5140_s20, %s526_s20   ;;  %v4967_v7 = vphi %v519_v7, %v6327_v7   ;;  %v4963_v9 = vphi %v520_v9, %v6326_v9  }
  0x2e   : >> { %s5155_s29 = scalar_lea.vmem %s6306_s2, %s4418_s23  ;;  %s5166_s13 = scalar_lea.vmem [#allocation7], %s3741_s12 }
  0x2f   : >> { %v3777_v15 = vld [vmem:[%s5155_s29 + $0x30] sm:$0xf]  ;;  %v4426_v16 = vld [vmem:[%s5155_s29 + $0x34] sm:$0xf0]  ;;  %v3769_v17 = vld [vmem:[%s5155_s29 + $0x20] sm:$0xf] }
  0x30   : >> { %v3778_v18 = vor.u32 %v4426_v16, %v3777_v15  ;;  %v4424_v19 = vld [vmem:[%s5155_s29 + $0x24] sm:$0xf0]  ;;  %v3761_v21 = vld [vmem:[%s5155_s29 + $0x10] sm:$0xf]  ;;  %v4422_v22 = vld [vmem:[%s5155_s29 + $0x14] sm:$0xf0] }
  0x31   : >> { %v3770_v20 = vor.u32 %v4424_v19, %v3769_v17  ;;  %v5169_v23 = vld [vmem:[%s5166_s13] sm:$0xff]  ;;  %v3762_v25 = vor.u32 %v4422_v22, %v3761_v21  ;;  %s4984_s21 = smov 64   ;;  %v4420_v27 = vld [vmem:[%s5155_s29 + $0x4] sm:$0xf0]  ;;  %v4425_v21 = vld [vmem:[%s5155_s29 + $0x34] sm:$0xf] }
  0x32   : >> { %769 = vmatpush.bf16.msra.mxu0 %v3778_v18  ;;  %v796_v24 = vperm.slane %v5169_v23, 1  ;;  %v3753_v26 = vld [vmem:[%s5155_s29] sm:$0xf]  ;;  %v793_v33 = vperm.slane %v5169_v23, 0  ;;  %v3779_v22 = vld [vmem:[%s5155_s29 + $0x38] sm:$0xf0] }
  0x33   : >> { %v3754_v28 = vor.u32 %v4420_v27, %v3753_v26  ;;  %v3771_v26 = vld [vmem:[%s5155_s29 + $0x28] sm:$0xf0]  ;;  %s5551_s27 = sshll.u32 %s4971_s20, 5  ;;  %s4447_s16 = sshll.u32 %s4971_s20, 9 }
  0x34   : >> { %798 = vrot.lane.b32.xlu0 %v796_v24, %s4984_s21  ;;  %v3782_v24 = vor.u32 %v4425_v21, %v3779_v22  ;;  %v803_v21 = vperm.slane %v5169_v23, 2  ;;  %s542_s25 = scalar_lea.vmem %s6307_s3, %s5551_s27  ;;  %s562_s28 = scalar_lea.vmem [#allocation2], %s5551_s27 }
  0x35   : >> { %s552_s15 = scalar_lea.vmem %s6308_s4, %s5551_s27  ;;  %s572_s18 = scalar_lea.vmem [#allocation4], %s5551_s27 }
  0x36   : >> { %770 = vmatpush.bf16.msra.mxu0 %v3770_v20  ;;  %783 = vmatpush.bf16.msra.mxu1 %v3782_v24  ;;  %s5921_s26 = scalar_lea.vmem %s6311_s7, %s4447_s16  ;;  %s6096_s27 = scalar_lea.vmem %s6312_s8, %s4447_s16 }
  0x37   : >> { %s6186_s5 = scalar_lea.vmem [#allocation6], %s3741_s12  ;;  %s526_s20 = sadd.s32 1, %s4971_s20  }
  0x38   : >> { %p523_p7 = scmp.ge.s32.totalorder %s526_s20, 6  }
  0x3a   : >> { %771 = vmatpush.bf16.msra.mxu0 %v3762_v25  ;;  %v4423_v25 = vld [vmem:[%s5155_s29 + $0x24] sm:$0xf] }
  0x3b   : >> { %v3774_v27 = vor.u32 %v4423_v25, %v3771_v26 }
  0x3c   : >> { %872 = vrot.lane.b32.xlu0 %v5118_v4, %s4984_s21 }
  0x3d   : >> { %784 = vmatpush.bf16.msra.mxu1 %v3774_v27 }
  0x3e   : >> { %772 = vmatpush.bf16.msra.mxu0 %v3754_v28  ;;  %v4421_v28 = vld [vmem:[%s5155_s29 + $0x14] sm:$0xf] }
  0x41   : >> { %3783 = vmatmul.msk.bf16.vlgmr.msra.gmra.mxu0 %vm761_vm6, %v5177_v29 }
  0x44   : >> { %4660 = vrot.lane.b32.xlu0 %v4659_v30, %s4984_s21  ;;  %v3763_v30 = vld [vmem:[%s5155_s29 + $0x18] sm:$0xf0] }
  0xa6   : >> { %v799_v31 = vpop.permute.xlu0 %798 }
  0xae   : >> { %v5189_v37 = vpop.permute.xlu0 %872 }
  0xbe   : >> { %v774_v32 = vpop.f32.mrf.mxu0 }
  0xbf   : >> { %v794_v34 = vadd.f32 %v793_v33, %v774_v32  ;;  %v5187_v35 = vadd.f32 %v799_v31, %v774_v32  ;;  %v4419_v32 = vld [vmem:[%s5155_s29 + $0x4] sm:$0xf] }
  0xc1   : >> { %v875_v40 = vmul.f32 %v5189_v37, %v5187_v35  ;;  %v806_v41 = vmul.f32 %v5111_v3, %v794_v34  ;;  %v5200_v44 = vmul.f32 %v5124_v8, %v794_v34  ;;  %v5203_v45 = vmul.f32 %v5126_v10, %v794_v34 }
  0xc2   : >> { %v5212_v48 = vmul.f32 %v5128_v11, %v794_v34  ;;  %v5218_v52 = vmul.f32 %v5130_v12, %v794_v34  ;;  %v5227_v56 = vmul.f32 %v5132_v13, %v794_v34  ;;  %v5237_v59 = vmul.f32 %v5134_v14, %v794_v34 }
  0xc3   : >> { %v868_v15 = vmul.f32 %v5118_v4, %v794_v34 }
  0xc6   : >> { %v776_v36 = vpop.f32.mrf.mxu0 }
  0xc7   : >> { %v795_v38 = vadd.f32 %v793_v33, %v776_v36  ;;  %v5191_v39 = vadd.f32 %v799_v31, %v776_v36  ;;  %v3766_v31 = vor.u32 %v4421_v28, %v3763_v30  ;;  %v3755_v33 = vld [vmem:[%s5155_s29 + $0x8] sm:$0xf0] }
  0xc9   : >> { %v876_v42 = vmul.f32 %v5189_v37, %v5191_v39  ;;  %v807_v43 = vmul.f32 %v5111_v3, %v795_v38  ;;  %v5206_v46 = vmul.f32 %v5124_v8, %v795_v38  ;;  %v5209_v47 = vmul.f32 %v5126_v10, %v795_v38  ;;  %785 = vmatpush.bf16.msra.mxu1 %v3766_v31 }
  0xca   : >> { %v5215_v49 = vmul.f32 %v5128_v11, %v795_v38  ;;  %v5231_v57 = vmul.f32 %v5130_v12, %v795_v38  ;;  %v5234_v58 = vmul.f32 %v5132_v13, %v795_v38  ;;  %v5240_v60 = vmul.f32 %v5134_v14, %v795_v38 }
  0xcb   : >> { %v877_v50 = vpack.c.bf16 %v876_v42, %v875_v40  ;;  %v808_v51 = vpack.c.bf16 %v807_v43, %v806_v41  ;;  %v965_v53 = vpack.c.bf16 %v5206_v46, %v5200_v44  ;;  %v1045_v54 = vpack.c.bf16 %v5209_v47, %v5203_v45 }
  0xcc   : >> { %v1125_v55 = vpack.c.bf16 %v5215_v49, %v5212_v48  ;;  %v1205_v61 = vpack.c.bf16 %v5231_v57, %v5218_v52  ;;  %v869_v2 = vmul.f32 %v5118_v4, %v795_v38  ;;  %v3758_v38 = vor.u32 %v4419_v32, %v3755_v33 }
  0xcd   : >> { %879 = vrot.lane.b32.xlu1 %v877_v50, %s4984_s21  ;;  %v6320_v44 = vpack.c.bf16 %v5234_v58, %v5227_v56  ;;  %v6321_v45 = vpack.c.bf16 %v5240_v60, %v5237_v59 }
  0xce   : >> { %v870_v16 = vpack.c.bf16 %v869_v2, %v868_v15  ;;  %786 = vmatpush.bf16.msra.mxu1 %v3758_v38 }
  0xd1   : >> { %3784 = vmatmul.msk.bf16.vlgmr.msra.gmra.mxu1 %vm761_vm6, %v5177_v29  ;;  %v4661_v29 = vpop.permute.xlu0 %4660 }
  0xd5   : >> { %810 = vrot.lane.b32.xlu1 %v5111_v3, %s4984_s21 }
 0x13f   : >> { %v880_v0 = vpop.permute.xlu1 %879 }
 0x140   : >> { %v885_v1 = vsel %vm761_vm6, %v880_v0, 0 }
 0x141   : >> { %894 = vmatpush.bf16.xpose.msra.mxu3 %v885_v1 }
 0x147   : >> { %v5253_v17 = vpop.permute.xlu1 %810 }
 0x148   : >> { %v813_v18 = vmul.f32 %v5253_v17, %v5187_v35  ;;  %v814_v19 = vmul.f32 %v5253_v17, %v5191_v39  ;;  %3786 = vmatmul.msk.bf16.vlgmr.msra.gmra.mxu3 %vm761_vm6, %v870_v16 }
 0x14a   : >> { %v815_v20 = vpack.c.bf16 %v814_v19, %v813_v18 }
 0x14c   : >> { %817 = vrot.lane.b32.xlu1 %v815_v20, %s4984_s21 }
 0x14e   : >> { %v788_v19 = vpop.f32.mrf.mxu1 }
 0x14f   : >> { %v5291_v25 = vadd.f32 %v803_v21, %v788_v19 }
 0x151   : >> { %v926_v32 = vmul.f32 %v5118_v4, %v5291_v25 }
 0x156   : >> { %v790_v26 = vpop.f32.mrf.mxu1 }
 0x157   : >> { %v5295_v30 = vadd.f32 %v803_v21, %v790_v26 }
 0x159   : >> { %v927_v33 = vmul.f32 %v5118_v4, %v5295_v30 }
 0x1be   : >> { %v818_v34 = vpop.permute.xlu1 %817 }
 0x1bf   : >> { %v823_v36 = vsel %vm761_vm6, %v818_v34, 0 }
 0x1c0   : >> { %832 = vmatpush.bf16.xpose.msra.mxu2 %v823_v36  ;;  %v928_v36 = vpack.c.bf16 %v927_v33, %v926_v32 }
 0x1c7   : >> { %3785 = vmatmul.msk.bf16.vlgmr.msra.gmra.mxu2 %vm761_vm6, %v808_v51  ;;  %v5281_v51 = vunpack.i.l.bf16 %v4661_v29 }
 0x1c8   : >> { %939 = vmatpush.bf16.msrb.mxu2 %v928_v36 }
 0x1c9   : >> { %v1051_v1 = vmul.f32 %v5281_v51, %v5191_v39  ;;  %v1050_v2 = vmul.f32 %v5281_v51, %v5187_v35 }
 0x1cb   : >> { %v896_v40 = vpop.f32.mrf.mxu3  ;;  %v1052_v15 = vpack.c.bf16 %v1051_v1, %v1050_v2 }
 0x1cc   : >> { %v901_v41 = vmul.f32 0.35355338, %v896_v40 }
 0x1ce   : >> { %v903_v42 = vsel %vm841_vm7, %v901_v41, -inf }
 0x1cf   : >> { %904 = vmax.xlane.f32.xlu2 %v903_v42  ;;  %v5308_v42 = vunpack.i.h.bf16 %v4661_v29 }
 0x1d1   : >> { %v971_v1 = vmul.f32 %v5308_v42, %v5191_v39  ;;  %v970_v2 = vmul.f32 %v5308_v42, %v5187_v35 }
 0x1d3   : >> { %v898_v43 = vpop.f32.mrf.mxu3 }
 0x1d4   : >> { %v902_v50 = vmul.f32 0.35355338, %v898_v43 }
 0x1d6   : >> { %v906_v0 = vsel %vm841_vm7, %v902_v50, -inf }
 0x1d7   : >> { %907 = vmax.xlane.f32.xlu2 %v906_v0 }
 0x1ef   : >> { %1207 = vrot.lane.b32.xlu2 %v5130_v12, %s4984_s21 }
 0x1f7   : >> { %1127 = vrot.lane.b32.xlu2 %v5128_v11, %s4984_s21 }
 0x1ff   : >> { %1367 = vrot.lane.b32.xlu2 %v5134_v14, %s4984_s21 }
 0x207   : >> { %1287 = vrot.lane.b32.xlu2 %v5132_v13, %s4984_s21 }
 0x20f   : >> { %1054 = vrot.lane.b32.xlu2 %v1052_v15, %s4984_s21  ;;  %v972_v15 = vpack.c.bf16 %v971_v1, %v970_v2  ;;  %v866_v1 = vmul.f32 %v5111_v3, %v5295_v30  ;;  %v1021_v2 = vmul.f32 %v5124_v8, %v5291_v25 }
 0x242   : >> { %v905_v16 = vpop.xlane.xlu2 %904 }
 0x243   : >> { %v909_v18 = vsub.f32 %v901_v41, %v905_v16 }
 0x245   : >> { %v911_v20 = vmul.f32 1.442695, %v909_v18 }
 0x247   : >> { %4664 = vpow2.f32 %v911_v20 }
 0x24a   : >> { %v908_v22 = vpop.xlane.xlu2 %907  ;;  %v834_v36 = vpop.f32.mrf.mxu2 }
 0x24b   : >> { %v910_v24 = vsub.f32 %v902_v50, %v908_v22 }
 0x24d   : >> { %v5293_v27 = vpop.eup %4664  ;;  %v913_v28 = vmul.f32 1.442695, %v910_v24 }
 0x24e   : >> { %v915_v31 = vsel %vm841_vm7, %v5293_v27, 0.0 }
 0x24f   : >> { %4666 = vpow2.f32 %v913_v28  ;;  %916 = vadd.xlane.f32.xlu0 %v915_v31 }
 0x252   : >> { %v5303_v34 = vpop.permute.xlu2 %1207 }
 0x253   : >> { %v1210_v20 = vmul.f32 %v5303_v34, %v5187_v35  ;;  %v1211_v21 = vmul.f32 %v5303_v34, %v5191_v39 }
 0x255   : >> { %v4667_v38 = vpop.eup %4666  ;;  %v1212_v31 = vpack.c.bf16 %v1211_v21, %v1210_v20  ;;  %v1182_v20 = vmul.f32 %v5128_v11, %v5295_v30 }
 0x256   : >> { %v918_v40 = vsel %vm841_vm7, %v4667_v38, 0.0 }
 0x257   : >> { %919 = vadd.xlane.f32.xlu1 %v918_v40  ;;  %v5340_v40 = vmul.f32 0.35355338, %v834_v36 }
 0x25a   : >> { %v5306_v41 = vpop.permute.xlu2 %1127 }
 0x25b   : >> { %v1130_v43 = vmul.f32 %v5306_v41, %v5187_v35  ;;  %v1131_v50 = vmul.f32 %v5306_v41, %v5191_v39 }
 0x25d   : >> { %v1132_v0 = vpack.c.bf16 %v1131_v50, %v1130_v43  ;;  %v842_v43 = vsel %vm841_vm7, %v5340_v40, -inf }
 0x25f   : >> { %1134 = vrot.lane.b32.xlu2 %v1132_v0, %s4984_s21  ;;  %v865_v0 = vmul.f32 %v5111_v3, %v5291_v25 }
 0x261   : >> { %v867_v21 = vpack.c.bf16 %v866_v1, %v865_v0 }
 0x262   : >> { %v5319_v16 = vpop.permute.xlu2 %1367 }
 0x263   : >> { %v1370_v29 = vmul.f32 %v5319_v16, %v5187_v35  ;;  %v1371_v18 = vmul.f32 %v5319_v16, %v5191_v39  ;;  %974 = vrot.lane.b32.xlu0 %v972_v15, %s4984_s21  ;;  %v1022_v15 = vmul.f32 %v5124_v8, %v5295_v30  ;;  %956 = vmatpush.bf16.msrb.mxu3 %v867_v21 }
 0x265   : >> { %v1372_v19 = vpack.c.bf16 %v1371_v18, %v1370_v29  ;;  %v1101_v29 = vmul.f32 %v5126_v10, %v5291_v25  ;;  %v1102_v18 = vmul.f32 %v5126_v10, %v5295_v30 }
 0x267   : >> { %1374 = vrot.lane.b32.xlu2 %v1372_v19, %s4984_s21  ;;  %v1181_v19 = vmul.f32 %v5128_v11, %v5291_v25 }
 0x26a   : >> { %v5331_v22 = vpop.permute.xlu2 %1287 }
 0x26b   : >> { %v1290_v24 = vmul.f32 %v5331_v22, %v5187_v35  ;;  %v1291_v26 = vmul.f32 %v5331_v22, %v5191_v39  ;;  %v836_v35 = vpop.f32.mrf.mxu2 }
 0x26c   : >> { %v5344_v50 = vmul.f32 0.35355338, %v836_v35 }
 0x26d   : >> { %v1292_v28 = vpack.c.bf16 %v1291_v26, %v1290_v24  ;;  %v1023_v24 = vpack.c.bf16 %v1022_v15, %v1021_v2  ;;  %v1103_v26 = vpack.c.bf16 %v1102_v18, %v1101_v29 }
 0x26e   : >> { %v845_v39 = vsel %vm841_vm7, %v5344_v50, -inf }
 0x26f   : >> { %1294 = vrot.lane.b32.xlu0 %v1292_v28, %s4984_s21  ;;  %v1183_v28 = vpack.c.bf16 %v1182_v20, %v1181_v19  ;;  %1034 = vmatpush.bf16.msrb.mxu1 %v1023_v24 }
 0x270   : >> { %1214 = vrot.lane.b32.xlu1 %v1212_v31, %s4984_s21  ;;  %1114 = vmatpush.bf16.msra.mxu3 %v1103_v26 }
 0x272   : >> { %v1055_v32 = vpop.permute.xlu2 %1054 }
 0x273   : >> { %v1060_v33 = vsel %vm761_vm6, %v1055_v32, 0  ;;  %1194 = vmatpush.bf16.msra.mxu1 %v1183_v28 }
 0x274   : >> { %1069 = vmatpush.bf16.xpose.msra.mxu2 %v1060_v33 }
 0x290   : >> { %843 = vmax.xlane.f32.xlu2 %v842_v43 }
 0x29a   : >> { %846 = vmax.xlane.f32.xlu1 %v845_v39 }
 0x2b9   : >> { %v1135_v39 = vpop.permute.xlu2 %1134 }
 0x2ba   : >> { %v1140_v1 = vsel %vm761_vm6, %v1135_v39, 0 }
 0x2c1   : >> { %v1375_v15 = vpop.permute.xlu2 %1374 }
 0x2c2   : >> { %v917_v31 = vpop.xlane.xlu0 %916 }
 0x2c3   : >> { %4668 = vrcp.f32 %v917_v31 }
 0x2c9   : >> { %v4669_v33 = vpop.eup %4668 }
 0x2ca   : >> { %v920_v32 = vpop.xlane.xlu1 %919  ;;  %v923_v43 = vmul.f32 %v4669_v33, %v5293_v27 }
 0x2cb   : >> { %4670 = vrcp.f32 %v920_v32 }
 0x2d1   : >> { %v4671_v36 = vpop.eup %4670 }
 0x2d2   : >> { %v924_v35 = vmul.f32 %v4671_v36, %v4667_v38 }
 0x2d4   : >> { %v925_v63 = vpack.c.bf16 %v924_v35, %v923_v43 }
 0x2d5   : >> { %v975_v62 = vpop.permute.xlu0 %974 }
 0x2d6   : >> { %3787 = vmatmul.msk.bf16.vlgmr.msrb.gmra.mxu2 %vm841_vm7, %v925_v63  ;;  %v980_v0 = vsel %vm761_vm6, %v975_v62, 0  ;;  %v1380_v62 = vsel %vm761_vm6, %v1375_v15, 0 }
 0x2d7   : >> { %989 = vmatpush.bf16.xpose.msrb.mxu0 %v980_v0 }
 0x2de   : >> { %3789 = vmatmul.msk.bf16.vlgmr.msrb.gmra.mxu0 %vm761_vm6, %v965_v53 }
 0x2df   : >> { %1149 = vmatpush.bf16.xpose.msra.mxu0 %v1140_v1 }
 0x2e1   : >> { %v1295_v2 = vpop.permute.xlu0 %1294 }
 0x2e2   : >> { %v1300_v27 = vsel %vm761_vm6, %v1295_v2, 0  ;;  %v1215_v38 = vpop.permute.xlu1 %1214 }
 0x2e3   : >> { %v1220_v29 = vsel %vm761_vm6, %v1215_v38, 0 }
 0x2e4   : >> { %1229 = vmatpush.bf16.xpose.msrb.mxu2 %v1220_v29 }
 0x2e6   : >> { %3791 = vmatmul.msk.bf16.vlgmr.msra.gmra.mxu2 %vm761_vm6, %v1045_v54 }
 0x2e7   : >> { %1309 = vmatpush.bf16.xpose.msrb.mxu0 %v1300_v27 }
 0x2ec   : >> { %1389 = vmatpush.bf16.xpose.msra.mxu2 %v1380_v62 }
 0x2ee   : >> { %3793 = vmatmul.msk.bf16.vlgmr.msra.gmra.mxu0 %vm761_vm6, %v1125_v55 }
 0x2f6   : >> { %3795 = vmatmul.msk.bf16.vlgmr.msrb.gmra.mxu2 %vm761_vm6, %v1205_v61 }
 0x2fe   : >> { %3797 = vmatmul.msk.bf16.vlgmr.msrb.gmra.mxu0 %vm761_vm6, %v6320_v44 }
 0x303   : >> { %v844_v18 = vpop.xlane.xlu2 %843 }
 0x304   : >> { %v848_v26 = vsub.f32 %v5340_v40, %v844_v18 }
 0x306   : >> { %3799 = vmatmul.msk.bf16.vlgmr.msra.gmra.mxu2 %vm761_vm6, %v6321_v45  ;;  %v850_v32 = vmul.f32 1.442695, %v848_v26 }
 0x308   : >> { %4672 = vpow2.f32 %v850_v32 }
 0x30d   : >> { %v847_v36 = vpop.xlane.xlu1 %846 }
 0x30e   : >> { %v849_v0 = vsub.f32 %v5344_v50, %v847_v36  ;;  %v5433_v27 = vpop.eup %4672 }
 0x30f   : >> { %v854_v29 = vsel %vm841_vm7, %v5433_v27, 0.0 }
 0x310   : >> { %v852_v2 = vmul.f32 1.442695, %v849_v0 }
 0x312   : >> { %4674 = vpow2.f32 %v852_v2 }
 0x359   : >> { %v5395_v46 = vpop.f32.mrf.mxu2 }
 0x35b   : >> { %v991_v47 = vpop.f32.mrf.mxu0 }
 0x35c   : >> { %v5397_v48 = vmul.f32 0.35355338, %v991_v47  ;;  %v5443_v47 = vpop.eup %4674 }
 0x35e   : >> { %v998_v49 = vsel %vm841_vm7, %v5397_v48, -inf }
 0x35f   : >> { %999 = vmax.xlane.f32.xlu1 %v998_v49 }
 0x361   : >> { %v5401_v52 = vpop.f32.mrf.mxu2 }
 0x363   : >> { %v993_v53 = vpop.f32.mrf.mxu0 }
 0x364   : >> { %v5407_v58 = vmul.f32 0.35355338, %v993_v53 }
 0x366   : >> { %v1001_v61 = vsel %vm841_vm7, %v5407_v58, -inf }
 0x369   : >> { %v1071_v54 = vpop.f32.mrf.mxu2 }
 0x36a   : >> { %v5403_v55 = vmul.f32 0.35355338, %v1071_v54 }
 0x36b   : >> { %v1151_v57 = vpop.f32.mrf.mxu0 }
 0x36c   : >> { %v1078_v56 = vsel %vm841_vm7, %v5403_v55, -inf  ;;  %v5415_v19 = vmul.f32 0.35355338, %v1151_v57 }
 0x36d   : >> { %1079 = vmax.xlane.f32.xlu0 %v1078_v56  ;;  %v857_v56 = vsel %vm841_vm7, %v5443_v47, 0.0 }
 0x36e   : >> { %v1158_v28 = vsel %vm841_vm7, %v5415_v19, -inf }
 0x371   : >> { %v1073_v59 = vpop.f32.mrf.mxu2 }
 0x372   : >> { %v5409_v60 = vmul.f32 0.35355338, %v1073_v59 }
 0x373   : >> { %v1153_v20 = vpop.f32.mrf.mxu0 }
 0x374   : >> { %v1081_v63 = vsel %vm841_vm7, %v5409_v60, -inf  ;;  %v5424_v33 = vmul.f32 0.35355338, %v1153_v20 }
 0x375   : >> { %1002 = vmax.xlane.f32.xlu0 %v1001_v61  ;;  %1082 = vmax.xlane.f32.xlu2 %v1081_v63 }
 0x376   : >> { %v1161_v40 = vsel %vm841_vm7, %v5424_v33, -inf }
 0x379   : >> { %v1231_v21 = vpop.f32.mrf.mxu2 }
 0x37a   : >> { %v5417_v24 = vmul.f32 0.35355338, %v1231_v21 }
 0x37b   : >> { %v1311_v39 = vpop.f32.mrf.mxu0 }
 0x37c   : >> { %v1238_v31 = vsel %vm841_vm7, %v5417_v24, -inf  ;;  %v5453_v57 = vmul.f32 0.35355338, %v1311_v39 }
 0x37d   : >> { %1159 = vmax.xlane.f32.xlu0 %v1158_v28  ;;  %1239 = vmax.xlane.f32.xlu2 %v1238_v31 }
 0x37e   : >> { %v1318_v59 = vsel %vm841_vm7, %v5453_v57, -inf }
 0x381   : >> { %v1233_v43 = vpop.f32.mrf.mxu2 }
 0x382   : >> { %v5426_v35 = vmul.f32 0.35355338, %v1233_v43 }
 0x383   : >> { %v1313_v62 = vpop.f32.mrf.mxu0 }
 0x384   : >> { %v1241_v1 = vsel %vm841_vm7, %v5426_v35, -inf  ;;  %v5441_v44 = vmul.f32 0.35355338, %v1313_v62 }
 0x385   : >> { %1162 = vmax.xlane.f32.xlu2 %v1161_v40  ;;  %1242 = vmax.xlane.f32.xlu1 %v1241_v1 }
 0x386   : >> { %v1321_v54 = vsel %vm841_vm7, %v5441_v44, -inf }
 0x389   : >> { %v1391_v38 = vpop.f32.mrf.mxu2 }
 0x38a   : >> { %v5435_v15 = vmul.f32 0.35355338, %v1391_v38 }
 0x38c   : >> { %v1398_v50 = vsel %vm841_vm7, %v5435_v15, -inf }
 0x38d   : >> { %855 = vadd.xlane.f32.xlu2 %v854_v29  ;;  %1399 = vmax.xlane.f32.xlu1 %v1398_v50 }
 0x391   : >> { %v1393_v45 = vpop.f32.mrf.mxu2 }
 0x392   : >> { %v5445_v49 = vmul.f32 0.35355338, %v1393_v45 }
 0x394   : >> { %v1401_v53 = vsel %vm841_vm7, %v5445_v49, -inf }
 0x395   : >> { %1402 = vmax.xlane.f32.xlu0 %v1401_v53  ;;  %1322 = vmax.xlane.f32.xlu2 %v1321_v54 }
 0x396   : >> { %858 = vadd.xlane.f32.xlu1 %v857_v56 }
 0x39d   : >> { %1319 = vmax.xlane.f32.xlu0 %v1318_v59 }
 0x3d2   : >> { %v1000_v61 = vpop.xlane.xlu1 %999 }
 0x3d3   : >> { %v1004_v63 = vsub.f32 %v5397_v48, %v1000_v61 }
 0x3d5   : >> { %v1006_v18 = vmul.f32 1.442695, %v1004_v63 }
 0x3d7   : >> { %4676 = vpow2.f32 %v1006_v18 }
 0x3dd   : >> { %v5458_v20 = vpop.eup %4676 }
 0x3de   : >> { %v1010_v21 = vsel %vm841_vm7, %v5458_v20, 0.0 }
 0x3df   : >> { %1011 = vadd.xlane.f32.xlu2 %v1010_v21 }
 0x3e0   : >> { %v1080_v26 = vpop.xlane.xlu0 %1079 }
 0x3e1   : >> { %v1084_v28 = vsub.f32 %v5403_v55, %v1080_v26 }
 0x3e3   : >> { %v1086_v31 = vmul.f32 1.442695, %v1084_v28 }
 0x3e5   : >> { %4678 = vpow2.f32 %v1086_v31 }
 0x3e8   : >> { %v1003_v32 = vpop.xlane.xlu0 %1002  ;;  %v1083_v36 = vpop.xlane.xlu2 %1082 }
 0x3e9   : >> { %v1005_v43 = vsub.f32 %v5407_v58, %v1003_v32  ;;  %v1085_v39 = vsub.f32 %v5409_v60, %v1083_v36 }
 0x3eb   : >> { %v5465_v48 = vpop.eup %4678  ;;  %v1008_v0 = vmul.f32 1.442695, %v1005_v43  ;;  %v1088_v40 = vmul.f32 1.442695, %v1085_v39 }
 0x3ec   : >> { %v1090_v1 = vsel %vm841_vm7, %v5465_v48, 0.0 }
 0x3ed   : >> { %4680 = vpow2.f32 %v1008_v0  ;;  %1091 = vadd.xlane.f32.xlu1 %v1090_v1 }
 0x3ee   : >> { %4682 = vpow2.f32 %v1088_v40 }
 0x3f0   : >> { %v1160_v2 = vpop.xlane.xlu0 %1159  ;;  %v1240_v55 = vpop.xlane.xlu2 %1239 }
 0x3f1   : >> { %v1164_v38 = vsub.f32 %v5415_v19, %v1160_v2  ;;  %v1244_v29 = vsub.f32 %v5417_v24, %v1240_v55 }
 0x3f3   : >> { %v5471_v50 = vpop.eup %4680  ;;  %v1166_v58 = vmul.f32 1.442695, %v1164_v38  ;;  %v1246_v60 = vmul.f32 1.442695, %v1244_v29 }
 0x3f4   : >> { %v5473_v62 = vpop.eup %4682  ;;  %v1013_v45 = vsel %vm841_vm7, %v5471_v50, 0.0 }
 0x3f5   : >> { %4684 = vpow2.f32 %v1166_v58  ;;  %v1093_v53 = vsel %vm841_vm7, %v5473_v62, 0.0  ;;  %1014 = vadd.xlane.f32.xlu1 %v1013_v45 }
 0x3f6   : >> { %4686 = vpow2.f32 %v1246_v60  ;;  %1094 = vadd.xlane.f32.xlu0 %v1093_v53 }
 0x3f8   : >> { %v1163_v54 = vpop.xlane.xlu2 %1162  ;;  %v1243_v19 = vpop.xlane.xlu1 %1242 }
 0x3f9   : >> { %v1165_v24 = vsub.f32 %v5424_v33, %v1163_v54  ;;  %v1245_v56 = vsub.f32 %v5426_v35, %v1243_v19 }
 0x3fb   : >> { %v5481_v59 = vpop.eup %4684  ;;  %v1168_v61 = vmul.f32 1.442695, %v1165_v24  ;;  %v1248_v63 = vmul.f32 1.442695, %v1245_v56 }
 0x3fc   : >> { %v5483_v18 = vpop.eup %4686  ;;  %v1170_v21 = vsel %vm841_vm7, %v5481_v59, 0.0 }
 0x3fd   : >> { %4688 = vpow2.f32 %v1168_v61  ;;  %v1250_v26 = vsel %vm841_vm7, %v5483_v18, 0.0  ;;  %1171 = vadd.xlane.f32.xlu1 %v1170_v21 }
 0x3fe   : >> { %4690 = vpow2.f32 %v1248_v63  ;;  %1251 = vadd.xlane.f32.xlu0 %v1250_v26 }
 0x400   : >> { %v856_v28 = vpop.xlane.xlu2 %855  ;;  %v1400_v33 = vpop.xlane.xlu1 %1399 }
 0x401   : >> { %v1404_v35 = vsub.f32 %v5435_v15, %v1400_v33 }
 0x403   : >> { %v5490_v31 = vpop.eup %4688  ;;  %v1406_v32 = vmul.f32 1.442695, %v1404_v35 }
 0x404   : >> { %v5492_v36 = vpop.eup %4690  ;;  %v1173_v43 = vsel %vm841_vm7, %v5490_v31, 0.0 }
 0x405   : >> { %4692 = vpow2.f32 %v1406_v32  ;;  %v1253_v39 = vsel %vm841_vm7, %v5492_v36, 0.0 }
 0x406   : >> { %1174 = vadd.xlane.f32.xlu0 %v1173_v43  ;;  %1254 = vadd.xlane.f32.xlu2 %v1253_v39  ;;  %4694 = vrcp.f32 %v856_v28 }
 0x408   : >> { %v1403_v0 = vpop.xlane.xlu0 %1402  ;;  %v1323_v40 = vpop.xlane.xlu2 %1322 }
 0x409   : >> { %v1405_v1 = vsub.f32 %v5445_v49, %v1403_v0  ;;  %v1325_v15 = vsub.f32 %v5441_v44, %v1323_v40  ;;  %v859_v2 = vpop.xlane.xlu1 %858  ;;  %v1261_v49 = vmul.f32 %v5130_v12, %v5291_v25  ;;  %v1262_v44 = vmul.f32 %v5130_v12, %v5295_v30 }
 0x40a   : >> { %4696 = vrcp.f32 %v859_v2 }
 0x40b   : >> { %v5500_v55 = vpop.eup %4692  ;;  %v1408_v38 = vmul.f32 1.442695, %v1405_v1  ;;  %v1328_v29 = vmul.f32 1.442695, %v1325_v15  ;;  %v1263_v26 = vpack.c.bf16 %v1262_v44, %v1261_v49  ;;  %v1341_v1 = vmul.f32 %v5132_v13, %v5291_v25 }
 0x40c   : >> { %v1410_v58 = vsel %vm841_vm7, %v5500_v55, 0.0  ;;  %v4695_v60 = vpop.eup %4694  ;;  %v1342_v15 = vmul.f32 %v5132_v13, %v5295_v30 }
 0x40d   : >> { %4698 = vpow2.f32 %v1408_v38  ;;  %v862_v54 = vmul.f32 %v4695_v60, %v5433_v27  ;;  %v1422_v60 = vmul.f32 %v5134_v14, %v5295_v30 }
 0x40e   : >> { %4700 = vpow2.f32 %v1328_v29  ;;  %1411 = vadd.xlane.f32.xlu2 %v1410_v58  ;;  %v1421_v58 = vmul.f32 %v5134_v14, %v5291_v25 }
 0x410   : >> { %v4697_v45 = vpop.eup %4696  ;;  %v1320_v53 = vpop.xlane.xlu0 %1319 }
 0x411   : >> { %v863_v19 = vmul.f32 %v4697_v45, %v5443_v47  ;;  %v1324_v24 = vsub.f32 %v5453_v57, %v1320_v53 }
 0x413   : >> { %v5511_v56 = vpop.eup %4698  ;;  %v1326_v61 = vmul.f32 1.442695, %v1324_v24  ;;  %v864_v63 = vpack.c.bf16 %v863_v19, %v862_v54  ;;  %v1343_v19 = vpack.c.bf16 %v1342_v15, %v1341_v1  ;;  %v1423_v24 = vpack.c.bf16 %v1422_v60, %v1421_v58 }
 0x414   : >> { %v5513_v21 = vpop.eup %4700  ;;  %v1413_v28 = vsel %vm841_vm7, %v5511_v56, 0.0 }
 0x415   : >> { %4702 = vpow2.f32 %v1326_v61  ;;  %3788 = vmatmul.msk.bf16.vlgmr.msrb.gmra.mxu3 %vm841_vm7, %v864_v63  ;;  %1414 = vadd.xlane.f32.xlu1 %v1413_v28  ;;  %v1333_v27 = vsel %vm841_vm7, %v5513_v21, 0.0 }
 0x416   : >> { %1274 = vmatpush.bf16.msrb.mxu3 %v1263_v26  ;;  %1334 = vadd.xlane.f32.xlu2 %v1333_v27 }
 0x41b   : >> { %v5520_v47 = vpop.eup %4702 }
 0x41c   : >> { %v1330_v57 = vsel %vm841_vm7, %v5520_v47, 0.0 }
 0x41d   : >> { %1331 = vadd.xlane.f32.xlu0 %v1330_v57 }
 0x452   : >> { %v1012_v35 = vpop.xlane.xlu2 %1011 }
 0x453   : >> { %4704 = vrcp.f32 %v1012_v35 }
 0x459   : >> { %v4705_v39 = vpop.eup %4704 }
 0x45a   : >> { %v1018_v38 = vmul.f32 %v4705_v39, %v5458_v20 }
 0x460   : >> { %v1092_v33 = vpop.xlane.xlu1 %1091 }
 0x461   : >> { %4706 = vrcp.f32 %v1092_v33 }
 0x467   : >> { %v4707_v0 = vpop.eup %4706 }
 0x468   : >> { %v1015_v32 = vpop.xlane.xlu1 %1014  ;;  %v1098_v45 = vmul.f32 %v4707_v0, %v5465_v48 }
 0x469   : >> { %v1095_v43 = vpop.xlane.xlu0 %1094  ;;  %4708 = vrcp.f32 %v1015_v32 }
 0x46a   : >> { %4710 = vrcp.f32 %v1095_v43 }
 0x46f   : >> { %v4709_v40 = vpop.eup %4708 }
 0x470   : >> { %v4711_v2 = vpop.eup %4710  ;;  %v1019_v29 = vmul.f32 %v4709_v40, %v5471_v50  ;;  %v1172_v20 = vpop.xlane.xlu1 %1171 }
 0x471   : >> { %v1099_v53 = vmul.f32 %v4711_v2, %v5473_v62  ;;  %v1252_v49 = vpop.xlane.xlu0 %1251  ;;  %4712 = vrcp.f32 %v1172_v20 }
 0x472   : >> { %v1020_v44 = vpack.c.bf16 %v1019_v29, %v1018_v38  ;;  %4714 = vrcp.f32 %v1252_v49  ;;  %v4428_v49 = vld [vmem:[%s542_s25] sm:$0xff] }
 0x473   : >> { %v1100_v54 = vpack.c.bf16 %v1099_v53, %v1098_v45 }
 0x474   : >> { %3790 = vmatmul.msk.bf16.vlgmr.msrb.gmra.mxu1 %vm841_vm7, %v1020_v44 }
 0x475   : >> { %3792 = vmatmul.msk.bf16.vlgmr.msra.gmra.mxu3 %vm841_vm7, %v1100_v54  ;;  %1354 = vmatpush.bf16.msrb.mxu1 %v1343_v19 }
 0x476   : >> { %1434 = vmatpush.bf16.msra.mxu3 %v1423_v24 }
 0x477   : >> { %v4713_v48 = vpop.eup %4712 }
 0x478   : >> { %v4715_v50 = vpop.eup %4714  ;;  %v1178_v63 = vmul.f32 %v4713_v48, %v5481_v59 }
 0x479   : >> { %v1175_v25 = vpop.xlane.xlu0 %1174  ;;  %v1255_v30 = vpop.xlane.xlu2 %1254  ;;  %v1258_v28 = vmul.f32 %v4715_v50, %v5483_v18 }
 0x47a   : >> { %4716 = vrcp.f32 %v1175_v25 }
 0x47b   : >> { %4718 = vrcp.f32 %v1255_v30 }
 0x480   : >> { %v4717_v62 = vpop.eup %4716 }
 0x481   : >> { %v4719_v61 = vpop.eup %4718  ;;  %v1179_v26 = vmul.f32 %v4717_v62, %v5490_v31  ;;  %v1412_v57 = vpop.xlane.xlu2 %1411 }
 0x482   : >> { %v1259_v27 = vmul.f32 %v4719_v61, %v5492_v36  ;;  %4720 = vrcp.f32 %v1412_v57 }
 0x483   : >> { %v1180_v33 = vpack.c.bf16 %v1179_v26, %v1178_v63 }
 0x484   : >> { %v1260_v35 = vpack.c.bf16 %v1259_v27, %v1258_v28 }
 0x485   : >> { %3794 = vmatmul.msk.bf16.vlgmr.msra.gmra.mxu1 %vm841_vm7, %v1180_v33 }
 0x486   : >> { %3796 = vmatmul.msk.bf16.vlgmr.msrb.gmra.mxu3 %vm841_vm7, %v1260_v35 }
 0x488   : >> { %v1415_v32 = vpop.xlane.xlu1 %1414  ;;  %v4721_v39 = vpop.eup %4720 }
 0x489   : >> { %4722 = vrcp.f32 %v1415_v32  ;;  %v1335_v43 = vpop.xlane.xlu2 %1334  ;;  %v1418_v59 = vmul.f32 %v4721_v39, %v5500_v55 }
 0x48a   : >> { %4724 = vrcp.f32 %v1335_v43 }
 0x48f   : >> { %v4723_v0 = vpop.eup %4722 }
 0x490   : >> { %v1419_v18 = vmul.f32 %v4723_v0, %v5511_v56  ;;  %v1332_v31 = vpop.xlane.xlu0 %1331  ;;  %v4725_v40 = vpop.eup %4724  ;;  %v4431_v56 = vld [vmem:[%s542_s25 + $0x18] sm:$0xff] }
 0x491   : >> { %4726 = vrcp.f32 %v1332_v31  ;;  %v1339_v15 = vmul.f32 %v4725_v40, %v5513_v21  ;;  %1476 = vmatpush.bf16.msra.mxu0 %v4431_v56  ;;  %v4430_v21 = vld [vmem:[%s542_s25 + $0x10] sm:$0xff]  ;;  %v1588_v56 = vpack.c.bf16 %v5122_v6, %v5120_v5 }
 0x492   : >> { %v1420_v36 = vpack.c.bf16 %v1419_v18, %v1418_v59 }
 0x495   : >> { %1477 = vmatpush.bf16.msra.mxu0 %v4430_v21 }
 0x496   : >> { %3800 = vmatmul.msk.bf16.vlgmr.msra.gmra.mxu3 %vm841_vm7, %v1420_v36 }
 0x497   : >> { %v4727_v1 = vpop.eup %4726 }
 0x498   : >> { %v1338_v2 = vmul.f32 %v4727_v1, %v5520_v47  ;;  %v958_v29 = vpop.f32.mrf.mxu3  ;;  %v4429_v47 = vld [vmem:[%s542_s25 + $0x8] sm:$0xff] }
 0x499   : >> { %1478 = vmatpush.bf16.msra.mxu0 %v4429_v47  ;;  %v959_v20 = vadd.f32 %v958_v29, %v5395_v46  ;;  %v4985_v29 = vmov 64.0  }
 0x49a   : >> { %v1340_v38 = vpack.c.bf16 %v1339_v15, %v1338_v2  ;;  %4728 = vrcp.f32 %v4985_v29 }
 0x49c   : >> { %3798 = vmatmul.msk.bf16.vlgmr.msrb.gmra.mxu1 %vm841_vm7, %v1340_v38  ;;  %v4441_v38 = vld [vmem:[%s562_s28 + $0x18] sm:$0xff] }
 0x49d   : >> { %1479 = vmatpush.bf16.msra.mxu0 %v4428_v49  ;;  %1620 = vmatpush.bf16.msrb.mxu2 %v4441_v38 }
 0x4a0   : >> { %v960_v58 = vpop.f32.mrf.mxu3 }
 0x4a1   : >> { %v961_v25 = vadd.f32 %v960_v58, %v5401_v52  ;;  %v1444_v52 = vperm.slane %v5169_v23, 3  ;;  %v4440_v23 = vld [vmem:[%s562_s28 + $0x10] sm:$0xff]  ;;  %v4729_v58 = vpop.eup %4728 }
 0x4a2   : >> { %1621 = vmatpush.bf16.msrb.mxu2 %v4440_v23  ;;  %vm1499_vm8 = vweird.f32 %v4729_v58 }
 0x4f1   : >> { %v1036_v60 = vpop.f32.mrf.mxu1 }
 0x4f2   : >> { %v1041_v30 = vadd.f32 %v1036_v60, %v959_v20  ;;  %v4439_v60 = vld [vmem:[%s562_s28 + $0x8] sm:$0xff] }
 0x4f3   : >> { %1622 = vmatpush.bf16.msrb.mxu2 %v4439_v60 }
 0x4f8   : >> { %v1116_v55 = vpop.f32.mrf.mxu3 }
 0x4f9   : >> { %v1038_v45 = vpop.f32.mrf.mxu1  ;;  %v1121_v62 = vadd.f32 %v1116_v55, %v1041_v30  ;;  %v1495_v55 = vmul.f32 64.0, %v4729_v58 }
 0x4fa   : >> { %v1042_v61 = vadd.f32 %v1038_v45, %v961_v25 }
 0x500   : >> { %v1118_v53 = vpop.f32.mrf.mxu3 }
 0x501   : >> { %v1122_v63 = vadd.f32 %v1118_v53, %v1042_v61  ;;  %v4436_v61 = vld [vmem:[%s552_s15 + $0x18] sm:$0xff] }
 0x502   : >> { %v1196_v44 = vpop.f32.mrf.mxu1  ;;  %1578 = vmatpush.bf16.msra.mxu1 %v4436_v61 }
 0x503   : >> { %v1201_v26 = vadd.f32 %v1196_v44, %v1121_v62 }
 0x509   : >> { %v1276_v54 = vpop.f32.mrf.mxu3 }
 0x50a   : >> { %v1198_v19 = vpop.f32.mrf.mxu1  ;;  %v1281_v28 = vadd.f32 %v1276_v54, %v1201_v26  ;;  %v4435_v26 = vld [vmem:[%s552_s15 + $0x10] sm:$0xff] }
 0x50b   : >> { %v1202_v27 = vadd.f32 %v1198_v19, %v1122_v63  ;;  %1579 = vmatpush.bf16.msra.mxu1 %v4435_v26 }
 0x511   : >> { %v1278_v24 = vpop.f32.mrf.mxu3 }
 0x512   : >> { %v1282_v57 = vadd.f32 %v1278_v24, %v1202_v27 }
 0x519   : >> { %v1436_v48 = vpop.f32.mrf.mxu3  ;;  %v1356_v50 = vpop.f32.mrf.mxu1 }
 0x51a   : >> { %v1361_v33 = vadd.f32 %v1356_v50, %v1281_v28  ;;  %v5576_v50 = vld [vmem:[%s5166_s13] sm:$0xff] }
 0x51b   : >> { %v1633_v62 = vperm.slane %v5576_v50, 6 }
 0x51c   : >> { %v1441_v39 = vadd.f32 %v1436_v48, %v1361_v33 }
 0x521   : >> { %v1358_v35 = vpop.f32.mrf.mxu1  ;;  %v1438_v43 = vpop.f32.mrf.mxu3 }
 0x522   : >> { %v1362_v32 = vadd.f32 %v1358_v35, %v1282_v57  ;;  %v4434_v57 = vld [vmem:[%s552_s15 + $0x8] sm:$0xff]  ;;  %v1630_v35 = vperm.slane %v5576_v50, 5 }
 0x523   : >> { %1580 = vmatpush.bf16.msra.mxu1 %v4434_v57 }
 0x524   : >> { %v1442_v0 = vadd.f32 %v1438_v43, %v1362_v32  ;;  %v4433_v43 = vld [vmem:[%s552_s15] sm:$0xff] }
 0x526   : >> { %v1443_v46 = vpack.c.bf16 %v1442_v0, %v1441_v39 }
 0x527   : >> { %1581 = vmatpush.bf16.msra.mxu1 %v4433_v43 }
 0x528   : >> { %3817 = vmatmul.msk.bf16.vlgmr.msra.gmra.mxu0 %vm761_vm6, %v1443_v46 }
 0x5a5   : >> { %v1481_v59 = vpop.f32.mrf.mxu0 }
 0x5a6   : >> { %v1482_v18 = vadd.f32 %v1481_v59, %v1444_v52 }
 0x5a8   : >> { %v1486_v31 = vadd.f32 %v4967_v7, %v1482_v18  ;;  %v4438_v7 = vld [vmem:[%s562_s28] sm:$0xff] }
 0x5a9   : >> { %1623 = vmatpush.bf16.msrb.mxu2 %v4438_v7 }
 0x5aa   : >> { %v1488_v36 = vsel %vm761_vm6, %v1486_v31, 0.0 }
 0x5ab   : >> { %1489 = vadd.xlane.f32.xlu1 %v1488_v36 }
 0x5ac   : >> { %3851 = vmatmul.msk.bf16.vlgmr.msrb.gmra.mxu2 %vm761_vm6, %v1588_v56 }
 0x5ad   : >> { %v1483_v40 = vpop.f32.mrf.mxu0 }
 0x5ae   : >> { %v1484_v1 = vadd.f32 %v1483_v40, %v1444_v52 }
 0x5b0   : >> { %v1487_v15 = vadd.f32 %v4963_v9, %v1484_v1  ;;  %v1496_v9 = vsub.f32 1.0, %v1495_v55  ;;  %v719_v55 = vld [vmem:[%s5166_s13 + $0x8] sm:$0x7f] }
 0x5b2   : >> { %v1491_v2 = vsel %vm761_vm6, %v1487_v15, 0.0  ;;  %v1497_v45 = vmul.f32 %v4729_v58, %v1496_v9 }
 0x5b3   : >> { %1492 = vadd.xlane.f32.xlu0 %v1491_v2 }
 0x5b4   : >> { %v1498_v21 = vadd.f32 %v4729_v58, %v1497_v45 }
 0x5b6   : >> { %v5569_v53 = vsel %vm1499_vm8, %v4729_v58, %v1498_v21  ;;  %v1539_v21 = vperm.slane %v719_v55, 0 }
 0x61e   : >> { %v1490_v47 = vpop.xlane.xlu1 %1489 }
 0x61f   : >> { %v1501_v49 = vmul.f32 %v5569_v53, %v1490_v47 }
 0x621   : >> { %v1503_v44 = vsub.f32 %v1486_v31, %v1501_v49 }
 0x623   : >> { %v1505_v54 = vmul.f32 %v1503_v44, %v1503_v44 }
 0x625   : >> { %v1507_v19 = vsel %vm761_vm6, %v1505_v54, 0.0 }
 0x626   : >> { %v1493_v24 = vpop.xlane.xlu0 %1492  ;;  %1508 = vadd.xlane.f32.xlu2 %v1507_v19  ;;  %v1542_v19 = vperm.slane %v719_v55, 1 }
 0x627   : >> { %v1502_v20 = vmul.f32 %v5569_v53, %v1493_v24 }
 0x629   : >> { %v1504_v25 = vsub.f32 %v1487_v15, %v1502_v20 }
 0x62b   : >> { %v1506_v30 = vmul.f32 %v1504_v25, %v1504_v25 }
 0x62d   : >> { %v1510_v48 = vsel %vm761_vm6, %v1506_v30, 0.0 }
 0x62e   : >> { %1511 = vadd.xlane.f32.xlu1 %v1510_v48 }
 0x62f   : >> { %v1625_v63 = vpop.f32.mrf.mxu2 }
 0x630   : >> { %v5586_v39 = vadd.f32 %v1630_v35, %v1625_v63 }
 0x632   : >> { %v1643_v46 = vmul.f32 %v5111_v3, %v5586_v39 }
 0x637   : >> { %v1627_v32 = vpop.f32.mrf.mxu2 }
 0x638   : >> { %v5588_v0 = vadd.f32 %v1630_v35, %v1627_v32 }
 0x63a   : >> { %v1644_v52 = vmul.f32 %v5111_v3, %v5588_v0  ;;  %v1948_v55 = vmul.f32 %v5128_v11, %v5588_v0 }
 0x63c   : >> { %v1645_v31 = vpack.c.bf16 %v1644_v52, %v1643_v46 }
 0x63e   : >> { %v1650_v1 = vsel %vm761_vm6, %v1645_v31, 0 }
 0x63f   : >> { %1659 = vmatpush.bf16.xpose.msrb.mxu3 %v1650_v1  ;;  %v1793_v1 = vmul.f32 %v5124_v8, %v5586_v39 }
 0x647   : >> { %1635 = vrot.lane.b32.xlu1 %v1633_v62, %s4984_s21 }
 0x699   : >> { %v1509_v28 = vpop.xlane.xlu2 %1508 }
 0x69a   : >> { %v1513_v27 = vmul.f32 %v1509_v28, %v5569_v53 }
 0x69c   : >> { %v1515_v33 = vadd.f32 1e-05, %v1513_v27 }
 0x69e   : >> { %4730 = vrsqrt.f32 %v1515_v33  ;;  %vm1523_vm10 = vweird.f32 %v1515_v33 }
 0x6a1   : >> { %v1512_v59 = vpop.xlane.xlu1 %1511 }
 0x6a2   : >> { %v1514_v18 = vmul.f32 %v1512_v59, %v5569_v53 }
 0x6a4   : >> { %v4731_v36 = vpop.eup %4730  ;;  %v1516_v40 = vadd.f32 1e-05, %v1514_v18 }
 0x6a5   : >> { %v1518_v15 = vmul.f32 %v4731_v36, %v1515_v33  ;;  %vm1524_vm9 = vweird.f32 %v4731_v36 }
 0x6a6   : >> { %4732 = vrsqrt.f32 %v1516_v40  ;;  %vm1525_vm11 = vmor %vm1523_vm10, %vm1524_vm9  ;;  %vm1533_vm13 = vweird.f32 %v1516_v40 }
 0x6a7   : >> { %v1519_v2 = vmul.f32 %v4731_v36, %v1518_v15 }
 0x6a9   : >> { %v1520_v38 = vmul.f32 0.5, %v1519_v2 }
 0x6ab   : >> { %v1521_v29 = vsub.f32 1.5, %v1520_v38 }
 0x6ac   : >> { %v4733_v23 = vpop.eup %4732 }
 0x6ad   : >> { %v1522_v58 = vmul.f32 %v4731_v36, %v1521_v29  ;;  %v1528_v60 = vmul.f32 %v4733_v23, %v1516_v40  ;;  %vm1534_vm12 = vweird.f32 %v4733_v23  ;;  %v1698_v40 = vmul.f32 %v5118_v4, %v5588_v0 }
 0x6ae   : >> { %vm1535_vm14 = vmor %vm1533_vm13, %vm1534_vm12 }
 0x6af   : >> { %v1529_v7 = vmul.f32 %v4733_v23, %v1528_v60  ;;  %v1526_v56 = vsel %vm1525_vm11, %v4731_v36, %v1522_v58  ;;  %v1697_v36 = vmul.f32 %v5118_v4, %v5586_v39  ;;  %v1546_v58 = vperm.slane %v5576_v50, 4 }
 0x6b0   : >> { %v1537_v47 = vmul.f32 %v1526_v56, %v1503_v44 }
 0x6b1   : >> { %v1530_v9 = vmul.f32 0.5, %v1529_v7  ;;  %v1699_v15 = vpack.c.bf16 %v1698_v40, %v1697_v36  ;;  %v1947_v7 = vmul.f32 %v5128_v11, %v5586_v39 }
 0x6b2   : >> { %v1540_v24 = vmul.f32 %v1539_v21, %v1537_v47 }
 0x6b3   : >> { %v1531_v45 = vsub.f32 1.5, %v1530_v9  ;;  %v1704_v38 = vsel %vm761_vm6, %v1699_v15, 0  ;;  %v1949_v47 = vpack.c.bf16 %v1948_v55, %v1947_v7 }
 0x6b4   : >> { %v5601_v26 = vadd.f32 %v1542_v19, %v1540_v24  ;;  %1713 = vmatpush.bf16.xpose.msrb.mxu0 %v1704_v38  ;;  %v2101_v38 = vmul.f32 %v5132_v13, %v5586_v39 }
 0x6b5   : >> { %v1532_v49 = vmul.f32 %v4733_v23, %v1531_v45 }
 0x6b7   : >> { %v1536_v54 = vsel %vm1535_vm14, %v4733_v23, %v1532_v49 }
 0x6b8   : >> { %v1538_v20 = vmul.f32 %v1536_v54, %v1504_v25 }
 0x6b9   : >> { %v1636_v30 = vpop.permute.xlu1 %1635 }
 0x6ba   : >> { %v1541_v48 = vmul.f32 %v1539_v21, %v1538_v20  ;;  %v5597_v62 = vadd.f32 %v1636_v30, %v1625_v63  ;;  %v5599_v61 = vadd.f32 %v1636_v30, %v1627_v32 }
 0x6bc   : >> { %v5603_v28 = vadd.f32 %v1542_v19, %v1541_v48  ;;  %v5607_v44 = vmul.f32 %v5281_v51, %v5597_v62  ;;  %v5611_v27 = vmul.f32 %v5281_v51, %v5599_v61  ;;  %v5615_v25 = vmul.f32 %v5308_v42, %v5597_v62 }
 0x6bd   : >> { %v5621_v57 = vmul.f32 %v5308_v42, %v5599_v61  ;;  %v5625_v33 = vmul.f32 %v5597_v62, %v5303_v34  ;;  %v5631_v51 = vmul.f32 %v5599_v61, %v5303_v34  ;;  %v5635_v32 = vmul.f32 %v5597_v62, %v5306_v41 }
 0x6be   : >> { %v1545_v63 = vpack.c.bf16 %v5603_v28, %v5601_v26  ;;  %v1920_v35 = vpack.c.bf16 %v5611_v27, %v5607_v44  ;;  %v5642_v43 = vmul.f32 %v5599_v61, %v5306_v41  ;;  %v5646_v46 = vmul.f32 %v5597_v62, %v5319_v16 }
 0x6bf   : >> { %v1843_v42 = vpack.c.bf16 %v5621_v57, %v5615_v25  ;;  %v5650_v34 = vmul.f32 %v5599_v61, %v5319_v16  ;;  %v5656_v59 = vmul.f32 %v5597_v62, %v5331_v22  ;;  %v5660_v18 = vmul.f32 %v5599_v61, %v5331_v22 }
 0x6c0   : >> { %3834 = vmatmul.msk.bf16.vlgmr.msra.gmra.mxu1 %vm761_vm6, %v1545_v63  ;;  %v1794_v22 = vmul.f32 %v5124_v8, %v5588_v0 }
 0x6c2   : >> { %v1795_v2 = vpack.c.bf16 %v1794_v22, %v1793_v1 }
 0x6c4   : >> { %v1800_v29 = vsel %vm761_vm6, %v1795_v2, 0  ;;  %v1954_v2 = vsel %vm761_vm6, %v1949_v47, 0 }
 0x6c5   : >> { %1809 = vmatpush.bf16.xpose.msra.mxu3 %v1800_v29  ;;  %v2102_v29 = vmul.f32 %v5132_v13, %v5588_v0 }
 0x6c7   : >> { %v2103_v7 = vpack.c.bf16 %v2102_v29, %v2101_v38 }
 0x73d   : >> { %v1583_v23 = vpop.f32.mrf.mxu1 }
 0x73e   : >> { %v1584_v60 = vadd.f32 %v1583_v23, %v1546_v58 }
 0x740   : >> { %v1640_v45 = vmul.f32 %v5111_v3, %v1584_v60  ;;  %v1694_v21 = vmul.f32 %v5118_v4, %v1584_v60  ;;  %v5688_v19 = vmul.f32 %v5126_v10, %v1584_v60  ;;  %v5691_v24 = vmul.f32 %v5130_v12, %v1584_v60 }
 0x741   : >> { %v5700_v48 = vmul.f32 %v5134_v14, %v1584_v60 }
 0x745   : >> { %v1585_v56 = vpop.f32.mrf.mxu1 }
 0x746   : >> { %v1586_v9 = vadd.f32 %v1585_v56, %v1546_v58  ;;  %v1790_v58 = vmul.f32 %v5124_v8, %v1584_v60  ;;  %v2108_v56 = vsel %vm761_vm6, %v2103_v7, 0 }
 0x748   : >> { %v1641_v49 = vmul.f32 %v5111_v3, %v1586_v9  ;;  %v1695_v54 = vmul.f32 %v5118_v4, %v1586_v9  ;;  %v5694_v20 = vmul.f32 %v5126_v10, %v1586_v9  ;;  %v5697_v30 = vmul.f32 %v5130_v12, %v1586_v9 }
 0x749   : >> { %v5703_v63 = vmul.f32 %v5134_v14, %v1586_v9  ;;  %v1791_v23 = vmul.f32 %v5124_v8, %v1586_v9 }
 0x74a   : >> { %v1642_v36 = vpack.c.bf16 %v1641_v49, %v1640_v45  ;;  %v1696_v40 = vpack.c.bf16 %v1695_v54, %v1694_v21  ;;  %v1869_v1 = vpack.c.bf16 %v5694_v20, %v5688_v19  ;;  %v2023_v22 = vpack.c.bf16 %v5697_v30, %v5691_v24 }
 0x74b   : >> { %v2177_v15 = vpack.c.bf16 %v5703_v63, %v5700_v48  ;;  %v1792_v55 = vpack.c.bf16 %v1791_v23, %v1790_v58  ;;  %v1945_v45 = vmul.f32 %v5128_v11, %v1586_v9  ;;  %v1944_v21 = vmul.f32 %v5128_v11, %v1584_v60 }
 0x74c   : >> { %3852 = vmatmul.msk.bf16.vlgmr.msrb.gmra.mxu3 %vm761_vm6, %v1642_v36  ;;  %3853 = vmatmul.msk.bf16.vlgmr.msrb.gmra.mxu0 %vm761_vm6, %v1696_v40  ;;  %v2099_v49 = vmul.f32 %v5132_v13, %v1586_v9  ;;  %v2098_v54 = vmul.f32 %v5132_v13, %v1584_v60 }
 0x74d   : >> { %1963 = vmatpush.bf16.xpose.msrb.mxu3 %v1954_v2  ;;  %v1946_v47 = vpack.c.bf16 %v1945_v45, %v1944_v21 }
 0x74e   : >> { %v2100_v36 = vpack.c.bf16 %v2099_v49, %v2098_v54 }
 0x75c   : >> { %3856 = vmatmul.msk.bf16.vlgmr.msra.gmra.mxu3 %vm761_vm6, %v1792_v55 }
 0x75d   : >> { %2117 = vmatpush.bf16.xpose.msra.mxu3 %v2108_v56 }
 0x76c   : >> { %3860 = vmatmul.msk.bf16.vlgmr.msrb.gmra.mxu3 %vm761_vm6, %v1946_v47 }
 0x77c   : >> { %3864 = vmatmul.msk.bf16.vlgmr.msra.gmra.mxu3 %vm761_vm6, %v2100_v36 }
 0x7c9   : >> { %v1715_v40 = vpop.f32.mrf.mxu0 }
 0x7ca   : >> { %v1720_v2 = vmul.f32 0.35355338, %v1715_v40 }
 0x7cc   : >> { %v1722_v38 = vsel %vm841_vm7, %v1720_v2, -inf }
 0x7cd   : >> { %1723 = vmax.xlane.f32.xlu0 %v1722_v38 }
 0x7cf   : >> { %v1661_v29 = vpop.f32.mrf.mxu3 }
 0x7d0   : >> { %v1666_v41 = vmul.f32 0.35355338, %v1661_v29 }
 0x7d1   : >> { %v1717_v23 = vpop.f32.mrf.mxu0 }
 0x7d2   : >> { %v1721_v58 = vmul.f32 0.35355338, %v1717_v23 }
 0x7d4   : >> { %v1725_v7 = vsel %vm841_vm7, %v1721_v58, -inf }
 0x7d5   : >> { %1726 = vmax.xlane.f32.xlu2 %v1725_v7 }
 0x7d7   : >> { %v1663_v55 = vpop.f32.mrf.mxu3 }
 0x7df   : >> { %v1811_v56 = vpop.f32.mrf.mxu3 }
 0x7e7   : >> { %v1813_v45 = vpop.f32.mrf.mxu3 }
 0x7ef   : >> { %v1965_v9 = vpop.f32.mrf.mxu3 }
 0x7f0   : >> { %v5744_v29 = vmul.f32 0.35355338, %v1965_v9 }
 0x7f7   : >> { %v1967_v21 = vpop.f32.mrf.mxu3 }
 0x7f8   : >> { %v5730_v60 = vmul.f32 0.35355338, %v1967_v21 }
 0x7fa   : >> { %v1975_v47 = vsel %vm841_vm7, %v5730_v60, -inf }
 0x7fb   : >> { %1976 = vmax.xlane.f32.xlu1 %v1975_v47  ;;  %v1745_v47 = vmul.f32 %v5597_v62, %v5189_v37 }
 0x840   : >> { %v1724_v49 = vpop.xlane.xlu0 %1723 }
 0x841   : >> { %v1728_v54 = vsub.f32 %v1720_v2, %v1724_v49  ;;  %v1746_v2 = vmul.f32 %v5599_v61, %v5189_v37  ;;  %v1668_v49 = vsel %vm841_vm7, %v1666_v41, -inf  ;;  %v5748_v37 = vmul.f32 0.35355338, %v1811_v56 }
 0x843   : >> { %v1730_v36 = vmul.f32 1.442695, %v1728_v54  ;;  %v1667_v54 = vmul.f32 0.35355338, %v1663_v55  ;;  %v1691_v55 = vmul.f32 %v5597_v62, %v5253_v17 }
 0x845   : >> { %4734 = vpow2.f32 %v1730_v36  ;;  %v1817_v36 = vmul.f32 0.35355338, %v1813_v45  ;;  %v1818_v45 = vsel %vm841_vm7, %v5748_v37, -inf }
 0x848   : >> { %v1727_v40 = vpop.xlane.xlu2 %1726 }
 0x849   : >> { %v1729_v38 = vsub.f32 %v1721_v58, %v1727_v40  ;;  %v1747_v58 = vpack.c.bf16 %v1746_v2, %v1745_v47  ;;  %v1821_v40 = vsel %vm841_vm7, %v1817_v36, -inf  ;;  %v1871_v2 = vmul.f32 %v5126_v10, %v5588_v0 }
 0x84b   : >> { %v4735_v23 = vpop.eup %4734  ;;  %v1732_v16 = vmul.f32 1.442695, %v1729_v38  ;;  %v1972_v38 = vsel %vm841_vm7, %v5744_v29, -inf }
 0x84c   : >> { %v1734_v7 = vsel %vm841_vm7, %v4735_v23, 0.0 }
 0x84d   : >> { %4736 = vpow2.f32 %v1732_v16  ;;  %1735 = vadd.xlane.f32.xlu0 %v1734_v7  ;;  %v1671_v16 = vsel %vm841_vm7, %v1667_v54, -inf  ;;  %v1692_v7 = vmul.f32 %v5599_v61, %v5253_v17  ;;  %v1870_v61 = vmul.f32 %v5126_v10, %v5586_v39 }
 0x84f   : >> { %v1693_v47 = vpack.c.bf16 %v1692_v7, %v1691_v55  ;;  %v1872_v27 = vpack.c.bf16 %v1871_v2, %v1870_v61 }
 0x853   : >> { %v4737_v31 = vpop.eup %4736 }
 0x854   : >> { %v1737_v21 = vsel %vm841_vm7, %v4737_v31, 0.0 }
 0x855   : >> { %1738 = vadd.xlane.f32.xlu2 %v1737_v21  ;;  %v2119_v21 = vpop.f32.mrf.mxu3 }
 0x856   : >> { %v5757_v9 = vmul.f32 0.35355338, %v2119_v21 }
 0x858   : >> { %v2126_v56 = vsel %vm841_vm7, %v5757_v9, -inf }
 0x85d   : >> { %1669 = vmax.xlane.f32.xlu2 %v1668_v49 }
 0x861   : >> { %1749 = vrot.lane.b32.xlu0 %v1747_v58, %s4984_s21  ;;  %v2024_v58 = vmul.f32 %v5130_v12, %v5586_v39 }
 0x865   : >> { %1672 = vmax.xlane.f32.xlu2 %v1671_v16  ;;  %v2025_v16 = vmul.f32 %v5130_v12, %v5588_v0 }
 0x867   : >> { %v2026_v21 = vpack.c.bf16 %v2025_v16, %v2024_v58  ;;  %v2178_v16 = vmul.f32 %v5134_v14, %v5586_v39 }
 0x86d   : >> { %1822 = vmax.xlane.f32.xlu2 %v1821_v40 }
 0x875   : >> { %1973 = vmax.xlane.f32.xlu2 %v1972_v38 }
 0x88b   : >> { %1819 = vmax.xlane.f32.xlu0 %v1818_v45 }
 0x88d   : >> { %1770 = vrot.lane.b32.xlu2 %v1693_v47, %s4984_s21  ;;  %v1877_v47 = vsel %vm761_vm6, %v1872_v27, 0 }
 0x893   : >> { %2127 = vmax.xlane.f32.xlu0 %v2126_v56 }
 0x8a7   : >> { %1922 = vrot.lane.b32.xlu0 %v1920_v35, %s4984_s21 }
 0x8c0   : >> { %v1736_v17 = vpop.xlane.xlu0 %1735 }
 0x8c8   : >> { %v1739_v62 = vpop.xlane.xlu2 %1738 }
 0x8c9   : >> { %4738 = vrcp.f32 %v1739_v62  ;;  %v1977_v62 = vpop.xlane.xlu1 %1976 }
 0x8ca   : >> { %4740 = vrcp.f32 %v1736_v17  ;;  %v2031_v17 = vsel %vm761_vm6, %v2026_v21, 0 }
 0x8cf   : >> { %v4739_v49 = vpop.eup %4738 }
 0x8d0   : >> { %v4741_v40 = vpop.eup %4740  ;;  %v1670_v44 = vpop.xlane.xlu2 %1669  ;;  %v1743_v35 = vmul.f32 %v4739_v49, %v4737_v31 }
 0x8d1   : >> { %v1674_v38 = vsub.f32 %v1666_v41, %v1670_v44  ;;  %v1742_v55 = vmul.f32 %v4741_v40, %v4735_v23  ;;  %v1979_v41 = vsub.f32 %v5730_v60, %v1977_v62  ;;  %v2121_v49 = vpop.f32.mrf.mxu3  ;;  %v2179_v40 = vmul.f32 %v5134_v14, %v5588_v0 }
 0x8d2   : >> { %v5782_v44 = vmul.f32 0.35355338, %v2121_v49 }
 0x8d3   : >> { %v1676_v7 = vmul.f32 1.442695, %v1674_v38  ;;  %v1750_v45 = vpop.permute.xlu0 %1749  ;;  %v1744_v56 = vpack.c.bf16 %v1743_v35, %v1742_v55  ;;  %v1982_v58 = vmul.f32 1.442695, %v1979_v41  ;;  %v2180_v35 = vpack.c.bf16 %v2179_v40, %v2178_v16 }
 0x8d4   : >> { %1762 = vmatpush.bf16.msrb.mxu1 %v1750_v45  ;;  %v2129_v38 = vsel %vm841_vm7, %v5782_v44, -inf }
 0x8d5   : >> { %4742 = vpow2.f32 %v1676_v7  ;;  %v2185_v39 = vsel %vm761_vm6, %v2180_v35, 0 }
 0x8d7   : >> { %3854 = vmatmul.msk.bf16.vlgmr.msrb.gmra.mxu1 %vm841_vm7, %v1744_v56 }
 0x8d8   : >> { %1886 = vmatpush.bf16.xpose.msra.mxu1 %v1877_v47  ;;  %v1673_v52 = vpop.xlane.xlu2 %1672 }
 0x8d9   : >> { %v1675_v61 = vsub.f32 %v1667_v54, %v1673_v52 }
 0x8db   : >> { %v4743_v31 = vpop.eup %4742  ;;  %v1678_v23 = vmul.f32 1.442695, %v1675_v61 }
 0x8dc   : >> { %v1680_v2 = vsel %vm841_vm7, %v4743_v31, 0.0 }
 0x8dd   : >> { %4744 = vpow2.f32 %v1678_v23  ;;  %1681 = vadd.xlane.f32.xlu1 %v1680_v2 }
 0x8de   : >> { %4746 = vpow2.f32 %v1982_v58 }
 0x8e0   : >> { %2040 = vmatpush.bf16.xpose.msrb.mxu1 %v2031_v17  ;;  %v1823_v27 = vpop.xlane.xlu2 %1822 }
 0x8e1   : >> { %v1825_v52 = vsub.f32 %v1817_v36, %v1823_v27 }
 0x8e3   : >> { %v4745_v54 = vpop.eup %4744  ;;  %v1828_v60 = vmul.f32 1.442695, %v1825_v52 }
 0x8e4   : >> { %v1683_v55 = vsel %vm841_vm7, %v4745_v54, 0.0  ;;  %v5792_v36 = vpop.eup %4746 }
 0x8e5   : >> { %4748 = vpow2.f32 %v1828_v60  ;;  %2130 = vmax.xlane.f32.xlu1 %v2129_v38  ;;  %1684 = vadd.xlane.f32.xlu2 %v1683_v55  ;;  %v1987_v21 = vsel %vm841_vm7, %v5792_v36, 0.0 }
 0x8e7   : >> { %3858 = vmatmul.msk.bf16.vlgmr.msra.gmra.mxu1 %vm761_vm6, %v1869_v1 }
 0x8e8   : >> { %2194 = vmatpush.bf16.xpose.msra.mxu1 %v2185_v39  ;;  %v1974_v0 = vpop.xlane.xlu2 %1973 }
 0x8eb   : >> { %v5794_v7 = vpop.eup %4748 }
 0x8ec   : >> { %v1833_v45 = vsel %vm841_vm7, %v5794_v7, 0.0 }
 0x8ed   : >> { %1834 = vadd.xlane.f32.xlu1 %v1833_v45  ;;  %1988 = vadd.xlane.f32.xlu2 %v1987_v21 }
 0x8f0   : >> { %v1771_v47 = vpop.permute.xlu2 %1770 }
 0x8f1   : >> { %1783 = vmatpush.bf16.msra.mxu2 %v1771_v47 }
 0x8f7   : >> { %3862 = vmatmul.msk.bf16.vlgmr.msrb.gmra.mxu1 %vm761_vm6, %v2023_v22 }
 0x8fe   : >> { %v1820_v19 = vpop.xlane.xlu0 %1819 }
 0x8ff   : >> { %v1824_v20 = vsub.f32 %v5748_v37, %v1820_v19 }
 0x901   : >> { %v1826_v1 = vmul.f32 1.442695, %v1824_v20  ;;  %v1978_v20 = vsub.f32 %v5744_v29, %v1974_v0 }
 0x903   : >> { %4750 = vpow2.f32 %v1826_v1  ;;  %v1980_v1 = vmul.f32 1.442695, %v1978_v20 }
 0x906   : >> { %v5813_v62 = vpop.xlane.xlu0 %2127 }
 0x907   : >> { %3866 = vmatmul.msk.bf16.vlgmr.msra.gmra.mxu1 %vm761_vm6, %v2177_v15 }
 0x909   : >> { %v5809_v56 = vpop.eup %4750 }
 0x90a   : >> { %v1830_v17 = vsel %vm841_vm7, %v5809_v56, 0.0 }
 0x90b   : >> { %1831 = vadd.xlane.f32.xlu0 %v1830_v17 }
 0x919   : >> { %v1923_v24 = vpop.permute.xlu0 %1922 }
 0x91a   : >> { %1935 = vmatpush.bf16.msrb.mxu2 %v1923_v24 }
 0x950   : >> { %v1682_v30 = vpop.xlane.xlu1 %1681 }
 0x951   : >> { %4752 = vrcp.f32 %v1682_v30 }
 0x954   : >> { %v5815_v22 = vpop.f32.mrf.mxu1 }
 0x957   : >> { %v4753_v48 = vpop.eup %4752 }
 0x958   : >> { %v1685_v37 = vpop.xlane.xlu2 %1684  ;;  %v1688_v15 = vmul.f32 %v4753_v48, %v4743_v31  ;;  %v5838_v57 = vpop.xlane.xlu1 %2130 }
 0x959   : >> { %4754 = vrcp.f32 %v1685_v37 }
 0x95a   : >> { %4756 = vpow2.f32 %v1980_v1 }
 0x95c   : >> { %v5817_v61 = vpop.f32.mrf.mxu1 }
 0x95f   : >> { %v4755_v63 = vpop.eup %4754 }
 0x960   : >> { %v1689_v41 = vmul.f32 %v4755_v63, %v4745_v54  ;;  %v5834_v17 = vpop.eup %4756  ;;  %v5840_v24 = vpop.xlane.xlu2 %1988 }
 0x961   : >> { %v1984_v25 = vsel %vm841_vm7, %v5834_v17, 0.0 }
 0x962   : >> { %v1690_v23 = vpack.c.bf16 %v1689_v41, %v1688_v15 }
 0x964   : >> { %3855 = vmatmul.msk.bf16.vlgmr.msra.gmra.mxu2 %vm841_vm7, %v1690_v23  ;;  %v1888_v2 = vpop.f32.mrf.mxu1 }
 0x965   : >> { %v1893_v49 = vmul.f32 0.35355338, %v1888_v2 }
 0x967   : >> { %v1895_v58 = vsel %vm841_vm7, %v1893_v49, -inf }
 0x968   : >> { %1896 = vmax.xlane.f32.xlu1 %v1895_v58 }
 0x96c   : >> { %v1890_v16 = vpop.f32.mrf.mxu1 }
 0x96d   : >> { %v1894_v40 = vmul.f32 0.35355338, %v1890_v16 }
 0x96f   : >> { %v1898_v27 = vsel %vm841_vm7, %v1894_v40, -inf }
 0x970   : >> { %1899 = vmax.xlane.f32.xlu2 %v1898_v27 }
 0x974   : >> { %v2042_v52 = vpop.f32.mrf.mxu1 }
 0x975   : >> { %v2047_v60 = vmul.f32 0.35355338, %v2042_v52 }
 0x977   : >> { %v2049_v35 = vsel %vm841_vm7, %v2047_v60, -inf }
 0x978   : >> { %2050 = vmax.xlane.f32.xlu2 %v2049_v35 }
 0x97c   : >> { %v2044_v31 = vpop.f32.mrf.mxu1 }
 0x97d   : >> { %v2048_v54 = vmul.f32 0.35355338, %v2044_v31 }
 0x97e   : >> { %v1832_v15 = vpop.xlane.xlu0 %1831 }
 0x97f   : >> { %v2052_v38 = vsel %vm841_vm7, %v2048_v54, -inf }
 0x980   : >> { %2053 = vmax.xlane.f32.xlu2 %v2052_v38 }
 0x981   : >> { %1845 = vrot.lane.b32.xlu1 %v1843_v42, %s4984_s21  ;;  %v1835_v42 = vpop.xlane.xlu1 %1834 }
 0x984   : >> { %v2196_v55 = vpop.f32.mrf.mxu1 }
 0x985   : >> { %v2201_v39 = vmul.f32 0.35355338, %v2196_v55 }
 0x987   : >> { %v2203_v45 = vsel %vm841_vm7, %v2201_v39, -inf }
 0x988   : >> { %2204 = vmax.xlane.f32.xlu2 %v2203_v45 }
 0x98c   : >> { %v2198_v21 = vpop.f32.mrf.mxu1 }
 0x98d   : >> { %v5829_v47 = vmul.f32 0.35355338, %v2198_v21 }
 0x98f   : >> { %v2206_v19 = vsel %vm841_vm7, %v5829_v47, -inf }
 0x990   : >> { %2207 = vmax.xlane.f32.xlu0 %v2206_v19 }
 0x9ab   : >> { %1985 = vadd.xlane.f32.xlu1 %v1984_v25 }
 0x9db   : >> { %v1897_v30 = vpop.xlane.xlu1 %1896 }
 0x9dc   : >> { %v1901_v37 = vsub.f32 %v1893_v49, %v1897_v30 }
 0x9de   : >> { %v1903_v48 = vmul.f32 1.442695, %v1901_v37 }
 0x9e0   : >> { %4758 = vpow2.f32 %v1903_v48 }
 0x9e1   : >> { %4760 = vrcp.f32 %v1832_v15 }
 0x9e3   : >> { %v1900_v63 = vpop.xlane.xlu2 %1899 }
 0x9e4   : >> { %v1902_v29 = vsub.f32 %v1894_v40, %v1900_v63 }
 0x9e6   : >> { %v5842_v0 = vpop.eup %4758  ;;  %v1905_v41 = vmul.f32 1.442695, %v1902_v29 }
 0x9e7   : >> { %v1907_v23 = vsel %vm841_vm7, %v5842_v0, 0.0  ;;  %v4761_v16 = vpop.eup %4760 }
 0x9e8   : >> { %4762 = vpow2.f32 %v1905_v41  ;;  %1908 = vadd.xlane.f32.xlu0 %v1907_v23  ;;  %v1838_v40 = vmul.f32 %v4761_v16, %v5809_v56  ;;  %v2132_v56 = vsub.f32 %v5757_v9, %v5813_v62  ;;  %v6322_v9 = vpack.c.bf16 %v5631_v51, %v5625_v33 }
 0x9e9   : >> { %4764 = vrcp.f32 %v1835_v42  ;;  %v6323_v62 = vpack.c.bf16 %v5642_v43, %v5635_v32  ;;  %v6324_v41 = vpack.c.bf16 %v5650_v34, %v5646_v46  ;;  %v6325_v51 = vpack.c.bf16 %v5660_v18, %v5656_v59 }
 0x9eb   : >> { %v2051_v2 = vpop.xlane.xlu2 %2050 }
 0x9ec   : >> { %v2055_v58 = vsub.f32 %v2047_v60, %v2051_v2  ;;  %v2133_v2 = vsub.f32 %v5782_v44, %v5838_v57 }
 0x9ee   : >> { %v4763_v27 = vpop.eup %4762  ;;  %v2057_v49 = vmul.f32 1.442695, %v2055_v58  ;;  %v2136_v33 = vmul.f32 1.442695, %v2133_v2 }
 0x9ef   : >> { %v1910_v52 = vsel %vm841_vm7, %v4763_v27, 0.0  ;;  %v4765_v35 = vpop.eup %4764 }
 0x9f0   : >> { %4766 = vpow2.f32 %v2057_v49  ;;  %1911 = vadd.xlane.f32.xlu1 %v1910_v52  ;;  %v1839_v31 = vmul.f32 %v4765_v35, %v5794_v7 }
 0x9f2   : >> { %v1840_v21 = vpack.c.bf16 %v1839_v31, %v1838_v40 }
 0x9f3   : >> { %v2054_v38 = vpop.xlane.xlu2 %2053  ;;  %v1846_v55 = vpop.permute.xlu1 %1845 }
 0x9f4   : >> { %v2056_v45 = vsub.f32 %v2048_v54, %v2054_v38  ;;  %1858 = vmatpush.bf16.msra.mxu0 %v1846_v55  ;;  %v2134_v54 = vmul.f32 1.442695, %v2132_v56 }
 0x9f6   : >> { %v4767_v19 = vpop.eup %4766  ;;  %v2059_v20 = vmul.f32 1.442695, %v2056_v45 }
 0x9f7   : >> { %3857 = vmatmul.msk.bf16.vlgmr.msra.gmra.mxu0 %vm841_vm7, %v1840_v21  ;;  %v2061_v60 = vsel %vm841_vm7, %v4767_v19, 0.0 }
 0x9f8   : >> { %4768 = vpow2.f32 %v2059_v20  ;;  %2062 = vadd.xlane.f32.xlu2 %v2061_v60 }
 0x9fb   : >> { %v2205_v1 = vpop.xlane.xlu2 %2204 }
 0x9fc   : >> { %v2209_v25 = vsub.f32 %v2201_v39, %v2205_v1 }
 0x9fe   : >> { %v4769_v42 = vpop.eup %4768  ;;  %v2211_v7 = vmul.f32 1.442695, %v2209_v25 }
 0x9ff   : >> { %v2064_v30 = vsel %vm841_vm7, %v4769_v42, 0.0 }
 0xa00   : >> { %4770 = vpow2.f32 %v2211_v7  ;;  %2065 = vadd.xlane.f32.xlu0 %v2064_v30 }
 0xa01   : >> { %4772 = vpow2.f32 %v2134_v54 }
 0xa03   : >> { %v2208_v15 = vpop.xlane.xlu0 %2207 }
 0xa04   : >> { %v2210_v29 = vsub.f32 %v5829_v47, %v2208_v15 }
 0xa06   : >> { %v5854_v37 = vpop.eup %4770  ;;  %v2213_v23 = vmul.f32 1.442695, %v2210_v29 }
 0xa07   : >> { %v2215_v48 = vsel %vm841_vm7, %v5854_v37, 0.0  ;;  %v5858_v63 = vpop.eup %4772 }
 0xa08   : >> { %2216 = vadd.xlane.f32.xlu1 %v2215_v48  ;;  %v2138_v39 = vsel %vm841_vm7, %v5858_v63, 0.0  ;;  %4774 = vpow2.f32 %v2213_v23  ;;  %v1785_v23 = vpop.f32.mrf.mxu2 }
 0xa09   : >> { %4776 = vpow2.f32 %v2136_v33 }
 0xa0e   : >> { %v4775_v32 = vpop.eup %4774 }
 0xa0f   : >> { %v2218_v43 = vsel %vm841_vm7, %v4775_v32, 0.0  ;;  %v4777_v47 = vpop.eup %4776 }
 0xa10   : >> { %2076 = vrot.lane.b32.xlu2 %v6322_v9, %s4984_s21  ;;  %2139 = vadd.xlane.f32.xlu1 %v2138_v39  ;;  %v2141_v46 = vsel %vm841_vm7, %v4777_v47, 0.0  ;;  %v1787_v2 = vpop.f32.mrf.mxu2 }
 0xa14   : >> { %1999 = vrot.lane.b32.xlu0 %v6323_v62, %s4984_s21 }
 0xa1e   : >> { %v1986_v34 = vpop.xlane.xlu1 %1985 }
 0xa29   : >> { %2230 = vrot.lane.b32.xlu1 %v6324_v41, %s4984_s21 }
 0xa31   : >> { %2153 = vrot.lane.b32.xlu1 %v6325_v51, %s4984_s21 }
 0xa39   : >> { %2219 = vadd.xlane.f32.xlu2 %v2218_v43  ;;  %v4446_v43 = vld [vmem:[%s572_s18 + $0x18] sm:$0xff] }
 0xa3a   : >> { %2285 = vmatpush.bf16.msrb.mxu3 %v4446_v43  ;;  %v4087_v43 = vld [vmem:[%s5921_s26 + $0x188] sm:$0xf] }
 0xa3e   : >> { %2142 = vadd.xlane.f32.xlu0 %v2141_v46 }
 0xa5b   : >> { %v1909_v58 = vpop.xlane.xlu0 %1908 }
 0xa5c   : >> { %4778 = vrcp.f32 %v1909_v58  ;;  %v4443_v58 = vld [vmem:[%s572_s18] sm:$0xff] }
 0xa62   : >> { %v4779_v57 = vpop.eup %4778 }
 0xa63   : >> { %v1912_v44 = vpop.xlane.xlu1 %1911  ;;  %v1915_v49 = vmul.f32 %v4779_v57, %v5842_v0 }
 0xa64   : >> { %4780 = vrcp.f32 %v1912_v44 }
 0xa6a   : >> { %v4781_v16 = vpop.eup %4780 }
 0xa6b   : >> { %v1916_v59 = vmul.f32 %v4781_v16, %v4763_v27  ;;  %v2063_v18 = vpop.xlane.xlu2 %2062  ;;  %v1786_v16 = vadd.f32 %v1785_v23, %v5815_v22  ;;  %v2253_v22 = vperm.slane %v5576_v50, 7  ;;  %v4504_v23 = vld [vmem:[%s5921_s26 + $0x1bc] sm:$0xf0] }
 0xa6c   : >> { %4782 = vrcp.f32 %v2063_v18 }
 0xa6d   : >> { %v1917_v52 = vpack.c.bf16 %v1916_v59, %v1915_v49  ;;  %v1788_v49 = vadd.f32 %v1787_v2, %v5817_v61  ;;  %v4496_v2 = vld [vmem:[%s5921_s26 + $0x184] sm:$0xf] }
 0xa6f   : >> { %3859 = vmatmul.msk.bf16.vlgmr.msrb.gmra.mxu2 %vm841_vm7, %v1917_v52 }
 0xa72   : >> { %v4783_v31 = vpop.eup %4782 }
 0xa73   : >> { %v2077_v35 = vpop.permute.xlu2 %2076  ;;  %v2066_v40 = vpop.xlane.xlu0 %2065  ;;  %v2069_v55 = vmul.f32 %v4783_v31, %v4767_v19 }
 0xa74   : >> { %4784 = vrcp.f32 %v2066_v40  ;;  %2089 = vmatpush.bf16.msra.mxu2 %v2077_v35  ;;  %v1860_v51 = vpop.f32.mrf.mxu0 }
 0xa75   : >> { %4786 = vrcp.f32 %v1986_v34  ;;  %v4444_v34 = vld [vmem:[%s572_s18 + $0x8] sm:$0xff]  ;;  %v1865_v59 = vadd.f32 %v1860_v51, %v1786_v16  ;;  %v4081_v51 = vld [vmem:[%s5921_s26 + $0x1c0] sm:$0xf0] }
 0xa76   : >> { %4788 = vrcp.f32 %v5840_v24 }
 0xa7a   : >> { %v4785_v38 = vpop.eup %4784 }
 0xa7b   : >> { %v2070_v45 = vmul.f32 %v4785_v38, %v4769_v42  ;;  %v4787_v0 = vpop.eup %4786  ;;  %v2217_v56 = vpop.xlane.xlu1 %2216 }
 0xa7c   : >> { %v4789_v27 = vpop.eup %4788  ;;  %v1992_v20 = vmul.f32 %v4787_v0, %v5834_v17  ;;  %4790 = vrcp.f32 %v2217_v56  ;;  %v1862_v46 = vpop.f32.mrf.mxu0 }
 0xa7d   : >> { %v2071_v21 = vpack.c.bf16 %v2070_v45, %v2069_v55  ;;  %v1993_v60 = vmul.f32 %v4789_v27, %v5792_v36  ;;  %v1866_v18 = vadd.f32 %v1862_v46, %v1788_v49  ;;  %v4017_v49 = vld [vmem:[%s5921_s26 + $0x140] sm:$0xf0] }
 0xa7f   : >> { %3863 = vmatmul.msk.bf16.vlgmr.msra.gmra.mxu2 %vm841_vm7, %v2071_v21  ;;  %v1994_v25 = vpack.c.bf16 %v1993_v60, %v1992_v20 }
 0xa82   : >> { %v4791_v30 = vpop.eup %4790 }
 0xa83   : >> { %v2140_v7 = vpop.xlane.xlu1 %2139  ;;  %v2223_v17 = vmul.f32 %v4791_v30, %v5854_v37  ;;  %v4445_v37 = vld [vmem:[%s572_s18 + $0x10] sm:$0xff] }
 0xa84   : >> { %2286 = vmatpush.bf16.msrb.mxu3 %v4445_v37  ;;  %v4505_v37 = vld [vmem:[%s5921_s26 + $0x1c4] sm:$0xf0] }
 0xa85   : >> { %v4088_v46 = vor.u32 %v4505_v37, %v4087_v43  ;;  %v4097_v37 = vld [vmem:[%s5921_s26 + $0x1d0] sm:$0xf0] }
 0xa86   : >> { %v2000_v1 = vpop.permute.xlu0 %1999 }
 0xa87   : >> { %2012 = vmatpush.bf16.msrb.mxu0 %v2000_v1 }
 0xa88   : >> { %2287 = vmatpush.bf16.msrb.mxu3 %v4444_v34  ;;  %v4497_v34 = vld [vmem:[%s5921_s26 + $0x18c] sm:$0xf] }
 0xa8a   : >> { %3861 = vmatmul.msk.bf16.vlgmr.msrb.gmra.mxu0 %vm841_vm7, %v1994_v25 }
 0xa8c   : >> { %2288 = vmatpush.bf16.msrb.mxu3 %v4443_v58  ;;  %v4089_v58 = vld [vmem:[%s5921_s26 + $0x1c8] sm:$0xf0] }
 0xa9b   : >> { %v2231_v19 = vpop.permute.xlu1 %2230 }
 0xa9c   : >> { %2243 = vmatpush.bf16.msrb.mxu2 %v2231_v19 }
 0xaa0   : >> { %2737 = vmatpush.bf16.msra.mxu2 %v4088_v46  ;;  %v4507_v46 = vld [vmem:[%s5921_s26 + $0x1d4] sm:$0xf0] }
 0xaa3   : >> { %v2154_v42 = vpop.permute.xlu1 %2153 }
 0xaa4   : >> { %2166 = vmatpush.bf16.msra.mxu0 %v2154_v42 }
 0xaac   : >> { %v2220_v24 = vpop.xlane.xlu2 %2219 }
 0xaad   : >> { %4792 = vrcp.f32 %v2220_v24 }
 0xaae   : >> { %4794 = vrcp.f32 %v2140_v7 }
 0xab1   : >> { %v2143_v54 = vpop.xlane.xlu0 %2142 }
 0xab2   : >> { %4796 = vrcp.f32 %v2143_v54 }
 0xab3   : >> { %v4793_v36 = vpop.eup %4792 }
 0xab4   : >> { %v2224_v48 = vmul.f32 %v4793_v36, %v4775_v32  ;;  %v4795_v39 = vpop.eup %4794 }
 0xab5   : >> { %v2146_v15 = vmul.f32 %v4795_v39, %v5858_v63 }
 0xab6   : >> { %v2225_v9 = vpack.c.bf16 %v2224_v48, %v2223_v17 }
 0xab8   : >> { %v4797_v62 = vpop.eup %4796  ;;  %3867 = vmatmul.msk.bf16.vlgmr.msrb.gmra.mxu2 %vm841_vm7, %v2225_v9 }
 0xab9   : >> { %v2147_v29 = vmul.f32 %v4797_v62, %v4777_v47 }
 0xabb   : >> { %v2148_v41 = vpack.c.bf16 %v2147_v29, %v2146_v15 }
 0xabd   : >> { %3865 = vmatmul.msk.bf16.vlgmr.msra.gmra.mxu0 %vm841_vm7, %v2148_v41  ;;  %v4079_v41 = vld [vmem:[%s5921_s26 + $0x180] sm:$0xf] }
 0xaf2   : >> { %v1937_v33 = vpop.f32.mrf.mxu2 }
 0xaf3   : >> { %v1942_v52 = vadd.f32 %v1937_v33, %v1865_v59  ;;  %v4080_v33 = vor.u32 %v4504_v23, %v4079_v41  ;;  %v4023_v59 = vld [vmem:[%s5921_s26 + $0x108] sm:$0xf]  ;;  %v4095_v23 = vld [vmem:[%s5921_s26 + $0x190] sm:$0xf] }
 0xaf5   : >> { %2709 = vmatpush.bf16.msrb.mxu0 %v4080_v33  ;;  %v4498_v33 = vld [vmem:[%s5921_s26 + $0x194] sm:$0xf] }
 0xafa   : >> { %v1939_v32 = vpop.f32.mrf.mxu2 }
 0xafb   : >> { %v1943_v40 = vadd.f32 %v1939_v32, %v1866_v18  ;;  %v4084_v32 = vor.u32 %v4496_v2, %v4081_v51  ;;  %v4489_v18 = vld [vmem:[%s5921_s26 + $0x144] sm:$0xf0]  ;;  %v4506_v2 = vld [vmem:[%s5921_s26 + $0x1cc] sm:$0xf0] }
 0xafc   : >> { %v4096_v43 = vor.u32 %v4506_v2, %v4095_v23  ;;  %v4459_v23 = vld [vmem:[%s5921_s26 + $0x54] sm:$0xf0]  ;;  %v4451_v2 = vld [vmem:[%s5921_s26 + $0x1c] sm:$0xf] }
 0xafd   : >> { %2723 = vmatpush.bf16.msrb.mxu1 %v4084_v32  ;;  %v4103_v32 = vld [vmem:[%s5921_s26 + $0x198] sm:$0xf] }
 0xb02   : >> { %v2091_v63 = vpop.f32.mrf.mxu2 }
 0xb07   : >> { %v2014_v44 = vpop.f32.mrf.mxu0 }
 0xb08   : >> { %v2019_v31 = vadd.f32 %v2014_v44, %v1942_v52  ;;  %v4092_v44 = vor.u32 %v4497_v34, %v4089_v58  ;;  %v4100_v34 = vor.u32 %v4498_v33, %v4097_v37  ;;  %v4104_v58 = vor.u32 %v4507_v46, %v4103_v32  ;;  %v3913_v33 = vld [vmem:[%s5921_s26 + $0x58] sm:$0xf0] }
 0xb09   : >> { %v3916_v46 = vor.u32 %v4451_v2, %v3913_v33  ;;  %v4469_v2 = vld [vmem:[%s5921_s26 + $0xac] sm:$0xf] }
 0xb0a   : >> { %v2093_v57 = vpop.f32.mrf.mxu2  ;;  %v2096_v45 = vadd.f32 %v2091_v63, %v2019_v31  ;;  %v4015_v63 = vld [vmem:[%s5921_s26 + $0x100] sm:$0xf]  ;;  %2751 = vmatpush.bf16.msra.mxu3 %v4092_v44  ;;  %v4481_v31 = vld [vmem:[%s5921_s26 + $0x10c] sm:$0xf]  ;;  %v4499_v44 = vld [vmem:[%s5921_s26 + $0x19c] sm:$0xf] }
 0xb0b   : >> { %v3993_v33 = vld [vmem:[%s5921_s26 + $0xe8] sm:$0xf0] }
 0xb0f   : >> { %v2016_v47 = vpop.f32.mrf.mxu0 }
 0xb10   : >> { %v2020_v55 = vadd.f32 %v2016_v47, %v1943_v40  ;;  %v4488_v47 = vld [vmem:[%s5921_s26 + $0x13c] sm:$0xf0]  ;;  %v4024_v40 = vor.u32 %v4489_v18, %v4023_v59  ;;  %v4490_v59 = vld [vmem:[%s5921_s26 + $0x14c] sm:$0xf0]  ;;  %v4482_v18 = vld [vmem:[%s5921_s26 + $0x114] sm:$0xf] }
 0xb11   : >> { %v4016_v16 = vor.u32 %v4488_v47, %v4015_v63  ;;  %v4105_v63 = vld [vmem:[%s5921_s26 + $0x1d8] sm:$0xf0]  ;;  %v4031_v47 = vld [vmem:[%s5921_s26 + $0x110] sm:$0xf] }
 0xb12   : >> { %v2097_v0 = vadd.f32 %v2093_v57, %v2020_v55  ;;  %v4480_v57 = vld [vmem:[%s5921_s26 + $0x104] sm:$0xf]  ;;  %2738 = vmatpush.bf16.msra.mxu2 %v4024_v40  ;;  %v4033_v40 = vld [vmem:[%s5921_s26 + $0x150] sm:$0xf0] }
 0xb13   : >> { %2710 = vmatpush.bf16.msrb.mxu0 %v4016_v16 }
 0xb3a   : >> { %v2168_v35 = vpop.f32.mrf.mxu0 }
 0xb3b   : >> { %v2245_v38 = vpop.f32.mrf.mxu2  ;;  %v2173_v21 = vadd.f32 %v2168_v35, %v2096_v45  ;;  %v4020_v35 = vor.u32 %v4480_v57, %v4017_v49  ;;  %v4108_v49 = vor.u32 %v4499_v44, %v4105_v63 }
 0xb3d   : >> { %v2250_v1 = vadd.f32 %v2245_v38, %v2173_v21  ;;  %v4025_v38 = vld [vmem:[%s5921_s26 + $0x148] sm:$0xf0]  ;;  %2724 = vmatpush.bf16.msrb.mxu1 %v4020_v35  ;;  %v3951_v21 = vld [vmem:[%s5921_s26 + $0x80] sm:$0xf]  ;;  %v4032_v35 = vor.u32 %v4490_v59, %v4031_v47 }
 0xb3e   : >> { %v4028_v45 = vor.u32 %v4481_v31, %v4025_v38  ;;  %v4039_v31 = vld [vmem:[%s5921_s26 + $0x118] sm:$0xf]  ;;  %v4807_v47 = vld [vmem:[%s5166_s13 + $0x8] sm:$0x7f] }
 0xb3f   : >> { %v4491_v38 = vld [vmem:[%s5921_s26 + $0x154] sm:$0xf0] }
 0xb40   : >> { %2752 = vmatpush.bf16.msra.mxu3 %v4028_v45  ;;  %v4040_v45 = vor.u32 %v4491_v38, %v4039_v31  ;;  %v4111_v31 = vld [vmem:[%s5921_s26 + $0x1a0] sm:$0xf] }
 0xb41   : >> { %v4508_v38 = vld [vmem:[%s5921_s26 + $0x1dc] sm:$0xf0] }
 0xb42   : >> { %v2170_v27 = vpop.f32.mrf.mxu0 }
 0xb43   : >> { %v2174_v20 = vadd.f32 %v2170_v27, %v2097_v0  ;;  %v2247_v60 = vpop.f32.mrf.mxu2  ;;  %v4472_v0 = vld [vmem:[%s5921_s26 + $0xbc] sm:$0xf0]  ;;  %v4464_v27 = vld [vmem:[%s5921_s26 + $0x84] sm:$0xf] }
 0xb45   : >> { %v2251_v25 = vadd.f32 %v2247_v60, %v2174_v20  ;;  %v3952_v60 = vor.u32 %v4472_v0, %v3951_v21  ;;  %v4483_v21 = vld [vmem:[%s5921_s26 + $0x11c] sm:$0xf] }
 0xb46   : >> { %v4041_v0 = vld [vmem:[%s5921_s26 + $0x158] sm:$0xf0] }
 0xb47   : >> { %v2252_v56 = vpack.c.bf16 %v2251_v25, %v2250_v1  ;;  %v3953_v1 = vld [vmem:[%s5921_s26 + $0xc0] sm:$0xf0]  ;;  %v3959_v25 = vld [vmem:[%s5921_s26 + $0x88] sm:$0xf]  ;;  %2711 = vmatpush.bf16.msrb.mxu0 %v3952_v60  ;;  %v4044_v60 = vor.u32 %v4483_v21, %v4041_v0 }
 0xb48   : >> { %v4509_v0 = vld [vmem:[%s5921_s26 + $0x1e4] sm:$0xf0] }
 0xb49   : >> { %3884 = vmatmul.msk.bf16.vlgmr.msrb.gmra.mxu3 %vm761_vm6, %v2252_v56  ;;  %v3956_v56 = vor.u32 %v4464_v27, %v3953_v1  ;;  %v3967_v1 = vld [vmem:[%s5921_s26 + $0x90] sm:$0xf] }
 0xb4b   : >> { %2725 = vmatpush.bf16.msrb.mxu1 %v3956_v56  ;;  %v4466_v56 = vld [vmem:[%s5921_s26 + $0x94] sm:$0xf] }
 0xbcc   : >> { %v2290_v61 = vpop.f32.mrf.mxu3 }
 0xbcd   : >> { %v2291_v7 = vadd.f32 %v2290_v61, %v2253_v22  ;;  %v4465_v61 = vld [vmem:[%s5921_s26 + $0x8c] sm:$0xf] }
 0xbcf   : >> { %v2295_v19 = vadd.f32 %v2291_v7, %v5601_v26  ;;  %v3961_v7 = vld [vmem:[%s5921_s26 + $0xc8] sm:$0xf0] }
 0xbd1   : >> { %v2297_v42 = vsel %vm761_vm6, %v2295_v19, 0.0 }
 0xbd2   : >> { %2298 = vadd.xlane.f32.xlu2 %v2297_v42  ;;  %v3964_v42 = vor.u32 %v4465_v61, %v3961_v7  ;;  %v3975_v61 = vld [vmem:[%s5921_s26 + $0x98] sm:$0xf] }
 0xbd3   : >> { %v4475_v7 = vld [vmem:[%s5921_s26 + $0xd4] sm:$0xf0] }
 0xbd4   : >> { %v2292_v24 = vpop.f32.mrf.mxu3  ;;  %2753 = vmatpush.bf16.msra.mxu3 %v3964_v42 }
 0xbd5   : >> { %v2293_v30 = vadd.f32 %v2292_v24, %v2253_v22  ;;  %v4473_v22 = vld [vmem:[%s5921_s26 + $0xc4] sm:$0xf0]  ;;  %v3887_v24 = vld [vmem:[%s5921_s26] sm:$0xf] }
 0xbd7   : >> { %v2296_v54 = vadd.f32 %v2293_v30, %v5603_v28  ;;  %v4456_v30 = vld [vmem:[%s5921_s26 + $0x3c] sm:$0xf0] }
 0xbd9   : >> { %v2300_v36 = vsel %vm761_vm6, %v2296_v54, 0.0 }
 0xbda   : >> { %2301 = vadd.xlane.f32.xlu1 %v2300_v36  ;;  %v3888_v36 = vor.u32 %v4456_v30, %v3887_v24  ;;  %v4467_v30 = vld [vmem:[%s5921_s26 + $0x9c] sm:$0xf] }
 0xbdc   : >> { %2712 = vmatpush.bf16.msrb.mxu0 %v3888_v36  ;;  %v3976_v36 = vor.u32 %v4475_v7, %v3975_v61 }
 0xbe0   : >> { %2765 = vmatpush.bf16.msra.mxu0 %v4096_v43 }
 0xbe4   : >> { %2766 = vmatpush.bf16.msra.mxu0 %v4032_v35 }
 0xc45   : >> { %v2299_v17 = vpop.xlane.xlu2 %2298 }
 0xc46   : >> { %v2303_v48 = vmul.f32 %v2299_v17, %v5569_v53  ;;  %v3889_v17 = vld [vmem:[%s5921_s26 + $0x40] sm:$0xf0] }
 0xc48   : >> { %v5904_v50 = vsub.f32 %v2295_v19, %v2303_v48  ;;  %v3960_v19 = vor.u32 %v4473_v22, %v3959_v25  ;;  %v3895_v48 = vld [vmem:[%s5921_s26 + $0x8] sm:$0xf]  ;;  %v4474_v25 = vld [vmem:[%s5921_s26 + $0xcc] sm:$0xf0]  ;;  %v3969_v22 = vld [vmem:[%s5921_s26 + $0xd0] sm:$0xf0] }
 0xc49   : >> { %v3968_v42 = vor.u32 %v4474_v25, %v3967_v1  ;;  %v3972_v24 = vor.u32 %v4466_v56, %v3969_v22  ;;  %v4112_v1 = vor.u32 %v4508_v38, %v4111_v31  ;;  %v4047_v56 = vld [vmem:[%s5921_s26 + $0x120] sm:$0xf]  ;;  %v4502_v31 = vld [vmem:[%s5921_s26 + $0x1b4] sm:$0xf] }
 0xc4a   : >> { %v2307_v26 = vmul.f32 %v5904_v50, %v5904_v50  ;;  %2739 = vmatpush.bf16.msra.mxu2 %v3960_v19  ;;  %v4492_v22 = vld [vmem:[%s5921_s26 + $0x15c] sm:$0xf0]  ;;  %v4129_v38 = vld [vmem:[%s5921_s26 + $0x1f0] sm:$0xf0] }
 0xc4b   : >> { %2767 = vmatpush.bf16.msra.mxu0 %v3968_v42  ;;  %v4049_v42 = vld [vmem:[%s5921_s26 + $0x160] sm:$0xf0] }
 0xc4c   : >> { %v2309_v39 = vsel %vm761_vm6, %v2307_v26, 0.0  ;;  %v4457_v26 = vld [vmem:[%s5921_s26 + $0x44] sm:$0xf0] }
 0xc4d   : >> { %v2302_v9 = vpop.xlane.xlu1 %2301  ;;  %2310 = vadd.xlane.f32.xlu0 %v2309_v39 }
 0xc4e   : >> { %v2304_v62 = vmul.f32 %v2302_v9, %v5569_v53  ;;  %v3896_v9 = vor.u32 %v4457_v26, %v3895_v48  ;;  %v3903_v48 = vld [vmem:[%s5921_s26 + $0x10] sm:$0xf] }
 0xc4f   : >> { %v4458_v26 = vld [vmem:[%s5921_s26 + $0x4c] sm:$0xf0] }
 0xc50   : >> { %v5910_v15 = vsub.f32 %v2296_v54, %v2304_v62  ;;  %v4448_v54 = vld [vmem:[%s5921_s26 + $0x4] sm:$0xf]  ;;  %v4449_v62 = vld [vmem:[%s5921_s26 + $0xc] sm:$0xf]  ;;  %2740 = vmatpush.bf16.msra.mxu2 %v3896_v9 }
 0xc51   : >> { %v3892_v39 = vor.u32 %v4448_v54, %v3889_v17  ;;  %v3977_v54 = vld [vmem:[%s5921_s26 + $0xd8] sm:$0xf0] }
 0xc52   : >> { %v2308_v28 = vmul.f32 %v5910_v15, %v5910_v15  ;;  %v3980_v17 = vor.u32 %v4467_v30, %v3977_v54  ;;  %v4493_v30 = vld [vmem:[%s5921_s26 + $0x164] sm:$0xf0]  ;;  %v4485_v54 = vld [vmem:[%s5921_s26 + $0x12c] sm:$0xf] }
 0xc53   : >> { %2726 = vmatpush.bf16.msrb.mxu1 %v3892_v39  ;;  %v4450_v39 = vld [vmem:[%s5921_s26 + $0x14] sm:$0xf] }
 0xc54   : >> { %v2312_v29 = vsel %vm761_vm6, %v2308_v28, 0.0  ;;  %v3897_v28 = vld [vmem:[%s5921_s26 + $0x48] sm:$0xf0]  ;;  %2793 = vmatpush.bf16.msrb.mxu2 %v4104_v58 }
 0xc55   : >> { %2313 = vadd.xlane.f32.xlu2 %v2312_v29  ;;  %v3900_v41 = vor.u32 %v4449_v62, %v3897_v28  ;;  %v3905_v62 = vld [vmem:[%s5921_s26 + $0x50] sm:$0xf0]  ;;  %v3911_v28 = vld [vmem:[%s5921_s26 + $0x18] sm:$0xf] }
 0xc56   : >> { %v3908_v37 = vor.u32 %v4450_v39, %v3905_v62  ;;  %v3912_v32 = vor.u32 %v4459_v23, %v3911_v28  ;;  %v4476_v39 = vld [vmem:[%s5921_s26 + $0xdc] sm:$0xf0]  ;;  %v4468_v28 = vld [vmem:[%s5921_s26 + $0xa4] sm:$0xf]  ;;  %v4477_v23 = vld [vmem:[%s5921_s26 + $0xe4] sm:$0xf0] }
 0xc57   : >> { %2754 = vmatpush.bf16.msra.mxu3 %v3900_v41  ;;  %2779 = vmatpush.bf16.msra.mxu1 %v4100_v34  ;;  %v3904_v41 = vor.u32 %v4458_v26, %v3903_v48  ;;  %v3983_v26 = vld [vmem:[%s5921_s26 + $0xa0] sm:$0xf] }
 0xc58   : >> { %2794 = vmatpush.bf16.msrb.mxu2 %v4040_v45  ;;  %v4119_v45 = vld [vmem:[%s5921_s26 + $0x1a8] sm:$0xf] }
 0xc59   : >> { %2768 = vmatpush.bf16.msra.mxu0 %v3904_v41  ;;  %v4120_v61 = vor.u32 %v4509_v0, %v4119_v45  ;;  %v3991_v41 = vld [vmem:[%s5921_s26 + $0xa8] sm:$0xf]  ;;  %v4503_v45 = vld [vmem:[%s5921_s26 + $0x1bc] sm:$0xf] }
 0xc5a   : >> { %v4137_v0 = vld [vmem:[%s5921_s26 + $0x1f8] sm:$0xf0] }
 0xc5b   : >> { %2807 = vmatpush.bf16.msrb.mxu3 %v4108_v49  ;;  %v2341_v49 = vperm.slane %v4807_v47, 2 }
 0xc5c   : >> { %2795 = vmatpush.bf16.msrb.mxu2 %v3976_v36  ;;  %v4057_v36 = vld [vmem:[%s5921_s26 + $0x168] sm:$0xf0] }
 0xc5d   : >> { %v4060_v62 = vor.u32 %v4485_v54, %v4057_v36 }
 0xc5f   : >> { %2808 = vmatpush.bf16.msrb.mxu3 %v4044_v60 }
 0xc60   : >> { %2796 = vmatpush.bf16.msrb.mxu2 %v3912_v32  ;;  %v4460_v32 = vld [vmem:[%s5921_s26 + $0x5c] sm:$0xf0] }
 0xc63   : >> { %2809 = vmatpush.bf16.msrb.mxu3 %v3980_v17  ;;  %v4048_v17 = vor.u32 %v4492_v22, %v4047_v56  ;;  %v4140_v22 = vor.u32 %v4503_v45, %v4137_v0 }
 0xc67   : >> { %2810 = vmatpush.bf16.msrb.mxu3 %v3916_v46  ;;  %v3992_v46 = vor.u32 %v4477_v23, %v3991_v41  ;;  %v4471_v41 = vld [vmem:[%s5921_s26 + $0xbc] sm:$0xf] }
 0xc68   : >> { %v4009_v23 = vld [vmem:[%s5921_s26 + $0xf8] sm:$0xf0] }
 0xcc0   : >> { %v2311_v52 = vpop.xlane.xlu0 %2310 }
 0xcc1   : >> { %v2315_v55 = vmul.f32 %v2311_v52, %v5569_v53 }
 0xcc3   : >> { %v5943_v20 = vadd.f32 1e-05, %v2315_v55  ;;  %v4036_v55 = vor.u32 %v4482_v18, %v4033_v40  ;;  %v2344_v18 = vperm.slane %v4807_v47, 3  ;;  %v4461_v47 = vld [vmem:[%s5921_s26 + $0x64] sm:$0xf0] }
 0xcc5   : >> { %4798 = vrsqrt.f32 %v5943_v20  ;;  %2780 = vmatpush.bf16.msra.mxu1 %v4036_v55  ;;  %vm2325_vm0 = vweird.f32 %v5943_v20  ;;  %v4500_v55 = vld [vmem:[%s5921_s26 + $0x1a4] sm:$0xf] }
 0xcc8   : >> { %v2314_v29 = vpop.xlane.xlu2 %2313 }
 0xcc9   : >> { %v2316_v51 = vmul.f32 %v2314_v29, %v5569_v53  ;;  %2781 = vmatpush.bf16.msra.mxu1 %v3972_v24  ;;  %v4055_v24 = vld [vmem:[%s5921_s26 + $0x128] sm:$0xf] }
 0xccb   : >> { %v5969_v57 = vpop.eup %4798  ;;  %v5971_v16 = vadd.f32 1e-05, %v2316_v51 }
 0xccc   : >> { %v2320_v52 = vmul.f32 %v5969_v57, %v5943_v20  ;;  %vm2326_vm15 = vweird.f32 %v5969_v57 }
 0xccd   : >> { %4800 = vrsqrt.f32 %v5971_v16  ;;  %vm2327_vm1 = vmor %vm2325_vm0, %vm2326_vm15  ;;  %2782 = vmatpush.bf16.msra.mxu1 %v3908_v37  ;;  %vm2335_vm3 = vweird.f32 %v5971_v16  ;;  %v3919_v37 = vld [vmem:[%s5921_s26 + $0x20] sm:$0xf] }
 0xcce   : >> { %v2321_v27 = vmul.f32 %v5969_v57, %v2320_v52 }
 0xcd0   : >> { %v2322_v19 = vmul.f32 0.5, %v2321_v27  ;;  %v4501_v27 = vld [vmem:[%s5921_s26 + $0x1ac] sm:$0xf] }
 0xcd2   : >> { %v2323_v9 = vsub.f32 1.5, %v2322_v19  ;;  %v4484_v19 = vld [vmem:[%s5921_s26 + $0x124] sm:$0xf] }
 0xcd3   : >> { %v4801_v29 = vpop.eup %4800  ;;  %v4052_v48 = vor.u32 %v4484_v19, %v4049_v42  ;;  %v4071_v19 = vld [vmem:[%s5921_s26 + $0x138] sm:$0xf] }
 0xcd4   : >> { %v2324_v51 = vmul.f32 %v5969_v57, %v2323_v9  ;;  %v2330_v43 = vmul.f32 %v4801_v29, %v5971_v16  ;;  %vm2336_vm2 = vweird.f32 %v4801_v29  ;;  %v4056_v9 = vor.u32 %v4493_v30, %v4055_v24  ;;  %v4495_v42 = vld [vmem:[%s5921_s26 + $0x174] sm:$0xf0]  ;;  %v4487_v24 = vld [vmem:[%s5921_s26 + $0x13c] sm:$0xf] }
 0xcd5   : >> { %vm2337_vm4 = vmor %vm2335_vm3, %vm2336_vm2  ;;  %v4073_v30 = vld [vmem:[%s5921_s26 + $0x178] sm:$0xf0] }
 0xcd6   : >> { %v2331_v34 = vmul.f32 %v4801_v29, %v2330_v43  ;;  %v2328_v58 = vsel %vm2327_vm1, %v5969_v57, %v2324_v51  ;;  %v3984_v51 = vor.u32 %v4476_v39, %v3983_v26  ;;  %v4072_v26 = vor.u32 %v4495_v42, %v4071_v19  ;;  %v4546_v19 = vld [vmem:[%s6096_s27 + $0x10c] sm:$0xf] }
 0xcd7   : >> { %v2339_v20 = vmul.f32 %v2328_v58, %v5904_v50  ;;  %v4113_v50 = vld [vmem:[%s5921_s26 + $0x1e0] sm:$0xf0]  ;;  %v4076_v39 = vor.u32 %v4487_v24, %v4073_v30  ;;  %v4297_v42 = vld [vmem:[%s6096_s27 + $0x148] sm:$0xf0] }
 0xcd8   : >> { %v2332_v44 = vmul.f32 0.5, %v2331_v34  ;;  %v4116_v25 = vor.u32 %v4500_v55, %v4113_v50  ;;  %v3996_v34 = vor.u32 %v4469_v2, %v3993_v33  ;;  %v4452_v58 = vld [vmem:[%s5921_s26 + $0x24] sm:$0xf]  ;;  %v4135_v55 = vld [vmem:[%s5921_s26 + $0x1b8] sm:$0xf] }
 0xcd9   : >> { %v2342_v52 = vmul.f32 %v2341_v49, %v2339_v20  ;;  %v3929_v20 = vld [vmem:[%s5921_s26 + $0x68] sm:$0xf0]  ;;  %v4511_v50 = vld [vmem:[%s5921_s26 + $0x1f4] sm:$0xf0] }
 0xcda   : >> { %v2333_v63 = vsub.f32 1.5, %v2332_v44  ;;  %v3921_v44 = vld [vmem:[%s5921_s26 + $0x60] sm:$0xf0]  ;;  %v4136_v56 = vor.u32 %v4511_v50, %v4135_v55  ;;  %v4562_v55 = vld [vmem:[%s6096_s27 + $0x18c] sm:$0xf] }
 0xcdb   : >> { %v6014_v21 = vadd.f32 %v2344_v18, %v2342_v52  ;;  %v4510_v52 = vld [vmem:[%s5921_s26 + $0x1ec] sm:$0xf0]  ;;  %v4361_v50 = vld [vmem:[%s6096_s27 + $0x1c8] sm:$0xf0] }
 0xcdc   : >> { %v2334_v59 = vmul.f32 %v4801_v29, %v2333_v63  ;;  %v3927_v63 = vld [vmem:[%s5921_s26 + $0x28] sm:$0xf] }
 0xcde   : >> { %v2338_v57 = vsel %vm2337_vm4, %v4801_v29, %v2334_v59  ;;  %v3985_v29 = vld [vmem:[%s5921_s26 + $0xe0] sm:$0xf0]  ;;  %v3920_v59 = vor.u32 %v4460_v32, %v3919_v37  ;;  %v4012_v32 = vor.u32 %v4471_v41, %v4009_v23 }
 0xcdf   : >> { %v2340_v35 = vmul.f32 %v2338_v57, %v5910_v15  ;;  %v4121_v15 = vld [vmem:[%s5921_s26 + $0x1e8] sm:$0xf0]  ;;  %v3988_v43 = vor.u32 %v4468_v28, %v3985_v29  ;;  %v3924_v57 = vor.u32 %v4452_v58, %v3921_v44  ;;  %v4007_v28 = vld [vmem:[%s5921_s26 + $0xb8] sm:$0xf] }
 0xce0   : >> { %v4124_v7 = vor.u32 %v4501_v27, %v4121_v15  ;;  %v4132_v15 = vor.u32 %v4502_v31, %v4129_v38  ;;  %v4479_v29 = vld [vmem:[%s5921_s26 + $0xf4] sm:$0xf0]  ;;  %v4359_v31 = vld [vmem:[%s6096_s27 + $0x188] sm:$0xf] }
 0xce1   : >> { %v2343_v40 = vmul.f32 %v2341_v49, %v2340_v35  ;;  %v4453_v49 = vld [vmem:[%s5921_s26 + $0x2c] sm:$0xf]  ;;  %v3928_v35 = vor.u32 %v4461_v47, %v3927_v63  ;;  %v4008_v37 = vor.u32 %v4479_v29, %v4007_v28  ;;  %v3943_v58 = vld [vmem:[%s5921_s26 + $0x38] sm:$0xf]  ;;  %v4455_v63 = vld [vmem:[%s5921_s26 + $0x3c] sm:$0xf] }
 0xce2   : >> { %v4463_v44 = vld [vmem:[%s5921_s26 + $0x74] sm:$0xf0]  ;;  %v3945_v47 = vld [vmem:[%s5921_s26 + $0x78] sm:$0xf0]  ;;  %v4570_v38 = vld [vmem:[%s6096_s27 + $0x1c4] sm:$0xf0] }
 0xce3   : >> { %v6016_v16 = vadd.f32 %v2344_v18, %v2343_v40  ;;  %v4127_v18 = vld [vmem:[%s5921_s26 + $0x1b0] sm:$0xf]  ;;  %v3932_v40 = vor.u32 %v4453_v49, %v3929_v20  ;;  %v4530_v28 = vld [vmem:[%s6096_s27 + $0x8c] sm:$0xf] }
 0xce4   : >> { %v4128_v27 = vor.u32 %v4510_v52, %v4127_v18  ;;  %v3944_v18 = vor.u32 %v4463_v44, %v3943_v58  ;;  %v3948_v52 = vor.u32 %v4455_v63, %v3945_v47  ;;  %v4233_v29 = vld [vmem:[%s6096_s27 + $0xc8] sm:$0xf0]  ;;  %v4563_v58 = vld [vmem:[%s6096_s27 + $0x194] sm:$0xf]  ;;  %v4167_v63 = vld [vmem:[%s6096_s27 + $0x8] sm:$0xf] }
 0xce5   : >> { %v6023_v60 = vpack.c.bf16 %v6016_v16, %v6014_v21  ;;  %v4369_v44 = vld [vmem:[%s6096_s27 + $0x1d0] sm:$0xf0]  ;;  %v4522_v47 = vld [vmem:[%s6096_s27 + $0x44] sm:$0xf0] }
 0xce7   : >> { %4141 = vmatmul.msk.bf16.vlgmr.msrb.gmra.mxu0 %vm761_vm6, %v6023_v60  ;;  %4142 = vmatmul.msk.bf16.vlgmr.msrb.gmra.mxu1 %vm761_vm6, %v6023_v60 }
 0xce8   : >> { %4143 = vmatmul.msk.bf16.vlgmr.msra.gmra.mxu2 %vm761_vm6, %v6023_v60  ;;  %4144 = vmatmul.msk.bf16.vlgmr.msra.gmra.mxu3 %vm761_vm6, %v6023_v60 }
 0xce9   : >> { %2821 = vmatpush.bf16.msrb.mxu0 %v4112_v1  ;;  %2835 = vmatpush.bf16.msrb.mxu1 %v4116_v25  ;;  %v4063_v1 = vld [vmem:[%s5921_s26 + $0x130] sm:$0xf] }
 0xcea   : >> { %2849 = vmatpush.bf16.msra.mxu2 %v4120_v61  ;;  %2863 = vmatpush.bf16.msra.mxu3 %v4124_v7  ;;  %v4494_v25 = vld [vmem:[%s5921_s26 + $0x16c] sm:$0xf0]  ;;  %v4486_v61 = vld [vmem:[%s5921_s26 + $0x134] sm:$0xf] }
 0xceb   : >> { %v4065_v7 = vld [vmem:[%s5921_s26 + $0x170] sm:$0xf0]  ;;  %v4064_v54 = vor.u32 %v4494_v25, %v4063_v1  ;;  %v4287_v1 = vld [vmem:[%s6096_s27 + $0x100] sm:$0xf] }
 0xcec   : >> { %v4068_v36 = vor.u32 %v4486_v61, %v4065_v7  ;;  %v4553_v25 = vld [vmem:[%s6096_s27 + $0x13c] sm:$0xf0]  ;;  %v4295_v61 = vld [vmem:[%s6096_s27 + $0x108] sm:$0xf] }
 0xced   : >> { %2822 = vmatpush.bf16.msrb.mxu0 %v4048_v17  ;;  %2836 = vmatpush.bf16.msrb.mxu1 %v4052_v48  ;;  %v3999_v17 = vld [vmem:[%s5921_s26 + $0xb0] sm:$0xf]  ;;  %v4554_v7 = vld [vmem:[%s6096_s27 + $0x144] sm:$0xf0]  ;;  %v4288_v24 = vor.u32 %v4553_v25, %v4287_v1  ;;  %v4305_v1 = vld [vmem:[%s6096_s27 + $0x150] sm:$0xf0] }
 0xcee   : >> { %2850 = vmatpush.bf16.msra.mxu2 %v4056_v9  ;;  %2864 = vmatpush.bf16.msra.mxu3 %v4060_v62  ;;  %v4478_v48 = vld [vmem:[%s5921_s26 + $0xec] sm:$0xf0]  ;;  %v4470_v9 = vld [vmem:[%s5921_s26 + $0xb4] sm:$0xf] }
 0xcef   : >> { %v4001_v62 = vld [vmem:[%s5921_s26 + $0xf0] sm:$0xf0]  ;;  %v4000_v2 = vor.u32 %v4478_v48, %v3999_v17  ;;  %v4223_v17 = vld [vmem:[%s6096_s27 + $0x80] sm:$0xf] }
 0xcf0   : >> { %v4004_v33 = vor.u32 %v4470_v9, %v4001_v62  ;;  %v4537_v48 = vld [vmem:[%s6096_s27 + $0xbc] sm:$0xf0]  ;;  %v4231_v9 = vld [vmem:[%s6096_s27 + $0x88] sm:$0xf] }
 0xcf1   : >> { %2823 = vmatpush.bf16.msrb.mxu0 %v3984_v51  ;;  %2837 = vmatpush.bf16.msrb.mxu1 %v3988_v43  ;;  %v3935_v51 = vld [vmem:[%s5921_s26 + $0x30] sm:$0xf]  ;;  %v4538_v62 = vld [vmem:[%s6096_s27 + $0xc4] sm:$0xf0]  ;;  %v4224_v41 = vor.u32 %v4537_v48, %v4223_v17  ;;  %v4241_v48 = vld [vmem:[%s6096_s27 + $0xd0] sm:$0xf0] }
 0xcf2   : >> { %2851 = vmatpush.bf16.msra.mxu2 %v3992_v46  ;;  %2865 = vmatpush.bf16.msra.mxu3 %v3996_v34  ;;  %v4462_v43 = vld [vmem:[%s5921_s26 + $0x6c] sm:$0xf0]  ;;  %v4454_v46 = vld [vmem:[%s5921_s26 + $0x34] sm:$0xf] }
 0xcf3   : >> { %v3937_v34 = vld [vmem:[%s5921_s26 + $0x70] sm:$0xf0]  ;;  %v3936_v49 = vor.u32 %v4462_v43, %v3935_v51  ;;  %v4159_v51 = vld [vmem:[%s6096_s27] sm:$0xf] }
 0xcf4   : >> { %v3940_v20 = vor.u32 %v4454_v46, %v3937_v34  ;;  %v4521_v43 = vld [vmem:[%s6096_s27 + $0x3c] sm:$0xf0]  ;;  %v4367_v46 = vld [vmem:[%s6096_s27 + $0x190] sm:$0xf] }
 0xcf5   : >> { %2824 = vmatpush.bf16.msrb.mxu0 %v3920_v59  ;;  %2838 = vmatpush.bf16.msrb.mxu1 %v3924_v57  ;;  %v4351_v59 = vld [vmem:[%s6096_s27 + $0x180] sm:$0xf]  ;;  %v4571_v34 = vld [vmem:[%s6096_s27 + $0x1cc] sm:$0xf0] }
 0xcf6   : >> { %2852 = vmatpush.bf16.msra.mxu2 %v3928_v35  ;;  %2866 = vmatpush.bf16.msra.mxu3 %v3932_v40  ;;  %v4569_v57 = vld [vmem:[%s6096_s27 + $0x1bc] sm:$0xf0]  ;;  %v4561_v35 = vld [vmem:[%s6096_s27 + $0x184] sm:$0xf] }
 0xcf7   : >> { %4145 = vmatmul.msk.bf16.vlgmr.msra.gmra.mxu0 %vm761_vm6, %v6023_v60  ;;  %4146 = vmatmul.msk.bf16.vlgmr.msra.gmra.mxu1 %vm761_vm6, %v6023_v60  ;;  %v4353_v40 = vld [vmem:[%s6096_s27 + $0x1c0] sm:$0xf0]  ;;  %v4352_v45 = vor.u32 %v4569_v57, %v4351_v59  ;;  %v4160_v59 = vor.u32 %v4521_v43, %v4159_v51  ;;  %v4177_v43 = vld [vmem:[%s6096_s27 + $0x50] sm:$0xf0] }
 0xcf8   : >> { %4147 = vmatmul.msk.bf16.vlgmr.msrb.gmra.mxu2 %vm761_vm6, %v6023_v60  ;;  %4148 = vmatmul.msk.bf16.vlgmr.msrb.gmra.mxu3 %vm761_vm6, %v6023_v60  ;;  %v4356_v0 = vor.u32 %v4561_v35, %v4353_v40  ;;  %v4377_v35 = vld [vmem:[%s6096_s27 + $0x1d8] sm:$0xf0]  ;;  %v4368_v40 = vor.u32 %v4571_v34, %v4367_v46  ;;  %v4524_v46 = vld [vmem:[%s6096_s27 + $0x54] sm:$0xf0] }
 0xcf9   : >> { %2877 = vmatpush.bf16.msra.mxu0 %v4128_v27  ;;  %2891 = vmatpush.bf16.msra.mxu1 %v4132_v15  ;;  %v4360_v27 = vor.u32 %v4570_v38, %v4359_v31  ;;  %v4364_v15 = vor.u32 %v4562_v55, %v4361_v50  ;;  %v4372_v31 = vor.u32 %v4563_v58, %v4369_v44  ;;  %v4516_v58 = vld [vmem:[%s6096_s27 + $0x1c] sm:$0xf] }
 0xcfa   : >> { %2905 = vmatpush.bf16.msrb.mxu2 %v4136_v56  ;;  %2919 = vmatpush.bf16.msrb.mxu3 %v4140_v22  ;;  %v4545_v56 = vld [vmem:[%s6096_s27 + $0x104] sm:$0xf]  ;;  %v4168_v38 = vor.u32 %v4522_v47, %v4167_v63  ;;  %v4185_v44 = vld [vmem:[%s6096_s27 + $0x58] sm:$0xf0] }
 0xcfb   : >> { %v4289_v22 = vld [vmem:[%s6096_s27 + $0x140] sm:$0xf0]  ;;  %v4188_v63 = vor.u32 %v4516_v58, %v4185_v44 }
 0xcfc   : >> { %v4292_v30 = vor.u32 %v4545_v56, %v4289_v22  ;;  %v4311_v22 = vld [vmem:[%s6096_s27 + $0x118] sm:$0xf]  ;;  %v6189_v47 = vld [vmem:[%s6186_s5] sm:$0xff] }
 0xcfd   : >> { %2878 = vmatpush.bf16.msra.mxu0 %v4064_v54  ;;  %2892 = vmatpush.bf16.msra.mxu1 %v4068_v36  ;;  %v4296_v54 = vor.u32 %v4554_v7, %v4295_v61  ;;  %v4300_v36 = vor.u32 %v4546_v19, %v4297_v42  ;;  %v4556_v61 = vld [vmem:[%s6096_s27 + $0x154] sm:$0xf0]  ;;  %v4548_v19 = vld [vmem:[%s6096_s27 + $0x11c] sm:$0xf]  ;;  %v2355_v58 = vperm.slane %v6189_v47, 5 }
 0xcfe   : >> { %2906 = vmatpush.bf16.msrb.mxu2 %v4072_v26  ;;  %2920 = vmatpush.bf16.msrb.mxu3 %v4076_v39  ;;  %v4529_v26 = vld [vmem:[%s6096_s27 + $0x84] sm:$0xf]  ;;  %v4312_v7 = vor.u32 %v4556_v61, %v4311_v22  ;;  %v4313_v42 = vld [vmem:[%s6096_s27 + $0x158] sm:$0xf0] }
 0xcff   : >> { %v4225_v39 = vld [vmem:[%s6096_s27 + $0xc0] sm:$0xf0] }
 0xd00   : >> { %v4228_v23 = vor.u32 %v4529_v26, %v4225_v39  ;;  %v4247_v39 = vld [vmem:[%s6096_s27 + $0x98] sm:$0xf] }
 0xd01   : >> { %2879 = vmatpush.bf16.msra.mxu0 %v4000_v2  ;;  %2893 = vmatpush.bf16.msra.mxu1 %v4004_v33  ;;  %v4232_v2 = vor.u32 %v4538_v62, %v4231_v9  ;;  %v4236_v33 = vor.u32 %v4530_v28, %v4233_v29  ;;  %v4540_v9 = vld [vmem:[%s6096_s27 + $0xd4] sm:$0xf0]  ;;  %v4532_v62 = vld [vmem:[%s6096_s27 + $0x9c] sm:$0xf] }
 0xd02   : >> { %2907 = vmatpush.bf16.msrb.mxu2 %v4008_v37  ;;  %2921 = vmatpush.bf16.msrb.mxu3 %v4012_v32  ;;  %v4513_v37 = vld [vmem:[%s6096_s27 + $0x4] sm:$0xf]  ;;  %v4248_v28 = vor.u32 %v4540_v9, %v4247_v39  ;;  %v4249_v29 = vld [vmem:[%s6096_s27 + $0xd8] sm:$0xf0] }
 0xd03   : >> { %v4161_v32 = vld [vmem:[%s6096_s27 + $0x40] sm:$0xf0] }
 0xd04   : >> { %v4164_v57 = vor.u32 %v4513_v37, %v4161_v32  ;;  %v4183_v32 = vld [vmem:[%s6096_s27 + $0x18] sm:$0xf] }
 0xd05   : >> { %2880 = vmatpush.bf16.msra.mxu0 %v3936_v49  ;;  %2894 = vmatpush.bf16.msra.mxu1 %v3940_v20  ;;  %v4169_v49 = vld [vmem:[%s6096_s27 + $0x48] sm:$0xf0]  ;;  %v4375_v20 = vld [vmem:[%s6096_s27 + $0x198] sm:$0xf]  ;;  %v4184_v34 = vor.u32 %v4524_v46, %v4183_v32 }
 0xd06   : >> { %2908 = vmatpush.bf16.msrb.mxu2 %v3944_v18  ;;  %2922 = vmatpush.bf16.msrb.mxu3 %v3948_v52  ;;  %v4572_v18 = vld [vmem:[%s6096_s27 + $0x1d4] sm:$0xf0]  ;;  %v4564_v52 = vld [vmem:[%s6096_s27 + $0x19c] sm:$0xf] }
 0xd07   : >> { %4149 = vmatmul.msk.bf16.vlgmr.msrb.gmra.mxu0 %vm761_vm6, %v6023_v60  ;;  %4150 = vmatmul.msk.bf16.vlgmr.msrb.gmra.mxu1 %vm761_vm6, %v6023_v60  ;;  %v4376_v50 = vor.u32 %v4572_v18, %v4375_v20  ;;  %v2350_v20 = vperm.slane %v6189_v47, 0 }
 0xd08   : >> { %4151 = vmatmul.msk.bf16.vlgmr.msra.gmra.mxu2 %vm761_vm6, %v6023_v60  ;;  %4152 = vmatmul.msk.bf16.vlgmr.msra.gmra.mxu3 %vm761_vm6, %v6023_v60 }
 0xd09   : >> { %3302 = vmatpush.bf16.xpose.msrb.mxu0 %v4352_v45  ;;  %3316 = vmatpush.bf16.xpose.msrb.mxu1 %v4356_v0  ;;  %v4380_v45 = vor.u32 %v4564_v52, %v4377_v35  ;;  %v4303_v0 = vld [vmem:[%s6096_s27 + $0x110] sm:$0xf] }
 0xd0a   : >> { %3330 = vmatpush.bf16.xpose.msra.mxu2 %v4360_v27  ;;  %3344 = vmatpush.bf16.xpose.msra.mxu3 %v4364_v15  ;;  %v4555_v27 = vld [vmem:[%s6096_s27 + $0x14c] sm:$0xf0]  ;;  %v4547_v15 = vld [vmem:[%s6096_s27 + $0x114] sm:$0xf] }
 0xd0b   : >> { %v4304_v25 = vor.u32 %v4555_v27, %v4303_v0  ;;  %v4308_v56 = vor.u32 %v4547_v15, %v4305_v1  ;;  %v4565_v0 = vld [vmem:[%s6096_s27 + $0x1a4] sm:$0xf]  ;;  %v2352_v15 = vperm.slane %v6189_v47, 2  ;;  %v2353_v1 = vperm.slane %v6189_v47, 3 }
 0xd0c   : >> { %v4385_v27 = vld [vmem:[%s6096_s27 + $0x1e0] sm:$0xf0] }
 0xd11   : >> { %3303 = vmatpush.bf16.xpose.msrb.mxu0 %v4288_v24  ;;  %3317 = vmatpush.bf16.xpose.msrb.mxu1 %v4292_v30  ;;  %v4316_v24 = vor.u32 %v4548_v19, %v4313_v42  ;;  %v4239_v30 = vld [vmem:[%s6096_s27 + $0x90] sm:$0xf]  ;;  %v4388_v19 = vor.u32 %v4565_v0, %v4385_v27  ;;  %v2356_v0 = vperm.slane %v6189_v47, 6  ;;  %v2357_v27 = vperm.slane %v6189_v47, 7 }
 0xd12   : >> { %3331 = vmatpush.bf16.xpose.msra.mxu2 %v4296_v54  ;;  %3345 = vmatpush.bf16.xpose.msra.mxu3 %v4300_v36  ;;  %v4539_v54 = vld [vmem:[%s6096_s27 + $0xcc] sm:$0xf0]  ;;  %v4531_v36 = vld [vmem:[%s6096_s27 + $0x94] sm:$0xf] }
 0xd13   : >> { %v4240_v17 = vor.u32 %v4539_v54, %v4239_v30  ;;  %v4244_v26 = vor.u32 %v4531_v36, %v4241_v48  ;;  %v4391_v48 = vld [vmem:[%s6096_s27 + $0x1a8] sm:$0xf] }
 0xd17   : >> { %4153 = vmatmul.msk.bf16.vlgmr.msra.gmra.mxu0 %vm761_vm6, %v6023_v60  ;;  %4154 = vmatmul.msk.bf16.vlgmr.msra.gmra.mxu1 %vm761_vm6, %v6023_v60 }
 0xd18   : >> { %4155 = vmatmul.msk.bf16.vlgmr.msrb.gmra.mxu2 %vm761_vm6, %v6023_v60  ;;  %4156 = vmatmul.msk.bf16.vlgmr.msrb.gmra.mxu3 %vm761_vm6, %v6023_v60  ;;  %v4514_v60 = vld [vmem:[%s6096_s27 + $0xc] sm:$0xf] }
 0xd19   : >> { %3304 = vmatpush.bf16.xpose.msrb.mxu0 %v4224_v41  ;;  %3318 = vmatpush.bf16.xpose.msrb.mxu1 %v4228_v23  ;;  %v4172_v55 = vor.u32 %v4514_v60, %v4169_v49  ;;  %v4252_v41 = vor.u32 %v4532_v62, %v4249_v29  ;;  %v4175_v23 = vld [vmem:[%s6096_s27 + $0x10] sm:$0xf]  ;;  %v4566_v29 = vld [vmem:[%s6096_s27 + $0x1ac] sm:$0xf] }
 0xd1a   : >> { %3332 = vmatpush.bf16.xpose.msra.mxu2 %v4232_v2  ;;  %3346 = vmatpush.bf16.xpose.msra.mxu3 %v4236_v33  ;;  %v4523_v2 = vld [vmem:[%s6096_s27 + $0x4c] sm:$0xf0]  ;;  %v4515_v33 = vld [vmem:[%s6096_s27 + $0x14] sm:$0xf] }
 0xd1b   : >> { %v4176_v51 = vor.u32 %v4523_v2, %v4175_v23  ;;  %v4180_v37 = vor.u32 %v4515_v33, %v4177_v43  ;;  %v4319_v23 = vld [vmem:[%s6096_s27 + $0x120] sm:$0xf]  ;;  %v4549_v33 = vld [vmem:[%s6096_s27 + $0x124] sm:$0xf] }
 0xd1c   : >> { %v4557_v2 = vld [vmem:[%s6096_s27 + $0x15c] sm:$0xf0] }
 0xd21   : >> { %3305 = vmatpush.bf16.xpose.msrb.mxu0 %v4160_v59  ;;  %3319 = vmatpush.bf16.xpose.msrb.mxu1 %v4164_v57  ;;  %v2351_v59 = vperm.slane %v6189_v47, 1 }
 0xd22   : >> { %3333 = vmatpush.bf16.xpose.msra.mxu2 %v4168_v38  ;;  %3347 = vmatpush.bf16.xpose.msra.mxu3 %v4172_v55  ;;  %v4383_v38 = vld [vmem:[%s6096_s27 + $0x1a0] sm:$0xf] }
 0xd29   : >> { %3358 = vmatpush.bf16.xpose.msra.mxu0 %v4368_v40  ;;  %3372 = vmatpush.bf16.xpose.msra.mxu1 %v4372_v31 }
 0xd2a   : >> { %3386 = vmatpush.bf16.xpose.msrb.mxu2 %v4376_v50  ;;  %3400 = vmatpush.bf16.xpose.msrb.mxu3 %v4380_v45  ;;  %v4573_v45 = vld [vmem:[%s6096_s27 + $0x1dc] sm:$0xf0] }
 0xd31   : >> { %3359 = vmatpush.bf16.xpose.msra.mxu0 %v4304_v25  ;;  %3373 = vmatpush.bf16.xpose.msra.mxu1 %v4308_v56 }
 0xd32   : >> { %3387 = vmatpush.bf16.xpose.msrb.mxu2 %v4312_v7  ;;  %3401 = vmatpush.bf16.xpose.msrb.mxu3 %v4316_v24  ;;  %v4384_v7 = vor.u32 %v4573_v45, %v4383_v38  ;;  %v4550_v38 = vld [vmem:[%s6096_s27 + $0x12c] sm:$0xf] }
 0xd39   : >> { %3360 = vmatpush.bf16.xpose.msra.mxu0 %v4240_v17  ;;  %3374 = vmatpush.bf16.xpose.msra.mxu1 %v4244_v26  ;;  %v4574_v26 = vld [vmem:[%s6096_s27 + $0x1e4] sm:$0xf0] }
 0xd3a   : >> { %3388 = vmatpush.bf16.xpose.msrb.mxu2 %v4248_v28  ;;  %3402 = vmatpush.bf16.xpose.msrb.mxu3 %v4252_v41  ;;  %v4393_v41 = vld [vmem:[%s6096_s27 + $0x1e8] sm:$0xf0]  ;;  %v4392_v44 = vor.u32 %v4574_v26, %v4391_v48 }
 0xd41   : >> { %3361 = vmatpush.bf16.xpose.msra.mxu0 %v4176_v51  ;;  %3375 = vmatpush.bf16.xpose.msra.mxu1 %v4180_v37  ;;  %v4321_v51 = vld [vmem:[%s6096_s27 + $0x160] sm:$0xf0] }
 0xd42   : >> { %3389 = vmatpush.bf16.xpose.msrb.mxu2 %v4184_v34  ;;  %3403 = vmatpush.bf16.xpose.msrb.mxu3 %v4188_v63  ;;  %v2354_v34 = vperm.slane %v6189_v47, 4  ;;  %v4396_v63 = vor.u32 %v4566_v29, %v4393_v41 }
 0xd64   : >> { %v2714_v60 = vpop.f32.mrf.mxu0  ;;  %v2728_v49 = vpop.f32.mrf.mxu1 }
 0xd65   : >> { %v2715_v57 = vadd.f32 %v2714_v60, %v2350_v20  ;;  %v2729_v18 = vadd.f32 %v2728_v49, %v2351_v59 }
 0xd67   : >> { %v2929_v25 = vmax.f32 %v2715_v57, 0.0  ;;  %v2930_v56 = vmax.f32 %v2729_v18, 0.0  ;;  %v4327_v57 = vld [vmem:[%s6096_s27 + $0x128] sm:$0xf] }
 0xd6b   : >> { %v2742_v52 = vpop.f32.mrf.mxu2  ;;  %v2756_v35 = vpop.f32.mrf.mxu3 }
 0xd6c   : >> { %v2716_v40 = vpop.f32.mrf.mxu0  ;;  %v2730_v31 = vpop.f32.mrf.mxu1  ;;  %v2743_v30 = vadd.f32 %v2742_v52, %v2352_v15  ;;  %v2757_v54 = vadd.f32 %v2756_v35, %v2353_v1 }
 0xd6d   : >> { %v2717_v55 = vadd.f32 %v2716_v40, %v2350_v20  ;;  %v2731_v50 = vadd.f32 %v2730_v31, %v2351_v59  ;;  %v4320_v20 = vor.u32 %v4557_v2, %v4319_v23  ;;  %v4324_v59 = vor.u32 %v4549_v33, %v4321_v51  ;;  %v4558_v31 = vld [vmem:[%s6096_s27 + $0x164] sm:$0xf0] }
 0xd6e   : >> { %v2931_v43 = vmax.f32 %v2743_v30, 0.0  ;;  %v2932_v37 = vmax.f32 %v2757_v54, 0.0  ;;  %v4263_v23 = vld [vmem:[%s6096_s27 + $0xa8] sm:$0xf] }
 0xd6f   : >> { %v2945_v22 = vmax.f32 %v2717_v55, 0.0  ;;  %v2946_v61 = vmax.f32 %v2731_v50, 0.0  ;;  %v4329_v55 = vld [vmem:[%s6096_s27 + $0x168] sm:$0xf0]  ;;  %v4542_v2 = vld [vmem:[%s6096_s27 + $0xe4] sm:$0xf0] }
 0xd71   : >> { %v2961_v42 = vpack.c.bf16 %v2945_v22, %v2929_v25  ;;  %v2962_v24 = vpack.c.bf16 %v2946_v61, %v2930_v56  ;;  %v4255_v25 = vld [vmem:[%s6096_s27 + $0xa0] sm:$0xf]  ;;  %v4328_v56 = vor.u32 %v4558_v31, %v4327_v57  ;;  %v4332_v22 = vor.u32 %v4550_v38, %v4329_v55  ;;  %v4399_v57 = vld [vmem:[%s6096_s27 + $0x1b0] sm:$0xf]  ;;  %v4401_v31 = vld [vmem:[%s6096_s27 + $0x1f0] sm:$0xf0] }
 0xd72   : >> { %v4541_v61 = vld [vmem:[%s6096_s27 + $0xdc] sm:$0xf0] }
 0xd73   : >> { %v2744_v36 = vpop.f32.mrf.mxu2  ;;  %v2758_v17 = vpop.f32.mrf.mxu3  ;;  %3306 = vmatmul.bf16.vlgmr.msrb.gmra.mxu0 %v2961_v42  ;;  %3320 = vmatmul.bf16.vlgmr.msrb.gmra.mxu1 %v2962_v24  ;;  %v4256_v26 = vor.u32 %v4541_v61, %v4255_v25  ;;  %v4526_v61 = vld [vmem:[%s6096_s27 + $0x64] sm:$0xf0] }
 0xd74   : >> { %v2745_v39 = vadd.f32 %v2744_v36, %v2352_v15  ;;  %v2759_v9 = vadd.f32 %v2758_v17, %v2353_v1  ;;  %3414 = vmatpush.bf16.xpose.msrb.mxu0 %v4384_v7  ;;  %3428 = vmatpush.bf16.xpose.msrb.mxu1 %v4388_v19  ;;  %v2770_v62 = vpop.f32.mrf.mxu0  ;;  %v2784_v28 = vpop.f32.mrf.mxu1  ;;  %v4533_v7 = vld [vmem:[%s6096_s27 + $0xa4] sm:$0xf]  ;;  %v6220_v36 = vld [vmem:[%s6186_s5 + $0x8] sm:$0xff] }
 0xd75   : >> { %v2771_v18 = vadd.f32 %v2770_v62, %v2354_v34  ;;  %v2785_v52 = vadd.f32 %v2784_v28, %v2355_v58  ;;  %v4257_v19 = vld [vmem:[%s6096_s27 + $0xe0] sm:$0xf0]  ;;  %v2358_v29 = vperm.slane %v6220_v36, 0  ;;  %v2359_v41 = vperm.slane %v6220_v36, 1 }
 0xd76   : >> { %v2947_v32 = vmax.f32 %v2745_v39, 0.0  ;;  %v2948_v46 = vmax.f32 %v2759_v9, 0.0  ;;  %v4260_v47 = vor.u32 %v4533_v7, %v4257_v19  ;;  %v4518_v7 = vld [vmem:[%s6096_s27 + $0x2c] sm:$0xf] }
 0xd77   : >> { %v2933_v42 = vmax.f32 %v2771_v18, 0.0  ;;  %v2934_v24 = vmax.f32 %v2785_v52, 0.0  ;;  %v4264_v18 = vor.u32 %v4542_v2, %v4263_v23  ;;  %v4201_v19 = vld [vmem:[%s6096_s27 + $0x68] sm:$0xf0]  ;;  %v4335_v23 = vld [vmem:[%s6096_s27 + $0x130] sm:$0xf] }
 0xd78   : >> { %v2963_v60 = vpack.c.bf16 %v2947_v32, %v2931_v43  ;;  %v2964_v49 = vpack.c.bf16 %v2948_v46, %v2932_v37  ;;  %v4534_v32 = vld [vmem:[%s6096_s27 + $0xac] sm:$0xf]  ;;  %v4559_v2 = vld [vmem:[%s6096_s27 + $0x16c] sm:$0xf0] }
 0xd79   : >> { %v4265_v46 = vld [vmem:[%s6096_s27 + $0xe8] sm:$0xf0] }
 0xd7a   : >> { %3334 = vmatmul.bf16.vlgmr.msra.gmra.mxu2 %v2963_v60  ;;  %3348 = vmatmul.bf16.vlgmr.msra.gmra.mxu3 %v2964_v49  ;;  %v4268_v52 = vor.u32 %v4534_v32, %v4265_v46  ;;  %v4337_v46 = vld [vmem:[%s6096_s27 + $0x170] sm:$0xf0] }
 0xd7b   : >> { %3442 = vmatpush.bf16.xpose.msra.mxu2 %v4392_v44  ;;  %3456 = vmatpush.bf16.xpose.msra.mxu3 %v4396_v63  ;;  %v2798_v35 = vpop.f32.mrf.mxu2  ;;  %v2812_v40 = vpop.f32.mrf.mxu3  ;;  %v4517_v44 = vld [vmem:[%s6096_s27 + $0x24] sm:$0xf] }
 0xd7c   : >> { %3415 = vmatpush.bf16.xpose.msrb.mxu0 %v4320_v20  ;;  %3429 = vmatpush.bf16.xpose.msrb.mxu1 %v4324_v59  ;;  %v2772_v50 = vpop.f32.mrf.mxu0  ;;  %v2786_v45 = vpop.f32.mrf.mxu1  ;;  %v2799_v39 = vadd.f32 %v2798_v35, %v2356_v0  ;;  %v2813_v9 = vadd.f32 %v2812_v40, %v2357_v27  ;;  %v4193_v63 = vld [vmem:[%s6096_s27 + $0x60] sm:$0xf0]  ;;  %v4575_v35 = vld [vmem:[%s6096_s27 + $0x1ec] sm:$0xf0]  ;;  %v4567_v40 = vld [vmem:[%s6096_s27 + $0x1b4] sm:$0xf] }
 0xd7d   : >> { %v2773_v15 = vadd.f32 %v2772_v50, %v2354_v34  ;;  %v2787_v1 = vadd.f32 %v2786_v45, %v2355_v58  ;;  %v4191_v34 = vld [vmem:[%s6096_s27 + $0x20] sm:$0xf]  ;;  %v4196_v45 = vor.u32 %v4517_v44, %v4193_v63 }
 0xd7e   : >> { %v4525_v58 = vld [vmem:[%s6096_s27 + $0x5c] sm:$0xf0]  ;;  %v2935_v60 = vmax.f32 %v2799_v39, 0.0  ;;  %v2936_v49 = vmax.f32 %v2813_v9, 0.0  ;;  %v4568_v39 = vld [vmem:[%s6096_s27 + $0x1bc] sm:$0xf] }
 0xd7f   : >> { %v2949_v30 = vmax.f32 %v2773_v15, 0.0  ;;  %v2950_v54 = vmax.f32 %v2787_v1, 0.0  ;;  %v4192_v50 = vor.u32 %v4525_v58, %v4191_v34  ;;  %v4199_v15 = vld [vmem:[%s6096_s27 + $0x28] sm:$0xf]  ;;  %v4409_v9 = vld [vmem:[%s6096_s27 + $0x1f8] sm:$0xf0] }
 0xd81   : >> { %v2965_v17 = vpack.c.bf16 %v2949_v30, %v2933_v42  ;;  %v2966_v48 = vpack.c.bf16 %v2950_v54, %v2934_v24  ;;  %v2360_v42 = vperm.slane %v6220_v36, 2  ;;  %v2361_v24 = vperm.slane %v6220_v36, 3 }
 0xd83   : >> { %3443 = vmatpush.bf16.xpose.msra.mxu2 %v4328_v56  ;;  %3457 = vmatpush.bf16.xpose.msra.mxu3 %v4332_v22  ;;  %v2800_v62 = vpop.f32.mrf.mxu2  ;;  %v2814_v28 = vpop.f32.mrf.mxu3 }
 0xd84   : >> { %v2801_v33 = vadd.f32 %v2800_v62, %v2356_v0  ;;  %v2815_v51 = vadd.f32 %v2814_v28, %v2357_v27  ;;  %3362 = vmatmul.bf16.vlgmr.msra.gmra.mxu0 %v2965_v17  ;;  %3376 = vmatmul.bf16.vlgmr.msra.gmra.mxu1 %v2966_v48  ;;  %v2826_v43 = vpop.f32.mrf.mxu0  ;;  %v2840_v37 = vpop.f32.mrf.mxu1  ;;  %v4400_v0 = vor.u32 %v4575_v35, %v4399_v57  ;;  %v4407_v17 = vld [vmem:[%s6096_s27 + $0x1b8] sm:$0xf] }
 0xd85   : >> { %3416 = vmatpush.bf16.xpose.msrb.mxu0 %v4256_v26  ;;  %3430 = vmatpush.bf16.xpose.msrb.mxu1 %v4260_v47  ;;  %v4404_v27 = vor.u32 %v4567_v40, %v4401_v31  ;;  %v2827_v1 = vadd.f32 %v2826_v43, %v2358_v29  ;;  %v2841_v25 = vadd.f32 %v2840_v37, %v2359_v41  ;;  %v4576_v47 = vld [vmem:[%s6096_s27 + $0x1f4] sm:$0xf0]  ;;  %v4552_v40 = vld [vmem:[%s6096_s27 + $0x13c] sm:$0xf] }
 0xd86   : >> { %v2951_v20 = vmax.f32 %v2801_v33, 0.0  ;;  %v2952_v59 = vmax.f32 %v2815_v51, 0.0  ;;  %v4200_v62 = vor.u32 %v4526_v61, %v4199_v15  ;;  %v4204_v28 = vor.u32 %v4518_v7, %v4201_v19  ;;  %v4551_v33 = vld [vmem:[%s6096_s27 + $0x134] sm:$0xf]  ;;  %v4560_v35 = vld [vmem:[%s6096_s27 + $0x174] sm:$0xf0] }
 0xd87   : >> { %v2937_v51 = vmax.f32 %v2827_v1, 0.0  ;;  %v2938_v43 = vmax.f32 %v2841_v25, 0.0  ;;  %v4408_v34 = vor.u32 %v4576_v47, %v4407_v17  ;;  %v4345_v31 = vld [vmem:[%s6096_s27 + $0x178] sm:$0xf0]  ;;  %v4271_v15 = vld [vmem:[%s6096_s27 + $0xb0] sm:$0xf] }
 0xd88   : >> { %v2967_v38 = vpack.c.bf16 %v2951_v20, %v2935_v60  ;;  %v2968_v55 = vpack.c.bf16 %v2952_v59, %v2936_v49  ;;  %v4336_v60 = vor.u32 %v4559_v2, %v4335_v23  ;;  %v4340_v49 = vor.u32 %v4551_v33, %v4337_v46  ;;  %v4543_v1 = vld [vmem:[%s6096_s27 + $0xec] sm:$0xf0]  ;;  %v4535_v25 = vld [vmem:[%s6096_s27 + $0xb4] sm:$0xf]  ;;  %v4279_v17 = vld [vmem:[%s6096_s27 + $0xb8] sm:$0xf] }
 0xd89   : >> { %v4348_v19 = vor.u32 %v4552_v40, %v4345_v31  ;;  %v4281_v47 = vld [vmem:[%s6096_s27 + $0xf8] sm:$0xf0] }
 0xd8a   : >> { %3390 = vmatmul.bf16.vlgmr.msrb.gmra.mxu2 %v2967_v38  ;;  %3404 = vmatmul.bf16.vlgmr.msrb.gmra.mxu3 %v2968_v55 }
 0xd8b   : >> { %3444 = vmatpush.bf16.xpose.msra.mxu2 %v4264_v18  ;;  %3458 = vmatpush.bf16.xpose.msra.mxu3 %v4268_v52  ;;  %v2854_v56 = vpop.f32.mrf.mxu2  ;;  %v2868_v22 = vpop.f32.mrf.mxu3  ;;  %v4343_v52 = vld [vmem:[%s6096_s27 + $0x138] sm:$0xf] }
 0xd8c   : >> { %v2828_v30 = vpop.f32.mrf.mxu0  ;;  %v2842_v54 = vpop.f32.mrf.mxu1  ;;  %v2855_v44 = vadd.f32 %v2854_v56, %v2360_v42  ;;  %v2869_v63 = vadd.f32 %v2868_v22, %v2361_v24  ;;  %v4273_v56 = vld [vmem:[%s6096_s27 + $0xf0] sm:$0xf0]  ;;  %v4344_v7 = vor.u32 %v4560_v35, %v4343_v52 }
 0xd8d   : >> { %3417 = vmatpush.bf16.xpose.msrb.mxu0 %v4192_v50  ;;  %3431 = vmatpush.bf16.xpose.msrb.mxu1 %v4196_v45  ;;  %v2829_v48 = vadd.f32 %v2828_v30, %v2358_v29  ;;  %v2843_v26 = vadd.f32 %v2842_v54, %v2359_v41  ;;  %v4412_v29 = vor.u32 %v4568_v39, %v4409_v9  ;;  %v4207_v39 = vld [vmem:[%s6096_s27 + $0x30] sm:$0xf] }
 0xd8e   : >> { %v2939_v38 = vmax.f32 %v2855_v44, 0.0  ;;  %v2940_v55 = vmax.f32 %v2869_v63, 0.0  ;;  %v4527_v9 = vld [vmem:[%s6096_s27 + $0x6c] sm:$0xf0]  ;;  %v4528_v63 = vld [vmem:[%s6096_s27 + $0x74] sm:$0xf0] }
 0xd8f   : >> { %v2953_v37 = vmax.f32 %v2829_v48, 0.0  ;;  %v2954_v32 = vmax.f32 %v2843_v26, 0.0  ;;  %v4544_v48 = vld [vmem:[%s6096_s27 + $0xf4] sm:$0xf0]  ;;  %v4536_v26 = vld [vmem:[%s6096_s27 + $0xbc] sm:$0xf] }
 0xd90   : >> { %v4280_v33 = vor.u32 %v4544_v48, %v4279_v17  ;;  %v6275_v48 = vld [vmem:[%s5166_s13 + $0x8] sm:$0x7f] }
 0xd91   : >> { %v2969_v58 = vpack.c.bf16 %v2953_v37, %v2937_v51  ;;  %v2970_v41 = vpack.c.bf16 %v2954_v32, %v2938_v43  ;;  %v4284_v51 = vor.u32 %v4536_v26, %v4281_v47  ;;  %v2362_v43 = vperm.slane %v6220_v36, 4 }
 0xd92   : >> { %v2363_v37 = vperm.slane %v6220_v36, 5  ;;  %v4208_v32 = vor.u32 %v4527_v9, %v4207_v39  ;;  %v2977_v26 = vperm.slane %v6275_v48, 6 }
 0xd93   : >> { %3445 = vmatpush.bf16.xpose.msra.mxu2 %v4200_v62  ;;  %3459 = vmatpush.bf16.xpose.msra.mxu3 %v4204_v28  ;;  %v2856_v20 = vpop.f32.mrf.mxu2  ;;  %v2870_v59 = vpop.f32.mrf.mxu3  ;;  %v4519_v62 = vld [vmem:[%s6096_s27 + $0x34] sm:$0xf] }
 0xd94   : >> { %v2857_v57 = vadd.f32 %v2856_v20, %v2360_v42  ;;  %v2871_v18 = vadd.f32 %v2870_v59, %v2361_v24  ;;  %3418 = vmatmul.bf16.vlgmr.msrb.gmra.mxu0 %v2969_v58  ;;  %3432 = vmatmul.bf16.vlgmr.msrb.gmra.mxu1 %v2970_v41  ;;  %v4272_v42 = vor.u32 %v4543_v1, %v4271_v15  ;;  %v4209_v28 = vld [vmem:[%s6096_s27 + $0x70] sm:$0xf0]  ;;  %v4215_v58 = vld [vmem:[%s6096_s27 + $0x38] sm:$0xf] }
 0xd95   : >> { %3470 = vmatpush.bf16.xpose.msra.mxu0 %v4400_v0  ;;  %3484 = vmatpush.bf16.xpose.msra.mxu1 %v4404_v27  ;;  %v2882_v0 = vpop.f32.mrf.mxu0  ;;  %v2896_v27 = vpop.f32.mrf.mxu1  ;;  %v4276_v24 = vor.u32 %v4535_v25, %v4273_v56  ;;  %v4212_v46 = vor.u32 %v4519_v62, %v4209_v28  ;;  %v4216_v40 = vor.u32 %v4528_v63, %v4215_v58 }
 0xd96   : >> { %v2955_v50 = vmax.f32 %v2857_v57, 0.0  ;;  %v2956_v45 = vmax.f32 %v2871_v18, 0.0  ;;  %v2883_v41 = vadd.f32 %v2882_v0, %v2362_v43  ;;  %v2897_v44 = vadd.f32 %v2896_v27, %v2363_v37 }
 0xd97   : >> { %v2364_v57 = vperm.slane %v6220_v36, 6  ;;  %v2365_v18 = vperm.slane %v6220_v36, 7 }
 0xd98   : >> { %v2971_v22 = vpack.c.bf16 %v2955_v50, %v2939_v38  ;;  %v2972_v61 = vpack.c.bf16 %v2956_v45, %v2940_v55  ;;  %v2941_v38 = vmax.f32 %v2883_v41, 0.0  ;;  %v2942_v55 = vmax.f32 %v2897_v44, 0.0 }
 0xd9a   : >> { %3446 = vmatmul.bf16.vlgmr.msra.gmra.mxu2 %v2971_v22  ;;  %3460 = vmatmul.bf16.vlgmr.msra.gmra.mxu3 %v2972_v61 }
 0xd9b   : >> { %3498 = vmatpush.bf16.xpose.msrb.mxu2 %v4408_v34  ;;  %3512 = vmatpush.bf16.xpose.msrb.mxu3 %v4412_v29  ;;  %v2910_v30 = vpop.f32.mrf.mxu2  ;;  %v2924_v54 = vpop.f32.mrf.mxu3 }
 0xd9c   : >> { %v2911_v0 = vadd.f32 %v2910_v30, %v2364_v57  ;;  %v2925_v27 = vadd.f32 %v2924_v54, %v2365_v18 }
 0xd9d   : >> { %3471 = vmatpush.bf16.xpose.msra.mxu0 %v4336_v60  ;;  %3485 = vmatpush.bf16.xpose.msra.mxu1 %v4340_v49  ;;  %v2884_v23 = vpop.f32.mrf.mxu0  ;;  %v2898_v2 = vpop.f32.mrf.mxu1  ;;  %v4520_v60 = vld [vmem:[%s6096_s27 + $0x3c] sm:$0xf] }
 0xd9e   : >> { %v2885_v34 = vadd.f32 %v2884_v23, %v2362_v43  ;;  %v2899_v29 = vadd.f32 %v2898_v2, %v2363_v37  ;;  %v4217_v49 = vld [vmem:[%s6096_s27 + $0x78] sm:$0xf0]  ;;  %v2943_v36 = vmax.f32 %v2911_v0, 0.0  ;;  %v2944_v22 = vmax.f32 %v2925_v27, 0.0 }
 0xd9f   : >> { %v4220_v31 = vor.u32 %v4520_v60, %v4217_v49 }
 0xda0   : >> { %v2957_v52 = vmax.f32 %v2885_v34, 0.0  ;;  %v2958_v35 = vmax.f32 %v2899_v29, 0.0 }
 0xda2   : >> { %v2973_v15 = vpack.c.bf16 %v2957_v52, %v2941_v38  ;;  %v2974_v1 = vpack.c.bf16 %v2958_v35, %v2942_v55 }
 0xda3   : >> { %3499 = vmatpush.bf16.xpose.msrb.mxu2 %v4344_v7  ;;  %3513 = vmatpush.bf16.xpose.msrb.mxu3 %v4348_v19  ;;  %v2912_v20 = vpop.f32.mrf.mxu2  ;;  %v2926_v59 = vpop.f32.mrf.mxu3 }
 0xda4   : >> { %v2913_v50 = vadd.f32 %v2912_v20, %v2364_v57  ;;  %v2927_v45 = vadd.f32 %v2926_v59, %v2365_v18 }
 0xda5   : >> { %3472 = vmatpush.bf16.xpose.msra.mxu0 %v4272_v42  ;;  %3486 = vmatpush.bf16.xpose.msra.mxu1 %v4276_v24 }
 0xda6   : >> { %v2959_v25 = vmax.f32 %v2913_v50, 0.0  ;;  %v2960_v56 = vmax.f32 %v2927_v45, 0.0 }
 0xda8   : >> { %v2975_v61 = vpack.c.bf16 %v2959_v25, %v2943_v36  ;;  %v2976_v7 = vpack.c.bf16 %v2960_v56, %v2944_v22 }
 0xdab   : >> { %3500 = vmatpush.bf16.xpose.msrb.mxu2 %v4280_v33  ;;  %3514 = vmatpush.bf16.xpose.msrb.mxu3 %v4284_v51 }
 0xdad   : >> { %3473 = vmatpush.bf16.xpose.msra.mxu0 %v4208_v32  ;;  %3487 = vmatpush.bf16.xpose.msra.mxu1 %v4212_v46 }
 0xdb3   : >> { %3501 = vmatpush.bf16.xpose.msrb.mxu2 %v4216_v40  ;;  %3515 = vmatpush.bf16.xpose.msrb.mxu3 %v4220_v31 }
 0xdb4   : >> { %3474 = vmatmul.bf16.vlgmr.msra.gmra.mxu0 %v2973_v15  ;;  %3488 = vmatmul.bf16.vlgmr.msra.gmra.mxu1 %v2974_v1 }
 0xdba   : >> { %3502 = vmatmul.bf16.vlgmr.msrb.gmra.mxu2 %v2975_v61  ;;  %3516 = vmatmul.bf16.vlgmr.msrb.gmra.mxu3 %v2976_v7 }
 0xdf0   : >> { %v3307_v19 = vpop.f32.mrf.mxu0  ;;  %v3321_v42 = vpop.f32.mrf.mxu1 }
 0xdf1   : >> { %v3308_v62 = vadd.f32 %v3307_v19, %v2977_v26 }
 0xdf3   : >> { %v3322_v23 = vadd.f32 %v3321_v42, %v3308_v62 }
 0xdf8   : >> { %v3309_v24 = vpop.f32.mrf.mxu0  ;;  %v3323_v17 = vpop.f32.mrf.mxu1 }
 0xdf9   : >> { %v3310_v37 = vadd.f32 %v3309_v24, %v2977_v26 }
 0xdfb   : >> { %v3324_v46 = vadd.f32 %v3323_v17, %v3310_v37 }
 0xdfd   : >> { %v3335_v30 = vpop.f32.mrf.mxu2  ;;  %v3349_v54 = vpop.f32.mrf.mxu3 }
 0xdfe   : >> { %v3336_v2 = vadd.f32 %v3335_v30, %v3322_v23 }
 0xe00   : >> { %v3350_v32 = vadd.f32 %v3349_v54, %v3336_v2 }
 0xe01   : >> { %v3363_v47 = vpop.f32.mrf.mxu0  ;;  %v3377_v28 = vpop.f32.mrf.mxu1 }
 0xe02   : >> { %v3364_v29 = vadd.f32 %v3363_v47, %v3350_v32 }
 0xe04   : >> { %v3378_v60 = vadd.f32 %v3377_v28, %v3364_v29 }
 0xe05   : >> { %v3337_v39 = vpop.f32.mrf.mxu2  ;;  %v3351_v9 = vpop.f32.mrf.mxu3 }
 0xe06   : >> { %v3338_v58 = vadd.f32 %v3337_v39, %v3324_v46 }
 0xe08   : >> { %v3352_v49 = vadd.f32 %v3351_v9, %v3338_v58 }
 0xe09   : >> { %v3365_v33 = vpop.f32.mrf.mxu0  ;;  %v3379_v34 = vpop.f32.mrf.mxu1 }
 0xe0a   : >> { %v3366_v59 = vadd.f32 %v3365_v33, %v3352_v49 }
 0xe0c   : >> { %v3380_v52 = vadd.f32 %v3379_v34, %v3366_v59 }
 0xe0d   : >> { %v3391_v51 = vpop.f32.mrf.mxu2  ;;  %v3405_v43 = vpop.f32.mrf.mxu3 }
 0xe0e   : >> { %v3392_v20 = vadd.f32 %v3391_v51, %v3378_v60 }
 0xe10   : >> { %v3406_v18 = vadd.f32 %v3405_v43, %v3392_v20 }
 0xe11   : >> { %v3419_v41 = vpop.f32.mrf.mxu0  ;;  %v3433_v57 = vpop.f32.mrf.mxu1 }
 0xe12   : >> { %v3420_v38 = vadd.f32 %v3419_v41, %v3406_v18 }
 0xe14   : >> { %v3434_v50 = vadd.f32 %v3433_v57, %v3420_v38 }
 0xe15   : >> { %v3393_v44 = vpop.f32.mrf.mxu2  ;;  %v3407_v63 = vpop.f32.mrf.mxu3 }
 0xe16   : >> { %v3394_v55 = vadd.f32 %v3393_v44, %v3380_v52 }
 0xe18   : >> { %v3408_v45 = vadd.f32 %v3407_v63, %v3394_v55 }
 0xe19   : >> { %v3421_v35 = vpop.f32.mrf.mxu0  ;;  %v3435_v0 = vpop.f32.mrf.mxu1 }
 0xe1a   : >> { %v3422_v1 = vadd.f32 %v3421_v35, %v3408_v45 }
 0xe1c   : >> { %v3436_v22 = vadd.f32 %v3435_v0, %v3422_v1 }
 0xe1d   : >> { %v3447_v40 = vpop.f32.mrf.mxu2  ;;  %v3461_v31 = vpop.f32.mrf.mxu3 }
 0xe1e   : >> { %v3448_v27 = vadd.f32 %v3447_v40, %v3434_v50 }
 0xe20   : >> { %v3462_v36 = vadd.f32 %v3461_v31, %v3448_v27  ;;  %v3568_v27 = vperm.slane %v6275_v48, 4 }
 0xe25   : >> { %v3449_v25 = vpop.f32.mrf.mxu2  ;;  %v3463_v56 = vpop.f32.mrf.mxu3 }
 0xe26   : >> { %v3450_v19 = vadd.f32 %v3449_v25, %v3436_v22  ;;  %v3571_v25 = vperm.slane %v6275_v48, 5 }
 0xe28   : >> { %v3464_v17 = vadd.f32 %v3463_v56, %v3450_v19 }
 0xe31   : >> { %v3475_v15 = vpop.f32.mrf.mxu0  ;;  %v3489_v7 = vpop.f32.mrf.mxu1 }
 0xe32   : >> { %v3476_v61 = vadd.f32 %v3475_v15, %v3462_v36 }
 0xe34   : >> { %v3490_v42 = vadd.f32 %v3489_v7, %v3476_v61 }
 0xe39   : >> { %v3477_v24 = vpop.f32.mrf.mxu0  ;;  %v3491_v62 = vpop.f32.mrf.mxu1 }
 0xe3a   : >> { %v3478_v47 = vadd.f32 %v3477_v24, %v3464_v17 }
 0xe3c   : >> { %v3492_v28 = vadd.f32 %v3491_v62, %v3478_v47 }
 0xe3d   : >> { %v3503_v30 = vpop.f32.mrf.mxu2  ;;  %v3517_v54 = vpop.f32.mrf.mxu3 }
 0xe3e   : >> { %v3504_v26 = vadd.f32 %v3503_v30, %v3490_v42 }
 0xe40   : >> { %v3518_v39 = vadd.f32 %v3517_v54, %v3504_v26 }
 0xe42   : >> { %v3522_v9 = vadd.f32 %v3518_v39, %v6014_v21 }
 0xe44   : >> { %v3524_v23 = vsel %vm761_vm6, %v3522_v9, 0.0 }
 0xe45   : >> { %v3505_v2 = vpop.f32.mrf.mxu2  ;;  %3525 = vadd.xlane.f32.xlu0 %v3524_v23  ;;  %v3519_v51 = vpop.f32.mrf.mxu3 }
 0xe46   : >> { %v3506_v33 = vadd.f32 %v3505_v2, %v3492_v28 }
 0xe48   : >> { %v3520_v43 = vadd.f32 %v3519_v51, %v3506_v33 }
 0xe4a   : >> { %v3523_v37 = vadd.f32 %v3520_v43, %v6016_v16 }
 0xe4c   : >> { %v3527_v32 = vsel %vm761_vm6, %v3523_v37, 0.0 }
 0xe4d   : >> { %3528 = vadd.xlane.f32.xlu2 %v3527_v32 }
 0xeb8   : >> { %v3526_v46 = vpop.xlane.xlu0 %3525 }
 0xeb9   : >> { %v3530_v34 = vmul.f32 %v3526_v46, %v5569_v53 }
 0xebb   : >> { %v3532_v29 = vsub.f32 %v3522_v9, %v3530_v34 }
 0xebd   : >> { %v3534_v58 = vmul.f32 %v3532_v29, %v3532_v29 }
 0xebf   : >> { %v3536_v21 = vsel %vm761_vm6, %v3534_v58, 0.0 }
 0xec0   : >> { %v3529_v41 = vpop.xlane.xlu2 %3528  ;;  %3537 = vadd.xlane.f32.xlu0 %v3536_v21 }
 0xec1   : >> { %v3531_v44 = vmul.f32 %v3529_v41, %v5569_v53 }
 0xec3   : >> { %v3533_v63 = vsub.f32 %v3523_v37, %v3531_v44 }
 0xec5   : >> { %v3535_v60 = vmul.f32 %v3533_v63, %v3533_v63 }
 0xec7   : >> { %v3539_v49 = vsel %vm761_vm6, %v3535_v60, 0.0 }
 0xec8   : >> { %3540 = vadd.xlane.f32.xlu2 %v3539_v49 }
 0xf33   : >> { %v3538_v16 = vpop.xlane.xlu0 %3537 }
 0xf34   : >> { %v3542_v20 = vmul.f32 %v3538_v16, %v5569_v53 }
 0xf36   : >> { %v3544_v59 = vadd.f32 1e-05, %v3542_v20 }
 0xf38   : >> { %4802 = vrsqrt.f32 %v3544_v59  ;;  %vm3552_vm7 = vweird.f32 %v3544_v59 }
 0xf3b   : >> { %v3541_v57 = vpop.xlane.xlu2 %3540 }
 0xf3c   : >> { %v3543_v18 = vmul.f32 %v3541_v57, %v5569_v53 }
 0xf3e   : >> { %v4803_v52 = vpop.eup %4802  ;;  %v3545_v35 = vadd.f32 1e-05, %v3543_v18 }
 0xf3f   : >> { %v3547_v40 = vmul.f32 %v4803_v52, %v3544_v59  ;;  %vm3553_vm5 = vweird.f32 %v4803_v52 }
 0xf40   : >> { %4804 = vrsqrt.f32 %v3545_v35  ;;  %vm3554_vm8 = vmor %vm3552_vm7, %vm3553_vm5  ;;  %vm3562_vm10 = vweird.f32 %v3545_v35 }
 0xf41   : >> { %v3548_v31 = vmul.f32 %v4803_v52, %v3547_v40 }
 0xf43   : >> { %v3549_v38 = vmul.f32 0.5, %v3548_v31 }
 0xf45   : >> { %v3550_v55 = vsub.f32 1.5, %v3549_v38 }
 0xf46   : >> { %v4805_v50 = vpop.eup %4804 }
 0xf47   : >> { %v3551_v45 = vmul.f32 %v4803_v52, %v3550_v55  ;;  %v3557_v0 = vmul.f32 %v4805_v50, %v3545_v35  ;;  %vm3563_vm9 = vweird.f32 %v4805_v50 }
 0xf48   : >> { %vm3564_vm11 = vmor %vm3562_vm10, %vm3563_vm9 }
 0xf49   : >> { %v3555_v15 = vsel %vm3554_vm8, %v4803_v52, %v3551_v45  ;;  %v3558_v1 = vmul.f32 %v4805_v50, %v3557_v0 }
 0xf4a   : >> { %v3566_v53 = vmul.f32 %v3555_v15, %v3532_v29 }
 0xf4b   : >> { %v3559_v56 = vmul.f32 0.5, %v3558_v1 }
 0xf4c   : >> { %v3569_v36 = vmul.f32 %v3568_v27, %v3566_v53 }
 0xf4d   : >> { %v3560_v22 = vsub.f32 1.5, %v3559_v56 }
 0xf4e   : >> { %v3572_v61 = vadd.f32 %v3571_v25, %v3569_v36  }
 0xf4f   : >> { %v3561_v7 = vmul.f32 %v4805_v50, %v3560_v22 }
 0xf50   : > { %3575 = vst.msk [vmem:[%s5116_s19] sm:$0xff] (%p523_p7), %vm761_vm6, %v3572_v61 }
 0xf51   : >> { %v3565_v19 = vsel %vm3564_vm11, %v4805_v50, %v3561_v7  ;;  %v6327_v7 = vmov %v3572_v61 }
 0xf52   : >> { %v3567_v42 = vmul.f32 %v3565_v19, %v3533_v63 }
 0xf54   : >> { %v3570_v24 = vmul.f32 %v3568_v27, %v3567_v42  ;;  %525 = sbr.rel (!%p523_p7) target bundleno = 45 (0x2d), region = 130 }
 0xf56   : >> { %v3573_v30 = vadd.f32 %v3571_v25, %v3570_v24  }
 0xf58   : >> { %v6326_v9 = vmov %v3573_v30  ;;  %3576 = vst.msk [vmem:[%s5116_s19 + $0x8] sm:$0xff] (%p523_p7), %vm761_vm6, %v3573_v30 }
 0xf59 PF: > { %s24_s17 = sadd.s32 1, %s4959_s17  }
 0xf5a   : > { %p21_p8 = scmp.ge.s32.totalorder %s24_s17, 4  }
 0xf5c   :  { %23 = sbr.rel (!%p21_p8) target bundleno = 5 (0x5), region = 141 }
 0xf61   :  { %3598 = vsyncpa [#allocation3], 1 }
 0xf62   :  { %3600 = vsyncpa [#allocation3 + $0x1], 1 }
 0xf63   :  { %3601 = vsyncpa [#allocation5], 1 }
 0xf64   :  { %3602 = vsyncpa [#allocation8], 1 }

</bundles_post_ra>
